<compile_context>
chip_gen: v7x
topology: tpu7x:2x2x1
jax: 0.10.0
libtpu: 0.0.40
codegen_flags: <defaults>
</compile_context>

<pallas_src>
import functools
import math

import jax
import jax.numpy as jnp
from jax.experimental import pallas as pl
from jax.experimental.pallas import tpu as pltpu

EDGE_NF = 2            # [current radial, initial radial]
NORM_FACTOR = 100.0    # unsorted_segment_sum 'sum' normalization
VMEM_LIMIT = 32 * 1024 * 1024

# per-node feature columns packed into `feats`
_F_NODE, _F_LINKER, _F_LIGAND, _F_POCKET, _F_BATCH, _F_IDX = range(6)
_NFEAT = 6


def _round_up(v, k):
    return ((v + k - 1) // k) * k


def _pick_tm(mp, cap):
    """Largest multiple of 8 <= cap that divides mp; prefer a grid length >= 2."""
    cap = max(8, (min(cap, mp) // 8) * 8)
    tm = 8
    t = cap
    while t >= 8:
        if mp % t == 0:
            tm = t
            break
        t -= 8
    if mp // tm < 2:                       # keep >=2 grid steps (v7x megacore)
        t = ((tm // 2) // 8) * 8
        while t >= 8:
            if mp % t == 0:
                tm = t
                break
            t -= 8
    return tm


def _tiling(m):
    """Choose (padded M, source tile TM, target chunk TC) for a VMEM budget."""
    m8 = _round_up(m, 8)
    if m8 <= 512:
        mp, tc = m8, m8
    else:
        mp = _round_up(m8, 512)
        tc = 512
    # keep ~8 live (tm, tc, 128-lane) f32 slabs under ~16 MiB
    cap = max(8, min(128, ((4096 // tc) // 8) * 8))
    tm = _pick_tm(mp, cap)
    return mp, tm, tc


# ----------------------------------------------------------------------------
# In-kernel helpers
# ----------------------------------------------------------------------------
def _silu(x):
    # x * sigmoid(x); exp -> EUP, approx reciprocal -> EUP (no VPU divide).
    e = jnp.exp(-jnp.clip(x, -30.0, 30.0))
    return x * pl.reciprocal(1.0 + e, approx=True)


def _pair_geometry(xs, xt, x0s, x0t, fs, ft, cutoff2):
    """Pairwise geometry + adjacency for a (tm source) x (tc target) chunk.

    Returns rad (tm,tc,1) current squared distance, rad0 (tm,tc,1) initial
    squared distance, diff (tm,tc,3) = x_i - x_j (current), adj (tm,tc,1) f32.
    """
    diff = xs[:, None, :] - xt[None, :, :]                    # (tm, tc, 3)
    rad = jnp.sum(diff * diff, axis=-1, keepdims=True)        # (tm, tc, 1)
    d0 = x0s[:, None, :] - x0t[None, :, :]
    rad0 = jnp.sum(d0 * d0, axis=-1, keepdims=True)

    def ci(k):                                                # (tm, 1, 1)
        return fs[:, k:k + 1][:, :, None]

    def cj(k):                                                # (1, tc, 1)
        return ft[:, k:k + 1][None, :, :]

    node = (ci(_F_NODE) > 0.5) & (cj(_F_NODE) > 0.5)
    same_batch = jnp.abs(ci(_F_BATCH) - cj(_F_BATCH)) < 0.5
    not_self = jnp.abs(ci(_F_IDX) - cj(_F_IDX)) > 0.5
    lig_i, lig_j = ci(_F_LIGAND) > 0.5, cj(_F_LIGAND) > 0.5
    poc_i, poc_j = ci(_F_POCKET) > 0.5, cj(_F_POCKET) > 0.5
    lig_lig = lig_i & lig_j
    poc_poc = poc_i & poc_j & (rad0 <= 16.0)                  # cdist <= 4 A
    lig_poc = ((lig_i & poc_j) | (poc_i & lig_j)) & (rad0 <= cutoff2)
    adj = node & same_batch & not_self & (lig_lig | poc_poc | lig_poc)
    return rad, rad0, diff, adj.astype(jnp.float32)


def _edge_mlp(s, h_t, rad, rad0, w1t, w1e, w2, b2):
    """silu(Linear(silu(W1s h_i + W1t h_j + W1e e_ij + b1))) for a whole chunk.

    s: (tm, H) precomputed h_s @ W1s + b1.  Returns (tm, tc, H).
    """
    t = jnp.dot(h_t, w1t, preferred_element_type=jnp.float32)           # (tc, H)
    # K=2 edge contraction as a VPU outer product (no padded MXU pass).
    e = rad * w1e[0:1, :][None, :, :] + rad0 * w1e[1:2, :][None, :, :]  # (tm,tc,H)
    m1 = _silu(s[:, None, :] + t[None, :, :] + e)                       # (tm,tc,H)
    tm_, tc_, hh = m1.shape
    m2 = jnp.dot(m1.reshape(tm_ * tc_, hh), w2,
                 preferred_element_type=jnp.float32).reshape(tm_, tc_, hh)
    return _silu(m2 + b2[None, :, :])


# ----------------------------------------------------------------------------
# Fused GCL: coord2diff + adjacency + edge MLP + segment sum + node MLP
# ----------------------------------------------------------------------------
def _gcl_kernel(hs_ref, ht_ref, xs_ref, xt_ref, x0s_ref, x0t_ref,
                fs_ref, ft_ref,
                w1s_ref, w1t_ref, w1e_ref, b1_ref, w2_ref, b2_ref,
                w1h_ref, w1a_ref, b1n_ref, w2n_ref, b2n_ref,
                o_ref, *, tc, n_chunks, cutoff2, inv_norm):
    hs = hs_ref[...]                               # (tm, H)
    xs = xs_ref[...]                               # (tm, 3)
    x0s = x0s_ref[...]
    fs = fs_ref[...]                               # (tm, F)
    w1t = w1t_ref[...]
    w1e = w1e_ref[...]
    w2 = w2_ref[...]
    b2 = b2_ref[...]
    s = jnp.dot(hs, w1s_ref[...], preferred_element_type=jnp.float32) + b1_ref[...]

    tm_, hh = hs.shape
    agg = jnp.zeros((tm_, hh), jnp.float32)
    for c in range(n_chunks):                      # static chunk loop over targets
        sl = pl.ds(c * tc, tc)
        ht = ht_ref[sl, :]
        xt = xt_ref[sl, :]
        x0t = x0t_ref[sl, :]
        ft = ft_ref[sl, :]
        rad, rad0, _, adj = _pair_geometry(xs, xt, x0s, x0t, fs, ft, cutoff2)
        mij = _edge_mlp(s, ht, rad, rad0, w1t, w1e, w2, b2)   # (tm, tc, H)
        agg = agg + jnp.sum(mij * adj, axis=1)                # masked segment sum
    agg = agg * inv_norm

    # node model: h = (h + Linear(SiLU(Linear([h, agg])))) * node_mask
    mid = _silu(jnp.dot(hs, w1h_ref[...], preferred_element_type=jnp.float32) +
                jnp.dot(agg, w1a_ref[...], preferred_element_type=jnp.float32) +
                b1n_ref[...])
    out = hs + jnp.dot(mid, w2n_ref[...], preferred_element_type=jnp.float32) + b2n_ref[...]
    o_ref[...] = out * fs[:, _F_NODE:_F_NODE + 1]


def fused_gcl(h, x, x0, feats, p, *, tm, tc, cutoff2):
    mp, hidden = h.shape
    fdim = feats.shape[1]
    n_chunks = mp // tc
    kernel = functools.partial(_gcl_kernel, tc=tc, n_chunks=n_chunks,
                               cutoff2=cutoff2, inv_norm=1.0 / NORM_FACTOR)
    tile = lambda i: (i, 0)
    full = lambda i: (0, 0)
    e, n = p['edge'], p['node']
    return pl.pallas_call(
        kernel,
        out_shape=jax.ShapeDtypeStruct((mp, hidden), jnp.float32),
        grid_spec=pltpu.PrefetchScalarGridSpec(
            num_scalar_prefetch=0, grid=(mp // tm,),
            in_specs=[pl.BlockSpec((tm, hidden), tile),
                      pl.BlockSpec((mp, hidden), full),
                      pl.BlockSpec((tm, 3), tile),
                      pl.BlockSpec((mp, 3), full),
                      pl.BlockSpec((tm, 3), tile),
                      pl.BlockSpec((mp, 3), full),
                      pl.BlockSpec((tm, fdim), tile),
                      pl.BlockSpec((mp, fdim), full),
                      pl.BlockSpec((hidden, hidden), full),
                      pl.BlockSpec((hidden, hidden), full),
                      pl.BlockSpec((EDGE_NF, hidden), full),
                      pl.BlockSpec((1, hidden), full),
                      pl.BlockSpec((hidden, hidden), full),
                      pl.BlockSpec((1, hidden), full),
                      pl.BlockSpec((hidden, hidden), full),
                      pl.BlockSpec((hidden, hidden), full),
                      pl.BlockSpec((1, hidden), full),
                      pl.BlockSpec((hidden, hidden), full),
                      pl.BlockSpec((1, hidden), full)],
            out_specs=pl.BlockSpec((tm, hidden), tile)),
        compiler_params=pltpu.CompilerParams(
            dimension_semantics=("parallel",), vmem_limit_bytes=VMEM_LIMIT),
    )(h, h, x, x, x0, x0, feats, feats,
      e['w1s'], e['w1t'], e['w1e'], e['b1'], e['w2'], e['b2'],
      n['w1h'], n['w1a'], n['b1'], n['w2'], n['b2'])


# ----------------------------------------------------------------------------
# Fused EquivariantUpdate: coord2diff + adjacency + coord MLP + segment sum
# ----------------------------------------------------------------------------
def _coord_kernel(hs_ref, ht_ref, xs_ref, xt_ref, x0s_ref, x0t_ref,
                  fs_ref, ft_ref,
                  w1s_ref, w1t_ref, w1e_ref, b1_ref, w2_ref, b2_ref, w3_ref,
                  o_ref, *, tc, n_chunks, cutoff2, inv_norm):
    hs = hs_ref[...]
    xs = xs_ref[...]
    x0s = x0s_ref[...]
    fs = fs_ref[...]
    w1t = w1t_ref[...]
    w1e = w1e_ref[...]
    w2 = w2_ref[...]
    b2 = b2_ref[...]
    w3 = w3_ref[...]                                            # (1, H)
    s = jnp.dot(hs, w1s_ref[...], preferred_element_type=jnp.float32) + b1_ref[...]

    tm_ = hs.shape[0]
    agg = jnp.zeros((tm_, 3), jnp.float32)
    for c in range(n_chunks):
        sl = pl.ds(c * tc, tc)
        ht = ht_ref[sl, :]
        xt = xt_ref[sl, :]
        x0t = x0t_ref[sl, :]
        ft = ft_ref[sl, :]
        rad, rad0, diff, adj = _pair_geometry(xs, xt, x0s, x0t, fs, ft, cutoff2)
        m2 = _edge_mlp(s, ht, rad, rad0, w1t, w1e, w2, b2)      # (tm, tc, H)
        phi = jnp.sum(m2 * w3[None, :, :], axis=-1, keepdims=True)  # (tm, tc, 1)
        inv_n = jax.lax.rsqrt(rad + 1e-8)                       # norm_constant = 0
        trans = diff * (inv_n * phi * adj)                      # (tm, tc, 3)
        agg = agg + jnp.sum(trans, axis=1)
    agg = agg * inv_norm

    lnk = fs[:, _F_LINKER:_F_LINKER + 1]
    nmk = fs[:, _F_NODE:_F_NODE + 1]
    o_ref[...] = (xs + agg * lnk) * nmk


def fused_coord_update(h, x, x0, feats, p, *, tm, tc, cutoff2):
    mp, hidden = h.shape
    fdim = feats.shape[1]
    n_chunks = mp // tc
    kernel = functools.partial(_coord_kernel, tc=tc, n_chunks=n_chunks,
                               cutoff2=cutoff2, inv_norm=1.0 / NORM_FACTOR)
    tile = lambda i: (i, 0)
    full = lambda i: (0, 0)
    return pl.pallas_call(
        kernel,
        out_shape=jax.ShapeDtypeStruct((mp, 3), jnp.float32),
        grid_spec=pltpu.PrefetchScalarGridSpec(
            num_scalar_prefetch=0, grid=(mp // tm,),
            in_specs=[pl.BlockSpec((tm, hidden), tile),
                      pl.BlockSpec((mp, hidden), full),
                      pl.BlockSpec((tm, 3), tile),
                      pl.BlockSpec((mp, 3), full),
                      pl.BlockSpec((tm, 3), tile),
                      pl.BlockSpec((mp, 3), full),
                      pl.BlockSpec((tm, fdim), tile),
                      pl.BlockSpec((mp, fdim), full),
                      pl.BlockSpec((hidden, hidden), full),
                      pl.BlockSpec((hidden, hidden), full),
                      pl.BlockSpec((EDGE_NF, hidden), full),
                      pl.BlockSpec((1, hidden), full),
                      pl.BlockSpec((hidden, hidden), full),
                      pl.BlockSpec((1, hidden), full),
                      pl.BlockSpec((1, hidden), full)],
            out_specs=pl.BlockSpec((tm, 3), tile)),
        compiler_params=pltpu.CompilerParams(
            dimension_semantics=("parallel",), vmem_limit_bytes=VMEM_LIMIT),
    )(h, h, x, x, x0, x0, feats, feats,
      p['w1s'], p['w1t'], p['w1e'], p['b1'], p['w2'], p['b2'],
      p['w3'].reshape(1, hidden))


# ----------------------------------------------------------------------------
# Plain linear (embedding / embedding_out)
# ----------------------------------------------------------------------------
def _linear_kernel(x_ref, w_ref, b_ref, o_ref):
    o_ref[...] = jnp.dot(x_ref[...], w_ref[...],
                         preferred_element_type=jnp.float32) + b_ref[...]


def linear(x, w, b, tm):
    mp, din = x.shape
    dout = w.shape[1]
    return pl.pallas_call(
        _linear_kernel,
        out_shape=jax.ShapeDtypeStruct((mp, dout), jnp.float32),
        grid_spec=pltpu.PrefetchScalarGridSpec(
            num_scalar_prefetch=0, grid=(mp // tm,),
            in_specs=[pl.BlockSpec((tm, din), lambda i: (i, 0)),
                      pl.BlockSpec((din, dout), lambda i: (0, 0)),
                      pl.BlockSpec((1, dout), lambda i: (0, 0))],
            out_specs=pl.BlockSpec((tm, dout), lambda i: (i, 0))),
        compiler_params=pltpu.CompilerParams(
            dimension_semantics=("parallel",), vmem_limit_bytes=VMEM_LIMIT),
    )(x, w, b)


# ----------------------------------------------------------------------------
# Full Pre_Dynamics forward (egnn_dynamics, attention=False, tanh=False,
# condition_time=True, centering=False, aggregation='sum', norm_factor=100)
# ----------------------------------------------------------------------------
def pre_dynamics_forward(params, t, xh, node_mask, linker_mask, edge_mask,
                         context, *, n_dims=3, context_nf=3, in_node_nf=5,
                         graph_type='FC-4A'):
    del edge_mask  # TODO(synk): original passes edge_mask (B*N*N,1) as the
    # "batch_mask" of get_dist_edges, which is shape-inconsistent with its own
    # per-node indexing; per-node batch ids (intended semantics) are used.
    bs, n_nodes = xh.shape[0], xh.shape[1]
    m = bs * n_nodes
    hidden = params['emb_w'].shape[1]

    node_f = node_mask.reshape(m, 1).astype(jnp.float32)
    linker_f = linker_mask.reshape(m, 1).astype(jnp.float32)
    frag_f = context[..., -2].reshape(m, 1).astype(jnp.float32)
    pocket_f = context[..., -1].reshape(m, 1).astype(jnp.float32)

    xh_f = xh.reshape(m, -1).astype(jnp.float32) * node_f
    x0 = xh_f[:, :n_dims]
    h = xh_f[:, n_dims:]

    # condition_time + context channels
    if t.size == 1:
        h_time = jnp.full((m, 1), jnp.reshape(t, ()).astype(jnp.float32))
    else:
        h_time = jnp.repeat(t.reshape(bs, 1).astype(jnp.float32),
                            n_nodes, axis=1).reshape(m, 1)
    h = jnp.concatenate(
        [h, h_time, context.reshape(m, context_nf).astype(jnp.float32)], axis=1)

    # per-node feature table for in-kernel adjacency (get_dist_edges, 'FC-4A')
    batch_ids = jnp.repeat(jnp.arange(bs, dtype=jnp.float32),
                           n_nodes).reshape(m, 1)
    idx = jnp.arange(m, dtype=jnp.float32).reshape(m, 1)
    ligand_f = jnp.clip(linker_f + frag_f, 0.0, 1.0) * node_f
    pocket_only = pocket_f * node_f
    feats = jnp.concatenate(
        [node_f, linker_f, ligand_f, pocket_only, batch_ids, idx], axis=1)

    # pad node rows to a tile multiple (padded rows: node_mask=0, batch=-1)
    mp, tm, tc = _tiling(m)
    pad = mp - m
    if pad:
        x0 = jnp.pad(x0, ((0, pad), (0, 0)))
        h = jnp.pad(h, ((0, pad), (0, 0)))
        fpad = jnp.zeros((pad, _NFEAT), jnp.float32)
        fpad = fpad.at[:, _F_BATCH].set(-1.0)
        fpad = fpad.at[:, _F_IDX].set(jnp.arange(m, mp, dtype=jnp.float32))
        feats = jnp.concatenate([feats, fpad], axis=0)
        node_fp = jnp.pad(node_f, ((0, pad), (0, 0)))
    else:
        node_fp = node_f

    cutoff2 = 16.0 if graph_type == 'FC-4A' else 100.0   # squared pocket-ligand cutoff

    # ----- EGNN -----
    h = linear(h, params['emb_w'], params['emb_b'], tm)
    x = x0
    for blk in params['blocks']:                         # EquivariantBlock
        for gcl in blk['gcls']:                          # GCL sublayers (fused)
            h = fused_gcl(h, x, x0, feats, gcl, tm=tm, tc=tc, cutoff2=cutoff2)
        x = fused_coord_update(h, x, x0, feats, blk['coord'],
                               tm=tm, tc=tc, cutoff2=cutoff2)
        h = h * node_fp
    h = linear(h, params['emb_out_w'], params['emb_out_b'], tm)
    h = h * node_fp

    vel = ((x - x0) * node_fp)[:m]
    h_final = h[:m, :in_node_nf]                         # strip context+time channels
    vel = vel.reshape(bs, n_nodes, n_dims)
    h_final = h_final.reshape(bs, n_nodes, -1)
    # centering=False; NaN-raise skipped (host-side exception)  # TODO(synk)
    # TODO(synk): very large M (>~4k nodes) would need a second grid axis over
    # target chunks with an accumulator instead of the in-kernel chunk loop.
    return jnp.concatenate([vel, h_final], axis=2)


# ----------------------------------------------------------------------------
# Deterministic parameter init (shapes from the PyTorch __init__)
# ----------------------------------------------------------------------------
def init_params(key, din, hidden, e_nf, n_layers, inv_sublayers):
    keys = iter(jax.random.split(key, 4096))

    def u(shape, bound):
        return jax.random.uniform(next(keys), shape, jnp.float32, -bound, bound)

    ie = 2 * hidden + e_nf
    params = {
        'emb_w': u((din, hidden), 1.0 / math.sqrt(din)),
        'emb_b': u((1, hidden), 1.0 / math.sqrt(din)),
        'emb_out_w': u((hidden, din), 1.0 / math.sqrt(hidden)),
        'emb_out_b': u((1, din), 1.0 / math.sqrt(hidden)),
        'blocks': [],
    }
    for _ in range(n_layers):
        gcls = []
        for _ in range(inv_sublayers):
            edge = {'w1s': u((hidden, hidden), 1.0 / math.sqrt(ie)),
                    'w1t': u((hidden, hidden), 1.0 / math.sqrt(ie)),
                    'w1e': u((e_nf, hidden), 1.0 / math.sqrt(ie)),
                    'b1': u((1, hidden), 1.0 / math.sqrt(ie)),
                    'w2': u((hidden, hidden), 1.0 / math.sqrt(hidden)),
                    'b2': u((1, hidden), 1.0 / math.sqrt(hidden))}
            node = {'w1h': u((hidden, hidden), 1.0 / math.sqrt(2 * hidden)),
                    'w1a': u((hidden, hidden), 1.0 / math.sqrt(2 * hidden)),
                    'b1': u((1, hidden), 1.0 / math.sqrt(2 * hidden)),
                    'w2': u((hidden, hidden), 1.0 / math.sqrt(hidden)),
                    'b2': u((1, hidden), 1.0 / math.sqrt(hidden))}
            gcls.append({'edge': edge, 'node': node})
        coord = {'w1s': u((hidden, hidden), 1.0 / math.sqrt(ie)),
                 'w1t': u((hidden, hidden), 1.0 / math.sqrt(ie)),
                 'w1e': u((e_nf, hidden), 1.0 / math.sqrt(ie)),
                 'b1': u((1, hidden), 1.0 / math.sqrt(ie)),
                 'w2': u((hidden, hidden), 1.0 / math.sqrt(hidden)),
                 'b2': u((1, hidden), 1.0 / math.sqrt(hidden)),
                 'w3': u((hidden, 1), 0.001)}   # xavier_uniform gain=0.001 (tiny)
        params['blocks'].append({'gcls': gcls, 'coord': coord})
    return params


if __name__ == "__main__":
    B, N, ND, NF, C, H = 2, 8, 3, 5, 3, 32      # batch, nodes, dims, node nf, context nf, hidden
    N_LAYERS, INV_SUBLAYERS = 2, 2

    key = jax.random.PRNGKey(0)
    k1, k2, k3 = jax.random.split(key, 3)

    xh = jax.random.normal(k1, (B, N, ND + NF), jnp.float32)
    node_mask = jnp.ones((B, N, 1), jnp.float32)
    frag = jnp.array([1, 1, 1, 0, 0, 0, 0, 0], jnp.float32)
    link = jnp.array([0, 0, 0, 1, 1, 0, 0, 0], jnp.float32)
    pock = jnp.array([0, 0, 0, 0, 0, 1, 1, 1], jnp.float32)
    linker_mask = jnp.tile(link.reshape(1, N, 1), (B, 1, 1))
    ctx_feat = jax.random.normal(k2, (B, N, 1), jnp.float32)
    context = jnp.concatenate([ctx_feat,
                               jnp.tile(frag.reshape(1, N, 1), (B, 1, 1)),
                               jnp.tile(pock.reshape(1, N, 1), (B, 1, 1))], axis=-1)
    edge_mask = jnp.ones((B * N * N, 1), jnp.float32)
    t = jnp.array([0.25, 0.75], jnp.float32)

    params = init_params(k3, NF + C + 1, H, EDGE_NF,
                         n_layers=N_LAYERS, inv_sublayers=INV_SUBLAYERS)

    fwd = jax.jit(functools.partial(pre_dynamics_forward,
                                    n_dims=ND, context_nf=C, in_node_nf=NF))
    out = fwd(params, t, xh, node_mask, linker_mask, edge_mask, context)
    jax.block_until_ready(out)
    assert out.shape == (B, N, ND + NF), out.shape
    assert bool(jnp.all(jnp.isfinite(out)))
    print("KERNEL_OK")
</pallas_src>

<mosaic_0001>
module attributes {stable_mosaic.version = 11 : i64} {
  func.func @_linear_kernel(%arg0: i32, %arg1: memref<8x9xf32, #tpu.memory_space<vmem>>, %arg2: memref<9x32xf32, #tpu.memory_space<vmem>>, %arg3: memref<1x32xf32, #tpu.memory_space<vmem>>, %arg4: memref<8x32xf32, #tpu.memory_space<vmem>>) attributes {dimension_semantics = [#tpu.dimension_semantics<parallel>], iteration_bounds = array<i64: 2>, scalar_prefetch = 0 : i64, scratch_operands = 0 : i64, tpu.core_type = #tpu.core_type<tc>, window_params = [{transform_indices = @transform_0, window_bounds = array<i64: 8, 9>}, {pipeline_mode = #tpu.pipeline_mode<synchronous>, transform_indices = @transform_1, window_bounds = array<i64: 9, 32>}, {pipeline_mode = #tpu.pipeline_mode<synchronous>, transform_indices = @transform_2, window_bounds = array<i64: 1, 32>}, {transform_indices = @transform_3, window_bounds = array<i64: 8, 32>}]} {
    %c0 = arith.constant 0 : index
    %c0_0 = arith.constant 0 : index
    %0 = vector.load %arg1[%c0, %c0_0] : memref<8x9xf32, #tpu.memory_space<vmem>>, vector<8x9xf32>
    %c0_1 = arith.constant 0 : index
    %c0_2 = arith.constant 0 : index
    %1 = vector.load %arg2[%c0_1, %c0_2] : memref<9x32xf32, #tpu.memory_space<vmem>>, vector<9x32xf32>
    %cst = arith.constant dense<0.000000e+00> : vector<8x32xf32>
    %2 = tpu.matmul %0, %1, %cst {dimension_numbers = #tpu.dot_dimension_numbers<[1], [0], [0], [1], [0, 0, 1, 1], [], []>} : vector<8x9xf32>, vector<9x32xf32>, vector<8x32xf32> -> vector<8x32xf32>
    %c0_3 = arith.constant 0 : index
    %c0_4 = arith.constant 0 : index
    %3 = vector.load %arg3[%c0_3, %c0_4] : memref<1x32xf32, #tpu.memory_space<vmem>>, vector<1x32xf32>
    %4 = vector.broadcast %3 : vector<1x32xf32> to vector<8x32xf32>
    %5 = arith.addf %2, %4 : vector<8x32xf32>
    %c0_5 = arith.constant 0 : index
    %c0_6 = arith.constant 0 : index
    %6 = vector.load %arg4[%c0_5, %c0_6] : memref<8x32xf32, #tpu.memory_space<vmem>>, vector<8x32xf32>
    tpu.vector_store %arg4[%c0_5, %c0_6], %5 {strides = array<i32>} : memref<8x32xf32, #tpu.memory_space<vmem>>, vector<8x32xf32>,
    return
  }
  func.func @transform_0(%arg0: i32) -> (i32, i32) {
    %c0_i32 = arith.constant 0 : i32
    %c0_i32_0 = arith.constant 0 : i32
    return %arg0, %c0_i32 : i32, i32
  }
  func.func @transform_1(%arg0: i32) -> (i32, i32) {
    %c0_i32 = arith.constant 0 : i32
    %c0_i32_0 = arith.constant 0 : i32
    %c0_i32_1 = arith.constant 0 : i32
    return %c0_i32, %c0_i32_0 : i32, i32
  }
  func.func @transform_2(%arg0: i32) -> (i32, i32) {
    %c0_i32 = arith.constant 0 : i32
    %c0_i32_0 = arith.constant 0 : i32
    %c0_i32_1 = arith.constant 0 : i32
    return %c0_i32, %c0_i32_0 : i32, i32
  }
  func.func @transform_3(%arg0: i32) -> (i32, i32) {
    %c0_i32 = arith.constant 0 : i32
    %c0_i32_0 = arith.constant 0 : i32
    return %arg0, %c0_i32 : i32, i32
  }
}

module attributes {stable_mosaic.version = 11 : i64} {
  func.func @_coord_kernel(%arg0: i32, %arg1: memref<8x32xf32, #tpu.memory_space<vmem>>, %arg2: memref<16x32xf32, #tpu.memory_space<vmem>>, %arg3: memref<8x3xf32, #tpu.memory_space<vmem>>, %arg4: memref<16x3xf32, #tpu.memory_space<vmem>>, %arg5: memref<8x3xf32, #tpu.memory_space<vmem>>, %arg6: memref<16x3xf32, #tpu.memory_space<vmem>>, %arg7: memref<8x6xf32, #tpu.memory_space<vmem>>, %arg8: memref<16x6xf32, #tpu.memory_space<vmem>>, %arg9: memref<32x32xf32, #tpu.memory_space<vmem>>, %arg10: memref<32x32xf32, #tpu.memory_space<vmem>>, %arg11: memref<2x32xf32, #tpu.memory_space<vmem>>, %arg12: memref<1x32xf32, #tpu.memory_space<vmem>>, %arg13: memref<32x32xf32, #tpu.memory_space<vmem>>, %arg14: memref<1x32xf32, #tpu.memory_space<vmem>>, %arg15: memref<1x32xf32, #tpu.memory_space<vmem>>, %arg16: memref<8x3xf32, #tpu.memory_space<vmem>>) attributes {dimension_semantics = [#tpu.dimension_semantics<parallel>], iteration_bounds = array<i64: 2>, scalar_prefetch = 0 : i64, scratch_operands = 0 : i64, tpu.core_type = #tpu.core_type<tc>, window_params = [{transform_indices = @transform_0, window_bounds = array<i64: 8, 32>}, {pipeline_mode = #tpu.pipeline_mode<synchronous>, transform_indices = @transform_1, window_bounds = array<i64: 16, 32>}, {transform_indices = @transform_2, window_bounds = array<i64: 8, 3>}, {pipeline_mode = #tpu.pipeline_mode<synchronous>, transform_indices = @transform_3, window_bounds = array<i64: 16, 3>}, {transform_indices = @transform_4, window_bounds = array<i64: 8, 3>}, {pipeline_mode = #tpu.pipeline_mode<synchronous>, transform_indices = @transform_5, window_bounds = array<i64: 16, 3>}, {transform_indices = @transform_6, window_bounds = array<i64: 8, 6>}, {pipeline_mode = #tpu.pipeline_mode<synchronous>, transform_indices = @transform_7, window_bounds = array<i64: 16, 6>}, {pipeline_mode = #tpu.pipeline_mode<synchronous>, transform_indices = @transform_8, window_bounds = array<i64: 32, 32>}, {pipeline_mode = #tpu.pipeline_mode<synchronous>, transform_indices = @transform_9, window_bounds = array<i64: 32, 32>}, {pipeline_mode = #tpu.pipeline_mode<synchronous>, transform_indices = @transform_10, window_bounds = array<i64: 2, 32>}, {pipeline_mode = #tpu.pipeline_mode<synchronous>, transform_indices = @transform_11, window_bounds = array<i64: 1, 32>}, {pipeline_mode = #tpu.pipeline_mode<synchronous>, transform_indices = @transform_12, window_bounds = array<i64: 32, 32>}, {pipeline_mode = #tpu.pipeline_mode<synchronous>, transform_indices = @transform_13, window_bounds = array<i64: 1, 32>}, {pipeline_mode = #tpu.pipeline_mode<synchronous>, transform_indices = @transform_14, window_bounds = array<i64: 1, 32>}, {transform_indices = @transform_15, window_bounds = array<i64: 8, 3>}]} {
    %c0 = arith.constant 0 : index
    %c0_0 = arith.constant 0 : index
    %0 = vector.load %arg1[%c0, %c0_0] : memref<8x32xf32, #tpu.memory_space<vmem>>, vector<8x32xf32>
    %c0_1 = arith.constant 0 : index
    %c0_2 = arith.constant 0 : index
    %1 = vector.load %arg3[%c0_1, %c0_2] : memref<8x3xf32, #tpu.memory_space<vmem>>, vector<8x3xf32>
    %c0_3 = arith.constant 0 : index
    %c0_4 = arith.constant 0 : index
    %2 = vector.load %arg5[%c0_3, %c0_4] : memref<8x3xf32, #tpu.memory_space<vmem>>, vector<8x3xf32>
    %c0_5 = arith.constant 0 : index
    %c0_6 = arith.constant 0 : index
    %3 = vector.load %arg7[%c0_5, %c0_6] : memref<8x6xf32, #tpu.memory_space<vmem>>, vector<8x6xf32>
    %c0_7 = arith.constant 0 : index
    %c0_8 = arith.constant 0 : index
    %4 = vector.load %arg10[%c0_7, %c0_8] : memref<32x32xf32, #tpu.memory_space<vmem>>, vector<32x32xf32>
    %c0_9 = arith.constant 0 : index
    %c0_10 = arith.constant 0 : index
    %5 = vector.load %arg11[%c0_9, %c0_10] : memref<2x32xf32, #tpu.memory_space<vmem>>, vector<2x32xf32>
    %c0_11 = arith.constant 0 : index
    %c0_12 = arith.constant 0 : index
    %6 = vector.load %arg13[%c0_11, %c0_12] : memref<32x32xf32, #tpu.memory_space<vmem>>, vector<32x32xf32>
    %c0_13 = arith.constant 0 : index
    %c0_14 = arith.constant 0 : index
    %7 = vector.load %arg14[%c0_13, %c0_14] : memref<1x32xf32, #tpu.memory_space<vmem>>, vector<1x32xf32>
    %c0_15 = arith.constant 0 : index
    %c0_16 = arith.constant 0 : index
    %8 = vector.load %arg15[%c0_15, %c0_16] : memref<1x32xf32, #tpu.memory_space<vmem>>, vector<1x32xf32>
    %c0_17 = arith.constant 0 : index
    %c0_18 = arith.constant 0 : index
    %9 = vector.load %arg9[%c0_17, %c0_18] : memref<32x32xf32, #tpu.memory_space<vmem>>, vector<32x32xf32>
    %cst = arith.constant dense<0.000000e+00> : vector<8x32xf32>
    %10 = tpu.matmul %0, %9, %cst {dimension_numbers = #tpu.dot_dimension_numbers<[1], [0], [0], [1], [0, 0, 1, 1], [], []>} : vector<8x32xf32>, vector<32x32xf32>, vector<8x32xf32> -> vector<8x32xf32>
    %c0_19 = arith.constant 0 : index
    %c0_20 = arith.constant 0 : index
    %11 = vector.load %arg12[%c0_19, %c0_20] : memref<1x32xf32, #tpu.memory_space<vmem>>, vector<1x32xf32>
    %12 = vector.broadcast %11 : vector<1x32xf32> to vector<8x32xf32>
    %13 = arith.addf %10, %12 : vector<8x32xf32>
    %cst_21 = arith.constant 0.000000e+00 : f32
    %14 = vector.broadcast %cst_21 : f32 to vector<8x3xf32>
    %c0_22 = arith.constant 0 : index
    %c0_23 = arith.constant 0 : index
    %15 = vector.load %arg2[%c0_22, %c0_23] : memref<16x32xf32, #tpu.memory_space<vmem>>, vector<16x32xf32>
    %c0_24 = arith.constant 0 : index
    %c0_25 = arith.constant 0 : index
    %16 = vector.load %arg4[%c0_24, %c0_25] : memref<16x3xf32, #tpu.memory_space<vmem>>, vector<16x3xf32>
    %c0_26 = arith.constant 0 : index
    %c0_27 = arith.constant 0 : index
    %17 = vector.load %arg6[%c0_26, %c0_27] : memref<16x3xf32, #tpu.memory_space<vmem>>, vector<16x3xf32>
    %c0_28 = arith.constant 0 : index
    %c0_29 = arith.constant 0 : index
    %18 = vector.load %arg8[%c0_28, %c0_29] : memref<16x6xf32, #tpu.memory_space<vmem>>, vector<16x6xf32>
    %19 = vector.shape_cast %1 : vector<8x3xf32> to vector<8x1x3xf32>
    %20 = vector.shape_cast %16 : vector<16x3xf32> to vector<1x16x3xf32>
    %21 = vector.broadcast %19 : vector<8x1x3xf32> to vector<8x16x3xf32>
    %22 = vector.broadcast %20 : vector<1x16x3xf32> to vector<8x16x3xf32>
    %23 = arith.subf %21, %22 : vector<8x16x3xf32>
    %24 = arith.mulf %23, %23 : vector<8x16x3xf32>
    %cst_30 = arith.constant dense<0.000000e+00> : vector<8x16xf32>
    %25 = vector.multi_reduction <add>, %24, %cst_30 [2] : vector<8x16x3xf32> to vector<8x16xf32>
    %26 = vector.shape_cast %25 : vector<8x16xf32> to vector<8x16x1xf32>
    %27 = vector.shape_cast %2 : vector<8x3xf32> to vector<8x1x3xf32>
    %28 = vector.shape_cast %17 : vector<16x3xf32> to vector<1x16x3xf32>
    %29 = vector.broadcast %27 : vector<8x1x3xf32> to vector<8x16x3xf32>
    %30 = vector.broadcast %28 : vector<1x16x3xf32> to vector<8x16x3xf32>
    %31 = arith.subf %29, %30 : vector<8x16x3xf32>
    %32 = arith.mulf %31, %31 : vector<8x16x3xf32>
    %cst_31 = arith.constant dense<0.000000e+00> : vector<8x16xf32>
    %33 = vector.multi_reduction <add>, %32, %cst_31 [2] : vector<8x16x3xf32> to vector<8x16xf32>
    %34 = vector.shape_cast %33 : vector<8x16xf32> to vector<8x16x1xf32>
    %35 = vector.extract_strided_slice %3 {offsets = [0, 0], sizes = [8, 1], strides = [1, 1]} : vector<8x6xf32> to vector<8x1xf32>
    %36 = vector.shape_cast %35 : vector<8x1xf32> to vector<8x1x1xf32>
    %cst_32 = arith.constant 5.000000e-01 : f32
    %37 = vector.broadcast %cst_32 : f32 to vector<8x1x1xf32>
    %38 = arith.cmpf ogt, %36, %37 : vector<8x1x1xf32>
    %39 = vector.extract_strided_slice %18 {offsets = [0, 0], sizes = [16, 1], strides = [1, 1]} : vector<16x6xf32> to vector<16x1xf32>
    %40 = vector.shape_cast %39 : vector<16x1xf32> to vector<1x16x1xf32>
    %cst_33 = arith.constant 5.000000e-01 : f32
    %41 = vector.broadcast %cst_33 : f32 to vector<1x16x1xf32>
    %42 = arith.cmpf ogt, %40, %41 : vector<1x16x1xf32>
    %43 = vector.broadcast %38 : vector<8x1x1xi1> to vector<8x16x1xi1>
    %44 = vector.broadcast %42 : vector<1x16x1xi1> to vector<8x16x1xi1>
    %45 = arith.andi %43, %44 : vector<8x16x1xi1>
    %46 = vector.extract_strided_slice %3 {offsets = [0, 4], sizes = [8, 1], strides = [1, 1]} : vector<8x6xf32> to vector<8x1xf32>
    %47 = vector.shape_cast %46 : vector<8x1xf32> to vector<8x1x1xf32>
    %48 = vector.extract_strided_slice %18 {offsets = [0, 4], sizes = [16, 1], strides = [1, 1]} : vector<16x6xf32> to vector<16x1xf32>
    %49 = vector.shape_cast %48 : vector<16x1xf32> to vector<1x16x1xf32>
    %50 = vector.broadcast %47 : vector<8x1x1xf32> to vector<8x16x1xf32>
    %51 = vector.broadcast %49 : vector<1x16x1xf32> to vector<8x16x1xf32>
    %52 = arith.subf %50, %51 : vector<8x16x1xf32>
    %53 = math.absf %52 : vector<8x16x1xf32>
    %cst_34 = arith.constant 5.000000e-01 : f32
    %54 = vector.broadcast %cst_34 : f32 to vector<8x16x1xf32>
    %55 = arith.cmpf olt, %53, %54 : vector<8x16x1xf32>
    %56 = vector.extract_strided_slice %3 {offsets = [0, 5], sizes = [8, 1], strides = [1, 1]} : vector<8x6xf32> to vector<8x1xf32>
    %57 = vector.shape_cast %56 : vector<8x1xf32> to vector<8x1x1xf32>
    %58 = vector.extract_strided_slice %18 {offsets = [0, 5], sizes = [16, 1], strides = [1, 1]} : vector<16x6xf32> to vector<16x1xf32>
    %59 = vector.shape_cast %58 : vector<16x1xf32> to vector<1x16x1xf32>
    %60 = vector.broadcast %57 : vector<8x1x1xf32> to vector<8x16x1xf32>
    %61 = vector.broadcast %59 : vector<1x16x1xf32> to vector<8x16x1xf32>
    %62 = arith.subf %60, %61 : vector<8x16x1xf32>
    %63 = math.absf %62 : vector<8x16x1xf32>
    %cst_35 = arith.constant 5.000000e-01 : f32
    %64 = vector.broadcast %cst_35 : f32 to vector<8x16x1xf32>
    %65 = arith.cmpf ogt, %63, %64 : vector<8x16x1xf32>
    %66 = vector.extract_strided_slice %3 {offsets = [0, 2], sizes = [8, 1], strides = [1, 1]} : vector<8x6xf32> to vector<8x1xf32>
    %67 = vector.shape_cast %66 : vector<8x1xf32> to vector<8x1x1xf32>
    %cst_36 = arith.constant 5.000000e-01 : f32
    %68 = vector.broadcast %cst_36 : f32 to vector<8x1x1xf32>
    %69 = arith.cmpf ogt, %67, %68 : vector<8x1x1xf32>
    %70 = vector.extract_strided_slice %18 {offsets = [0, 2], sizes = [16, 1], strides = [1, 1]} : vector<16x6xf32> to vector<16x1xf32>
    %71 = vector.shape_cast %70 : vector<16x1xf32> to vector<1x16x1xf32>
    %cst_37 = arith.constant 5.000000e-01 : f32
    %72 = vector.broadcast %cst_37 : f32 to vector<1x16x1xf32>
    %73 = arith.cmpf ogt, %71, %72 : vector<1x16x1xf32>
    %74 = vector.extract_strided_slice %3 {offsets = [0, 3], sizes = [8, 1], strides = [1, 1]} : vector<8x6xf32> to vector<8x1xf32>
    %75 = vector.shape_cast %74 : vector<8x1xf32> to vector<8x1x1xf32>
    %cst_38 = arith.constant 5.000000e-01 : f32
    %76 = vector.broadcast %cst_38 : f32 to vector<8x1x1xf32>
    %77 = arith.cmpf ogt, %75, %76 : vector<8x1x1xf32>
    %78 = vector.extract_strided_slice %18 {offsets = [0, 3], sizes = [16, 1], strides = [1, 1]} : vector<16x6xf32> to vector<16x1xf32>
    %79 = vector.shape_cast %78 : vector<16x1xf32> to vector<1x16x1xf32>
    %cst_39 = arith.constant 5.000000e-01 : f32
    %80 = vector.broadcast %cst_39 : f32 to vector<1x16x1xf32>
    %81 = arith.cmpf ogt, %79, %80 : vector<1x16x1xf32>
    %82 = vector.broadcast %69 : vector<8x1x1xi1> to vector<8x16x1xi1>
    %83 = vector.broadcast %73 : vector<1x16x1xi1> to vector<8x16x1xi1>
    %84 = arith.andi %82, %83 : vector<8x16x1xi1>
    %85 = vector.broadcast %77 : vector<8x1x1xi1> to vector<8x16x1xi1>
    %86 = vector.broadcast %81 : vector<1x16x1xi1> to vector<8x16x1xi1>
    %87 = arith.andi %85, %86 : vector<8x16x1xi1>
    %cst_40 = arith.constant 1.600000e+01 : f32
    %88 = vector.broadcast %cst_40 : f32 to vector<8x16x1xf32>
    %89 = arith.cmpf ole, %34, %88 : vector<8x16x1xf32>
    %90 = arith.andi %87, %89 : vector<8x16x1xi1>
    %91 = vector.broadcast %69 : vector<8x1x1xi1> to vector<8x16x1xi1>
    %92 = vector.broadcast %81 : vector<1x16x1xi1> to vector<8x16x1xi1>
    %93 = arith.andi %91, %92 : vector<8x16x1xi1>
    %94 = vector.broadcast %77 : vector<8x1x1xi1> to vector<8x16x1xi1>
    %95 = vector.broadcast %73 : vector<1x16x1xi1> to vector<8x16x1xi1>
    %96 = arith.andi %94, %95 : vector<8x16x1xi1>
    %97 = arith.ori %93, %96 : vector<8x16x1xi1>
    %cst_41 = arith.constant 1.600000e+01 : f32
    %98 = vector.broadcast %cst_41 : f32 to vector<8x16x1xf32>
    %99 = arith.cmpf ole, %34, %98 : vector<8x16x1xf32>
    %100 = arith.andi %97, %99 : vector<8x16x1xi1>
    %101 = arith.andi %45, %55 : vector<8x16x1xi1>
    %102 = arith.andi %101, %65 : vector<8x16x1xi1>
    %103 = arith.ori %84, %90 : vector<8x16x1xi1>
    %104 = arith.ori %103, %100 : vector<8x16x1xi1>
    %105 = arith.andi %102, %104 : vector<8x16x1xi1>
    %106 = arith.extui %105 : vector<8x16x1xi1> to vector<8x16x1xi32>
    %107 = arith.sitofp %106 : vector<8x16x1xi32> to vector<8x16x1xf32>
    %cst_42 = arith.constant dense<0.000000e+00> : vector<16x32xf32>
    %108 = tpu.matmul %15, %4, %cst_42 {dimension_numbers = #tpu.dot_dimension_numbers<[1], [0], [0], [1], [0, 0, 1, 1], [], []>} : vector<16x32xf32>, vector<32x32xf32>, vector<16x32xf32> -> vector<16x32xf32>
    %109 = vector.extract_strided_slice %5 {offsets = [0, 0], sizes = [1, 32], strides = [1, 1]} : vector<2x32xf32> to vector<1x32xf32>
    %110 = vector.shape_cast %109 : vector<1x32xf32> to vector<1x1x32xf32>
    %111 = vector.broadcast %26 : vector<8x16x1xf32> to vector<8x16x32xf32>
    %112 = vector.broadcast %110 : vector<1x1x32xf32> to vector<8x16x32xf32>
    %113 = arith.mulf %111, %112 : vector<8x16x32xf32>
    %114 = vector.extract_strided_slice %5 {offsets = [1, 0], sizes = [1, 32], strides = [1, 1]} : vector<2x32xf32> to vector<1x32xf32>
    %115 = vector.shape_cast %114 : vector<1x32xf32> to vector<1x1x32xf32>
    %116 = vector.broadcast %34 : vector<8x16x1xf32> to vector<8x16x32xf32>
    %117 = vector.broadcast %115 : vector<1x1x32xf32> to vector<8x16x32xf32>
    %118 = arith.mulf %116, %117 : vector<8x16x32xf32>
    %119 = arith.addf %113, %118 : vector<8x16x32xf32>
    %120 = vector.shape_cast %13 : vector<8x32xf32> to vector<8x1x32xf32>
    %121 = vector.shape_cast %108 : vector<16x32xf32> to vector<1x16x32xf32>
    %122 = vector.broadcast %120 : vector<8x1x32xf32> to vector<8x16x32xf32>
    %123 = vector.broadcast %121 : vector<1x16x32xf32> to vector<8x16x32xf32>
    %124 = arith.addf %122, %123 : vector<8x16x32xf32>
    %125 = arith.addf %124, %119 : vector<8x16x32xf32>
    %cst_43 = arith.constant -3.000000e+01 : f32
    %cst_44 = arith.constant 3.000000e+01 : f32
    %126 = vector.broadcast %cst_43 : f32 to vector<8x16x32xf32>
    %127 = arith.maximumf %126, %125 : vector<8x16x32xf32>
    %128 = vector.broadcast %cst_44 : f32 to vector<8x16x32xf32>
    %129 = arith.minimumf %128, %127 : vector<8x16x32xf32>
    %cst_45 = arith.constant 0.000000e+00 : f32
    %130 = vector.broadcast %cst_45 : f32 to vector<8x16x32xf32>
    %131 = arith.subf %130, %129 : vector<8x16x32xf32>
    %132 = math.exp %131 : vector<8x16x32xf32>
    %cst_46 = arith.constant 1.000000e+00 : f32
    %133 = vector.broadcast %cst_46 : f32 to vector<8x16x32xf32>
    %134 = arith.addf %133, %132 : vector<8x16x32xf32>
    %135 = tpu.reciprocal %134 {approx = true} : vector<8x16x32xf32> -> vector<8x16x32xf32>
    %136 = arith.mulf %125, %135 : vector<8x16x32xf32>
    %137 = vector.shape_cast %136 : vector<8x16x32xf32> to vector<128x32xf32>
    %cst_47 = arith.constant dense<0.000000e+00> : vector<128x32xf32>
    %138 = tpu.matmul %137, %6, %cst_47 {dimension_numbers = #tpu.dot_dimension_numbers<[1], [0], [0], [1], [0, 0, 1, 1], [], []>} : vector<128x32xf32>, vector<32x32xf32>, vector<128x32xf32> -> vector<128x32xf32>
    %139 = vector.shape_cast %138 : vector<128x32xf32> to vector<8x16x32xf32>
    %140 = vector.shape_cast %7 : vector<1x32xf32> to vector<1x1x32xf32>
    %141 = vector.broadcast %140 : vector<1x1x32xf32> to vector<8x16x32xf32>
    %142 = arith.addf %139, %141 : vector<8x16x32xf32>
    %cst_48 = arith.constant -3.000000e+01 : f32
    %cst_49 = arith.constant 3.000000e+01 : f32
    %143 = vector.broadcast %cst_48 : f32 to vector<8x16x32xf32>
    %144 = arith.maximumf %143, %142 : vector<8x16x32xf32>
    %145 = vector.broadcast %cst_49 : f32 to vector<8x16x32xf32>
    %146 = arith.minimumf %145, %144 : vector<8x16x32xf32>
    %cst_50 = arith.constant 0.000000e+00 : f32
    %147 = vector.broadcast %cst_50 : f32 to vector<8x16x32xf32>
    %148 = arith.subf %147, %146 : vector<8x16x32xf32>
    %149 = math.exp %148 : vector<8x16x32xf32>
    %cst_51 = arith.constant 1.000000e+00 : f32
    %150 = vector.broadcast %cst_51 : f32 to vector<8x16x32xf32>
    %151 = arith.addf %150, %149 : vector<8x16x32xf32>
    %152 = tpu.reciprocal %151 {approx = true} : vector<8x16x32xf32> -> vector<8x16x32xf32>
    %153 = arith.mulf %142, %152 : vector<8x16x32xf32>
    %154 = vector.shape_cast %8 : vector<1x32xf32> to vector<1x1x32xf32>
    %155 = vector.broadcast %154 : vector<1x1x32xf32> to vector<8x16x32xf32>
    %156 = arith.mulf %153, %155 : vector<8x16x32xf32>
    %cst_52 = arith.constant dense<0.000000e+00> : vector<8x16xf32>
    %157 = vector.multi_reduction <add>, %156, %cst_52 [2] : vector<8x16x32xf32> to vector<8x16xf32>
    %158 = vector.shape_cast %157 : vector<8x16xf32> to vector<8x16x1xf32>
    %cst_53 = arith.constant 9.99999993E-9 : f32
    %159 = vector.broadcast %cst_53 : f32 to vector<8x16x1xf32>
    %160 = arith.addf %26, %159 : vector<8x16x1xf32>
    %161 = math.rsqrt %160 : vector<8x16x1xf32>
    %162 = arith.mulf %161, %158 : vector<8x16x1xf32>
    %163 = arith.mulf %162, %107 : vector<8x16x1xf32>
    %164 = vector.broadcast %163 : vector<8x16x1xf32> to vector<8x16x3xf32>
    %165 = arith.mulf %23, %164 : vector<8x16x3xf32>
    %cst_54 = arith.constant dense<0.000000e+00> : vector<8x3xf32>
    %166 = vector.multi_reduction <add>, %165, %cst_54 [1] : vector<8x16x3xf32> to vector<8x3xf32>
    %167 = arith.addf %14, %166 : vector<8x3xf32>
    %cst_55 = arith.constant 0.00999999977 : f32
    %168 = vector.broadcast %cst_55 : f32 to vector<8x3xf32>
    %169 = arith.mulf %167, %168 : vector<8x3xf32>
    %170 = vector.extract_strided_slice %3 {offsets = [0, 1], sizes = [8, 1], strides = [1, 1]} : vector<8x6xf32> to vector<8x1xf32>
    %171 = vector.extract_strided_slice %3 {offsets = [0, 0], sizes = [8, 1], strides = [1, 1]} : vector<8x6xf32> to vector<8x1xf32>
    %172 = vector.broadcast %170 : vector<8x1xf32> to vector<8x3xf32>
    %173 = arith.mulf %169, %172 : vector<8x3xf32>
    %174 = arith.addf %1, %173 : vector<8x3xf32>
    %175 = vector.broadcast %171 : vector<8x1xf32> to vector<8x3xf32>
    %176 = arith.mulf %174, %175 : vector<8x3xf32>
    %c0_56 = arith.constant 0 : index
    %c0_57 = arith.constant 0 : index
    %177 = vector.load %arg16[%c0_56, %c0_57] : memref<8x3xf32, #tpu.memory_space<vmem>>, vector<8x3xf32>
    tpu.vector_store %arg16[%c0_56, %c0_57], %176 {strides = array<i32>} : memref<8x3xf32, #tpu.memory_space<vmem>>, vector<8x3xf32>,
    return
  }
  func.func @transform_0(%arg0: i32) -> (i32, i32) {
    %c0_i32 = arith.constant 0 : i32
    %c0_i32_0 = arith.constant 0 : i32
    return %arg0, %c0_i32 : i32, i32
  }
  func.func @transform_1(%arg0: i32) -> (i32, i32) {
    %c0_i32 = arith.constant 0 : i32
    %c0_i32_0 = arith.constant 0 : i32
    %c0_i32_1 = arith.constant 0 : i32
    return %c0_i32, %c0_i32_0 : i32, i32
  }
  func.func @transform_2(%arg0: i32) -> (i32, i32) {
    %c0_i32 = arith.constant 0 : i32
    %c0_i32_0 = arith.constant 0 : i32
    return %arg0, %c0_i32 : i32, i32
  }
  func.func @transform_3(%arg0: i32) -> (i32, i32) {
    %c0_i32 = arith.constant 0 : i32
    %c0_i32_0 = arith.constant 0 : i32
    %c0_i32_1 = arith.constant 0 : i32
    return %c0_i32, %c0_i32_0 : i32, i32
  }
  func.func @transform_4(%arg0: i32) -> (i32, i32) {
    %c0_i32 = arith.constant 0 : i32
    %c0_i32_0 = arith.constant 0 : i32
    return %arg0, %c0_i32 : i32, i32
  }
  func.func @transform_5(%arg0: i32) -> (i32, i32) {
    %c0_i32 = arith.constant 0 : i32
    %c0_i32_0 = arith.constant 0 : i32
    %c0_i32_1 = arith.constant 0 : i32
    return %c0_i32, %c0_i32_0 : i32, i32
  }
  func.func @transform_6(%arg0: i32) -> (i32, i32) {
    %c0_i32 = arith.constant 0 : i32
    %c0_i32_0 = arith.constant 0 : i32
    return %arg0, %c0_i32 : i32, i32
  }
  func.func @transform_7(%arg0: i32) -> (i32, i32) {
    %c0_i32 = arith.constant 0 : i32
    %c0_i32_0 = arith.constant 0 : i32
    %c0_i32_1 = arith.constant 0 : i32
    return %c0_i32, %c0_i32_0 : i32, i32
  }
  func.func @transform_8(%arg0: i32) -> (i32, i32) {
    %c0_i32 = arith.constant 0 : i32
    %c0_i32_0 = arith.constant 0 : i32
    %c0_i32_1 = arith.constant 0 : i32
    return %c0_i32, %c0_i32_0 : i32, i32
  }
  func.func @transform_9(%arg0: i32) -> (i32, i32) {
    %c0_i32 = arith.constant 0 : i32
    %c0_i32_0 = arith.constant 0 : i32
    %c0_i32_1 = arith.constant 0 : i32
    return %c0_i32, %c0_i32_0 : i32, i32
  }
  func.func @transform_10(%arg0: i32) -> (i32, i32) {
    %c0_i32 = arith.constant 0 : i32
    %c0_i32_0 = arith.constant 0 : i32
    %c0_i32_1 = arith.constant 0 : i32
    return %c0_i32, %c0_i32_0 : i32, i32
  }
  func.func @transform_11(%arg0: i32) -> (i32, i32) {
    %c0_i32 = arith.constant 0 : i32
    %c0_i32_0 = arith.constant 0 : i32
    %c0_i32_1 = arith.constant 0 : i32
    return %c0_i32, %c0_i32_0 : i32, i32
  }
  func.func @transform_12(%arg0: i32) -> (i32, i32) {
    %c0_i32 = arith.constant 0 : i32
    %c0_i32_0 = arith.constant 0 : i32
    %c0_i32_1 = arith.constant 0 : i32
    return %c0_i32, %c0_i32_0 : i32, i32
  }
  func.func @transform_13(%arg0: i32) -> (i32, i32) {
    %c0_i32 = arith.constant 0 : i32
    %c0_i32_0 = arith.constant 0 : i32
    %c0_i32_1 = arith.constant 0 : i32
    return %c0_i32, %c0_i32_0 : i32, i32
  }
  func.func @transform_14(%arg0: i32) -> (i32, i32) {
    %c0_i32 = arith.constant 0 : i32
    %c0_i32_0 = arith.constant 0 : i32
    %c0_i32_1 = arith.constant 0 : i32
    return %c0_i32, %c0_i32_0 : i32, i32
  }
  func.func @transform_15(%arg0: i32) -> (i32, i32) {
    %c0_i32 = arith.constant 0 : i32
    %c0_i32_0 = arith.constant 0 : i32
    return %arg0, %c0_i32 : i32, i32
  }
}

module attributes {stable_mosaic.version = 11 : i64} {
  func.func @_gcl_kernel(%arg0: i32, %arg1: memref<8x32xf32, #tpu.memory_space<vmem>>, %arg2: memref<16x32xf32, #tpu.memory_space<vmem>>, %arg3: memref<8x3xf32, #tpu.memory_space<vmem>>, %arg4: memref<16x3xf32, #tpu.memory_space<vmem>>, %arg5: memref<8x3xf32, #tpu.memory_space<vmem>>, %arg6: memref<16x3xf32, #tpu.memory_space<vmem>>, %arg7: memref<8x6xf32, #tpu.memory_space<vmem>>, %arg8: memref<16x6xf32, #tpu.memory_space<vmem>>, %arg9: memref<32x32xf32, #tpu.memory_space<vmem>>, %arg10: memref<32x32xf32, #tpu.memory_space<vmem>>, %arg11: memref<2x32xf32, #tpu.memory_space<vmem>>, %arg12: memref<1x32xf32, #tpu.memory_space<vmem>>, %arg13: memref<32x32xf32, #tpu.memory_space<vmem>>, %arg14: memref<1x32xf32, #tpu.memory_space<vmem>>, %arg15: memref<32x32xf32, #tpu.memory_space<vmem>>, %arg16: memref<32x32xf32, #tpu.memory_space<vmem>>, %arg17: memref<1x32xf32, #tpu.memory_space<vmem>>, %arg18: memref<32x32xf32, #tpu.memory_space<vmem>>, %arg19: memref<1x32xf32, #tpu.memory_space<vmem>>, %arg20: memref<8x32xf32, #tpu.memory_space<vmem>>) attributes {dimension_semantics = [#tpu.dimension_semantics<parallel>], iteration_bounds = array<i64: 2>, scalar_prefetch = 0 : i64, scratch_operands = 0 : i64, tpu.core_type = #tpu.core_type<tc>, window_params = [{transform_indices = @transform_0, window_bounds = array<i64: 8, 32>}, {pipeline_mode = #tpu.pipeline_mode<synchronous>, transform_indices = @transform_1, window_bounds = array<i64: 16, 32>}, {transform_indices = @transform_2, window_bounds = array<i64: 8, 3>}, {pipeline_mode = #tpu.pipeline_mode<synchronous>, transform_indices = @transform_3, window_bounds = array<i64: 16, 3>}, {transform_indices = @transform_4, window_bounds = array<i64: 8, 3>}, {pipeline_mode = #tpu.pipeline_mode<synchronous>, transform_indices = @transform_5, window_bounds = array<i64: 16, 3>}, {transform_indices = @transform_6, window_bounds = array<i64: 8, 6>}, {pipeline_mode = #tpu.pipeline_mode<synchronous>, transform_indices = @transform_7, window_bounds = array<i64: 16, 6>}, {pipeline_mode = #tpu.pipeline_mode<synchronous>, transform_indices = @transform_8, window_bounds = array<i64: 32, 32>}, {pipeline_mode = #tpu.pipeline_mode<synchronous>, transform_indices = @transform_9, window_bounds = array<i64: 32, 32>}, {pipeline_mode = #tpu.pipeline_mode<synchronous>, transform_indices = @transform_10, window_bounds = array<i64: 2, 32>}, {pipeline_mode = #tpu.pipeline_mode<synchronous>, transform_indices = @transform_11, window_bounds = array<i64: 1, 32>}, {pipeline_mode = #tpu.pipeline_mode<synchronous>, transform_indices = @transform_12, window_bounds = array<i64: 32, 32>}, {pipeline_mode = #tpu.pipeline_mode<synchronous>, transform_indices = @transform_13, window_bounds = array<i64: 1, 32>}, {pipeline_mode = #tpu.pipeline_mode<synchronous>, transform_indices = @transform_14, window_bounds = array<i64: 32, 32>}, {pipeline_mode = #tpu.pipeline_mode<synchronous>, transform_indices = @transform_15, window_bounds = array<i64: 32, 32>}, {pipeline_mode = #tpu.pipeline_mode<synchronous>, transform_indices = @transform_16, window_bounds = array<i64: 1, 32>}, {pipeline_mode = #tpu.pipeline_mode<synchronous>, transform_indices = @transform_17, window_bounds = array<i64: 32, 32>}, {pipeline_mode = #tpu.pipeline_mode<synchronous>, transform_indices = @transform_18, window_bounds = array<i64: 1, 32>}, {transform_indices = @transform_19, window_bounds = array<i64: 8, 32>}]} {
    %c0 = arith.constant 0 : index
    %c0_0 = arith.constant 0 : index
    %0 = vector.load %arg1[%c0, %c0_0] : memref<8x32xf32, #tpu.memory_space<vmem>>, vector<8x32xf32>
    %c0_1 = arith.constant 0 : index
    %c0_2 = arith.constant 0 : index
    %1 = vector.load %arg3[%c0_1, %c0_2] : memref<8x3xf32, #tpu.memory_space<vmem>>, vector<8x3xf32>
    %c0_3 = arith.constant 0 : index
    %c0_4 = arith.constant 0 : index
    %2 = vector.load %arg5[%c0_3, %c0_4] : memref<8x3xf32, #tpu.memory_space<vmem>>, vector<8x3xf32>
    %c0_5 = arith.constant 0 : index
    %c0_6 = arith.constant 0 : index
    %3 = vector.load %arg7[%c0_5, %c0_6] : memref<8x6xf32, #tpu.memory_space<vmem>>, vector<8x6xf32>
    %c0_7 = arith.constant 0 : index
    %c0_8 = arith.constant 0 : index
    %4 = vector.load %arg10[%c0_7, %c0_8] : memref<32x32xf32, #tpu.memory_space<vmem>>, vector<32x32xf32>
    %c0_9 = arith.constant 0 : index
    %c0_10 = arith.constant 0 : index
    %5 = vector.load %arg11[%c0_9, %c0_10] : memref<2x32xf32, #tpu.memory_space<vmem>>, vector<2x32xf32>
    %c0_11 = arith.constant 0 : index
    %c0_12 = arith.constant 0 : index
    %6 = vector.load %arg13[%c0_11, %c0_12] : memref<32x32xf32, #tpu.memory_space<vmem>>, vector<32x32xf32>
    %c0_13 = arith.constant 0 : index
    %c0_14 = arith.constant 0 : index
    %7 = vector.load %arg14[%c0_13, %c0_14] : memref<1x32xf32, #tpu.memory_space<vmem>>, vector<1x32xf32>
    %c0_15 = arith.constant 0 : index
    %c0_16 = arith.constant 0 : index
    %8 = vector.load %arg9[%c0_15, %c0_16] : memref<32x32xf32, #tpu.memory_space<vmem>>, vector<32x32xf32>
    %cst = arith.constant dense<0.000000e+00> : vector<8x32xf32>
    %9 = tpu.matmul %0, %8, %cst {dimension_numbers = #tpu.dot_dimension_numbers<[1], [0], [0], [1], [0, 0, 1, 1], [], []>} : vector<8x32xf32>, vector<32x32xf32>, vector<8x32xf32> -> vector<8x32xf32>
    %c0_17 = arith.constant 0 : index
    %c0_18 = arith.constant 0 : index
    %10 = vector.load %arg12[%c0_17, %c0_18] : memref<1x32xf32, #tpu.memory_space<vmem>>, vector<1x32xf32>
    %11 = vector.broadcast %10 : vector<1x32xf32> to vector<8x32xf32>
    %12 = arith.addf %9, %11 : vector<8x32xf32>
    %cst_19 = arith.constant 0.000000e+00 : f32
    %13 = vector.broadcast %cst_19 : f32 to vector<8x32xf32>
    %c0_20 = arith.constant 0 : index
    %c0_21 = arith.constant 0 : index
    %14 = vector.load %arg2[%c0_20, %c0_21] : memref<16x32xf32, #tpu.memory_space<vmem>>, vector<16x32xf32>
    %c0_22 = arith.constant 0 : index
    %c0_23 = arith.constant 0 : index
    %15 = vector.load %arg4[%c0_22, %c0_23] : memref<16x3xf32, #tpu.memory_space<vmem>>, vector<16x3xf32>
    %c0_24 = arith.constant 0 : index
    %c0_25 = arith.constant 0 : index
    %16 = vector.load %arg6[%c0_24, %c0_25] : memref<16x3xf32, #tpu.memory_space<vmem>>, vector<16x3xf32>
    %c0_26 = arith.constant 0 : index
    %c0_27 = arith.constant 0 : index
    %17 = vector.load %arg8[%c0_26, %c0_27] : memref<16x6xf32, #tpu.memory_space<vmem>>, vector<16x6xf32>
    %18 = vector.shape_cast %1 : vector<8x3xf32> to vector<8x1x3xf32>
    %19 = vector.shape_cast %15 : vector<16x3xf32> to vector<1x16x3xf32>
    %20 = vector.broadcast %18 : vector<8x1x3xf32> to vector<8x16x3xf32>
    %21 = vector.broadcast %19 : vector<1x16x3xf32> to vector<8x16x3xf32>
    %22 = arith.subf %20, %21 : vector<8x16x3xf32>
    %23 = arith.mulf %22, %22 : vector<8x16x3xf32>
    %cst_28 = arith.constant dense<0.000000e+00> : vector<8x16xf32>
    %24 = vector.multi_reduction <add>, %23, %cst_28 [2] : vector<8x16x3xf32> to vector<8x16xf32>
    %25 = vector.shape_cast %24 : vector<8x16xf32> to vector<8x16x1xf32>
    %26 = vector.shape_cast %2 : vector<8x3xf32> to vector<8x1x3xf32>
    %27 = vector.shape_cast %16 : vector<16x3xf32> to vector<1x16x3xf32>
    %28 = vector.broadcast %26 : vector<8x1x3xf32> to vector<8x16x3xf32>
    %29 = vector.broadcast %27 : vector<1x16x3xf32> to vector<8x16x3xf32>
    %30 = arith.subf %28, %29 : vector<8x16x3xf32>
    %31 = arith.mulf %30, %30 : vector<8x16x3xf32>
    %cst_29 = arith.constant dense<0.000000e+00> : vector<8x16xf32>
    %32 = vector.multi_reduction <add>, %31, %cst_29 [2] : vector<8x16x3xf32> to vector<8x16xf32>
    %33 = vector.shape_cast %32 : vector<8x16xf32> to vector<8x16x1xf32>
    %34 = vector.extract_strided_slice %3 {offsets = [0, 0], sizes = [8, 1], strides = [1, 1]} : vector<8x6xf32> to vector<8x1xf32>
    %35 = vector.shape_cast %34 : vector<8x1xf32> to vector<8x1x1xf32>
    %cst_30 = arith.constant 5.000000e-01 : f32
    %36 = vector.broadcast %cst_30 : f32 to vector<8x1x1xf32>
    %37 = arith.cmpf ogt, %35, %36 : vector<8x1x1xf32>
    %38 = vector.extract_strided_slice %17 {offsets = [0, 0], sizes = [16, 1], strides = [1, 1]} : vector<16x6xf32> to vector<16x1xf32>
    %39 = vector.shape_cast %38 : vector<16x1xf32> to vector<1x16x1xf32>
    %cst_31 = arith.constant 5.000000e-01 : f32
    %40 = vector.broadcast %cst_31 : f32 to vector<1x16x1xf32>
    %41 = arith.cmpf ogt, %39, %40 : vector<1x16x1xf32>
    %42 = vector.broadcast %37 : vector<8x1x1xi1> to vector<8x16x1xi1>
    %43 = vector.broadcast %41 : vector<1x16x1xi1> to vector<8x16x1xi1>
    %44 = arith.andi %42, %43 : vector<8x16x1xi1>
    %45 = vector.extract_strided_slice %3 {offsets = [0, 4], sizes = [8, 1], strides = [1, 1]} : vector<8x6xf32> to vector<8x1xf32>
    %46 = vector.shape_cast %45 : vector<8x1xf32> to vector<8x1x1xf32>
    %47 = vector.extract_strided_slice %17 {offsets = [0, 4], sizes = [16, 1], strides = [1, 1]} : vector<16x6xf32> to vector<16x1xf32>
    %48 = vector.shape_cast %47 : vector<16x1xf32> to vector<1x16x1xf32>
    %49 = vector.broadcast %46 : vector<8x1x1xf32> to vector<8x16x1xf32>
    %50 = vector.broadcast %48 : vector<1x16x1xf32> to vector<8x16x1xf32>
    %51 = arith.subf %49, %50 : vector<8x16x1xf32>
    %52 = math.absf %51 : vector<8x16x1xf32>
    %cst_32 = arith.constant 5.000000e-01 : f32
    %53 = vector.broadcast %cst_32 : f32 to vector<8x16x1xf32>
    %54 = arith.cmpf olt, %52, %53 : vector<8x16x1xf32>
    %55 = vector.extract_strided_slice %3 {offsets = [0, 5], sizes = [8, 1], strides = [1, 1]} : vector<8x6xf32> to vector<8x1xf32>
    %56 = vector.shape_cast %55 : vector<8x1xf32> to vector<8x1x1xf32>
    %57 = vector.extract_strided_slice %17 {offsets = [0, 5], sizes = [16, 1], strides = [1, 1]} : vector<16x6xf32> to vector<16x1xf32>
    %58 = vector.shape_cast %57 : vector<16x1xf32> to vector<1x16x1xf32>
    %59 = vector.broadcast %56 : vector<8x1x1xf32> to vector<8x16x1xf32>
    %60 = vector.broadcast %58 : vector<1x16x1xf32> to vector<8x16x1xf32>
    %61 = arith.subf %59, %60 : vector<8x16x1xf32>
    %62 = math.absf %61 : vector<8x16x1xf32>
    %cst_33 = arith.constant 5.000000e-01 : f32
    %63 = vector.broadcast %cst_33 : f32 to vector<8x16x1xf32>
    %64 = arith.cmpf ogt, %62, %63 : vector<8x16x1xf32>
    %65 = vector.extract_strided_slice %3 {offsets = [0, 2], sizes = [8, 1], strides = [1, 1]} : vector<8x6xf32> to vector<8x1xf32>
    %66 = vector.shape_cast %65 : vector<8x1xf32> to vector<8x1x1xf32>
    %cst_34 = arith.constant 5.000000e-01 : f32
    %67 = vector.broadcast %cst_34 : f32 to vector<8x1x1xf32>
    %68 = arith.cmpf ogt, %66, %67 : vector<8x1x1xf32>
    %69 = vector.extract_strided_slice %17 {offsets = [0, 2], sizes = [16, 1], strides = [1, 1]} : vector<16x6xf32> to vector<16x1xf32>
    %70 = vector.shape_cast %69 : vector<16x1xf32> to vector<1x16x1xf32>
    %cst_35 = arith.constant 5.000000e-01 : f32
    %71 = vector.broadcast %cst_35 : f32 to vector<1x16x1xf32>
    %72 = arith.cmpf ogt, %70, %71 : vector<1x16x1xf32>
    %73 = vector.extract_strided_slice %3 {offsets = [0, 3], sizes = [8, 1], strides = [1, 1]} : vector<8x6xf32> to vector<8x1xf32>
    %74 = vector.shape_cast %73 : vector<8x1xf32> to vector<8x1x1xf32>
    %cst_36 = arith.constant 5.000000e-01 : f32
    %75 = vector.broadcast %cst_36 : f32 to vector<8x1x1xf32>
    %76 = arith.cmpf ogt, %74, %75 : vector<8x1x1xf32>
    %77 = vector.extract_strided_slice %17 {offsets = [0, 3], sizes = [16, 1], strides = [1, 1]} : vector<16x6xf32> to vector<16x1xf32>
    %78 = vector.shape_cast %77 : vector<16x1xf32> to vector<1x16x1xf32>
    %cst_37 = arith.constant 5.000000e-01 : f32
    %79 = vector.broadcast %cst_37 : f32 to vector<1x16x1xf32>
    %80 = arith.cmpf ogt, %78, %79 : vector<1x16x1xf32>
    %81 = vector.broadcast %68 : vector<8x1x1xi1> to vector<8x16x1xi1>
    %82 = vector.broadcast %72 : vector<1x16x1xi1> to vector<8x16x1xi1>
    %83 = arith.andi %81, %82 : vector<8x16x1xi1>
    %84 = vector.broadcast %76 : vector<8x1x1xi1> to vector<8x16x1xi1>
    %85 = vector.broadcast %80 : vector<1x16x1xi1> to vector<8x16x1xi1>
    %86 = arith.andi %84, %85 : vector<8x16x1xi1>
    %cst_38 = arith.constant 1.600000e+01 : f32
    %87 = vector.broadcast %cst_38 : f32 to vector<8x16x1xf32>
    %88 = arith.cmpf ole, %33, %87 : vector<8x16x1xf32>
    %89 = arith.andi %86, %88 : vector<8x16x1xi1>
    %90 = vector.broadcast %68 : vector<8x1x1xi1> to vector<8x16x1xi1>
    %91 = vector.broadcast %80 : vector<1x16x1xi1> to vector<8x16x1xi1>
    %92 = arith.andi %90, %91 : vector<8x16x1xi1>
    %93 = vector.broadcast %76 : vector<8x1x1xi1> to vector<8x16x1xi1>
    %94 = vector.broadcast %72 : vector<1x16x1xi1> to vector<8x16x1xi1>
    %95 = arith.andi %93, %94 : vector<8x16x1xi1>
    %96 = arith.ori %92, %95 : vector<8x16x1xi1>
    %cst_39 = arith.constant 1.600000e+01 : f32
    %97 = vector.broadcast %cst_39 : f32 to vector<8x16x1xf32>
    %98 = arith.cmpf ole, %33, %97 : vector<8x16x1xf32>
    %99 = arith.andi %96, %98 : vector<8x16x1xi1>
    %100 = arith.andi %44, %54 : vector<8x16x1xi1>
    %101 = arith.andi %100, %64 : vector<8x16x1xi1>
    %102 = arith.ori %83, %89 : vector<8x16x1xi1>
    %103 = arith.ori %102, %99 : vector<8x16x1xi1>
    %104 = arith.andi %101, %103 : vector<8x16x1xi1>
    %105 = arith.extui %104 : vector<8x16x1xi1> to vector<8x16x1xi32>
    %106 = arith.sitofp %105 : vector<8x16x1xi32> to vector<8x16x1xf32>
    %cst_40 = arith.constant dense<0.000000e+00> : vector<16x32xf32>
    %107 = tpu.matmul %14, %4, %cst_40 {dimension_numbers = #tpu.dot_dimension_numbers<[1], [0], [0], [1], [0, 0, 1, 1], [], []>} : vector<16x32xf32>, vector<32x32xf32>, vector<16x32xf32> -> vector<16x32xf32>
    %108 = vector.extract_strided_slice %5 {offsets = [0, 0], sizes = [1, 32], strides = [1, 1]} : vector<2x32xf32> to vector<1x32xf32>
    %109 = vector.shape_cast %108 : vector<1x32xf32> to vector<1x1x32xf32>
    %110 = vector.broadcast %25 : vector<8x16x1xf32> to vector<8x16x32xf32>
    %111 = vector.broadcast %109 : vector<1x1x32xf32> to vector<8x16x32xf32>
    %112 = arith.mulf %110, %111 : vector<8x16x32xf32>
    %113 = vector.extract_strided_slice %5 {offsets = [1, 0], sizes = [1, 32], strides = [1, 1]} : vector<2x32xf32> to vector<1x32xf32>
    %114 = vector.shape_cast %113 : vector<1x32xf32> to vector<1x1x32xf32>
    %115 = vector.broadcast %33 : vector<8x16x1xf32> to vector<8x16x32xf32>
    %116 = vector.broadcast %114 : vector<1x1x32xf32> to vector<8x16x32xf32>
    %117 = arith.mulf %115, %116 : vector<8x16x32xf32>
    %118 = arith.addf %112, %117 : vector<8x16x32xf32>
    %119 = vector.shape_cast %12 : vector<8x32xf32> to vector<8x1x32xf32>
    %120 = vector.shape_cast %107 : vector<16x32xf32> to vector<1x16x32xf32>
    %121 = vector.broadcast %119 : vector<8x1x32xf32> to vector<8x16x32xf32>
    %122 = vector.broadcast %120 : vector<1x16x32xf32> to vector<8x16x32xf32>
    %123 = arith.addf %121, %122 : vector<8x16x32xf32>
    %124 = arith.addf %123, %118 : vector<8x16x32xf32>
    %cst_41 = arith.constant -3.000000e+01 : f32
    %cst_42 = arith.constant 3.000000e+01 : f32
    %125 = vector.broadcast %cst_41 : f32 to vector<8x16x32xf32>
    %126 = arith.maximumf %125, %124 : vector<8x16x32xf32>
    %127 = vector.broadcast %cst_42 : f32 to vector<8x16x32xf32>
    %128 = arith.minimumf %127, %126 : vector<8x16x32xf32>
    %cst_43 = arith.constant 0.000000e+00 : f32
    %129 = vector.broadcast %cst_43 : f32 to vector<8x16x32xf32>
    %130 = arith.subf %129, %128 : vector<8x16x32xf32>
    %131 = math.exp %130 : vector<8x16x32xf32>
    %cst_44 = arith.constant 1.000000e+00 : f32
    %132 = vector.broadcast %cst_44 : f32 to vector<8x16x32xf32>
    %133 = arith.addf %132, %131 : vector<8x16x32xf32>
    %134 = tpu.reciprocal %133 {approx = true} : vector<8x16x32xf32> -> vector<8x16x32xf32>
    %135 = arith.mulf %124, %134 : vector<8x16x32xf32>
    %136 = vector.shape_cast %135 : vector<8x16x32xf32> to vector<128x32xf32>
    %cst_45 = arith.constant dense<0.000000e+00> : vector<128x32xf32>
    %137 = tpu.matmul %136, %6, %cst_45 {dimension_numbers = #tpu.dot_dimension_numbers<[1], [0], [0], [1], [0, 0, 1, 1], [], []>} : vector<128x32xf32>, vector<32x32xf32>, vector<128x32xf32> -> vector<128x32xf32>
    %138 = vector.shape_cast %137 : vector<128x32xf32> to vector<8x16x32xf32>
    %139 = vector.shape_cast %7 : vector<1x32xf32> to vector<1x1x32xf32>
    %140 = vector.broadcast %139 : vector<1x1x32xf32> to vector<8x16x32xf32>
    %141 = arith.addf %138, %140 : vector<8x16x32xf32>
    %cst_46 = arith.constant -3.000000e+01 : f32
    %cst_47 = arith.constant 3.000000e+01 : f32
    %142 = vector.broadcast %cst_46 : f32 to vector<8x16x32xf32>
    %143 = arith.maximumf %142, %141 : vector<8x16x32xf32>
    %144 = vector.broadcast %cst_47 : f32 to vector<8x16x32xf32>
    %145 = arith.minimumf %144, %143 : vector<8x16x32xf32>
    %cst_48 = arith.constant 0.000000e+00 : f32
    %146 = vector.broadcast %cst_48 : f32 to vector<8x16x32xf32>
    %147 = arith.subf %146, %145 : vector<8x16x32xf32>
    %148 = math.exp %147 : vector<8x16x32xf32>
    %cst_49 = arith.constant 1.000000e+00 : f32
    %149 = vector.broadcast %cst_49 : f32 to vector<8x16x32xf32>
    %150 = arith.addf %149, %148 : vector<8x16x32xf32>
    %151 = tpu.reciprocal %150 {approx = true} : vector<8x16x32xf32> -> vector<8x16x32xf32>
    %152 = arith.mulf %141, %151 : vector<8x16x32xf32>
    %153 = vector.broadcast %106 : vector<8x16x1xf32> to vector<8x16x32xf32>
    %154 = arith.mulf %152, %153 : vector<8x16x32xf32>
    %cst_50 = arith.constant dense<0.000000e+00> : vector<8x32xf32>
    %155 = vector.multi_reduction <add>, %154, %cst_50 [1] : vector<8x16x32xf32> to vector<8x32xf32>
    %156 = arith.addf %13, %155 : vector<8x32xf32>
    %cst_51 = arith.constant 0.00999999977 : f32
    %157 = vector.broadcast %cst_51 : f32 to vector<8x32xf32>
    %158 = arith.mulf %156, %157 : vector<8x32xf32>
    %c0_52 = arith.constant 0 : index
    %c0_53 = arith.constant 0 : index
    %159 = vector.load %arg15[%c0_52, %c0_53] : memref<32x32xf32, #tpu.memory_space<vmem>>, vector<32x32xf32>
    %cst_54 = arith.constant dense<0.000000e+00> : vector<8x32xf32>
    %160 = tpu.matmul %0, %159, %cst_54 {dimension_numbers = #tpu.dot_dimension_numbers<[1], [0], [0], [1], [0, 0, 1, 1], [], []>} : vector<8x32xf32>, vector<32x32xf32>, vector<8x32xf32> -> vector<8x32xf32>
    %c0_55 = arith.constant 0 : index
    %c0_56 = arith.constant 0 : index
    %161 = vector.load %arg16[%c0_55, %c0_56] : memref<32x32xf32, #tpu.memory_space<vmem>>, vector<32x32xf32>
    %cst_57 = arith.constant dense<0.000000e+00> : vector<8x32xf32>
    %162 = tpu.matmul %158, %161, %cst_57 {dimension_numbers = #tpu.dot_dimension_numbers<[1], [0], [0], [1], [0, 0, 1, 1], [], []>} : vector<8x32xf32>, vector<32x32xf32>, vector<8x32xf32> -> vector<8x32xf32>
    %163 = arith.addf %160, %162 : vector<8x32xf32>
    %c0_58 = arith.constant 0 : index
    %c0_59 = arith.constant 0 : index
    %164 = vector.load %arg17[%c0_58, %c0_59] : memref<1x32xf32, #tpu.memory_space<vmem>>, vector<1x32xf32>
    %165 = vector.broadcast %164 : vector<1x32xf32> to vector<8x32xf32>
    %166 = arith.addf %163, %165 : vector<8x32xf32>
    %cst_60 = arith.constant -3.000000e+01 : f32
    %cst_61 = arith.constant 3.000000e+01 : f32
    %167 = vector.broadcast %cst_60 : f32 to vector<8x32xf32>
    %168 = arith.maximumf %167, %166 : vector<8x32xf32>
    %169 = vector.broadcast %cst_61 : f32 to vector<8x32xf32>
    %170 = arith.minimumf %169, %168 : vector<8x32xf32>
    %cst_62 = arith.constant 0.000000e+00 : f32
    %171 = vector.broadcast %cst_62 : f32 to vector<8x32xf32>
    %172 = arith.subf %171, %170 : vector<8x32xf32>
    %173 = math.exp %172 : vector<8x32xf32>
    %cst_63 = arith.constant 1.000000e+00 : f32
    %174 = vector.broadcast %cst_63 : f32 to vector<8x32xf32>
    %175 = arith.addf %174, %173 : vector<8x32xf32>
    %176 = tpu.reciprocal %175 {approx = true} : vector<8x32xf32> -> vector<8x32xf32>
    %177 = arith.mulf %166, %176 : vector<8x32xf32>
    %c0_64 = arith.constant 0 : index
    %c0_65 = arith.constant 0 : index
    %178 = vector.load %arg18[%c0_64, %c0_65] : memref<32x32xf32, #tpu.memory_space<vmem>>, vector<32x32xf32>
    %cst_66 = arith.constant dense<0.000000e+00> : vector<8x32xf32>
    %179 = tpu.matmul %177, %178, %cst_66 {dimension_numbers = #tpu.dot_dimension_numbers<[1], [0], [0], [1], [0, 0, 1, 1], [], []>} : vector<8x32xf32>, vector<32x32xf32>, vector<8x32xf32> -> vector<8x32xf32>
    %180 = arith.addf %0, %179 : vector<8x32xf32>
    %c0_67 = arith.constant 0 : index
    %c0_68 = arith.constant 0 : index
    %181 = vector.load %arg19[%c0_67, %c0_68] : memref<1x32xf32, #tpu.memory_space<vmem>>, vector<1x32xf32>
    %182 = vector.broadcast %181 : vector<1x32xf32> to vector<8x32xf32>
    %183 = arith.addf %180, %182 : vector<8x32xf32>
    %184 = vector.extract_strided_slice %3 {offsets = [0, 0], sizes = [8, 1], strides = [1, 1]} : vector<8x6xf32> to vector<8x1xf32>
    %185 = vector.broadcast %184 : vector<8x1xf32> to vector<8x32xf32>
    %186 = arith.mulf %183, %185 : vector<8x32xf32>
    %c0_69 = arith.constant 0 : index
    %c0_70 = arith.constant 0 : index
    %187 = vector.load %arg20[%c0_69, %c0_70] : memref<8x32xf32, #tpu.memory_space<vmem>>, vector<8x32xf32>
    tpu.vector_store %arg20[%c0_69, %c0_70], %186 {strides = array<i32>} : memref<8x32xf32, #tpu.memory_space<vmem>>, vector<8x32xf32>,
    return
  }
  func.func @transform_0(%arg0: i32) -> (i32, i32) {
    %c0_i32 = arith.constant 0 : i32
    %c0_i32_0 = arith.constant 0 : i32
    return %arg0, %c0_i32 : i32, i32
  }
  func.func @transform_1(%arg0: i32) -> (i32, i32) {
    %c0_i32 = arith.constant 0 : i32
    %c0_i32_0 = arith.constant 0 : i32
    %c0_i32_1 = arith.constant 0 : i32
    return %c0_i32, %c0_i32_0 : i32, i32
  }
  func.func @transform_2(%arg0: i32) -> (i32, i32) {
    %c0_i32 = arith.constant 0 : i32
    %c0_i32_0 = arith.constant 0 : i32
    return %arg0, %c0_i32 : i32, i32
  }
  func.func @transform_3(%arg0: i32) -> (i32, i32) {
    %c0_i32 = arith.constant 0 : i32
    %c0_i32_0 = arith.constant 0 : i32
    %c0_i32_1 = arith.constant 0 : i32
    return %c0_i32, %c0_i32_0 : i32, i32
  }
  func.func @transform_4(%arg0: i32) -> (i32, i32) {
    %c0_i32 = arith.constant 0 : i32
    %c0_i32_0 = arith.constant 0 : i32
    return %arg0, %c0_i32 : i32, i32
  }
  func.func @transform_5(%arg0: i32) -> (i32, i32) {
    %c0_i32 = arith.constant 0 : i32
    %c0_i32_0 = arith.constant 0 : i32
    %c0_i32_1 = arith.constant 0 : i32
    return %c0_i32, %c0_i32_0 : i32, i32
  }
  func.func @transform_6(%arg0: i32) -> (i32, i32) {
    %c0_i32 = arith.constant 0 : i32
    %c0_i32_0 = arith.constant 0 : i32
    return %arg0, %c0_i32 : i32, i32
  }
  func.func @transform_7(%arg0: i32) -> (i32, i32) {
    %c0_i32 = arith.constant 0 : i32
    %c0_i32_0 = arith.constant 0 : i32
    %c0_i32_1 = arith.constant 0 : i32
    return %c0_i32, %c0_i32_0 : i32, i32
  }
  func.func @transform_8(%arg0: i32) -> (i32, i32) {
    %c0_i32 = arith.constant 0 : i32
    %c0_i32_0 = arith.constant 0 : i32
    %c0_i32_1 = arith.constant 0 : i32
    return %c0_i32, %c0_i32_0 : i32, i32
  }
  func.func @transform_9(%arg0: i32) -> (i32, i32) {
    %c0_i32 = arith.constant 0 : i32
    %c0_i32_0 = arith.constant 0 : i32
    %c0_i32_1 = arith.constant 0 : i32
    return %c0_i32, %c0_i32_0 : i32, i32
  }
  func.func @transform_10(%arg0: i32) -> (i32, i32) {
    %c0_i32 = arith.constant 0 : i32
    %c0_i32_0 = arith.constant 0 : i32
    %c0_i32_1 = arith.constant 0 : i32
    return %c0_i32, %c0_i32_0 : i32, i32
  }
  func.func @transform_11(%arg0: i32) -> (i32, i32) {
    %c0_i32 = arith.constant 0 : i32
    %c0_i32_0 = arith.constant 0 : i32
    %c0_i32_1 = arith.constant 0 : i32
    return %c0_i32, %c0_i32_0 : i32, i32
  }
  func.func @transform_12(%arg0: i32) -> (i32, i32) {
    %c0_i32 = arith.constant 0 : i32
    %c0_i32_0 = arith.constant 0 : i32
    %c0_i32_1 = arith.constant 0 : i32
    return %c0_i32, %c0_i32_0 : i32, i32
  }
  func.func @transform_13(%arg0: i32) -> (i32, i32) {
    %c0_i32 = arith.constant 0 : i32
    %c0_i32_0 = arith.constant 0 : i32
    %c0_i32_1 = arith.constant 0 : i32
    return %c0_i32, %c0_i32_0 : i32, i32
  }
  func.func @transform_14(%arg0: i32) -> (i32, i32) {
    %c0_i32 = arith.constant 0 : i32
    %c0_i32_0 = arith.constant 0 : i32
    %c0_i32_1 = arith.constant 0 : i32
    return %c0_i32, %c0_i32_0 : i32, i32
  }
  func.func @transform_15(%arg0: i32) -> (i32, i32) {
    %c0_i32 = arith.constant 0 : i32
    %c0_i32_0 = arith.constant 0 : i32
    %c0_i32_1 = arith.constant 0 : i32
    return %c0_i32, %c0_i32_0 : i32, i32
  }
  func.func @transform_16(%arg0: i32) -> (i32, i32) {
    %c0_i32 = arith.constant 0 : i32
    %c0_i32_0 = arith.constant 0 : i32
    %c0_i32_1 = arith.constant 0 : i32
    return %c0_i32, %c0_i32_0 : i32, i32
  }
  func.func @transform_17(%arg0: i32) -> (i32, i32) {
    %c0_i32 = arith.constant 0 : i32
    %c0_i32_0 = arith.constant 0 : i32
    %c0_i32_1 = arith.constant 0 : i32
    return %c0_i32, %c0_i32_0 : i32, i32
  }
  func.func @transform_18(%arg0: i32) -> (i32, i32) {
    %c0_i32 = arith.constant 0 : i32
    %c0_i32_0 = arith.constant 0 : i32
    %c0_i32_1 = arith.constant 0 : i32
    return %c0_i32, %c0_i32_0 : i32, i32
  }
  func.func @transform_19(%arg0: i32) -> (i32, i32) {
    %c0_i32 = arith.constant 0 : i32
    %c0_i32_0 = arith.constant 0 : i32
    return %arg0, %c0_i32 : i32, i32
  }
}

module attributes {stable_mosaic.version = 11 : i64} {
  func.func @_linear_kernel(%arg0: i32, %arg1: memref<8x32xf32, #tpu.memory_space<vmem>>, %arg2: memref<32x9xf32, #tpu.memory_space<vmem>>, %arg3: memref<1x9xf32, #tpu.memory_space<vmem>>, %arg4: memref<8x9xf32, #tpu.memory_space<vmem>>) attributes {dimension_semantics = [#tpu.dimension_semantics<parallel>], iteration_bounds = array<i64: 2>, scalar_prefetch = 0 : i64, scratch_operands = 0 : i64, tpu.core_type = #tpu.core_type<tc>, window_params = [{transform_indices = @transform_0, window_bounds = array<i64: 8, 32>}, {pipeline_mode = #tpu.pipeline_mode<synchronous>, transform_indices = @transform_1, window_bounds = array<i64: 32, 9>}, {pipeline_mode = #tpu.pipeline_mode<synchronous>, transform_indices = @transform_2, window_bounds = array<i64: 1, 9>}, {transform_indices = @transform_3, window_bounds = array<i64: 8, 9>}]} {
    %c0 = arith.constant 0 : index
    %c0_0 = arith.constant 0 : index
    %0 = vector.load %arg1[%c0, %c0_0] : memref<8x32xf32, #tpu.memory_space<vmem>>, vector<8x32xf32>
    %c0_1 = arith.constant 0 : index
    %c0_2 = arith.constant 0 : index
    %1 = vector.load %arg2[%c0_1, %c0_2] : memref<32x9xf32, #tpu.memory_space<vmem>>, vector<32x9xf32>
    %cst = arith.constant dense<0.000000e+00> : vector<8x9xf32>
    %2 = tpu.matmul %0, %1, %cst {dimension_numbers = #tpu.dot_dimension_numbers<[1], [0], [0], [1], [0, 0, 1, 1], [], []>} : vector<8x32xf32>, vector<32x9xf32>, vector<8x9xf32> -> vector<8x9xf32>
    %c0_3 = arith.constant 0 : index
    %c0_4 = arith.constant 0 : index
    %3 = vector.load %arg3[%c0_3, %c0_4] : memref<1x9xf32, #tpu.memory_space<vmem>>, vector<1x9xf32>
    %4 = vector.broadcast %3 : vector<1x9xf32> to vector<8x9xf32>
    %5 = arith.addf %2, %4 : vector<8x9xf32>
    %c0_5 = arith.constant 0 : index
    %c0_6 = arith.constant 0 : index
    %6 = vector.load %arg4[%c0_5, %c0_6] : memref<8x9xf32, #tpu.memory_space<vmem>>, vector<8x9xf32>
    tpu.vector_store %arg4[%c0_5, %c0_6], %5 {strides = array<i32>} : memref<8x9xf32, #tpu.memory_space<vmem>>, vector<8x9xf32>,
    return
  }
  func.func @transform_0(%arg0: i32) -> (i32, i32) {
    %c0_i32 = arith.constant 0 : i32
    %c0_i32_0 = arith.constant 0 : i32
    return %arg0, %c0_i32 : i32, i32
  }
  func.func @transform_1(%arg0: i32) -> (i32, i32) {
    %c0_i32 = arith.constant 0 : i32
    %c0_i32_0 = arith.constant 0 : i32
    %c0_i32_1 = arith.constant 0 : i32
    return %c0_i32, %c0_i32_0 : i32, i32
  }
  func.func @transform_2(%arg0: i32) -> (i32, i32) {
    %c0_i32 = arith.constant 0 : i32
    %c0_i32_0 = arith.constant 0 : i32
    %c0_i32_1 = arith.constant 0 : i32
    return %c0_i32, %c0_i32_0 : i32, i32
  }
  func.func @transform_3(%arg0: i32) -> (i32, i32) {
    %c0_i32 = arith.constant 0 : i32
    %c0_i32_0 = arith.constant 0 : i32
    return %arg0, %c0_i32 : i32, i32
  }
}

</mosaic_0001>

<bundles_post_ra>
// kernel: mul.15
= control target key start
LH: loop header
LB: loop body
LE: loop exit
PB: predicated region body
PF: predicated region fallthrough
CT: control target
= control target key end

     0   :  { %s34_s0 = inlined_call_operand.vmem [shape: f32[16,1], index: 0, kind: input, shape index: {}]   ;;  %s35_s1 = inlined_call_operand.vmem [shape: f32[16,1], index: 1, kind: input, shape index: {}]   ;;  %s36_s2 = inlined_call_operand.vmem [shape: f32[16,1], index: 2, kind: output, shape index: {}]  }
   0x1   :  { %v3_v0 = vld [vmem:[%s34_s0] sm:$0x1] }
   0x2   :  { %v4_v1 = vld [vmem:[%s35_s1] sm:$0x1] }
   0x3   :  { %v7_v2 = vmul.f32 %v4_v1, %v3_v0 }
   0x5   :  { %9 = vst [vmem:[%s36_s2] sm:$0x1] %v7_v2 }

// kernel: mul.23
= control target key start
LH: loop header
LB: loop body
LE: loop exit
PB: predicated region body
PF: predicated region fallthrough
CT: control target
= control target key end

     0   :  { %vm7_vm0 = vcmask 64512   ;;  %vm13_vm1 = vcmask 130112   ;;  %s39_s0 = inlined_call_operand.vmem [shape: f32[2,8], index: 0, kind: input, shape index: {}]   ;;  %s40_s1 = inlined_call_operand.vmem [shape: f32[16], index: 1, kind: output, shape index: {}]  }
   0x1   :  { %v4_v0 = vld [vmem:[%s39_s0] sm:$0x3]  ;;  %s22_s0 = smov 8  }
   0x2   :  { %5 = vst [vmem:[#allocation1] sm:$0x3] %v4_v0 }
   0x9   :  { %v10_v1 = vld [vmem:[#allocation1 + $0x1] sm:$0x1]   ;;  %v6_v2 = vld [vmem:[#allocation1] sm:$0x1]  }
   0xa   :  { %11 = vrot.lane.b32.xlu0 %v10_v1, %s22_s0  ;;  %8 = vst.msk [vmem:[#allocation0] sm:$0x1] %vm7_vm0, %v6_v2  }
  0x7c   :  { %v12_v3 = vpop.permute.xlu0 %11  }
  0x7d   :  { %14 = vst.msk [vmem:[#allocation0] sm:$0x1] %vm13_vm1, %v12_v3  }
  0x84   :  { %v18_v4 = vld [vmem:[#allocation0] sm:$0x1] }
  0x85   :  { %20 = vst [vmem:[%s40_s1] sm:$0x1] %v18_v4 }

// kernel: pre_dynamics_forward.15
= control target key start
LH: loop header
LB: loop body
LE: loop exit
PB: predicated region body
PF: predicated region fallthrough
CT: control target
= control target key end

     0   :  { %s382_s12 = smov 0   ;;  %s414_s0 = inlined_call_operand.vmem [shape: f32[16,32], index: 0, kind: input, shape index: {}]   ;;  %s415_s1 = inlined_call_operand.vmem [shape: f32[32,9], index: 1, kind: input, shape index: {}]   ;;  %s416_s2 = inlined_call_operand.vmem [shape: f32[1,9], index: 2, kind: input, shape index: {}]   ;;  %s417_s3 = inlined_call_operand.vmem [shape: f32[16,9], index: 3, kind: output, shape index: {}]  }
   0x1 LB: > { %s307_s13 = sadd.s32 4294967295, %s357_s12   ;;  %p311_p0 = scmp.ge.s32.totalorder %s357_s12, 1  ;;  %s357_s12 = sphi %s382_s12, %s13_s12  }
   0x2   : > { %p136_p1 = scmp.lt.s32.totalorder %s357_s12, 3 }
   0x4   : > { %p137_p2 = pnand %p311_p0, %p136_p1 }
   0x5   : > { %v167_v0 = vld [vmem:[%s415_s1] sm:$0xff] (!%p137_p2)  ;;  %v168_v1 = vld [vmem:[%s415_s1 + $0x8] sm:$0xff] (!%p137_p2)  ;;  %v169_v2 = vld [vmem:[%s415_s1 + $0x10] sm:$0xff] (!%p137_p2)  ;;  %v359_v3 = vmov (!%p137_p2), 0.0|0.0   ;;  %vm360_vm0 = vmmov (!%p137_p2), 0   ;;  %v361_v6 = vmov (!%p137_p2), 0.0  }
   0x6   : > { %140 = sbr.rel (%p137_p2) target bundleno = 232 (0xe8), region = 32  ;;  %334 = vmatprep.subr.bf16.mxu0 (!%p137_p2), %v359_v3  ;;  %v335_v4 = vpack.c.bf16 (!%p137_p2), %v168_v1, %v167_v0  ;;  %v170_v5 = vld [vmem:[%s415_s1 + $0x18] sm:$0xff] (!%p137_p2)  ;;  %331 = vmatprep.mubr.msk.f32.mxu0 (!%p137_p2), %vm360_vm0, %v361_v6  ;;  %p158_p3 = scmp.lt.s32.totalorder (!%p137_p2), %s307_s13, 1  ;;  %vm178_vm1 = vcmask (!%p137_p2), 261120   ;;  %v314_v9 = vld [vmem:[%s416_s2] ss:$0 sm:$0xff] (!%p137_p2) }
   0x7   : > { %v338_v7 = vpack.c.bf16 (!%p137_p2), %v170_v5, %v169_v2  ;;  %vm252_vm2 = vcmask (!%p137_p2), 72704  }
   0x8   : > { %336 = vmatpush3.bf16.msra.mxu0 (!%p137_p2), %v335_v4 }
   0x9   : > { %337 = vmatprep.subr.bf16.mxu0 (!%p137_p2), %v359_v3 }
   0xc   : > { %339 = vmatpush3.bf16.msra.mxu0 (!%p137_p2), %v338_v7 }
   0xd   : > { %s419_s13 = smov (!%p158_p3, %s307_s13), 1 }
   0xe   : > { %s312_s22 = sshll.u32 %s419_s13, 3 }
   0xf   : > { %s161_s25 = scalar_lea.vmem %s414_s0, %s312_s22  ;;  %s165_s30 = scalar_lea.vmem %s417_s3, %s312_s22 }
  0x10   : > { %v166_v8 = vld [vmem:[%s161_s25] sm:$0xff] }
  0x11   : > { %332 = vmatmul.mubr.msk.f32.vlgmr.msra.gmra.mrb[0].mxu0 %vm178_vm1, %v166_v8 }
  0xe4   : > { %v248_v10 = vpop.f32.mrb[0].mxu0 }
  0xe5   : > { %v249_v11 = vadd.f32 %v314_v9, %v248_v10  ;;  %v333_v12 = vpop.f32.mrb[1].mxu0 }
  0xe7   : > { %253 = vst.msk [vmem:[%s165_s30] sm:$0xff] %vm252_vm2, %v249_v11 }
  0xe8 PF: > { %s13_s12 = sadd.s32 1, %s357_s12  }
  0xe9   : > { %p10_p4 = scmp.ge.s32.totalorder %s13_s12, 4  }
  0xeb   :  { %12 = sbr.rel (!%p10_p4) target bundleno = 1 (0x1), region = 62 }

// kernel: pre_dynamics_forward.8
= control target key start
LH: loop header
LB: loop body
LE: loop exit
PB: predicated region body
PF: predicated region fallthrough
CT: control target
= control target key end

     0   :  { %s379_s12 = smov 0   ;;  %s405_s0 = inlined_call_operand.vmem [shape: f32[16,9], index: 0, kind: input, shape index: {}]   ;;  %s406_s1 = inlined_call_operand.vmem [shape: f32[9,32], index: 1, kind: input, shape index: {}]   ;;  %s407_s2 = inlined_call_operand.vmem [shape: f32[1,32], index: 2, kind: input, shape index: {}]   ;;  %s408_s3 = inlined_call_operand.vmem [shape: f32[16,32], index: 3, kind: output, shape index: {}]  }
   0x1 LB: > { %s309_s13 = sadd.s32 4294967295, %s353_s12   ;;  %p313_p0 = scmp.ge.s32.totalorder %s353_s12, 1  ;;  %s353_s12 = sphi %s379_s12, %s13_s12  }
   0x2   : > { %p136_p1 = scmp.lt.s32.totalorder %s353_s12, 3 }
   0x4   : > { %p137_p2 = pnand %p313_p0, %p136_p1 }
   0x5   : > { %v167_v0 = vld [vmem:[%s406_s1] sm:$0xff] (!%p137_p2)  ;;  %v168_v1 = vld [vmem:[%s406_s1 + $0x8] sm:$0x1] (!%p137_p2)  ;;  %vm180_vm0 = vcmask (!%p137_p2), 1040384   ;;  %v355_v2 = vmov (!%p137_p2), 0.0|0.0   ;;  %vm356_vm1 = vmmov (!%p137_p2), 1  }
   0x6   : > { %140 = sbr.rel (%p137_p2) target bundleno = 232 (0xe8), region = 32  ;;  %331 = vmatprep.subr.bf16.mxu0 (!%p137_p2), %v355_v2  ;;  %v332_v3 = vpack.c.bf16 (!%p137_p2), %v168_v1, %v167_v0  ;;  %vm333_vm2 = vmpackc.low (!%p137_p2), %vm180_vm0, %vm356_vm1  ;;  %p158_p3 = scmp.lt.s32.totalorder (!%p137_p2), %s309_s13, 1  ;;  %vm357_vm3 = vmmov (!%p137_p2), 0   ;;  %v358_v4 = vmov (!%p137_p2), 0.0   ;;  %vm176_vm4 = vcmask (!%p137_p2), 72704  }
   0x7   : > { %328 = vmatprep.mubr.msk.f32.mxu0 (!%p137_p2), %vm357_vm3, %v358_v4  ;;  %v316_v6 = vld [vmem:[%s407_s2] ss:$0 sm:$0xff] (!%p137_p2)  ;;  %vm254_vm5 = vcmask (!%p137_p2), 261120  }
   0x8   : > { %334 = vmatpush3.bf16.msk.msra.mxu0 (!%p137_p2), %vm333_vm2, %v332_v3 }
   0xd   : > { %s410_s13 = smov (!%p158_p3, %s309_s13), 1 }
   0xe   : > { %s314_s18 = sshll.u32 %s410_s13, 3 }
   0xf   : > { %s161_s21 = scalar_lea.vmem %s405_s0, %s314_s18  ;;  %s165_s26 = scalar_lea.vmem %s408_s3, %s314_s18 }
  0x10   : > { %v166_v5 = vld [vmem:[%s161_s21] sm:$0xff] }
  0x11   : > { %329 = vmatmul.mubr.msk.f32.vlgmr.msra.gmra.mrb[0].mxu0 %vm176_vm4, %v166_v5 }
  0xe4   : > { %v250_v7 = vpop.f32.mrb[0].mxu0 }
  0xe5   : > { %v251_v8 = vadd.f32 %v316_v6, %v250_v7  ;;  %v330_v9 = vpop.f32.mrb[1].mxu0 }
  0xe7   : > { %255 = vst.msk [vmem:[%s165_s26] sm:$0xff] %vm254_vm5, %v251_v8 }
  0xe8 PF: > { %s13_s12 = sadd.s32 1, %s353_s12  }
  0xe9   : > { %p10_p4 = scmp.ge.s32.totalorder %s13_s12, 4  }
  0xeb   :  { %12 = sbr.rel (!%p10_p4) target bundleno = 1 (0x1), region = 62 }

// kernel: pre_dynamics_forward.11
= control target key start
LH: loop header
LB: loop body
LE: loop exit
PB: predicated region body
PF: predicated region fallthrough
CT: control target
= control target key end

     0   :  { %s3451_s18 = smov 0   ;;  %s5770_s0 = inlined_call_operand.vmem [shape: f32[16,32], index: 0, kind: input, shape index: {}, may-alias: {0,1}]   ;;  %s5771_s1 = inlined_call_operand.vmem [shape: f32[16,32], index: 1, kind: input, shape index: {}, may-alias: {0,1}]   ;;  %s5772_s2 = inlined_call_operand.vmem [shape: f32[16,3], index: 2, kind: input, shape index: {}, may-alias: {2,3,4,5}]   ;;  %s5773_s3 = inlined_call_operand.vmem [shape: f32[16,3], index: 3, kind: input, shape index: {}, may-alias: {2,3,4,5}]   ;;  %s5774_s4 = inlined_call_operand.vmem [shape: f32[16,3], index: 4, kind: input, shape index: {}, may-alias: {2,3,4,5}]   ;;  %s5775_s5 = inlined_call_operand.vmem [shape: f32[16,3], index: 5, kind: input, shape index: {}, may-alias: {2,3,4,5}]   ;;  %s5776_s6 = inlined_call_operand.vmem [shape: f32[16,6], index: 6, kind: input, shape index: {}, may-alias: {6,7}]   ;;  %s5777_s7 = inlined_call_operand.vmem [shape: f32[16,6], index: 7, kind: input, shape index: {}, may-alias: {6,7}]   ;;  %s5778_s8 = inlined_call_operand.vmem [shape: f32[32,32], index: 8, kind: input, shape index: {}]   ;;  %s5779_s9 = inlined_call_operand.vmem [shape: f32[32,32], index: 9, kind: input, shape index: {}]   ;;  %s5780_s10 = inlined_call_operand.vmem [shape: f32[2,32], index: 10, kind: input, shape index: {}]   ;;  %s5781_s11 = inlined_call_operand.vmem [shape: f32[1,32], index: 11, kind: input, shape index: {}]   ;;  %s5782_s12 = inlined_call_operand.vmem [shape: f32[32,32], index: 12, kind: input, shape index: {}]   ;;  %s5783_s13 = inlined_call_operand.vmem [shape: f32[1,32], index: 13, kind: input, shape index: {}]   ;;  %s5784_s14 = inlined_call_operand.vmem [shape: f32[1,32], index: 14, kind: input, shape index: {}]   ;;  %s5785_s15 = inlined_call_operand.vmem [shape: f32[16,3], index: 15, kind: output, shape index: {}]  }
   0x1 LB: > { %s2972_s19 = sadd.s32 4294967295, %s3358_s18   ;;  %p2976_p0 = scmp.ge.s32.totalorder %s3358_s18, 1  ;;  %s3358_s18 = sphi %s3451_s18, %s25_s18  }
   0x2   : > { %p463_p1 = scmp.lt.s32.totalorder %s3358_s18, 3 }
   0x4   : > { %p464_p2 = pnand %p2976_p0, %p463_p1 }
   0x6   : > { %467 = sbr.rel (%p464_p2) target bundleno = 884 (0x374), region = 80 }
   0xd   : > { %v556_v0 = vld [vmem:[%s5778_s8] sm:$0xff]  ;;  %v557_v1 = vld [vmem:[%s5778_s8 + $0x8] sm:$0xff]  ;;  %v558_v2 = vld [vmem:[%s5778_s8 + $0x10] sm:$0xff]  ;;  %v654_v3 = vlaneseq  ;;  %v3360_v4 = vmov 0.0|0.0   ;;  %vm3361_vm0 = vmmov 0   ;;  %v5786_v9 = vmov 0.0  }
   0xe   : > { %3139 = vmatprep.subr.bf16.mxu0 %v3360_v4  ;;  %v3140_v5 = vpack.c.bf16 %v557_v1, %v556_v0  ;;  %v559_v6 = vld [vmem:[%s5778_s8 + $0x18] sm:$0xff]  ;;  %v545_v7 = vld [vmem:[%s5779_s9] sm:$0xff]  ;;  %v546_v8 = vld [vmem:[%s5779_s9 + $0x8] sm:$0xff]  ;;  %3093 = vmatprep.mubr.msk.f32.mxu0 %vm3361_vm0, %v5786_v9  ;;  %p521_p3 = scmp.lt.s32.totalorder %s2972_s19, 1  ;;  %vm5863_vm1 = vcmask 261120   ;;  %v5788_v20 = vmov 0  }
   0xf   : > { %v3145_v10 = vpack.c.bf16 %v546_v8, %v545_v7  ;;  %v547_v11 = vld [vmem:[%s5779_s9 + $0x10] sm:$0xff]  ;;  %v548_v12 = vld [vmem:[%s5779_s9 + $0x18] sm:$0xff]  ;;  %v641_v13 = vld [vmem:[%s5771_s1] sm:$0xff]  ;;  %v3143_v14 = vpack.c.bf16 %v559_v6, %v558_v2  ;;  %v3363_v16 = vmov 1966171168   ;;  %v3488_v18 = vshrl.u32 %v654_v3, 7  ;;  %3184 = vset.pattern.permute.xlu0 %v5788_v20  ;;  %3185 = vset.pattern.permute.xlu1 %v5788_v20 }
  0x10   : > { %3141 = vmatpush3.bf16.msra.mxu0 %v3140_v5  ;;  %s6440_s19 = smov (!%p521_p3, %s2972_s19), 1  ;;  %v3149_v15 = vpack.c.bf16 %v548_v12, %v547_v11  ;;  %3104 = vmatprep.mubr.msk.f32.mxu1 %vm5863_vm1, %v641_v13  ;;  %v652_v17 = vunpack.c.l.s4 %v3363_v16  ;;  %v642_v24 = vld [vmem:[%s5771_s1 + $0x8] sm:$0xff]  ;;  %v3553_v42 = vld [vmem:[%s5773_s3] sm:$0xff]  ;;  %vm5861_vm2 = vcmask 23552   ;;  %s3365_s27 = smov 127  }
  0x11   : > { %3142 = vmatprep.subr.bf16.mxu0 %v3360_v4  ;;  %3146 = vmatprep.subr.bf16.mxu1 %v3145_v10  ;;  %s3490_s25 = sshll.u32 %s6440_s19, 3  ;;  %v3517_v26 = vsub.s32 0, %v3488_v18  ;;  %v3529_v34 = vld [vmem:[%s5773_s3 + $0x8] sm:$0xff]  ;;  %v3566_v47 = vld [vmem:[%s5775_s5] sm:$0xff]  ;;  %s3367_s29 = smov 124  }
  0x12   : > { %3148 = vmatpush3.bf16.msra.mxu1 %v3145_v10  ;;  %v653_v19 = vunpack.c.0.s8 %v652_v17  ;;  %s524_s28 = scalar_lea.vmem %s5770_s0, %s3490_s25  ;;  %s3502_s19 = scalar_lea.vmem %s5772_s2, %s3490_s25  ;;  %v3540_v38 = vld [vmem:[%s5775_s5 + $0x8] sm:$0xff] }
  0x13   : > { %3150 = vmatprep.subr.bf16.mxu1 %v3149_v15  ;;  %v541_v21 = vld [vmem:[%s524_s28] sm:$0xff]  ;;  %s532_s20 = scalar_lea.vmem %s5774_s4, %s3490_s25  ;;  %s3740_s21 = scalar_lea.vmem %s5776_s6, %s3490_s25 }
  0x14   : > { %3144 = vmatpush3.bf16.msra.mxu0 %v3143_v14  ;;  %v3505_v22 = vsub.s32 %v653_v19, %v3488_v18  ;;  %v542_v23 = vld [vmem:[%s3502_s19] sm:$0xff]  ;;  %s3366_s28 = smov 1  }
  0x15   : > { %v543_v27 = vld [vmem:[%s532_s20] sm:$0xff]  ;;  %v650_v28 = vcombine.high %v542_v23, %v542_v23  ;;  %s3368_s20 = smov 123  }
  0x16   : > { %3152 = vmatpush3.bf16.msra.mxu1 %v3149_v15  ;;  %v657_v25 = vrot.slane %v542_v23, %v3505_v22  ;;  %v828_v29 = vrot.slane %v543_v27, %v3505_v22  ;;  %v821_v30 = vcombine.high %v543_v27, %v543_v27 }
  0x17   : > { %3094 = vmatmul.mubr.msk.f32.vlgmr.msra.gmra.mrb[0].mxu0 %vm5863_vm1, %v541_v21  ;;  %v664_v32 = vrot.slane %v650_v28, %v3505_v22 }
  0x18   : > { %v3522_v31 = vrot.slane %v657_v25, %v3505_v22  ;;  %v665_v33 = vcombine.high %v657_v25, %v657_v25  ;;  %v3532_v35 = vrot.slane %v828_v29, %v3505_v22  ;;  %v835_v36 = vrot.slane %v821_v30, %v3505_v22 }
  0x19   : > { %3105 = vmatmul.mubr.msk.f32.vlgmr.msra.gmra.mrb[0].mxu1 %vm5863_vm1, %v642_v24  ;;  %v3543_v39 = vrot.slane %v664_v32, %v3505_v22  ;;  %v836_v44 = vcombine.high %v828_v29, %v828_v29  ;;  %v666_v62 = vcombine.high %v664_v32, %v664_v32 }
  0x1a   : > { %v702_v37 = vrot.slane %v3522_v31, %v3517_v26  ;;  %v3546_v40 = vrot.slane %v665_v33, %v3505_v22  ;;  %v873_v41 = vrot.slane %v3532_v35, %v3517_v26  ;;  %v3556_v43 = vrot.slane %v835_v36, %v3505_v22 }
  0x1b   : > { %v718_v46 = vrot.slane %v3543_v39, %v3517_v26  ;;  %v3585_v58 = vrot.slane %v836_v44, %v3505_v22  ;;  %v837_v6 = vcombine.high %v835_v36, %v835_v36  ;;  %v3605_v8 = vrot.slane %v666_v62, %v3505_v22 }
  0x1c   : > { %v3559_v45 = vsub.f32 %v702_v37, %v3529_v34  ;;  %v3569_v48 = vsub.f32 %v702_v37, %v3553_v42  ;;  %v911_v49 = vsub.f32 %v873_v41, %v3540_v38  ;;  %v889_v50 = vrot.slane %v3556_v43, %v3517_v26 }
  0x1d   : > { %v910_v51 = vsub.f32 %v873_v41, %v3566_v47  ;;  %v3578_v53 = vsub.f32 %v718_v46, %v3553_v42  ;;  %v706_v55 = vrot.slane %v3546_v40, %v3517_v26  ;;  %v877_v3 = vrot.slane %v3585_v58, %v3517_v26 }
  0x1e   : > { %5928 = vst [vmem:[#allocation2_spill] sm:$0xff] %v3559_v45  ;;  %5929 = vst [vmem:[#allocation3_spill] sm:$0xff] %v3569_v48  ;;  %v756_v52 = vmul.f32 %v3559_v45, %v3559_v45  ;;  %v755_v54 = vmul.f32 %v3569_v48, %v3569_v48  ;;  %v927_v56 = vmul.f32 %v911_v49, %v911_v49 }
  0x1f   : > { %5930 = vst [vmem:[#allocation4_spill] sm:$0xff] %v3578_v53  ;;  %v926_v57 = vmul.f32 %v910_v51, %v910_v51  ;;  %v918_v61 = vsub.f32 %v889_v50, %v3566_v47  ;;  %v763_v0 = vmul.f32 %v3578_v53, %v3578_v53  ;;  %v3595_v2 = vsub.f32 %v706_v55, %v3553_v42 }
  0x20   : > { %v775_v59 = vsel %vm5861_vm2, %v756_v52, 0.0  ;;  %v772_v60 = vsel %vm5861_vm2, %v755_v54, 0.0  ;;  %v945_v63 = vsel %vm5861_vm2, %v927_v56, 0.0  ;;  %v3600_v4 = vsub.f32 %v718_v46, %v3529_v34 }
  0x21   : > { %776 = vadd.xlane.f32.xlu1 %v775_v59  ;;  %773 = vadd.xlane.f32.xlu0 %v772_v60  ;;  %v942_v1 = vsel %vm5861_vm2, %v926_v57, 0.0  ;;  %5931 = vst [vmem:[#allocation5_spill] sm:$0xff] %v3595_v2  ;;  %v757_v5 = vmul.f32 %v3595_v2, %v3595_v2  ;;  %v934_v7 = vmul.f32 %v918_v61, %v918_v61  ;;  %v796_v11 = vsel %vm5861_vm2, %v763_v0, 0.0 }
  0x22   : > { %5932 = vst [vmem:[#allocation6_spill] sm:$0xff] %v3600_v4  ;;  %v912_v10 = vsub.f32 %v877_v3, %v3566_v47  ;;  %v3611_v13 = vsub.f32 %v706_v55, %v3529_v34  ;;  %v764_v15 = vmul.f32 %v3600_v4, %v3600_v4  ;;  %v919_v16 = vsub.f32 %v889_v50, %v3540_v38 }
  0x23   : > { %v778_v12 = vsel %vm5861_vm2, %v757_v5, 0.0  ;;  %v695_v17 = vcombine.high %v3522_v31, %v3522_v31  ;;  %v966_v19 = vsel %vm5861_vm2, %v934_v7, 0.0  ;;  %v722_v21 = vrot.slane %v3605_v8, %v3517_v26 }
  0x24   : > { %5933 = vst [vmem:[#allocation7_spill] sm:$0xff] %v3611_v13  ;;  %v928_v14 = vmul.f32 %v912_v10, %v912_v10  ;;  %v3622_v23 = vrot.slane %v837_v6, %v3505_v22  ;;  %v913_v24 = vsub.f32 %v877_v3, %v3540_v38  ;;  %v758_v27 = vmul.f32 %v3611_v13, %v3611_v13 }
  0x25   : > { %946 = vadd.xlane.f32.xlu1 %v945_v63  ;;  %943 = vadd.xlane.f32.xlu0 %v942_v1  ;;  %v710_v28 = vrot.slane %v695_v17, %v3517_v26  ;;  %v866_v29 = vcombine.high %v3532_v35, %v3532_v35  ;;  %v799_v30 = vsel %vm5861_vm2, %v764_v15, 0.0  ;;  %v935_v31 = vmul.f32 %v919_v16, %v919_v16 }
  0x26   : > { %v948_v25 = vsel %vm5861_vm2, %v928_v14, 0.0  ;;  %v3633_v32 = vsub.f32 %v722_v21, %v3553_v42  ;;  %v893_v33 = vrot.slane %v3622_v23, %v3517_v26  ;;  %v781_v36 = vsel %vm5861_vm2, %v758_v27, 0.0 }
  0x27   : > { %v929_v37 = vmul.f32 %v913_v24, %v913_v24  ;;  %v3639_v41 = vsub.f32 %v710_v28, %v3553_v42  ;;  %v881_v44 = vrot.slane %v866_v29, %v3517_v26  ;;  %v969_v35 = vsel %vm5861_vm2, %v935_v31, 0.0 }
  0x28   : > { %5934 = vst [vmem:[#allocation8_spill] sm:$0xff] %v3633_v32  ;;  %v920_v46 = vsub.f32 %v893_v33, %v3566_v47  ;;  %v765_v49 = vmul.f32 %v3633_v32, %v3633_v32  ;;  %v3651_v54 = vsub.f32 %v722_v21, %v3529_v34  ;;  %v696_v56 = vcombine.high %v3543_v39, %v3543_v39 }
  0x29   : > { %797 = vadd.xlane.f32.xlu1 %v796_v11  ;;  %779 = vadd.xlane.f32.xlu0 %v778_v12  ;;  %5935 = vst [vmem:[#allocation9_spill] sm:$0xff] %v3639_v41  ;;  %v951_v50 = vsel %vm5861_vm2, %v929_v37, 0.0  ;;  %v759_v51 = vmul.f32 %v3639_v41, %v3639_v41  ;;  %v914_v52 = vsub.f32 %v881_v44, %v3566_v47 }
  0x2a   : > { %5936 = vst [vmem:[#allocation10_spill] sm:$0xff] %v3651_v54  ;;  %v936_v55 = vmul.f32 %v920_v46, %v920_v46  ;;  %v697_v57 = vcombine.high %v3546_v40, %v3546_v40  ;;  %v802_v59 = vsel %vm5861_vm2, %v765_v49, 0.0  ;;  %v3660_v62 = vsub.f32 %v710_v28, %v3529_v34 }
  0x2b   : > { %v784_v60 = vsel %vm5861_vm2, %v759_v51, 0.0  ;;  %v930_v61 = vmul.f32 %v914_v52, %v914_v52  ;;  %v766_v63 = vmul.f32 %v3651_v54, %v3651_v54  ;;  %v921_v0 = vsub.f32 %v893_v33, %v3540_v38 }
  0x2c   : > { %5937 = vst [vmem:[#allocation11_spill] sm:$0xff] %v3660_v62  ;;  %v972_v1 = vsel %vm5861_vm2, %v936_v55, 0.0  ;;  %v726_v39 = vrot.slane %v696_v56, %v3517_v26  ;;  %v867_v40 = vcombine.high %v3556_v43, %v3556_v43  ;;  %v714_v3 = vrot.slane %v697_v57, %v3517_v26 }
  0x2d   : > { %967 = vadd.xlane.f32.xlu1 %v966_v19  ;;  %949 = vadd.xlane.f32.xlu0 %v948_v25  ;;  %v954_v5 = vsel %vm5861_vm2, %v930_v61, 0.0  ;;  %v760_v6 = vmul.f32 %v3660_v62, %v3660_v62  ;;  %v915_v7 = vsub.f32 %v881_v44, %v3540_v38  ;;  %v868_v10 = vcombine.high %v3585_v58, %v3585_v58 }
  0x2e   : > { %v805_v11 = vsel %vm5861_vm2, %v766_v63, 0.0  ;;  %v937_v12 = vmul.f32 %v921_v0, %v921_v0  ;;  %v3678_v14 = vsub.f32 %v726_v39, %v3553_v42  ;;  %v897_v43 = vrot.slane %v867_v40, %v3517_v26 }
  0x2f   : > { %v787_v15 = vsel %vm5861_vm2, %v760_v6, 0.0  ;;  %v931_v16 = vmul.f32 %v915_v7, %v915_v7  ;;  %v3683_v17 = vsub.f32 %v714_v3, %v3553_v42  ;;  %v885_v19 = vrot.slane %v868_v10, %v3517_v26 }
  0x30   : > { %5938 = vst [vmem:[#allocation12_spill] sm:$0xff] %v3678_v14  ;;  %v767_v58 = vmul.f32 %v3678_v14, %v3678_v14  ;;  %v922_v21 = vsub.f32 %v897_v43, %v3566_v47  ;;  %v975_v24 = vsel %vm5861_vm2, %v937_v12, 0.0  ;;  %v3696_v31 = vsub.f32 %v726_v39, %v3529_v34 }
  0x31   : > { %800 = vadd.xlane.f32.xlu1 %v799_v30  ;;  %782 = vadd.xlane.f32.xlu0 %v781_v36  ;;  %5939 = vst [vmem:[#allocation13_spill] sm:$0xff] %v3683_v17  ;;  %v957_v25 = vsel %vm5861_vm2, %v931_v16, 0.0  ;;  %v761_v27 = vmul.f32 %v3683_v17, %v3683_v17  ;;  %v916_v28 = vsub.f32 %v885_v19, %v3566_v47 }
  0x32   : > { %v808_v29 = vsel %vm5861_vm2, %v767_v58, 0.0  ;;  %v938_v30 = vmul.f32 %v922_v21, %v922_v21  ;;  %5940 = vst [vmem:[#allocation14_spill] sm:$0xff] %v3696_v31  ;;  %v869_v33 = vcombine.high %v3622_v23, %v3622_v23  ;;  %v3702_v44 = vsub.f32 %v714_v3, %v3529_v34 }
  0x33   : > { %v790_v36 = vsel %vm5861_vm2, %v761_v27, 0.0  ;;  %v932_v37 = vmul.f32 %v916_v28, %v916_v28  ;;  %v768_v49 = vmul.f32 %v3696_v31, %v3696_v31  ;;  %v917_v55 = vsub.f32 %v885_v19, %v3540_v38 }
  0x34   : > { %5941 = vst [vmem:[#allocation15_spill] sm:$0xff] %v3702_v44  ;;  %v978_v46 = vsel %vm5861_vm2, %v938_v30, 0.0  ;;  %v901_v23 = vrot.slane %v869_v33, %v3517_v26  ;;  %v762_v52 = vmul.f32 %v3702_v44, %v3702_v44  ;;  %v550_v30 = vld [vmem:[%s5782_s12] sm:$0xff]  ;;  %v551_v33 = vld [vmem:[%s5782_s12 + $0x8] sm:$0xff] }
  0x35   : > { %970 = vadd.xlane.f32.xlu1 %v969_v35  ;;  %952 = vadd.xlane.f32.xlu0 %v951_v50  ;;  %v698_v35 = vcombine.high %v3605_v8, %v3605_v8  ;;  %v923_v50 = vsub.f32 %v897_v43, %v3540_v38  ;;  %v960_v51 = vsel %vm5861_vm2, %v932_v37, 0.0  ;;  %v811_v56 = vsel %vm5861_vm2, %v768_v49, 0.0  ;;  %v3758_v43 = vld [vmem:[%s5777_s7] sm:$0xff]  ;;  %v552_v37 = vld [vmem:[%s5782_s12 + $0x10] sm:$0xff] }
  0x36   : > { %v933_v61 = vmul.f32 %v917_v55, %v917_v55  ;;  %vm5862_vm4 = vcmp.gt.f32.partialorder %v3758_v43, 0.5 }
  0x37   : > { %v730_v8 = vrot.slane %v698_v35, %v3517_v26  ;;  %v939_v57 = vmul.f32 %v923_v50, %v923_v50  ;;  %v1262_v21 = vsel %vm5862_vm4, 1, %v5788_v20  ;;  %v553_v35 = vld [vmem:[%s5782_s12 + $0x18] sm:$0xff] }
  0x38   : > { %v963_v40 = vsel %vm5861_vm2, %v933_v61, 0.0 }
  0x39   : > { %803 = vadd.xlane.f32.xlu1 %v802_v59  ;;  %785 = vadd.xlane.f32.xlu0 %v784_v60  ;;  %v924_v59 = vsub.f32 %v901_v23, %v3566_v47  ;;  %v793_v60 = vsel %vm5861_vm2, %v762_v52, 0.0  ;;  %v3720_v63 = vsub.f32 %v730_v8, %v3553_v42  ;;  %v981_v0 = vsel %vm5861_vm2, %v939_v57, 0.0 }
  0x3a   : > { %v3728_v47 = vsub.f32 %v730_v8, %v3529_v34  ;;  %v3743_v34 = vld [vmem:[%s3740_s21] sm:$0xff] }
  0x3b   : > { %5942 = vst [vmem:[#allocation16_spill] sm:$0xff] %v3720_v63  ;;  %v940_v39 = vmul.f32 %v924_v59, %v924_v59  ;;  %v769_v3 = vmul.f32 %v3720_v63, %v3720_v63  ;;  %v3752_v12 = vrot.slane %v3743_v34, %v3505_v22 }
  0x3c   : > { %5943 = vst [vmem:[#allocation17_spill] sm:$0xff] %v3728_v47 }
  0x3d   : > { %973 = vadd.xlane.f32.xlu1 %v972_v1  ;;  %955 = vadd.xlane.f32.xlu0 %v954_v5  ;;  %v925_v1 = vsub.f32 %v901_v23, %v3540_v38  ;;  %v984_v42 = vsel %vm5861_vm2, %v940_v39, 0.0  ;;  %v814_v6 = vsel %vm5861_vm2, %v769_v3, 0.0  ;;  %v770_v38 = vmul.f32 %v3728_v47, %v3728_v47 }
  0x3e   : > { %v991_v3 = vcombine.high %v3743_v34, %v3743_v34  ;;  %v5975_v47 = vmov 0  }
  0x3f   : > { %v941_v5 = vmul.f32 %v925_v1, %v925_v1  ;;  %v817_v10 = vsel %vm5861_vm2, %v770_v38, 0.0 }
  0x41   : > { %806 = vadd.xlane.f32.xlu1 %v805_v11  ;;  %788 = vadd.xlane.f32.xlu0 %v787_v15  ;;  %v987_v7 = vsel %vm5861_vm2, %v941_v5, 0.0  ;;  %v3748_v11 = vld [vmem:[%s5777_s7 + $0x8] sm:$0xff]  ;;  %v3762_v15 = vrot.slane %v3752_v12, %v3505_v22 }
  0x42   : > { %vm5866_vm3 = vcmp.gt.f32.partialorder %v3748_v11, 0.5 }
  0x43   : > { %v1263_v16 = vsel %vm5866_vm3, 1, %v5788_v20  ;;  %v1129_v19 = vrot.slane %v3762_v15, %v3517_v26  ;;  %vm1048_vm7 = vcmp.gt.f32.partialorder %v3762_v15, 0.5 }
  0x44   : > { %v3899_v17 = vsel %vm1048_vm7, 1, %v5975_v47 }
  0x45   : > { %976 = vadd.xlane.f32.xlu1 %v975_v24  ;;  %958 = vadd.xlane.f32.xlu0 %v957_v25  ;;  %v1166_v58 = vsub.f32 %v1129_v19, %v3758_v43  ;;  %v1167_v25 = vsub.f32 %v1129_v19, %v3748_v11  ;;  %v1036_v19 = vcombine.high %v3762_v15, %v3762_v15 }
  0x46   : > { %v1069_v62 = vrot.slane %v3899_v17, %v3517_v26 }
  0x47   : > { %v3775_v24 = vand.u32 2147483647, %v1166_v58  ;;  %v3780_v27 = vand.u32 2147483647, %v1167_v25  ;;  %vm1050_vm9 = vcmp.gt.f32.partialorder %v1036_v19, 0.5 }
  0x49   : > { %809 = vadd.xlane.f32.xlu1 %v808_v29  ;;  %791 = vadd.xlane.f32.xlu0 %v790_v36  ;;  %5944 = vst [vmem:[#allocation18_spill] sm:$0xff] %v3775_v24  ;;  %vm1198_vm5 = vcmp.lt.f32.partialorder %v3775_v24, 0.5  ;;  %5945 = vst [vmem:[#allocation19_spill] sm:$0xff] %v3780_v27  ;;  %vm1199_vm6 = vcmp.lt.f32.partialorder %v3780_v27, 0.5  ;;  %v3153_v36 = vpack.c.bf16 %v551_v33, %v550_v30 }
  0x4a   : > { %v1404_v28 = vsel %vm1198_vm5, 1, %v5788_v20  ;;  %v1405_v29 = vsel %vm1199_vm6, 1, %v5788_v20  ;;  %vm4038_vm6 = vcmp.eq.s32.totalorder %v1069_v62, 1 }
  0x4b   : > { %3154 = vmatprep.subr.bf16.mxu0 %v3153_v36  ;;  %3161 = vmatprep.subr.bf16.mxu1 %v3153_v36 }
  0x4c   : > { %3156 = vmatpush3.bf16.msra.mxu0 %v3153_v36  ;;  %3163 = vmatpush3.bf16.msra.mxu1 %v3153_v36 }
  0x4d   : > { %979 = vadd.xlane.f32.xlu1 %v978_v46  ;;  %961 = vadd.xlane.f32.xlu0 %v960_v51  ;;  %v3157_v46 = vpack.c.bf16 %v553_v35, %v552_v37  ;;  %v1875_v35 = vsub.s32 1, %v3488_v18 }
  0x4f   : > { %3158 = vmatprep.subr.bf16.mxu0 %v3157_v46  ;;  %3162 = vmatprep.subr.bf16.mxu1 %v3157_v46 }
  0x50   : > { %3160 = vmatpush3.bf16.msra.mxu0 %v3157_v46  ;;  %3164 = vmatpush3.bf16.msra.mxu1 %v3157_v46 }
  0x51   : > { %812 = vadd.xlane.f32.xlu1 %v811_v56  ;;  %794 = vadd.xlane.f32.xlu0 %v793_v60 }
  0x55   : > { %982 = vadd.xlane.f32.xlu1 %v981_v0  ;;  %964 = vadd.xlane.f32.xlu0 %v963_v40 }
  0x59   : > { %985 = vadd.xlane.f32.xlu1 %v984_v42  ;;  %815 = vadd.xlane.f32.xlu0 %v814_v6  ;;  %v1006_v6 = vcombine.high %v3752_v12, %v3752_v12  ;;  %v1137_v12 = vrot.slane %v1036_v19, %v3517_v26 }
  0x5b   : > { %v1171_v19 = vsub.f32 %v1137_v12, %v3748_v11 }
  0x5d   : > { %988 = vadd.xlane.f32.xlu1 %v987_v7  ;;  %818 = vadd.xlane.f32.xlu0 %v817_v10  ;;  %v1005_v10 = vrot.slane %v991_v3, %v3505_v22  ;;  %v3969_v13 = vand.u32 2147483647, %v1171_v19 }
  0x5f   : > { %v1007_v58 = vcombine.high %v1005_v10, %v1005_v10 }
  0x6e   : > { %1266 = vrot.lane.b32.xlu1 %v1263_v16, %s3365_s27 }
  0x72   : > { %1286 = vrot.lane.b32.xlu1 %v1262_v21, %s3366_s28 }
  0x73   : > { %1264 = vrot.lane.b32.xlu0 %v1262_v21, %s3365_s27 }
  0x76   : > { %1288 = vrot.lane.b32.xlu1 %v1263_v16, %s3366_s28  ;;  %v1028_v16 = vrot.slane %v1006_v6, %v3505_v22  ;;  %s540_s28 = scalar_lea.vmem %s5785_s15, %s3490_s25 }
  0x77   : > { %1420 = vrot.lane.b32.xlu0 %v1404_v28, %s3367_s29  ;;  %v3854_v28 = vrot.slane %v1005_v10, %v3505_v22  ;;  %v1170_v10 = vsub.f32 %v1137_v12, %v3758_v43 }
  0x78   : > { %v1133_v34 = vrot.slane %v1028_v16, %v3517_v26  ;;  %v1038_v30 = vcombine.high %v1028_v16, %v1028_v16  ;;  %vm1049_vm8 = vcmp.gt.f32.partialorder %v1028_v16, 0.5 }
  0x79   : > { %v3861_v33 = vcombine.high %v3854_v28, %v3854_v28  ;;  %vm1052_vm10 = vcmp.gt.f32.partialorder %v3854_v28, 0.5  ;;  %v3896_v16 = vand.u32 2147483647, %v1170_v10 }
  0x7a   : > { %1422 = vrot.lane.b32.xlu1 %v1405_v29, %s3367_s29  ;;  %v3857_v29 = vrot.slane %v1007_v58, %v3505_v22  ;;  %v1168_v36 = vsub.f32 %v1133_v34, %v3758_v43  ;;  %v1169_v37 = vsub.f32 %v1133_v34, %v3748_v11  ;;  %v549_v58 = vld [vmem:[%s5780_s10] sm:$0x3]  ;;  %vm1051_vm12 = vcmp.gt.f32.partialorder %v1038_v30, 0.5 }
  0x7b   : > { %vm1054_vm13 = vcmp.gt.f32.partialorder %v3861_v33, 0.5  ;;  %v3887_v9 = vrot.slane %v549_v58, %v3517_v26  ;;  %v3889_v20 = vrot.slane %v549_v58, %v1875_v35  ;;  %5974 = vst [vmem:[#allocation48_spill] sm:$0xff] %v3896_v16  ;;  %v3908_v35 = vrot.slane %v1038_v30, %v3517_v26 }
  0x7c   : > { %v3872_v6 = vcombine.high %v3857_v29, %v3857_v29  ;;  %vm1053_vm11 = vcmp.gt.f32.partialorder %v3857_v29, 0.5  ;;  %v3882_v18 = vand.u32 2147483647, %v1168_v36  ;;  %v3884_v34 = vand.u32 2147483647, %v1169_v37 }
  0x7d   : > { %v3902_v36 = vsel %vm1049_vm8, 1, %v5975_v47  ;;  %v3905_v37 = vsel %vm1052_vm10, 1, %v5975_v47  ;;  %v3912_v58 = vsel %vm1050_vm9, 1, %v5975_v47  ;;  %v3915_v44 = vsel %vm1051_vm12, 1, %v5975_v47 }
  0x7e   : > { %5969 = vst [vmem:[#allocation43_spill] sm:$0xff] %v3872_v6  ;;  %5970 = vst [vmem:[#allocation44_spill] sm:$0xff] %v3882_v18  ;;  %vm1055_vm14 = vcmp.gt.f32.partialorder %v3872_v6, 0.5  ;;  %v3920_v10 = vsel %vm1053_vm11, 1, %v5975_v47  ;;  %v3925_v14 = vsel %vm1054_vm13, 1, %v5975_v47  ;;  %vm1200_vm15 = vcmp.lt.f32.partialorder %v3882_v18, 0.5 }
  0x7f   : > { %5971 = vst [vmem:[#allocation45_spill] sm:$0xff] %v3884_v34  ;;  %v3928_v30 = vsel %vm1055_vm14, 1, %v5975_v47  ;;  %vm1201_vm0 = vcmp.lt.f32.partialorder %v3884_v34, 0.5  ;;  %v1073_v32 = vrot.slane %v3902_v36, %v3517_v26  ;;  %vm1202_vm5 = vcmp.lt.f32.partialorder %v3896_v16, 0.5 }
  0x80   : > { %v1077_v53 = vrot.slane %v3912_v58, %v3517_v26  ;;  %v1172_v17 = vsub.f32 %v3908_v35, %v3758_v43  ;;  %v3957_v48 = vsel %vm1200_vm15, 1, %v5975_v47  ;;  %v3960_v58 = vsel %vm1201_vm0, 1, %v5975_v47 }
  0x81   : > { %v3967_v45 = vsel %vm1202_vm5, 1, %v5975_v47  ;;  %vm4049_vm7 = vcmp.eq.s32.totalorder %v1073_v32, 1  ;;  %v5989_v32 = vmov 0 }
  0x82   : > { %5978 = vst [vmem:[#allocation51_spill] sm:$0xff] %v3967_v45  ;;  %v3985_v34 = vand.u32 2147483647, %v1172_v17  ;;  %v2982_v17 = vld [vmem:[%s5781_s11] ss:$0 sm:$0xff]  ;;  %vm4065_vm8 = vcmp.eq.s32.totalorder %v1077_v53, 1 }
  0x83   : > { %v5990_v32 = vsel %vm4065_vm8, 4294967295, %v5989_v32 }
  0xae   : > { %v3799_v49 = vpop.xlane.xlu1 %776  ;;  %v3801_v50 = vpop.xlane.xlu0 %773 }
  0xaf   : > { %5946 = vst [vmem:[#allocation20_spill] sm:$0xff] %v3799_v49  ;;  %5947 = vst [vmem:[#allocation21_spill] sm:$0xff] %v3801_v50  ;;  %v1858_v12 = vmul.f32 %v3887_v9, %v3799_v49  ;;  %v1857_v4 = vmul.f32 %v3887_v9, %v3801_v50 }
  0xb2   : > { %v3803_v23 = vpop.xlane.xlu1 %946  ;;  %v3805_v51 = vpop.xlane.xlu0 %943 }
  0xb3   : > { %5948 = vst [vmem:[#allocation22_spill] sm:$0xff] %v3803_v23  ;;  %5949 = vst [vmem:[#allocation23_spill] sm:$0xff] %v3805_v51  ;;  %v1878_v54 = vmul.f32 %v3889_v20, %v3803_v23  ;;  %v1877_v49 = vmul.f32 %v3889_v20, %v3805_v51  ;;  %v3989_v23 = vrot.slane %v3854_v28, %v3517_v26 }
  0xb5   : > { %v4012_v18 = vadd.f32 %v1878_v54, %v1858_v12  ;;  %v4016_v27 = vadd.f32 %v1877_v49, %v1857_v4 }
  0xb6   : > { %v3807_v52 = vpop.xlane.xlu1 %797  ;;  %v3809_v55 = vpop.xlane.xlu0 %779 }
  0xb7   : > { %5950 = vst [vmem:[#allocation24_spill] sm:$0xff] %v3807_v52  ;;  %5951 = vst [vmem:[#allocation25_spill] sm:$0xff] %v3809_v55  ;;  %v1865_v36 = vmul.f32 %v3887_v9, %v3807_v52  ;;  %v1859_v50 = vmul.f32 %v3887_v9, %v3809_v55 }
  0xba   : > { %v3811_v8 = vpop.xlane.xlu1 %967  ;;  %v3813_v56 = vpop.xlane.xlu0 %949 }
  0xbb   : > { %5952 = vst [vmem:[#allocation26_spill] sm:$0xff] %v3811_v8  ;;  %5953 = vst [vmem:[#allocation27_spill] sm:$0xff] %v3813_v56  ;;  %v1885_v2 = vmul.f32 %v3889_v20, %v3811_v8  ;;  %v1879_v19 = vmul.f32 %v3889_v20, %v3813_v56 }
  0xbd   : > { %v4022_v45 = vadd.f32 %v1879_v19, %v1859_v50  ;;  %v5982_v19 = vmov 0 }
  0xbe   : > { %v3815_v57 = vpop.xlane.xlu1 %800  ;;  %v3817_v59 = vpop.xlane.xlu0 %782  ;;  %v5983_v19 = vsel %vm4038_vm6, 4294967295, %v5982_v19 }
  0xbf   : > { %5954 = vst [vmem:[#allocation28_spill] sm:$0xff] %v3815_v57  ;;  %5955 = vst [vmem:[#allocation29_spill] sm:$0xff] %v3817_v59  ;;  %v1866_v52 = vmul.f32 %v3887_v9, %v3815_v57  ;;  %v1860_v51 = vmul.f32 %v3887_v9, %v3817_v59 }
  0xc0   : > { %5984 = vst [vmem:[#allocation55_spill] sm:$0xff] %v5983_v19 }
  0xc2   : > { %v3819_v60 = vpop.xlane.xlu1 %970  ;;  %v3821_v61 = vpop.xlane.xlu0 %952 }
  0xc3   : > { %5956 = vst [vmem:[#allocation30_spill] sm:$0xff] %v3819_v60  ;;  %5957 = vst [vmem:[#allocation31_spill] sm:$0xff] %v3821_v61  ;;  %v1886_v8 = vmul.f32 %v3889_v20, %v3819_v60  ;;  %v1880_v55 = vmul.f32 %v3889_v20, %v3821_v61  ;;  %v4014_v61 = vadd.f32 %v1885_v2, %v1865_v36 }
  0xc5   : > { %v4028_v2 = vadd.f32 %v1886_v8, %v1866_v52  ;;  %v4030_v4 = vadd.f32 %v1880_v55, %v1860_v51  ;;  %v5985_v8 = vmov 0 }
  0xc6   : > { %v3823_v0 = vpop.xlane.xlu1 %803  ;;  %v3825_v1 = vpop.xlane.xlu0 %785  ;;  %v5986_v8 = vsel %vm4049_vm7, 4294967295, %v5985_v8 }
  0xc7   : > { %5958 = vst [vmem:[#allocation32_spill] sm:$0xff] %v3823_v0  ;;  %5959 = vst [vmem:[#allocation33_spill] sm:$0xff] %v3825_v1  ;;  %v1867_v28 = vmul.f32 %v3887_v9, %v3823_v0  ;;  %v1861_v60 = vmul.f32 %v3887_v9, %v3825_v1 }
  0xca   : > { %v3827_v39 = vpop.xlane.xlu1 %973  ;;  %v3829_v40 = vpop.xlane.xlu0 %955 }
  0xcb   : > { %5960 = vst [vmem:[#allocation34_spill] sm:$0xff] %v3827_v39  ;;  %v1887_v57 = vmul.f32 %v3889_v20, %v3827_v39  ;;  %v1881_v59 = vmul.f32 %v3889_v20, %v3829_v40 }
  0xcd   : > { %v4042_v0 = vadd.f32 %v1887_v57, %v1867_v28 }
  0xce   : > { %v3833_v42 = vpop.xlane.xlu1 %806  ;;  %v3835_v5 = vpop.xlane.xlu0 %788 }
  0xcf   : > { %5961 = vst [vmem:[#allocation35_spill] sm:$0xff] %v3833_v42  ;;  %5962 = vst [vmem:[#allocation36_spill] sm:$0xff] %v3835_v5  ;;  %v1868_v1 = vmul.f32 %v3887_v9, %v3833_v42  ;;  %v1862_v49 = vmul.f32 %v3887_v9, %v3835_v5 }
  0xd2   : > { %v3839_v38 = vpop.xlane.xlu1 %976  ;;  %v3841_v7 = vpop.xlane.xlu0 %958 }
  0xd3   : > { %5963 = vst [vmem:[#allocation37_spill] sm:$0xff] %v3839_v38  ;;  %5964 = vst [vmem:[#allocation38_spill] sm:$0xff] %v3841_v7  ;;  %v1888_v39 = vmul.f32 %v3889_v20, %v3839_v38  ;;  %v1882_v36 = vmul.f32 %v3889_v20, %v3841_v7 }
  0xd6   : > { %v3848_v21 = vpop.xlane.xlu1 %809  ;;  %v3850_v25 = vpop.xlane.xlu0 %791 }
  0xd7   : > { %5965 = vst [vmem:[#allocation39_spill] sm:$0xff] %v3848_v21  ;;  %5966 = vst [vmem:[#allocation40_spill] sm:$0xff] %v3850_v25  ;;  %v1863_v57 = vmul.f32 %v3887_v9, %v3850_v25  ;;  %v4075_v25 = vadd.f32 %v1882_v36, %v1862_v49  ;;  %v5991_v36 = vrot.slane %v3915_v44, %v3517_v26 }
  0xd9   : > { %vm4094_vm9 = vcmp.eq.s32.totalorder %v5991_v36, 1 }
  0xda   : > { %v3866_v46 = vpop.xlane.xlu1 %979  ;;  %v3868_v3 = vpop.xlane.xlu0 %961 }
  0xdb   : > { %5967 = vst [vmem:[#allocation41_spill] sm:$0xff] %v3866_v46  ;;  %5968 = vst [vmem:[#allocation42_spill] sm:$0xff] %v3868_v3  ;;  %v1889_v62 = vmul.f32 %v3889_v20, %v3866_v46 }
  0xde   : > { %v3891_v63 = vpop.xlane.xlu1 %812  ;;  %v3893_v15 = vpop.xlane.xlu0 %794 }
  0xdf   : > { %5972 = vst [vmem:[#allocation46_spill] sm:$0xff] %v3891_v63  ;;  %5973 = vst [vmem:[#allocation47_spill] sm:$0xff] %v3893_v15  ;;  %v4112_v44 = vmul.f32 %v3887_v9, %v3893_v15 }
  0xe2   : > { %v3933_v31 = vpop.xlane.xlu1 %982  ;;  %v3935_v41 = vpop.xlane.xlu0 %964 }
  0xe3   : > { %5976 = vst [vmem:[#allocation49_spill] sm:$0xff] %v3933_v31  ;;  %5977 = vst [vmem:[#allocation50_spill] sm:$0xff] %v3935_v41 }
  0xe6   : > { %v3979_v16 = vpop.xlane.xlu1 %985  ;;  %v4002_v56 = vpop.xlane.xlu0 %815 }
  0xe7   : > { %5979 = vst [vmem:[#allocation52_spill] sm:$0xff] %v3979_v16  ;;  %5980 = vst [vmem:[#allocation53_spill] sm:$0xff] %v4002_v56  ;;  %v1891_v42 = vmul.f32 %v3889_v20, %v3979_v16  ;;  %v1871_v53 = vmul.f32 %v3887_v9, %v4002_v56  ;;  %v1870_v56 = vmul.f32 %v3887_v9, %v3891_v63 }
  0xea   : > { %v4018_v24 = vpop.xlane.xlu1 %988  ;;  %v637_v6 = vpop.f32.mrb[0].mxu0 }
  0xeb   : > { %5981 = vst [vmem:[#allocation54_spill] sm:$0xff] %v4018_v24  ;;  %v638_v54 = vadd.f32 %v2982_v17, %v637_v6  ;;  %v3095_v12 = vpop.f32.mrb[1].mxu0  ;;  %v4044_v6 = vadd.f32 %v1881_v59, %v1861_v60  ;;  %v1869_v17 = vmul.f32 %v3887_v9, %v3848_v21  ;;  %v1883_v59 = vmul.f32 %v3889_v20, %v3868_v3  ;;  %v4063_v28 = vpop.xlane.xlu0 %818 }
  0xec   : > { %v4036_v50 = vpop.f32.mrb[0].mxu1  ;;  %5988 = vst [vmem:[#allocation57_spill] sm:$0xff] %v4063_v28  ;;  %v1872_v49 = vmul.f32 %v3887_v9, %v4063_v28  ;;  %v1890_v28 = vmul.f32 %v3889_v20, %v3933_v31 }
  0xed   : > { %v1910_v52 = vcombine.high %v638_v54, %v638_v54  ;;  %v1917_v51 = vrot.slane %v638_v54, %v3505_v22  ;;  %v4047_v55 = vpop.f32.mrb[1].mxu1  ;;  %v4069_v54 = vadd.f32 %v1888_v39, %v1868_v1 }
  0xee   : > { %v4061_v60 = vpop.permute.xlu1 %1266  ;;  %v4233_v7 = vadd.f32 %v1890_v28, %v1870_v56 }
  0xef   : > { %5987 = vst [vmem:[#allocation56_spill] sm:$0xff] %v4061_v60  ;;  %v1924_v12 = vrot.slane %v1910_v52, %v3505_v22  ;;  %v1925_v21 = vcombine.high %v1917_v51, %v1917_v51  ;;  %v4073_v5 = vrot.slane %v1917_v51, %v3505_v22  ;;  %v1892_v60 = vmul.f32 %v3889_v20, %v4018_v24 }
  0xf0   : > { %v4098_v51 = vadd.f32 %v1889_v62, %v1869_v17  ;;  %v6172_v52 = vmov 0 }
  0xf1   : > { %v1926_v46 = vcombine.high %v1924_v12, %v1924_v12  ;;  %v4084_v1 = vrot.slane %v1924_v12, %v3505_v22  ;;  %v4087_v39 = vrot.slane %v1925_v21, %v3505_v22  ;;  %v4102_v12 = vadd.f32 %v1883_v59, %v1863_v57 }
  0xf2   : > { %v1962_v21 = vrot.slane %v4073_v5, %v3517_v26  ;;  %v4106_v24 = vpop.permute.xlu1 %1286  ;;  %v4125_v59 = vmul.f32 %v3889_v20, %v3935_v41  ;;  %v1955_v9 = vcombine.high %v4073_v5, %v4073_v5  ;;  %v1908_v15 = vadd.f32 %v1892_v60, %v1872_v49 }
  0xf3   : > { %v1954_v17 = vrot.slane %v1926_v46, %v3505_v22  ;;  %v4117_v62 = vrot.slane %v4087_v39, %v3517_v26  ;;  %v4121_v57 = vrot.slane %v4084_v1, %v3517_v26  ;;  %vm1290_vm10 = vcmp.ne.s32.totalorder %v4106_v24, 0 }
  0xf4   : > { %v1999_v36 = vadd.f32 %v1962_v21, %v4047_v55  ;;  %v1907_v46 = vadd.f32 %v1891_v42, %v1871_v53  ;;  %vm1292_vm11 = vmand %vm4038_vm6, %vm1290_vm10  ;;  %v5994_v5 = vrot.slane %v3905_v37, %v3517_v26  ;;  %v2000_v60 = vadd.f32 %v4036_v50, %v1962_v21 }
  0xf5   : > { %v1958_v22 = vcombine.high %v1954_v17, %v1954_v17  ;;  %v1308_v20 = vsel %vm1292_vm11, 1, %v5975_v47  ;;  %vm1294_vm12 = vmand %vm4049_vm7, %vm1290_vm10  ;;  %v2001_v49 = vadd.f32 %v4117_v62, %v4047_v55  ;;  %v1956_v16 = vcombine.high %v4084_v1, %v4084_v1 }
  0xf6   : > { %v4135_v63 = vpop.permute.xlu1 %1288  ;;  %vm4145_vm13 = vcmp.eq.s32.totalorder %v5994_v5, 1  ;;  %v4150_v53 = vadd.f32 %v1999_v36, %v4016_v27  ;;  %1324 = vrot.lane.b32.xlu0 %v1308_v20, %s3365_s27  ;;  %vm4164_vm15 = vmand %vm4065_vm8, %vm1290_vm10  ;;  %v2007_v37 = vadd.f32 %v4121_v57, %v4047_v55  ;;  %v1310_v1 = vsel %vm1294_vm12, 1, %v5975_v47 }
  0xf7   : > { %v1990_v31 = vrot.slane %v1958_v22, %v3517_v26  ;;  %vm1291_vm14 = vcmp.ne.s32.totalorder %v4135_v63, 0  ;;  %v5999_v21 = vrot.slane %v3920_v10, %v3517_v26  ;;  %v6000_v36 = vmov 0 }
  0xf8   : > { %vm1293_vm0 = vmand %vm4038_vm6, %vm1291_vm14  ;;  %v3002_v22 = vclamps-f32 %v4150_v53, 30.0  ;;  %v4184_v20 = vadd.f32 %v2000_v60, %v4012_v18  ;;  %v4187_v5 = vadd.f32 %v2001_v49, %v4022_v45  ;;  %v4197_v10 = vadd.f32 %v2007_v37, %v4014_v61 }
  0xf9   : > { %vm4178_vm5 = vcmp.eq.s32.totalorder %v5999_v21, 1  ;;  %v2013_v38 = vadd.f32 %v1990_v31, %v4047_v55  ;;  %v2014_v41 = vadd.f32 %v4036_v50, %v1990_v31  ;;  %v1309_v3 = vsel %vm1293_vm0, 1, %v5975_v47  ;;  %vm1295_vm11 = vmand %vm4049_vm7, %vm1291_vm14 }
  0xfa   : > { %v6001_v36 = vsel %vm4178_vm5, 4294967295, %v6000_v36  ;;  %v1982_v18 = vrot.slane %v1954_v17, %v3517_v26  ;;  %1326 = vrot.lane.b32.xlu1 %v1309_v3, %s3365_s27  ;;  %v2063_v45 = vsub.f32 0.0, %v3002_v22  ;;  %v3003_v60 = vclamps-f32 %v4184_v20, 30.0  ;;  %1328 = vrot.lane.b32.xlu0 %v1310_v1, %s3365_s27  ;;  %vm4213_vm12 = vmand %vm4065_vm8, %vm1291_vm14 }
  0xfb   : > { %v3004_v49 = vclamps-f32 %v4187_v5, 30.0  ;;  %v4203_v31 = vadd.f32 %v2013_v38, %v1907_v46  ;;  %v4205_v21 = vadd.f32 %v2014_v41, %v1908_v15  ;;  %v1311_v19 = vsel %vm1295_vm11, 1, %v5975_v47  ;;  %vm4225_vm0 = vmand %vm4094_vm9, %vm1290_vm10 }
  0xfc   : > { %v3010_v3 = vclamps-f32 %v4197_v10, 30.0  ;;  %v1312_v38 = vsel %vm4164_vm15, 1, %v5975_v47  ;;  %v2079_v15 = vmul.f32 1.442695, %v2063_v45  ;;  %v2064_v17 = vsub.f32 0.0, %v3003_v60  ;;  %vm4240_vm15 = vmand %vm4094_vm9, %vm1291_vm14 }
  0xfd   : > { %v2065_v46 = vsub.f32 0.0, %v3004_v49  ;;  %v1957_v37 = vcombine.high %v4087_v39, %v4087_v39  ;;  %v3016_v1 = vclamps-f32 %v4203_v31, 30.0  ;;  %v3017_v22 = vclamps-f32 %v4205_v21, 30.0  ;;  %vm4256_vm11 = vmand %vm4145_vm13, %vm1290_vm10 }
  0xfe   : > { %v2071_v27 = vsub.f32 0.0, %v3010_v3  ;;  %1330 = vrot.lane.b32.xlu1 %v1311_v19, %s3365_s27  ;;  %3190 = vpow2.f32 %v2079_v15  ;;  %v2081_v60 = vmul.f32 1.442695, %v2064_v17  ;;  %v1970_v49 = vrot.slane %v1955_v9, %v3517_v26  ;;  %1332 = vrot.lane.b32.xlu0 %v1312_v38, %s3365_s27  ;;  %vm4264_vm2 = vmand %vm4145_vm13, %vm1291_vm14 }
  0xff   : > { %v2083_v39 = vmul.f32 1.442695, %v2065_v46  ;;  %v1313_v56 = vsel %vm4213_vm12, 1, %v5975_v47  ;;  %v1314_v19 = vsel %vm4225_vm0, 1, %v5975_v47  ;;  %v2077_v9 = vsub.f32 0.0, %v3016_v1  ;;  %vm1302_vm0 = vmand %vm4178_vm5, %vm1290_vm10 }
 0x100   : > { %v2095_v3 = vmul.f32 1.442695, %v2071_v27  ;;  %v6012_v38 = vrot.slane %v3925_v14, %v3517_v26  ;;  %v6013_v41 = vmov 0  ;;  %3192 = vpow2.f32 %v2081_v60 }
 0x101   : > { %v2008_v15 = vadd.f32 %v4036_v50, %v4121_v57  ;;  %v2009_v17 = vadd.f32 %v1982_v18, %v4047_v55  ;;  %v4279_v46 = vrot.slane %v1957_v37, %v3517_v26  ;;  %v4282_v1 = vrot.slane %v1956_v16, %v3517_v26 }
 0x102   : > { %vm4271_vm12 = vcmp.eq.s32.totalorder %v6012_v38, 1  ;;  %v2078_v27 = vsub.f32 0.0, %v3017_v22  ;;  %3194 = vpow2.f32 %v2083_v39  ;;  %1334 = vrot.lane.b32.xlu1 %v1313_v56, %s3365_s27  ;;  %v1315_v14 = vsel %vm4240_vm15, 1, %v5975_v47  ;;  %1336 = vrot.lane.b32.xlu0 %v1314_v19, %s3365_s27 }
 0x103   : > { %v6014_v41 = vsel %vm4271_vm12, 4294967295, %v6013_v41  ;;  %3196 = vpow2.f32 %v2095_v3  ;;  %v4293_v57 = vadd.f32 %v2008_v15, %v4028_v2  ;;  %v4296_v16 = vadd.f32 %v2009_v17, %v4042_v0 }
 0x104   : > { %v1316_v37 = vsel %vm4256_vm11, 1, %v5975_v47  ;;  %v1317_v22 = vsel %vm4264_vm2, 1, %v5975_v47  ;;  %v6015_v45 = vrot.slane %v3928_v30, %v3517_v26  ;;  %v6016_v60 = vmov 0  ;;  %vm4343_vm2 = vmand %vm4178_vm5, %vm1291_vm14 }
 0x105   : > { %v2002_v0 = vadd.f32 %v4036_v50, %v4117_v62  ;;  %v2003_v2 = vadd.f32 %v1970_v49, %v4047_v55  ;;  %v2107_v39 = vmul.f32 1.442695, %v2077_v9  ;;  %v1318_v56 = vsel %vm1302_vm0, 1, %v5975_v47  ;;  %vm4357_vm11 = vmand %vm4271_vm12, %vm1290_vm10 }
 0x106   : > { %vm4308_vm15 = vcmp.eq.s32.totalorder %v6015_v45, 1  ;;  %v3011_v19 = vclamps-f32 %v4293_v57, 30.0  ;;  %v3012_v28 = vclamps-f32 %v4296_v16, 30.0  ;;  %v4318_v3 = vmul.f32 1.442695, %v2078_v27  ;;  %1338 = vrot.lane.b32.xlu1 %v1315_v14, %s3365_s27  ;;  %1340 = vrot.lane.b32.xlu0 %v1316_v37, %s3365_s27  ;;  %vm4376_vm0 = vmand %vm4271_vm12, %vm1291_vm14 }
 0x107   : > { %v6017_v60 = vsel %vm4308_vm15, 4294967295, %v6016_v60  ;;  %v4321_v30 = vadd.f32 %v2002_v0, %v4030_v4  ;;  %v4324_v61 = vadd.f32 %v2003_v2, %v4044_v6  ;;  %v2010_v38 = vadd.f32 %v4036_v50, %v1982_v18 }
 0x108   : > { %v2072_v62 = vsub.f32 0.0, %v3011_v19  ;;  %v2073_v9 = vsub.f32 0.0, %v3012_v28  ;;  %v2011_v15 = vadd.f32 %v4282_v1, %v4047_v55  ;;  %v2004_v17 = vadd.f32 %v4036_v50, %v1970_v49  ;;  %v3191_v14 = vpop.eup %3190 }
 0x109   : > { %v3005_v27 = vclamps-f32 %v4321_v30, 30.0  ;;  %v3006_v4 = vclamps-f32 %v4324_v61, 30.0  ;;  %v4335_v6 = vadd.f32 %v2010_v38, %v4069_v54  ;;  %v2005_v18 = vadd.f32 %v4279_v46, %v4047_v55 }
 0x10a   : > { %v2097_v49 = vmul.f32 1.442695, %v2072_v62  ;;  %v2099_v37 = vmul.f32 1.442695, %v2073_v9  ;;  %v4348_v0 = vadd.f32 %v2011_v15, %v4098_v51  ;;  %v4351_v54 = vadd.f32 %v2004_v17, %v4075_v25  ;;  %v3193_v38 = vpop.eup %3192  ;;  %1342 = vrot.lane.b32.xlu1 %v1317_v22, %s3365_s27  ;;  %1344 = vrot.lane.b32.xlu0 %v1318_v56, %s3365_s27 }
 0x10b   : > { %3198 = vpow2.f32 %v2107_v39  ;;  %v2111_v2 = vadd.f32 1.0, %v3191_v14  ;;  %v2066_v19 = vsub.f32 0.0, %v3005_v27  ;;  %v3013_v28 = vclamps-f32 %v4335_v6, 30.0 }
 0x10c   : > { %3200 = vpow2.f32 %v2097_v49  ;;  %v3014_v25 = vclamps-f32 %v4348_v0, 30.0  ;;  %v3007_v51 = vclamps-f32 %v4351_v54, 30.0  ;;  %v4366_v39 = vadd.f32 %v2005_v18, %v4102_v12  ;;  %v3195_v62 = vpop.eup %3194 }
 0x10d   : > { %v1319_v9 = vsel %vm4343_vm2, 1, %v5975_v47  ;;  %3202 = vrcp.f32 %v2111_v2  ;;  %v2112_v15 = vadd.f32 1.0, %v3193_v38  ;;  %v2067_v17 = vsub.f32 0.0, %v3006_v4  ;;  %v3197_v12 = vpop.eup %3196  ;;  %vm1306_vm2 = vmand %vm4308_vm15, %vm1290_vm10 }
 0x10e   : > { %v1320_v56 = vsel %vm4357_vm11, 1, %v5975_v47  ;;  %v2113_v27 = vadd.f32 1.0, %v3195_v62  ;;  %3204 = vpow2.f32 %v2099_v37  ;;  %v2074_v18 = vsub.f32 0.0, %v3013_v28  ;;  %1346 = vrot.lane.b32.xlu1 %v1319_v9, %s3365_s27  ;;  %vm4400_vm10 = vmand %vm4308_vm15, %vm1291_vm14 }
 0x10f   : > { %3206 = vrcp.f32 %v2112_v15  ;;  %v2119_v14 = vadd.f32 1.0, %v3197_v12  ;;  %v2075_v45 = vsub.f32 0.0, %v3014_v25  ;;  %v3008_v49 = vclamps-f32 %v4366_v39, 30.0  ;;  %1348 = vrot.lane.b32.xlu0 %v1320_v56, %s3365_s27 }
 0x110   : > { %v1900_v4 = vadd.f32 %v4125_v59, %v4112_v44  ;;  %3208 = vrcp.f32 %v2113_v27  ;;  %v2085_v55 = vmul.f32 1.442695, %v2066_v19  ;;  %v2068_v2 = vsub.f32 0.0, %v3007_v51 }
 0x111   : > { %v1321_v24 = vsel %vm4376_vm0, 1, %v5975_v47  ;;  %v1322_v37 = vsel %vm1306_vm2, 1, %v5975_v47  ;;  %3210 = vrcp.f32 %v2119_v14  ;;  %v2087_v28 = vmul.f32 1.442695, %v2067_v17 }
 0x112   : > { %v2101_v59 = vmul.f32 1.442695, %v2074_v18  ;;  %v2069_v19 = vsub.f32 0.0, %v3008_v49  ;;  %v2012_v38 = vadd.f32 %v4036_v50, %v4282_v1  ;;  %v2006_v25 = vadd.f32 %v4036_v50, %v4279_v46  ;;  %1350 = vrot.lane.b32.xlu1 %v1321_v24, %s3365_s27 }
 0x113   : > { %3212 = vpow2.f32 %v4318_v3  ;;  %vm1203_vm11 = vcmp.lt.f32.partialorder %v3969_v13, 0.5  ;;  %v2103_v51 = vmul.f32 1.442695, %v2075_v45  ;;  %v1174_v63 = vsub.f32 %v3989_v23, %v3758_v43  ;;  %1352 = vrot.lane.b32.xlu0 %v1322_v37, %s3365_s27 }
 0x114   : > { %3214 = vpow2.f32 %v2085_v55  ;;  %v2089_v62 = vmul.f32 1.442695, %v2068_v2  ;;  %v4414_v9 = vadd.f32 %v2012_v38, %v4233_v7  ;;  %v4416_v22 = vadd.f32 %v2006_v25, %v1900_v4  ;;  %v6027_v38 = vld [vmem:[#allocation51_spill] sm:$0xff] }
 0x115   : > { %v4418_v1 = vpop.eup %3198  ;;  %v1323_v50 = vsel %vm4400_vm10, 1, %v5975_v47  ;;  %3216 = vpow2.f32 %v2087_v28  ;;  %v6026_v46 = vsub.f32 %v3908_v35, %v3748_v11  ;;  %v4431_v7 = vrot.slane %v3857_v29, %v3517_v26 }
 0x116   : > { %v3201_v15 = vpop.eup %3200  ;;  %3218 = vpow2.f32 %v2101_v59  ;;  %v2091_v17 = vmul.f32 1.442695, %v2069_v19  ;;  %v3015_v12 = vclamps-f32 %v4414_v9, 30.0  ;;  %v3009_v56 = vclamps-f32 %v4416_v22, 30.0  ;;  %1354 = vrot.lane.b32.xlu1 %v1323_v50, %s3365_s27 }
 0x117   : > { %v4427_v3 = vand.u32 2147483647, %v6026_v46  ;;  %v3203_v27 = vpop.eup %3202  ;;  %v2120_v18 = vadd.f32 1.0, %v3201_v15  ;;  %3220 = vpow2.f32 %v2103_v51  ;;  %v4435_v14 = vand.u32 2147483647, %v1174_v63  ;;  %1424 = vrot.lane.b32.xlu0 %v3957_v48, %s3367_s29  ;;  %v6028_v46 = vld [vmem:[#allocation43_spill] sm:$0xff] }
 0x118   : > { %v1175_v35 = vsub.f32 %v3989_v23, %v3748_v11  ;;  %v3205_v45 = vpop.eup %3204  ;;  %v2143_v29 = vmul.f32 %v3203_v27, %v4150_v53  ;;  %3222 = vpow2.f32 %v2089_v62  ;;  %v2076_v49 = vsub.f32 0.0, %v3015_v12 }
 0x119   : > { %v2070_v4 = vsub.f32 0.0, %v3009_v56  ;;  %v3207_v55 = vpop.eup %3206  ;;  %3224 = vrcp.f32 %v2120_v18  ;;  %v2121_v2 = vadd.f32 1.0, %v3205_v45  ;;  %v1176_v24 = vsub.f32 %v4431_v7, %v3758_v43 }
 0x11a   : > { %v4447_v23 = vrot.slane %v3861_v33, %v3517_v26  ;;  %v3209_v37 = vpop.eup %3208  ;;  %3115 = vmatprep.mubr.msk.f32.mxu0 %vm5863_vm1, %v2143_v29  ;;  %v2144_v53 = vmul.f32 %v3207_v55, %v4184_v20  ;;  %3226 = vpow2.f32 %v2091_v17  ;;  %v2105_v28 = vmul.f32 1.442695, %v2076_v49  ;;  %1426 = vrot.lane.b32.xlu1 %v3960_v58, %s3367_s29 }
 0x11b   : > { %v2093_v44 = vmul.f32 1.442695, %v2070_v4  ;;  %v3211_v59 = vpop.eup %3210  ;;  %v2145_v48 = vmul.f32 %v3209_v37, %v4187_v5  ;;  %3228 = vrcp.f32 %v2121_v2  ;;  %v1409_v19 = vsel %vm1203_vm11, 1, %v5975_v47  ;;  %1428 = vrot.lane.b32.xlu0 %v6027_v38, %s3367_s29 }
 0x11c   : > { %vm1204_vm14 = vcmp.lt.f32.partialorder %v3985_v34, 0.5  ;;  %3116 = vmatmul.mubr.msk.f32.vlgmr.msra.gmra.mrb[2].mxu0 %vm5863_vm1, %v2144_v53  ;;  %v2151_v33 = vmul.f32 %v3211_v59, %v4197_v10  ;;  %vm1205_vm0 = vcmp.lt.f32.partialorder %v4427_v3, 0.5  ;;  %3230 = vpow2.f32 %v2105_v28 }
 0x11d   : > { %v4461_v20 = vand.u32 2147483647, %v1175_v35  ;;  %v3213_v5 = vpop.eup %3212  ;;  %3118 = vmatprep.mubr.msk.f32.mxu0 %vm5863_vm1, %v2145_v48  ;;  %vm1206_vm2 = vcmp.lt.f32.partialorder %v4435_v14, 0.5  ;;  %v4467_v25 = vand.u32 2147483647, %v1176_v24  ;;  %3232 = vpow2.f32 %v2093_v44 }
 0x11e   : > { %v1177_v58 = vsub.f32 %v4431_v7, %v3748_v11  ;;  %v3215_v10 = vpop.eup %3214  ;;  %3127 = vmatprep.mubr.msk.f32.mxu1 %vm5863_vm1, %v2151_v33  ;;  %v1410_v51 = vsel %vm1204_vm14, 1, %v5975_v47  ;;  %v1178_v63 = vsub.f32 %v4447_v23, %v3758_v43  ;;  %v1157_v15 = vrot.slane %v6028_v46, %v3517_v26  ;;  %1430 = vrot.lane.b32.xlu1 %v1409_v19, %s3367_s29 }
 0x11f   : > { %v3217_v62 = vpop.eup %3216  ;;  %v2114_v50 = vadd.f32 1.0, %v3215_v10  ;;  %v1411_v7 = vsel %vm1205_vm0, 1, %v5975_v47  ;;  %v1412_v56 = vsel %vm1206_vm2, 1, %v5975_v47  ;;  %vm1207_vm10 = vcmp.lt.f32.partialorder %v4461_v20, 0.5  ;;  %1432 = vrot.lane.b32.xlu0 %v1410_v51, %s3367_s29 }
 0x120   : > { %v3219_v17 = vpop.eup %3218  ;;  %v2115_v12 = vadd.f32 1.0, %v3217_v62  ;;  %vm1208_vm11 = vcmp.lt.f32.partialorder %v4467_v25, 0.5  ;;  %v4487_v26 = vand.u32 2147483647, %v1177_v58  ;;  %v4489_v29 = vand.u32 2147483647, %v1178_v63 }
 0x121   : > { %v3221_v27 = vpop.eup %3220  ;;  %3234 = vrcp.f32 %v2114_v50  ;;  %v2122_v18 = vadd.f32 1.0, %v3219_v17  ;;  %v1179_v49 = vsub.f32 %v4447_v23, %v3748_v11  ;;  %v1180_v2 = vsub.f32 %v1157_v15, %v3758_v43 }
 0x122   : > { %v3223_v35 = vpop.eup %3222  ;;  %3236 = vrcp.f32 %v2115_v12  ;;  %v2123_v45 = vadd.f32 1.0, %v3221_v27  ;;  %v2125_v37 = vadd.f32 1.0, %v4418_v1  ;;  %1434 = vrot.lane.b32.xlu1 %v1411_v7, %s3367_s29  ;;  %v1413_v28 = vsel %vm1207_vm10, 1, %v5975_v47 }
 0x123   : > { %v3225_v4 = vpop.eup %3224  ;;  %3238 = vrcp.f32 %v2122_v18  ;;  %v2116_v55 = vadd.f32 1.0, %v3223_v35  ;;  %1436 = vrot.lane.b32.xlu0 %v1412_v56, %s3367_s29  ;;  %v1414_v59 = vsel %vm1208_vm11, 1, %v5975_v47  ;;  %vm1209_vm14 = vcmp.lt.f32.partialorder %v4487_v26, 0.5  ;;  %v6029_v35 = vld [vmem:[#allocation18_spill] sm:$0xff] }
 0x124   : > { %v3227_v24 = vpop.eup %3226  ;;  %v2152_v53 = vmul.f32 %v3225_v4, %v4293_v57  ;;  %3240 = vrcp.f32 %v2123_v45  ;;  %vm1210_vm0 = vcmp.lt.f32.partialorder %v4489_v29, 0.5  ;;  %v4508_v48 = vand.u32 2147483647, %v1179_v49 }
 0x125   : > { %v3229_v44 = vpop.eup %3228  ;;  %3242 = vrcp.f32 %v2116_v55  ;;  %v2117_v23 = vadd.f32 1.0, %v3227_v24  ;;  %v1181_v19 = vsub.f32 %v1157_v15, %v3748_v11  ;;  %v2126_v38 = vadd.f32 1.0, %v3213_v5  ;;  %v6030_v55 = vld [vmem:[#allocation19_spill] sm:$0xff] }
 0x126   : > { %v3231_v1 = vpop.eup %3230  ;;  %3128 = vmatmul.mubr.msk.f32.vlgmr.msra.gmra.mrb[2].mxu1 %vm5863_vm1, %v2152_v53  ;;  %v2153_v57 = vmul.f32 %v3229_v44, %v4296_v16  ;;  %v4511_v10 = vand.u32 2147483647, %v1180_v2  ;;  %1438 = vrot.lane.b32.xlu1 %v1413_v28, %s3367_s29  ;;  %v1415_v16 = vsel %vm1209_vm14, 1, %v5975_v47  ;;  %v1416_v5 = vsel %vm1210_vm0, 1, %v5975_v47 }
 0x127   : > { %v3233_v33 = vpop.eup %3232  ;;  %3244 = vrcp.f32 %v2117_v23  ;;  %v2124_v58 = vadd.f32 1.0, %v3231_v1  ;;  %1440 = vrot.lane.b32.xlu0 %v1414_v59, %s3367_s29  ;;  %vm1211_vm2 = vcmp.lt.f32.partialorder %v4508_v48, 0.5  ;;  %v4523_v63 = vand.u32 2147483647, %v1181_v19  ;;  %v6032_v23 = vld [vmem:[#allocation27_spill] sm:$0xff]  ;;  %v6033_v1 = vld [vmem:[#allocation45_spill] sm:$0xff] }
 0x128   : > { %3246 = vrcp.f32 %v2125_v37  ;;  %3130 = vmatprep.mubr.msk.f32.mxu1 %vm5863_vm1, %v2153_v57  ;;  %v2118_v51 = vadd.f32 1.0, %v3233_v33  ;;  %vm1212_vm10 = vcmp.lt.f32.partialorder %v4511_v10, 0.5  ;;  %v1417_v12 = vsel %vm1211_vm2, 1, %v5975_v47  ;;  %v6038_v57 = vld [vmem:[#allocation31_spill] sm:$0xff] }
 0x129   : > { %3248 = vrcp.f32 %v2124_v58  ;;  %v1418_v27 = vsel %vm1212_vm10, 1, %v5975_v47  ;;  %vm1213_vm11 = vcmp.lt.f32.partialorder %v4523_v63, 0.5  ;;  %vm1214_vm14 = vcmp.gt.f32.partialorder %v6029_v35, 0.5  ;;  %v6047_v58 = vld [vmem:[#allocation38_spill] sm:$0xff] }
 0x12a   : > { %3250 = vrcp.f32 %v2118_v51  ;;  %1442 = vrot.lane.b32.xlu1 %v1415_v16, %s3367_s29  ;;  %v1484_v4 = vsel %vm1214_vm14, 1, %v5975_v47  ;;  %vm1215_vm0 = vcmp.gt.f32.partialorder %v6030_v55, 0.5  ;;  %vm5869_vm10 = vcmp.le.f32.partialorder %v6032_v23, 16.0  ;;  %vm4564_vm14 = vmand %vm4049_vm7, %vm5862_vm4  ;;  %v6048_v51 = vld [vmem:[#allocation23_spill] sm:$0xff] }
 0x12b   : > { %v3235_v62 = vpop.eup %3234  ;;  %3252 = vrcp.f32 %v2126_v38  ;;  %1444 = vrot.lane.b32.xlu0 %v1416_v5, %s3367_s29  ;;  %vm1248_vm4 = vmand %vm4564_vm14, %vm5869_vm10  ;;  %vm6039_vm15 = vcmask 261120   ;;  %v6044_v33 = vmov 0  ;;  %v6051_v5 = vmov 0 }
 0x12c   : > { %v3237_v50 = vpop.eup %3236  ;;  %v2146_v46 = vmul.f32 %v3235_v62, %v4321_v30  ;;  %v1566_v38 = vsel %vm1248_vm4, 1, %v5975_v47  ;;  %v6071_v35 = vmov 0  ;;  %v6161_v42 = vmov 0 }
 0x12d   : > { %v3239_v15 = vpop.eup %3238  ;;  %v2147_v17 = vmul.f32 %v3237_v50, %v4324_v61  ;;  %v6054_v50 = vmov 0 }
 0x12e   : > { %v3241_v7 = vpop.eup %3240  ;;  %3119 = vmatmul.mubr.msk.f32.gmra.mrb[4].mxu0 %vm5863_vm1, %v2146_v46  ;;  %v2154_v56 = vmul.f32 %v3239_v15, %v4335_v6  ;;  %1446 = vrot.lane.b32.xlu1 %v1417_v12, %s3367_s29  ;;  %v1419_v6 = vsel %vm1213_vm11, 1, %v5975_v47  ;;  %vm1217_vm11 = vcmp.gt.f32.partialorder %v6033_v1, 0.5  ;;  %v6057_v15 = vld [vmem:[#allocation22_spill] sm:$0xff]  ;;  %v6061_v12 = vmov 0  ;;  %v6100_v1 = vld [vmem:[#allocation52_spill] sm:$0xff] }
 0x12f   : > { %v3243_v18 = vpop.eup %3242  ;;  %3121 = vmatprep.mubr.msk.f32.mxu0 %vm5863_vm1, %v2147_v17  ;;  %v2155_v30 = vmul.f32 %v3241_v7, %v4348_v0  ;;  %1448 = vrot.lane.b32.xlu0 %v1418_v27, %s3367_s29  ;;  %v1487_v19 = vsel %vm1217_vm11, 1, %v5975_v47  ;;  %v6059_v17 = vld [vmem:[#allocation42_spill] sm:$0xff] }
 0x130   : > { %3131 = vmatmul.mubr.msk.f32.gmra.mrb[4].mxu1 %vm5863_vm1, %v2154_v56  ;;  %v2148_v61 = vmul.f32 %v3243_v18, %v4351_v54  ;;  %v6031_v54 = vld [vmem:[#allocation44_spill] sm:$0xff]  ;;  %v6064_v56 = vmov 0  ;;  %v6067_v18 = vld [vmem:[#allocation50_spill] sm:$0xff] }
 0x131   : > { %v3245_v45 = vpop.eup %3244  ;;  %3133 = vmatprep.mubr.msk.f32.mxu1 %vm5863_vm1, %v2155_v30  ;;  %vm1216_vm2 = vcmp.gt.f32.partialorder %v6031_v54, 0.5  ;;  %v6069_v30 = vld [vmem:[#allocation26_spill] sm:$0xff] }
 0x132   : > { %v3247_v49 = vpop.eup %3246  ;;  %3122 = vmatmul.mubr.msk.f32.gmra.mrb[6].mxu0 %vm5863_vm1, %v2148_v61  ;;  %v2149_v0 = vmul.f32 %v3245_v45, %v4366_v39  ;;  %1450 = vrot.lane.b32.xlu1 %v1419_v6, %s3367_s29  ;;  %v1485_v39 = vsel %vm1215_vm0, 1, %v5975_v47  ;;  %v1486_v59 = vsel %vm1216_vm2, 1, %v5975_v47  ;;  %vm4576_vm0 = vmand %vm4049_vm7, %vm5866_vm3  ;;  %vm6040_vm3 = vcmp.gt.f32.partialorder %v3758_v43, 0.5 }
 0x133   : > { %v3249_v2 = vpop.eup %3248  ;;  %v2157_v28 = vmul.f32 %v3247_v49, %v4203_v31  ;;  %1500 = vrot.lane.b32.xlu0 %v1484_v4, %s3368_s20  ;;  %v6034_v31 = vmov 0  ;;  %vm4593_vm7 = vmand %vm4065_vm8, %vm6040_vm3  ;;  %vm6043_vm2 = vcmp.gt.f32.partialorder %v3748_v11, 0.5  ;;  %v6074_v45 = vmov 0  ;;  %v6077_v49 = vld [vmem:[#allocation30_spill] sm:$0xff] }
 0x134   : > { %v3251_v24 = vpop.eup %3250  ;;  %3124 = vmatprep.mubr.msk.f32.mxu0 %vm5863_vm1, %v2149_v0  ;;  %v2156_v37 = vmul.f32 %v3249_v2, %v4414_v9  ;;  %v6035_v31 = vsel %vm4564_vm14, 4294967295, %v6034_v31  ;;  %vm4601_vm11 = vmand %vm4065_vm8, %vm6043_vm2  ;;  %vm6049_vm8 = vcmp.gt.f32.partialorder %v3758_v43, 0.5  ;;  %v6079_v0 = vld [vmem:[#allocation34_spill] sm:$0xff]  ;;  %v6081_v4 = vmov 0 }
 0x135   : > { %v3253_v53 = vpop.eup %3252  ;;  %v2150_v44 = vmul.f32 %v3251_v24, %v4416_v22  ;;  %v6036_v22 = vmov 0  ;;  %v6045_v33 = vsel %vm4601_vm11, 4294967295, %v6044_v33  ;;  %vm4622_vm4 = vmand %vm4038_vm6, %vm6049_vm8  ;;  %v6084_v2 = vmov 0  ;;  %v6087_v24 = vld [vmem:[#allocation37_spill] sm:$0xff] }
 0x136   : > { %3134 = vmatmul.mubr.msk.f32.gmra.mrb[6].mxu1 %vm5863_vm1, %v2156_v37  ;;  %v2158_v9 = vmul.f32 %v3253_v53, %v4205_v21  ;;  %1502 = vrot.lane.b32.xlu1 %v1485_v39, %s3368_s20  ;;  %v6037_v22 = vsel %vm4576_vm0, 4294967295, %v6036_v22  ;;  %v6041_v21 = vmov 0  ;;  %v6052_v5 = vsel %vm4622_vm4, 4294967295, %v6051_v5  ;;  %v6089_v37 = vld [vmem:[#allocation41_spill] sm:$0xff] }
 0x137   : > { %3136 = vmatprep.mubr.msk.f32.mxu1 %vm5863_vm1, %v2157_v28  ;;  %3125 = vmatmul.mubr.msk.f32.gmra.mrb[8].mxu0 %vm5863_vm1, %v2150_v44  ;;  %vm5874_vm1 = vcmp.le.f32.partialorder %v3829_v40, 16.0  ;;  %v6042_v21 = vsel %vm4593_vm7, 4294967295, %v6041_v21  ;;  %v6091_v53 = vmov 0  ;;  %v6094_v44 = vmov 0 }
 0x138   : > { %1504 = vrot.lane.b32.xlu0 %v1486_v59, %s3368_s20  ;;  %vm1250_vm2 = vmand %vm4593_vm7, %vm5874_vm1  ;;  %vm6056_vm1 = vcmp.le.f32.partialorder %v6047_v58, 16.0  ;;  %v6098_v59 = vld [vmem:[#allocation49_spill] sm:$0xff] }
 0x139   : > { %v1568_v46 = vsel %vm1250_vm2, 1, %v5975_v47  ;;  %vm1251_vm8 = vmand %vm4601_vm11, %vm6056_vm1  ;;  %vm6063_vm1 = vcmp.gt.f32.partialorder %v3748_v11, 0.5 }
 0x13a   : > { %3137 = vmatmul.mubr.msk.f32.gmra.mrb[8].mxu1 %vm6039_vm15, %v2158_v9  ;;  %1506 = vrot.lane.b32.xlu1 %v1487_v19, %s3368_s20  ;;  %vm6046_vm15 = vcmp.le.f32.partialorder %v6038_v57, 16.0  ;;  %v1569_v7 = vsel %vm1251_vm8, 1, %v5975_v47  ;;  %vm4661_vm14 = vmand %vm4094_vm9, %vm6063_vm1  ;;  %vm6068_vm8 = vcmp.le.f32.partialorder %v6059_v17, 16.0  ;;  %v6103_v9 = vmov 0 }
 0x13b   : > { %vm1249_vm3 = vmand %vm4576_vm0, %vm6046_vm15  ;;  %vm6053_vm15 = vcmp.gt.f32.partialorder %v3748_v11, 0.5  ;;  %vm6060_vm0 = vcmp.gt.f32.partialorder %v3758_v43, 0.5  ;;  %v6065_v56 = vsel %vm4661_vm14, 4294967295, %v6064_v56 }
 0x13c   : > { %1584 = vrot.lane.b32.xlu0 %v1566_v38, %s3365_s27  ;;  %v1567_v62 = vsel %vm1249_vm3, 1, %v5975_v47  ;;  %vm4631_vm10 = vmand %vm4038_vm6, %vm6053_vm15  ;;  %vm6058_vm3 = vcmp.le.f32.partialorder %v6048_v51, 16.0  ;;  %v6107_v38 = vmov 0 }
 0x13d   : > { %v6055_v50 = vsel %vm4631_vm10, 4294967295, %v6054_v50  ;;  %vm1246_vm15 = vmand %vm4622_vm4, %vm6058_vm3  ;;  %vm6066_vm3 = vcmp.le.f32.partialorder %v6057_v15, 16.0  ;;  %vm6070_vm4 = vcmp.gt.f32.partialorder %v3758_v43, 0.5 }
 0x13e   : > { %1586 = vrot.lane.b32.xlu1 %v1567_v62, %s3365_s27  ;;  %vm4652_vm2 = vmand %vm4094_vm9, %vm6060_vm0  ;;  %v1564_v27 = vsel %vm1246_vm15, 1, %v5975_v47  ;;  %v6111_v62 = vld [vmem:[#allocation54_spill] sm:$0xff] }
 0x13f   : > { %v6062_v12 = vsel %vm4652_vm2, 4294967295, %v6061_v12  ;;  %vm1247_vm0 = vmand %vm4631_vm10, %vm6066_vm3  ;;  %vm6073_vm3 = vcmp.gt.f32.partialorder %v3748_v11, 0.5  ;;  %vm6080_vm10 = vcmp.gt.f32.partialorder %v3758_v43, 0.5 }
 0x140   : > { %1588 = vrot.lane.b32.xlu0 %v1568_v46, %s3365_s27  ;;  %vm1252_vm1 = vmand %vm4652_vm2, %vm6068_vm8  ;;  %v1565_v61 = vsel %vm1247_vm0, 1, %v5975_v47  ;;  %vm6076_vm8 = vcmp.le.f32.partialorder %v6067_v18, 16.0  ;;  %vm6078_vm0 = vcmp.le.f32.partialorder %v6069_v30, 16.0  ;;  %v6113_v46 = vld [vmem:[#allocation48_spill] sm:$0xff] }
 0x141   : > { %vm4682_vm15 = vmand %vm4145_vm13, %vm6070_vm4  ;;  %v1570_v6 = vsel %vm1252_vm1, 1, %v5975_v47 }
 0x142   : > { %1590 = vrot.lane.b32.xlu1 %v1569_v7, %s3365_s27  ;;  %v6072_v35 = vsel %vm4682_vm15, 4294967295, %v6071_v35  ;;  %vm4691_vm7 = vmand %vm4145_vm13, %vm6073_vm3 }
 0x143   : > { %v6075_v45 = vsel %vm4691_vm7, 4294967295, %v6074_v45  ;;  %vm1253_vm4 = vmand %vm4661_vm14, %vm6076_vm8  ;;  %vm6083_vm8 = vcmp.gt.f32.partialorder %v3748_v11, 0.5  ;;  %vm6090_vm14 = vcmp.gt.f32.partialorder %v3758_v43, 0.5 }
 0x144   : > { %1580 = vrot.lane.b32.xlu0 %v1564_v27, %s3365_s27  ;;  %vm1254_vm3 = vmand %vm4682_vm15, %vm6078_vm0  ;;  %v1571_v55 = vsel %vm1253_vm4, 1, %v5975_v47  ;;  %vm6086_vm0 = vcmp.le.f32.partialorder %v6077_v49, 16.0  ;;  %vm6088_vm4 = vcmp.le.f32.partialorder %v6079_v0, 16.0 }
 0x145   : > { %vm4712_vm1 = vmand %vm4178_vm5, %vm6080_vm10  ;;  %v1572_v54 = vsel %vm1254_vm3, 1, %v5975_v47 }
 0x146   : > { %1582 = vrot.lane.b32.xlu1 %v1565_v61, %s3365_s27  ;;  %v6082_v4 = vsel %vm4712_vm1, 4294967295, %v6081_v4  ;;  %vm4721_vm11 = vmand %vm4178_vm5, %vm6083_vm8 }
 0x147   : > { %v6085_v2 = vsel %vm4721_vm11, 4294967295, %v6084_v2  ;;  %vm1255_vm10 = vmand %vm4691_vm7, %vm6086_vm0  ;;  %vm6093_vm0 = vcmp.gt.f32.partialorder %v3748_v11, 0.5  ;;  %vm6101_vm7 = vcmp.gt.f32.partialorder %v3758_v43, 0.5 }
 0x148   : > { %1592 = vrot.lane.b32.xlu0 %v1570_v6, %s3365_s27  ;;  %vm1256_vm8 = vmand %vm4712_vm1, %vm6088_vm4  ;;  %v1573_v28 = vsel %vm1255_vm10, 1, %v5975_v47  ;;  %vm6097_vm4 = vcmp.le.f32.partialorder %v6087_v24, 16.0  ;;  %vm6099_vm10 = vcmp.le.f32.partialorder %v6089_v37, 16.0  ;;  %vm5899_vm1 = vcmp.le.f32.partialorder %v6111_v62, 16.0 }
 0x149   : > { %vm4742_vm3 = vmand %vm4271_vm12, %vm6090_vm14  ;;  %v1574_v39 = vsel %vm1256_vm8, 1, %v5975_v47  ;;  %vm6102_vm8 = vnez %v6017_v60 }
 0x14a   : > { %1594 = vrot.lane.b32.xlu1 %v1571_v55, %s3365_s27  ;;  %v6092_v53 = vsel %vm4742_vm3, 4294967295, %v6091_v53  ;;  %vm4751_vm2 = vmand %vm4271_vm12, %vm6093_vm0 }
 0x14b   : > { %v6095_v44 = vsel %vm4751_vm2, 4294967295, %v6094_v44  ;;  %vm1257_vm14 = vmand %vm4721_vm11, %vm6097_vm4  ;;  %vm6106_vm4 = vcmp.gt.f32.partialorder %v3748_v11, 0.5  ;;  %vm1218_vm11 = vcmp.gt.f32.partialorder %v6113_v46, 0.5 }
 0x14c   : > { %1596 = vrot.lane.b32.xlu0 %v1572_v54, %s3365_s27  ;;  %6096 = vst [vmem:[#allocation51_spill] sm:$0xff] %v6095_v44  ;;  %vm1258_vm0 = vmand %vm4742_vm3, %vm6099_vm10  ;;  %v1575_v19 = vsel %vm1257_vm14, 1, %v5975_v47  ;;  %vm6110_vm10 = vcmp.le.f32.partialorder %v6098_v59, 16.0  ;;  %vm6112_vm14 = vcmp.le.f32.partialorder %v6100_v1, 16.0  ;;  %v1488_v27 = vsel %vm1218_vm11, 1, %v5975_v47  ;;  %v4815_v54 = vpop.permute.xlu0 %1264 }
 0x14d   : > { %vm4772_vm12 = vmand %vm6102_vm8, %vm6101_vm7  ;;  %v1576_v43 = vsel %vm1258_vm0, 1, %v5975_v47  ;;  %vm1222_vm11 = vcmp.gt.f32.partialorder %v4435_v14, 0.5 }
 0x14e   : > { %1598 = vrot.lane.b32.xlu1 %v1573_v28, %s3365_s27  ;;  %v6104_v9 = vsel %vm4772_vm12, 4294967295, %v6103_v9  ;;  %vm4781_vm15 = vmand %vm6102_vm8, %vm6106_vm4 }
 0x14f   : > { %6105 = vst [vmem:[#allocation43_spill] sm:$0xff] %v6104_v9  ;;  %v6108_v38 = vsel %vm4781_vm15, 4294967295, %v6107_v38  ;;  %vm1259_vm7 = vmand %vm4751_vm2, %vm6110_vm10  ;;  %vm1219_vm10 = vcmp.gt.f32.partialorder %v3969_v13, 0.5 }
 0x150   : > { %1600 = vrot.lane.b32.xlu0 %v1574_v39, %s3365_s27  ;;  %6109 = vst [vmem:[#allocation18_spill] sm:$0xff] %v6108_v38  ;;  %vm1260_vm4 = vmand %vm4772_vm12, %vm6112_vm14  ;;  %v1577_v11 = vsel %vm1259_vm7, 1, %v5975_v47  ;;  %vm1220_vm7 = vcmp.gt.f32.partialorder %v3985_v34, 0.5  ;;  %v1489_v6 = vsel %vm1219_vm10, 1, %v5975_v47  ;;  %vm1221_vm14 = vcmp.gt.f32.partialorder %v4427_v3, 0.5  ;;  %v4826_v3 = vpop.permute.xlu0 %1420  ;;  %v4833_v39 = vpop.permute.xlu1 %1422 }
 0x151   : > { %v1578_v7 = vsel %vm1260_vm4, 1, %v5975_v47  ;;  %vm1261_vm0 = vmand %vm4781_vm15, %vm5899_vm1  ;;  %v1490_v55 = vsel %vm1220_vm7, 1, %v5975_v47  ;;  %v1491_v13 = vsel %vm1221_vm14, 1, %v5975_v47  ;;  %v1492_v34 = vsel %vm1222_vm11, 1, %v5975_v47  ;;  %6114 = vst [vmem:[#allocation19_spill] sm:$0xff] %v4826_v3 }
 0x152   : > { %1602 = vrot.lane.b32.xlu1 %v1575_v19, %s3365_s27  ;;  %v1579_v61 = vsel %vm1261_vm0, 1, %v5975_v47  ;;  %vm1223_vm4 = vcmp.gt.f32.partialorder %v4461_v20, 0.5  ;;  %vm1224_vm0 = vcmp.gt.f32.partialorder %v4467_v25, 0.5  ;;  %vm1225_vm10 = vcmp.gt.f32.partialorder %v4487_v26, 0.5  ;;  %6115 = vst [vmem:[#allocation44_spill] sm:$0xff] %v4833_v39 }
 0x153   : > { %v1493_v14 = vsel %vm1223_vm4, 1, %v5975_v47  ;;  %v1494_v28 = vsel %vm1224_vm0, 1, %v5975_v47  ;;  %vm1226_vm7 = vcmp.gt.f32.partialorder %v4489_v29, 0.5  ;;  %v1495_v20 = vsel %vm1225_vm10, 1, %v5975_v47 }
 0x154   : > { %1604 = vrot.lane.b32.xlu0 %v1576_v43, %s3365_s27  ;;  %v1496_v25 = vsel %vm1226_vm7, 1, %v5975_v47  ;;  %vm1227_vm14 = vcmp.gt.f32.partialorder %v4508_v48, 0.5  ;;  %vm1228_vm11 = vcmp.gt.f32.partialorder %v4511_v10, 0.5  ;;  %vm1229_vm4 = vcmp.gt.f32.partialorder %v4523_v63, 0.5 }
 0x155   : > { %v1497_v26 = vsel %vm1227_vm14, 1, %v5975_v47  ;;  %v1498_v43 = vsel %vm1228_vm11, 1, %v5975_v47  ;;  %v1499_v48 = vsel %vm1229_vm4, 1, %v5975_v47  ;;  %vm5919_vm0 = vcmp.ne.s32.totalorder %v4815_v54, 0 }
 0x156   : > { %1606 = vrot.lane.b32.xlu1 %v1577_v11, %s3365_s27  ;;  %vm1284_vm10 = vmand %vm6102_vm8, %vm5919_vm0 }
 0x158   : > { %1608 = vrot.lane.b32.xlu0 %v1578_v7, %s3365_s27 }
 0x15a   : > { %1610 = vrot.lane.b32.xlu1 %v1579_v61, %s3365_s27  ;;  %s3369_s27 = smov 126  }
 0x15c   : > { %1508 = vrot.lane.b32.xlu0 %v1488_v27, %s3368_s20 }
 0x15e   : > { %1510 = vrot.lane.b32.xlu1 %v1489_v6, %s3368_s20 }
 0x160   : > { %1512 = vrot.lane.b32.xlu0 %v1490_v55, %s3368_s20 }
 0x162   : > { %1514 = vrot.lane.b32.xlu1 %v1491_v13, %s3368_s20 }
 0x164   : > { %1516 = vrot.lane.b32.xlu0 %v1492_v34, %s3368_s20 }
 0x166   : > { %1518 = vrot.lane.b32.xlu1 %v1493_v14, %s3368_s20 }
 0x168   : > { %1520 = vrot.lane.b32.xlu0 %v1494_v28, %s3368_s20  ;;  %v1325_v19 = vpop.permute.xlu0 %1324 }
 0x16a   : > { %1522 = vrot.lane.b32.xlu1 %v1495_v20, %s3368_s20  ;;  %v6116_v20 = vld [vmem:[#allocation56_spill] sm:$0xff] }
 0x16b   : > { %vm5918_vm7 = vcmp.ne.s32.totalorder %v6116_v20, 0 }
 0x16c   : > { %1524 = vrot.lane.b32.xlu0 %v1496_v25, %s3368_s20  ;;  %v1327_v29 = vpop.permute.xlu1 %1326  ;;  %v1329_v11 = vpop.permute.xlu0 %1328  ;;  %v6117_v25 = vmov 0  ;;  %vm1285_vm4 = vmand %vm6102_vm8, %vm5918_vm7 }
 0x16d   : > { %vm1270_vm8 = vmand %vm4038_vm6, %vm5919_vm0 }
 0x16e   : > { %1526 = vrot.lane.b32.xlu1 %v1497_v26, %s3368_s20 }
 0x170   : > { %1528 = vrot.lane.b32.xlu0 %v1498_v43, %s3368_s20  ;;  %v4848_v46 = vpop.permute.xlu1 %1330  ;;  %v4850_v10 = vpop.permute.xlu0 %1332 }
 0x172   : > { %1530 = vrot.lane.b32.xlu1 %v1499_v48, %s3368_s20  ;;  %v6120_v48 = vmov 0 }
 0x174   : > { %v4853_v7 = vpop.permute.xlu1 %1334  ;;  %v4855_v27 = vpop.permute.xlu0 %1336 }
 0x178   : > { %v4857_v61 = vpop.permute.xlu1 %1338  ;;  %v4859_v63 = vpop.permute.xlu0 %1340 }
 0x17c   : > { %v4861_v6 = vpop.permute.xlu1 %1342  ;;  %v4863_v55 = vpop.permute.xlu0 %1344 }
 0x180   : > { %v4865_v13 = vpop.permute.xlu1 %1346 }
 0x181   : > { %v4867_v34 = vpop.permute.xlu0 %1348 }
 0x184   : > { %v4870_v14 = vpop.permute.xlu1 %1350 }
 0x185   : > { %v1353_v28 = vpop.permute.xlu0 %1352 }
 0x186   : > { %vm1370_vm14 = vcmp.ne.s32.totalorder %v1353_v28, 0 }
 0x187   : > { %vm4877_vm11 = vmor %vm1284_vm10, %vm1370_vm14  ;;  %vm1356_vm10 = vcmp.ne.s32.totalorder %v1325_v19, 0  ;;  %vm6128_vm14 = vnez %v5986_v8  ;;  %v6135_v19 = vmov 0  ;;  %v6139_v8 = vmov 0 }
 0x188   : > { %v6118_v25 = vsel %vm4877_vm11, 4294967295, %v6117_v25  ;;  %v1355_v26 = vpop.permute.xlu1 %1354  ;;  %vm1357_vm11 = vcmp.ne.s32.totalorder %v1327_v29, 0  ;;  %vm4947_vm3 = vmor %vm1270_vm8, %vm1356_vm10 }
 0x189   : > { %6119 = vst [vmem:[#allocation27_spill] sm:$0xff] %v6118_v25  ;;  %vm1371_vm1 = vcmp.ne.s32.totalorder %v1355_v26, 0  ;;  %v1425_v43 = vpop.permute.xlu0 %1424 }
 0x18a   : > { %vm4885_vm12 = vmor %vm1285_vm4, %vm1371_vm1  ;;  %vm1454_vm2 = vcmp.ne.s32.totalorder %v1425_v43, 0  ;;  %v6145_v43 = vmov 0 }
 0x18b   : > { %v6121_v48 = vsel %vm4885_vm12, 4294967295, %v6120_v48  ;;  %vm1271_vm1 = vmand %vm4038_vm6, %vm5918_vm7  ;;  %vm6134_vm6 = vnez %v5990_v32 }
 0x18c   : > { %6122 = vst [vmem:[#allocation45_spill] sm:$0xff] %v6121_v48  ;;  %v1427_v39 = vpop.permute.xlu1 %1426  ;;  %vm4923_vm4 = vmand %vm6128_vm14, %vm5919_vm0 }
 0x18d   : > { %v4889_v3 = vpop.permute.xlu0 %1428  ;;  %vm4931_vm12 = vmand %vm6128_vm14, %vm5918_vm7  ;;  %vm1358_vm14 = vcmp.ne.s32.totalorder %v1329_v11, 0  ;;  %v6148_v11 = vmov 0 }
 0x18e   : > { %vm4941_vm15 = vmand %vm6134_vm6, %vm5919_vm0 }
 0x18f   : > { %v6136_v19 = vsel %vm4941_vm15, 4294967295, %v6135_v19  ;;  %vm4951_vm7 = vmor %vm1271_vm1, %vm1357_vm11  ;;  %vm1455_vm15 = vcmp.ne.s32.totalorder %v1427_v39, 0  ;;  %vm6147_vm11 = vcmp.ne.s32.totalorder %v4815_v54, 0  ;;  %v6151_v39 = vmov 0 }
 0x190   : > { %v4891_v28 = vpop.permute.xlu1 %1430  ;;  %v6140_v8 = vsel %vm4951_vm7, 4294967295, %v6139_v8  ;;  %vm4975_vm1 = vmand %vm4145_vm13, %vm6147_vm11  ;;  %vm6153_vm7 = vcmp.ne.s32.totalorder %v6116_v20, 0 }
 0x191   : > { %v4893_v1 = vpop.permute.xlu0 %1432  ;;  %v6149_v11 = vsel %vm4975_vm1, 4294967295, %v6148_v11  ;;  %vm4994_vm11 = vmand %vm4145_vm13, %vm6153_vm7  ;;  %vm6160_vm1 = vnez %v6037_v22 }
 0x194   : > { %v4895_v25 = vpop.permute.xlu1 %1434 }
 0x195   : > { %v4897_v9 = vpop.permute.xlu0 %1436 }
 0x196   : > { %6123 = vst [vmem:[#allocation31_spill] sm:$0xff] %v4897_v9 }
 0x198   : > { %v4899_v62 = vpop.permute.xlu1 %1438 }
 0x199   : > { %6124 = vst [vmem:[#allocation38_spill] sm:$0xff] %v4899_v62  ;;  %v4901_v60 = vpop.permute.xlu0 %1440  ;;  %v6154_v62 = vmov 0 }
 0x19a   : > { %6125 = vst [vmem:[#allocation23_spill] sm:$0xff] %v4901_v60  ;;  %v6137_v60 = vmov 0  ;;  %v6155_v62 = vsel %vm4994_vm11, 4294967295, %v6154_v62 }
 0x19b   : > { %v6138_v60 = vsel %vm4947_vm3, 4294967295, %v6137_v60 }
 0x19c   : > { %v4903_v26 = vpop.permute.xlu1 %1442 }
 0x19d   : > { %v4905_v38 = vpop.permute.xlu0 %1444 }
 0x19e   : > { %6126 = vst [vmem:[#allocation55_spill] sm:$0xff] %v4905_v38  ;;  %v6158_v38 = vmov 0 }
 0x1a0   : > { %v4907_v48 = vpop.permute.xlu1 %1446 }
 0x1a1   : > { %v4913_v44 = vpop.permute.xlu0 %1448 }
 0x1a2   : > { %6127 = vst [vmem:[#allocation22_spill] sm:$0xff] %v4913_v44  ;;  %v6131_v44 = vmov 0 }
 0x1a3   : > { %v6132_v44 = vsel %vm4931_vm12, 4294967295, %v6131_v44  ;;  %vm6141_vm12 = vcmp.ne.s32.totalorder %v6116_v20, 0 }
 0x1a4   : > { %v4935_v16 = vpop.permute.xlu1 %1450  ;;  %vm4959_vm0 = vmand %vm6134_vm6, %vm6141_vm12  ;;  %vm6163_vm13 = vnez %v6132_v44 }
 0x1a5   : > { %6133 = vst [vmem:[#allocation42_spill] sm:$0xff] %v4935_v16  ;;  %v4945_v29 = vpop.permute.xlu0 %1500  ;;  %v6142_v16 = vmov 0  ;;  %vm6144_vm5 = vmmov %vm6141_vm12  ;;  %vm6150_vm12 = vnez %v6035_v31 }
 0x1a6   : > { %v6143_v16 = vsel %vm4959_vm0, 4294967295, %v6142_v16  ;;  %vm4967_vm8 = vmand %vm4094_vm9, %vm6144_vm5  ;;  %vm1359_vm5 = vcmp.ne.s32.totalorder %v4848_v46, 0  ;;  %v6165_v46 = vmov 0 }
 0x1a7   : > { %v6146_v43 = vsel %vm4967_vm8, 4294967295, %v6145_v43  ;;  %vm1470_vm10 = vmand %vm6150_vm12, %vm1454_vm2  ;;  %vm1360_vm2 = vcmp.ne.s32.totalorder %v4850_v10, 0  ;;  %vm6156_vm12 = vcmp.ne.s32.totalorder %v4815_v54, 0  ;;  %v6183_v54 = vmov 0 }
 0x1a8   : > { %v4981_v32 = vpop.permute.xlu1 %1502  ;;  %vm4985_vm6 = vmor %vm4923_vm4, %vm1358_vm14  ;;  %vm6157_vm4 = vnez %v6001_v36  ;;  %v6206_v36 = vmov 0 }
 0x1a9   : > { %v6152_v39 = vsel %vm4985_vm6, 4294967295, %v6151_v39  ;;  %vm5003_vm14 = vmand %vm6157_vm4, %vm6156_vm12 }
 0x1aa   : > { %v1505_v9 = vpop.permute.xlu0 %1504  ;;  %v6159_v38 = vsel %vm5003_vm14, 4294967295, %v6158_v38  ;;  %vm1471_vm8 = vmand %vm6160_vm1, %vm1455_vm15 }
 0x1ab   : > { %vm1534_vm3 = vcmp.ne.s32.totalorder %v1505_v9, 0  ;;  %vm1375_vm7 = vmor %vm6163_vm13, %vm1359_vm5  ;;  %v6168_v9 = vmov 0  ;;  %vm6170_vm5 = vcmp.le.f32.partialorder %v6032_v23, 16.0  ;;  %vm6171_vm13 = vnez %v6152_v39 }
 0x1ac   : > { %vm5009_vm0 = vmand %vm1470_vm10, %vm1534_vm3  ;;  %v1507_v10 = vpop.permute.xlu1 %1506  ;;  %vm1361_vm3 = vcmp.ne.s32.totalorder %v4853_v7, 0  ;;  %v6177_v7 = vmov 0  ;;  %v6180_v23 = vmov 0 }
 0x1ad   : > { %v6162_v42 = vsel %vm5009_vm0, 4294967295, %v6161_v42  ;;  %vm6164_vm11 = vmmov %vm6156_vm12  ;;  %vm6167_vm12 = vnez %v6136_v19  ;;  %vm1535_vm10 = vcmp.ne.s32.totalorder %v1507_v10, 0  ;;  %v6175_v19 = vmov 0 }
 0x1ae   : > { %vm5019_vm6 = vmand %vm4094_vm9, %vm6164_vm11  ;;  %v1585_v44 = vpop.permute.xlu0 %1584  ;;  %vm1363_vm9 = vcmp.ne.s32.totalorder %v4857_v61, 0 }
 0x1af   : > { %v6166_v46 = vsel %vm5019_vm6, 4294967295, %v6165_v46  ;;  %vm5025_vm15 = vmor %vm6167_vm12, %vm1360_vm2  ;;  %vm6174_vm2 = vnez %v6014_v41  ;;  %v6222_v41 = vmov 0 }
 0x1b0   : > { %v6169_v9 = vsel %vm5025_vm15, 4294967295, %v6168_v9  ;;  %vm5034_vm0 = vmand %vm6171_vm13, %vm6170_vm5  ;;  %vm1365_vm5 = vcmp.ne.s32.totalorder %v4861_v6, 0  ;;  %vm6179_vm13 = vcmp.le.f32.partialorder %v6038_v57, 16.0  ;;  %v1587_v61 = vpop.permute.xlu1 %1586  ;;  %v6190_v6 = vmov 0 }
 0x1b1   : > { %v6173_v52 = vsel %vm5034_vm0, 4294967295, %v6172_v52  ;;  %vm5043_vm12 = vmand %vm6174_vm2, %vm6164_vm11  ;;  %vm6182_vm0 = vnez %v6143_v16  ;;  %vm1364_vm11 = vcmp.ne.s32.totalorder %v4859_v63, 0  ;;  %v6193_v63 = vmov 0 }
 0x1b2   : > { %v6176_v19 = vsel %vm5043_vm12, 4294967295, %v6175_v19  ;;  %vm5047_vm6 = vmand %vm1471_vm8, %vm1535_vm10  ;;  %vm1614_vm8 = vcmp.ne.s32.totalorder %v1585_v44, 0  ;;  %vm6185_vm10 = vcmp.le.f32.partialorder %v6048_v51, 16.0  ;;  %v1589_v16 = vpop.permute.xlu0 %1588  ;;  %v6295_v51 = vmov 0 }
 0x1b3   : > { %v6178_v7 = vsel %vm5047_vm6, 4294967295, %v6177_v7  ;;  %vm5054_vm15 = vmand %vm1375_vm7, %vm6179_vm13  ;;  %vm6186_vm6 = vnez %v6138_v60  ;;  %vm6189_vm7 = vnez %v6146_v43 }
 0x1b4   : > { %v6181_v23 = vsel %vm5054_vm15, 4294967295, %v6180_v23  ;;  %vm5060_vm14 = vmor %vm6182_vm0, %vm1361_vm3  ;;  %vm1615_vm0 = vcmp.ne.s32.totalorder %v1587_v61, 0  ;;  %vm6192_vm3 = vnez %v6155_v62  ;;  %vm1366_vm15 = vcmp.ne.s32.totalorder %v4863_v55, 0  ;;  %v1591_v60 = vpop.permute.xlu1 %1590 }
 0x1b5   : > { %v6184_v54 = vsel %vm5060_vm14, 4294967295, %v6183_v54  ;;  %vm5069_vm12 = vmand %vm6186_vm6, %vm6185_vm10  ;;  %vm6195_vm6 = vcmp.ne.s32.totalorder %v6116_v20, 0  ;;  %v6203_v55 = vmov 0  ;;  %v6274_v61 = vmov 0 }
 0x1b6   : > { %vm5075_vm13 = vmor %vm6189_vm7, %vm1363_vm9  ;;  %vm6198_vm9 = vcmp.le.f32.partialorder %v6057_v15, 16.0  ;;  %vm6199_vm7 = vnez %v6140_v8  ;;  %v6208_v15 = vmov 0  ;;  %v6211_v8 = vmov 0  ;;  %v1581_v22 = vpop.permute.xlu0 %1580 }
 0x1b7   : > { %v6191_v6 = vsel %vm5075_vm13, 4294967295, %v6190_v6  ;;  %vm5081_vm14 = vmor %vm6192_vm3, %vm1365_vm5  ;;  %vm6202_vm5 = vnez %v6149_v11  ;;  %v6238_v11 = vmov 0 }
 0x1b8   : > { %v6194_v63 = vsel %vm5081_vm14, 4294967295, %v6193_v63  ;;  %vm5090_vm10 = vmand %vm6157_vm4, %vm6195_vm6  ;;  %vm6205_vm14 = vnez %v6035_v31  ;;  %vm1362_vm6 = vcmp.ne.s32.totalorder %v4855_v27, 0  ;;  %v6214_v31 = vmov 0 }
 0x1b9   : > { %vm5098_vm13 = vmand %vm6199_vm7, %vm6198_vm9  ;;  %v6219_v27 = vmov 0 }
 0x1ba   : > { %vm5104_vm3 = vmor %vm6202_vm5, %vm1364_vm11  ;;  %vm6210_vm11 = vnez %v6159_v38  ;;  %vm1616_vm5 = vcmp.ne.s32.totalorder %v1589_v16, 0 }
 0x1bb   : > { %v6204_v55 = vsel %vm5104_vm3, 4294967295, %v6203_v55  ;;  %vm5110_vm4 = vmor %vm6205_vm14, %vm1614_vm8  ;;  %vm6213_vm14 = vcmp.ne.s32.totalorder %v6116_v20, 0 }
 0x1bc   : > { %v6207_v36 = vsel %vm5110_vm4, 4294967295, %v6206_v36  ;;  %vm5117_vm9 = vmor %vm6160_vm1, %vm1615_vm0  ;;  %vm1368_vm1 = vcmp.ne.s32.totalorder %v4867_v34, 0  ;;  %vm6225_vm0 = vcmp.le.f32.partialorder %v6047_v58, 16.0  ;;  %vm6226_vm4 = vnez %v6184_v54  ;;  %v1583_v34 = vpop.permute.xlu1 %1582  ;;  %v1593_v58 = vpop.permute.xlu0 %1592 }
 0x1bd   : > { %v6209_v15 = vsel %vm5117_vm9, 4294967295, %v6208_v15  ;;  %vm5123_vm7 = vmor %vm6210_vm11, %vm1366_vm15  ;;  %vm6217_vm15 = vcmp.le.f32.partialorder %v3829_v40, 16.0  ;;  %vm6218_vm11 = vnez %v6169_v9  ;;  %v6227_v40 = vmov 0 }
 0x1be   : > { %v6212_v8 = vsel %vm5123_vm7, 4294967295, %v6211_v8  ;;  %vm5131_vm8 = vmand %vm6174_vm2, %vm6213_vm14  ;;  %vm1612_vm2 = vcmp.ne.s32.totalorder %v1581_v22, 0  ;;  %vm6221_vm14 = vnez %v6166_v46  ;;  %vm6233_vm9 = vnez %v6055_v50  ;;  %v6319_v22 = vld [vmem:[#allocation51_spill] sm:$0xff] }
 0x1bf   : > { %v6215_v31 = vsel %vm5131_vm8, 4294967295, %v6214_v31  ;;  %vm5144_vm7 = vmand %vm6218_vm11, %vm6217_vm15  ;;  %vm1367_vm11 = vcmp.ne.s32.totalorder %v4865_v13, 0  ;;  %v6248_v46 = vmov 0  ;;  %v6255_v9 = vmov 0 }
 0x1c0   : > { %v6220_v27 = vsel %vm5144_vm7, 4294967295, %v6219_v27  ;;  %vm5150_vm3 = vmor %vm6221_vm14, %vm1362_vm6  ;;  %vm6229_vm6 = vnez %v6052_v5  ;;  %v1597_v10 = vpop.permute.xlu0 %1596  ;;  %v6270_v54 = vmov 0 }
 0x1c1   : > { %v6223_v41 = vsel %vm5150_vm3, 4294967295, %v6222_v41  ;;  %vm5162_vm15 = vmand %vm6226_vm4, %vm6225_vm0  ;;  %vm6230_vm3 = vnez %v6176_v19  ;;  %vm1613_vm4 = vcmp.ne.s32.totalorder %v1583_v34, 0  ;;  %vm1617_vm0 = vcmp.ne.s32.totalorder %v1591_v60, 0 }
 0x1c2   : > { %v6228_v40 = vsel %vm5162_vm15, 4294967295, %v6227_v40  ;;  %vm1628_vm14 = vmor %vm6229_vm6, %vm1612_vm2  ;;  %vm6234_vm2 = vcmp.le.f32.partialorder %v6077_v49, 16.0  ;;  %vm6235_vm6 = vnez %v6194_v63  ;;  %v6289_v63 = vmov 0 }
 0x1c3   : > { %vm5171_vm7 = vmor %vm6230_vm3, %vm1368_vm1 }
 0x1c4   : > { %vm1644_vm8 = vmor %vm1628_vm14, %vm5069_vm12  ;;  %vm1369_vm12 = vcmp.ne.s32.totalorder %v4870_v14, 0  ;;  %v1595_v14 = vpop.permute.xlu1 %1594 }
 0x1c5   : > { %vm1629_vm15 = vmor %vm6233_vm9, %vm1613_vm4  ;;  %v1660_v13 = vsel %vm1644_vm8, 1, %v5975_v47  ;;  %vm6240_vm8 = vnez %v6042_v21  ;;  %vm6243_vm4 = vcmp.le.f32.partialorder %v6067_v18, 16.0  ;;  %v6251_v18 = vmov 0 }
 0x1c6   : > { %vm5184_vm3 = vmand %vm6235_vm6, %vm6234_vm2  ;;  %1676 = vrot.lane.b32.xlu1 %v1660_v13, %s3369_s27 }
 0x1c7   : > { %vm5190_vm1 = vmor %vm5090_vm10, %vm1367_vm11  ;;  %vm6244_vm10 = vnez %v6191_v6  ;;  %v6281_v6 = vmov 0 }
 0x1c8   : > { %v6239_v11 = vsel %vm5190_vm1, 4294967295, %v6238_v11  ;;  %vm1645_vm14 = vmor %vm1629_vm15, %vm5098_vm13  ;;  %vm6247_vm13 = vnez %v6045_v33 }
 0x1c9   : > { %vm5200_vm6 = vmor %vm6240_vm8, %vm1616_vm5  ;;  %v1661_v38 = vsel %vm1645_vm14, 1, %v5975_v47  ;;  %vm6250_vm5 = vnez %v6215_v31  ;;  %vm6254_vm14 = vnez %v6204_v55 }
 0x1ca   : > { %vm5208_vm11 = vmand %vm6244_vm10, %vm6243_vm4  ;;  %1678 = vrot.lane.b32.xlu0 %v1661_v38, %s3369_s27  ;;  %vm1619_vm4 = vcmp.ne.s32.totalorder %v1595_v14, 0  ;;  %vm6253_vm10 = vcmp.le.f32.partialorder %v6069_v30, 16.0  ;;  %v1599_v30 = vpop.permute.xlu1 %1598 }
 0x1cb   : > { %vm5215_vm15 = vmor %vm6247_vm13, %vm1617_vm0  ;;  %vm6257_vm0 = vnez %v6207_v36  ;;  %vm6258_vm13 = vnez %v6173_v52  ;;  %v6264_v52 = vmov 0 }
 0x1cc   : > { %v6249_v46 = vsel %vm5215_vm15, 4294967295, %v6248_v46  ;;  %vm5222_vm2 = vmor %vm6250_vm5, %vm1369_vm12  ;;  %vm6260_vm12 = vnez %v6220_v27  ;;  %vm6277_vm15 = vnez %v6072_v35 }
 0x1cd   : > { %v6252_v18 = vsel %vm5222_vm2, 4294967295, %v6251_v18  ;;  %vm5230_vm9 = vmand %vm6254_vm14, %vm6253_vm10  ;;  %vm6262_vm14 = vcmp.le.f32.partialorder %v6079_v0, 16.0  ;;  %vm1620_vm10 = vcmp.ne.s32.totalorder %v1597_v10, 0  ;;  %vm1621_vm2 = vcmp.ne.s32.totalorder %v1599_v30, 0  ;;  %v1601_v0 = vpop.permute.xlu0 %1600 }
 0x1ce   : > { %v6256_v9 = vsel %vm5230_vm9, 4294967295, %v6255_v9  ;;  %vm6259_vm8 = vmor %vm6257_vm0, %vm6258_vm13  ;;  %vm6263_vm9 = vnez %v6212_v8  ;;  %vm6269_vm0 = vnez %v6065_v56  ;;  %v1603_v57 = vpop.permute.xlu1 %1602  ;;  %v6336_v10 = vmov 0 }
 0x1cf   : > { %v1662_v44 = vsel %vm6259_vm8, 1, %v5975_v47  ;;  %vm1648_vm5 = vmor %vm5200_vm6, %vm6260_vm12  ;;  %vm6266_vm8 = vnez %v6209_v15  ;;  %vm6267_vm6 = vnez %v6181_v23 }
 0x1d0   : > { %1680 = vrot.lane.b32.xlu1 %v1662_v44, %s3369_s27  ;;  %vm5253_vm1 = vmand %vm6263_vm9, %vm6262_vm14  ;;  %vm6272_vm9 = vcmp.le.f32.partialorder %v6059_v17, 16.0  ;;  %vm6273_vm14 = vnez %v6223_v41  ;;  %v1664_v23 = vsel %vm1648_vm5, 1, %v5975_v47 }
 0x1d1   : > { %v6265_v52 = vsel %vm5253_vm1, 4294967295, %v6264_v52  ;;  %vm6268_vm13 = vmor %vm6266_vm8, %vm6267_vm6  ;;  %vm6276_vm8 = vnez %v6075_v45 }
 0x1d2   : > { %v1663_v19 = vsel %vm6268_vm13, 1, %v5975_v47  ;;  %vm5265_vm12 = vmor %vm6269_vm0, %vm1619_vm4  ;;  %vm1622_vm13 = vcmp.ne.s32.totalorder %v1601_v0, 0  ;;  %vm1456_vm0 = vcmp.ne.s32.totalorder %v4889_v3, 0  ;;  %v1605_v3 = vpop.permute.xlu0 %1604 }
 0x1d3   : > { %v6271_v54 = vsel %vm5265_vm12, 4294967295, %v6270_v54  ;;  %1682 = vrot.lane.b32.xlu0 %v1663_v19, %s3369_s27  ;;  %vm5274_vm1 = vmand %vm6273_vm14, %vm6272_vm9  ;;  %vm6280_vm9 = vcmp.le.f32.partialorder %v6089_v37, 16.0  ;;  %vm1457_vm14 = vcmp.ne.s32.totalorder %v4891_v28, 0 }
 0x1d4   : > { %v6275_v61 = vsel %vm5274_vm1, 4294967295, %v6274_v61  ;;  %vm1637_vm6 = vmor %vm6276_vm8, %vm1621_vm2  ;;  %1684 = vrot.lane.b32.xlu1 %v1664_v23, %s3369_s27  ;;  %vm6283_vm5 = vnez %v6271_v54  ;;  %vm6298_vm1 = vnez %v6062_v12 }
 0x1d5   : > { %vm1653_vm4 = vmor %vm1637_vm6, %vm5184_vm3  ;;  %vm1618_vm3 = vcmp.ne.s32.totalorder %v1593_v58, 0  ;;  %vm6284_vm6 = vnez %v6082_v4 }
 0x1d6   : > { %vm5287_vm12 = vmor %vm6277_vm15, %vm1620_vm10  ;;  %v1669_v16 = vsel %vm1653_vm4, 1, %v5975_v47  ;;  %vm6288_vm4 = vnez %v6239_v11  ;;  %v6329_v11 = vmov 0 }
 0x1d7   : > { %vm5295_vm2 = vmand %vm5171_vm7, %vm6280_vm9  ;;  %1694 = vrot.lane.b32.xlu0 %v1669_v16, %s3369_s27  ;;  %vm6287_vm7 = vcmp.le.f32.partialorder %v6087_v24, 16.0 }
 0x1d8   : > { %v6282_v6 = vsel %vm5295_vm2, 4294967295, %v6281_v6  ;;  %vm1651_vm10 = vmor %vm6283_vm5, %vm5208_vm11  ;;  %vm6291_vm11 = vnez %v6249_v46  ;;  %vm6292_vm5 = vnez %v6228_v40  ;;  %vm1458_vm2 = vcmp.ne.s32.totalorder %v4893_v1, 0  ;;  %v1607_v1 = vpop.permute.xlu1 %1606  ;;  %v6417_v40 = vld [vmem:[#allocation8_spill] sm:$0xff] }
 0x1d9   : > { %vm5308_vm8 = vmor %vm6284_vm6, %vm1622_vm13  ;;  %vm6294_vm13 = vnez %v6042_v21  ;;  %v1667_v62 = vsel %vm1651_vm10, 1, %v5975_v47  ;;  %vm6311_vm10 = vnez %v6092_v53 }
 0x1da   : > { %vm5316_vm9 = vmand %vm6288_vm4, %vm6287_vm7  ;;  %vm6297_vm7 = vnez %v6256_v9 }
 0x1db   : > { %v6290_v63 = vsel %vm5316_vm9, 4294967295, %v6289_v63  ;;  %vm6293_vm15 = vmor %vm6291_vm11, %vm6292_vm5  ;;  %vm1624_vm9 = vcmp.ne.s32.totalorder %v1605_v3, 0  ;;  %1690 = vrot.lane.b32.xlu0 %v1667_v62, %s3369_s27 }
 0x1dc   : > { %v1665_v28 = vsel %vm6293_vm15, 1, %v5975_v47  ;;  %vm5328_vm6 = vmand %vm6294_vm13, %vm1456_vm0  ;;  %vm6301_vm15 = vcmp.le.f32.partialorder %v6098_v59, 16.0  ;;  %vm6302_vm0 = vnez %v6252_v18  ;;  %v5363_v59 = vpop.permute.xlu0 %1608  ;;  %v5390_v60 = vpop.permute.xlu1 %1610 }
 0x1dd   : > { %v6296_v51 = vsel %vm5328_vm6, 4294967295, %v6295_v51  ;;  %vm1652_vm4 = vmor %vm5287_vm12, %vm6297_vm7  ;;  %1686 = vrot.lane.b32.xlu1 %v1665_v28, %s3369_s27  ;;  %vm6305_vm12 = vnez %v6045_v33  ;;  %vm1623_vm6 = vcmp.ne.s32.totalorder %v1603_v57, 0 }
 0x1de   : > { %vm5340_vm11 = vmor %vm6298_vm1, %vm1618_vm3  ;;  %vm6308_vm3 = vnez %v6265_v52  ;;  %v1668_v15 = vsel %vm1652_vm4, 1, %v5975_v47 }
 0x1df   : > { %vm5348_vm5 = vmand %vm6302_vm0, %vm6301_vm15 }
 0x1e0   : > { %vm5355_vm13 = vmand %vm6305_vm12, %vm1457_vm14  ;;  %vm1625_vm12 = vcmp.ne.s32.totalorder %v1607_v1, 0  ;;  %v1509_v31 = vpop.permute.xlu0 %1508  ;;  %v1511_v34 = vpop.permute.xlu1 %1510 }
 0x1e1   : > { %vm1654_vm7 = vmor %vm5308_vm8, %vm6308_vm3  ;;  %vm6314_vm8 = vnez %v6275_v61  ;;  %1692 = vrot.lane.b32.xlu1 %v1668_v15, %s3369_s27 }
 0x1e2   : > { %vm5368_vm15 = vmand %vm6298_vm1, %vm1458_vm2  ;;  %vm6315_vm1 = vnez %v6085_v2  ;;  %v1670_v8 = vsel %vm1654_vm7, 1, %v5975_v47  ;;  %v5464_v2 = vld [vmem:[%s5783_s13] ss:$0 sm:$0xff] }
 0x1e3   : > { %vm5374_vm14 = vmor %vm6311_vm10, %vm1624_vm9  ;;  %vm6318_vm9 = vnez %v6282_v6  ;;  %1696 = vrot.lane.b32.xlu0 %v1670_v8, %s3369_s27 }
 0x1e4   : > { %vm1650_vm0 = vmor %vm5340_vm11, %vm6314_vm8  ;;  %vm6320_vm11 = vnez %v6319_v22  ;;  %vm6323_vm8 = vnez %v6290_v63  ;;  %v1513_v58 = vpop.permute.xlu0 %1512  ;;  %v1515_v49 = vpop.permute.xlu1 %1514 }
 0x1e5   : > { %vm5386_vm2 = vmor %vm6315_vm1, %vm1623_vm6  ;;  %vm1536_vm6 = vcmp.ne.s32.totalorder %v1509_v31, 0  ;;  %v1666_v41 = vsel %vm1650_vm0, 1, %v5975_v47 }
 0x1e6   : > { %vm1656_vm4 = vmor %vm5374_vm14, %vm6318_vm9  ;;  %1688 = vrot.lane.b32.xlu1 %v1666_v41, %s3369_s27  ;;  %vm6324_vm14 = vnez %v6296_v51 }
 0x1e7   : > { %vm5400_vm3 = vmor %vm6320_vm11, %vm1625_vm12  ;;  %v1672_v20 = vsel %vm1656_vm4, 1, %v5975_v47  ;;  %vm1537_vm12 = vcmp.ne.s32.totalorder %v1511_v34, 0 }
 0x1e8   : > { %vm1655_vm7 = vmor %vm5386_vm2, %vm6323_vm8  ;;  %1700 = vrot.lane.b32.xlu0 %v1672_v20, %s3369_s27  ;;  %vm1459_vm2 = vcmp.ne.s32.totalorder %v4895_v25, 0  ;;  %vm1538_vm8 = vcmp.ne.s32.totalorder %v1513_v58, 0  ;;  %v6332_v25 = vmov 0  ;;  %v5445_v14 = vpop.permute.xlu1 %1518 }
 0x1e9   : > { %vm5412_vm9 = vmand %vm6324_vm14, %vm1536_vm6  ;;  %v1671_v43 = vsel %vm1655_vm7, 1, %v5975_v47  ;;  %vm1539_vm14 = vcmp.ne.s32.totalorder %v1515_v49, 0 }
 0x1ea   : > { %vm1657_vm0 = vmor %vm5400_vm3, %vm5348_vm5  ;;  %1698 = vrot.lane.b32.xlu1 %v1671_v43, %s3369_s27  ;;  %vm6331_vm5 = vnez %v6065_v56 }
 0x1eb   : > { %vm5425_vm6 = vmand %vm5355_vm13, %vm1537_vm12  ;;  %v1673_v39 = vsel %vm1657_vm0, 1, %v5975_v47 }
 0x1ec   : > { %vm5432_vm4 = vmand %vm5368_vm15, %vm1538_vm8  ;;  %vm1463_vm15 = vcmp.ne.s32.totalorder %v4903_v26, 0  ;;  %v1523_v38 = vpop.permute.xlu1 %1522 }
 0x1ed   : > { %v6330_v11 = vsel %vm5432_vm4, 4294967295, %v6329_v11  ;;  %vm1475_vm3 = vmand %vm6331_vm5, %vm1459_vm2  ;;  %vm1543_vm12 = vcmp.ne.s32.totalorder %v1523_v38, 0  ;;  %vm1465_vm2 = vcmp.ne.s32.totalorder %v4907_v48, 0 }
 0x1ee   : > { %vm5439_vm13 = vmand %vm1475_vm3, %vm1539_vm14  ;;  %1702 = vrot.lane.b32.xlu1 %v1673_v39, %s3369_s27 }
 0x1ef   : > { %v6333_v25 = vsel %vm5439_vm13, 4294967295, %v6332_v25  ;;  %vm1479_vm7 = vmand %vm6315_vm1, %vm1463_vm15  ;;  %v3117_v26 = vpop.f32.mrb[2].mxu0  ;;  %vm6338_vm1 = vcmask 261120  }
 0x1f0   : > { %vm5451_vm8 = vmand %vm1479_vm7, %vm1543_vm12  ;;  %v1527_v46 = vpop.permute.xlu1 %1526  ;;  %v5467_v48 = vadd.f32 %v3117_v26, %v5464_v2  ;;  %v2273_v18 = vpop.f32.mrb[3].mxu0 }
 0x1f1   : > { %vm1481_vm0 = vmand %vm6320_vm11, %vm1465_vm2  ;;  %vm1545_vm5 = vcmp.ne.s32.totalorder %v1527_v46, 0  ;;  %v5470_v9 = vadd.f32 %v5464_v2, %v2273_v18 }
 0x1f2   : > { %vm5457_vm3 = vmand %vm1481_vm0, %vm1545_vm5  ;;  %v3036_v44 = vclamps-f32 %v5467_v48, 30.0 }
 0x1f3   : > { %v6337_v10 = vsel %vm5457_vm3, 4294967295, %v6336_v10  ;;  %v3035_v30 = vclamps-f32 %v5470_v9, 30.0  ;;  %vm6339_vm11 = vmmov %vm6338_vm1 }
 0x1f4   : > { %v2407_v52 = vsub.f32 0.0, %v3036_v44  ;;  %vm6340_vm14 = vmmov %vm6338_vm1 }
 0x1f5   : > { %v2406_v19 = vsub.f32 0.0, %v3035_v30  ;;  %vm6341_vm15 = vmmov %vm6338_vm1 }
 0x1f6   : > { %v2424_v54 = vmul.f32 1.442695, %v2407_v52  ;;  %vm6342_vm7 = vmmov %vm6338_vm1 }
 0x1f7   : > { %v2422_v0 = vmul.f32 1.442695, %v2406_v19  ;;  %vm6343_vm12 = vmmov %vm6338_vm1 }
 0x1f8   : > { %3254 = vpow2.f32 %v2424_v54  ;;  %vm6344_vm2 = vmmov %vm6338_vm1 }
 0x1f9   : > { %3256 = vpow2.f32 %v2422_v0  ;;  %v3129_v61 = vpop.f32.mrb[2].mxu1  ;;  %vm6345_vm0 = vmmov %vm6338_vm1 }
 0x1fa   : > { %v5475_v23 = vadd.f32 %v3129_v61, %v5464_v2  ;;  %v2313_v17 = vpop.f32.mrb[3].mxu1  ;;  %vm6346_vm5 = vmmov %vm6345_vm0 }
 0x1fb   : > { %v5478_v57 = vadd.f32 %v5464_v2, %v2313_v17 }
 0x1fc   : > { %v3044_v6 = vclamps-f32 %v5475_v23, 30.0 }
 0x1fd   : > { %v3043_v16 = vclamps-f32 %v5478_v57, 30.0 }
 0x1fe   : > { %v2415_v3 = vsub.f32 0.0, %v3044_v6 }
 0x1ff   : > { %v2414_v37 = vsub.f32 0.0, %v3043_v16 }
 0x200   : > { %v2440_v63 = vmul.f32 1.442695, %v2415_v3 }
 0x201   : > { %v2438_v28 = vmul.f32 1.442695, %v2414_v37  ;;  %v3120_v51 = vpop.f32.mrb[4].mxu0 }
 0x202   : > { %v3255_v24 = vpop.eup %3254  ;;  %3258 = vpow2.f32 %v2440_v63  ;;  %v5483_v21 = vadd.f32 %v3120_v51, %v5464_v2  ;;  %v2283_v1 = vpop.f32.mrb[5].mxu0 }
 0x203   : > { %v3257_v62 = vpop.eup %3256  ;;  %v2455_v55 = vadd.f32 1.0, %v3255_v24  ;;  %3260 = vpow2.f32 %v2438_v28  ;;  %v5486_v36 = vadd.f32 %v5464_v2, %v2283_v1  ;;  %v3132_v33 = vpop.f32.mrb[4].mxu1 }
 0x204   : > { %v2454_v15 = vadd.f32 1.0, %v3257_v62  ;;  %v3038_v12 = vclamps-f32 %v5483_v21, 30.0  ;;  %v5490_v8 = vadd.f32 %v3132_v33, %v5464_v2  ;;  %v2323_v31 = vpop.f32.mrb[5].mxu1 }
 0x205   : > { %3262 = vrcp.f32 %v2455_v55  ;;  %v3037_v22 = vclamps-f32 %v5486_v36, 30.0  ;;  %v5494_v27 = vadd.f32 %v5464_v2, %v2323_v31  ;;  %v3123_v41 = vpop.f32.mrb[6].mxu0 }
 0x206   : > { %3264 = vrcp.f32 %v2454_v15  ;;  %v2409_v34 = vsub.f32 0.0, %v3038_v12  ;;  %v3046_v20 = vclamps-f32 %v5490_v8, 30.0  ;;  %v5498_v58 = vadd.f32 %v3123_v41, %v5464_v2  ;;  %v2293_v43 = vpop.f32.mrb[7].mxu0 }
 0x207   : > { %v2408_v49 = vsub.f32 0.0, %v3037_v22  ;;  %v3045_v39 = vclamps-f32 %v5494_v27, 30.0  ;;  %v5502_v38 = vadd.f32 %v5464_v2, %v2293_v43 }
 0x208   : > { %v2428_v46 = vmul.f32 1.442695, %v2409_v34  ;;  %v2417_v26 = vsub.f32 0.0, %v3046_v20  ;;  %v3040_v18 = vclamps-f32 %v5498_v58, 30.0 }
 0x209   : > { %v2426_v44 = vmul.f32 1.442695, %v2408_v49  ;;  %v2416_v30 = vsub.f32 0.0, %v3045_v39  ;;  %v3039_v52 = vclamps-f32 %v5502_v38, 30.0  ;;  %v3135_v19 = vpop.f32.mrb[6].mxu1 }
 0x20a   : > { %3266 = vpow2.f32 %v2428_v46  ;;  %v2444_v54 = vmul.f32 1.442695, %v2417_v26  ;;  %v2411_v0 = vsub.f32 0.0, %v3040_v18  ;;  %v5507_v61 = vadd.f32 %v3135_v19, %v5464_v2  ;;  %v2333_v17 = vpop.f32.mrb[7].mxu1  ;;  %v3126_v6 = vpop.f32.mrb[8].mxu0 }
 0x20b   : > { %3268 = vpow2.f32 %v2426_v44  ;;  %v2442_v16 = vmul.f32 1.442695, %v2416_v30  ;;  %v2410_v3 = vsub.f32 0.0, %v3039_v52  ;;  %v5510_v37 = vadd.f32 %v5464_v2, %v2333_v17  ;;  %v2303_v63 = vpop.f32.mrb[9].mxu0  ;;  %v5528_v30 = vld [vmem:[%s5784_s14] ss:$0 sm:$0xff] }
 0x20c   : > { %v3259_v28 = vpop.eup %3258  ;;  %3270 = vpow2.f32 %v2444_v54  ;;  %v2432_v51 = vmul.f32 1.442695, %v2411_v0  ;;  %v3048_v24 = vclamps-f32 %v5507_v61, 30.0  ;;  %v5514_v1 = vadd.f32 %v3126_v6, %v5464_v2 }
 0x20d   : > { %v3261_v62 = vpop.eup %3260  ;;  %v2463_v55 = vadd.f32 1.0, %v3259_v28  ;;  %3272 = vpow2.f32 %v2442_v16  ;;  %v2430_v33 = vmul.f32 1.442695, %v2410_v3  ;;  %v3047_v15 = vclamps-f32 %v5510_v37, 30.0  ;;  %v3138_v12 = vpop.f32.mrb[8].mxu1 }
 0x20e   : > { %v2462_v31 = vadd.f32 1.0, %v3261_v62  ;;  %3274 = vpow2.f32 %v2432_v51  ;;  %v2419_v22 = vsub.f32 0.0, %v3048_v24  ;;  %v3042_v41 = vclamps-f32 %v5514_v1, 30.0  ;;  %v2343_v34 = vpop.f32.mrb[9].mxu1 }
 0x20f   : > { %v3263_v20 = vpop.eup %3262  ;;  %3276 = vrcp.f32 %v2463_v55  ;;  %v2418_v43 = vsub.f32 0.0, %v3047_v15  ;;  %v5519_v49 = vadd.f32 %v5464_v2, %v2303_v63  ;;  %v5522_v39 = vadd.f32 %v3138_v12, %v5464_v2 }
 0x210   : > { %v3265_v46 = vpop.eup %3264  ;;  %v2487_v26 = vmul.f32 %v3263_v20, %v5467_v48  ;;  %3278 = vrcp.f32 %v2462_v31  ;;  %v2448_v18 = vmul.f32 1.442695, %v2419_v22  ;;  %v2413_v44 = vsub.f32 0.0, %v3042_v41 }
 0x211   : > { %v2486_v52 = vmul.f32 %v3265_v46, %v5470_v9  ;;  %3280 = vpow2.f32 %v2430_v33  ;;  %v2446_v19 = vmul.f32 1.442695, %v2418_v43  ;;  %v3041_v54 = vclamps-f32 %v5519_v49, 30.0 }
 0x212   : > { %3282 = vpow2.f32 %v2448_v18  ;;  %v2436_v0 = vmul.f32 1.442695, %v2413_v44  ;;  %v3050_v17 = vclamps-f32 %v5522_v39, 30.0  ;;  %v5534_v48 = vadd.f32 %v5464_v2, %v2343_v34 }
 0x213   : > { %3284 = vpow2.f32 %v2446_v19  ;;  %v2509_v6 = vmul.f32 %v5528_v30, %v2487_v26  ;;  %v2508_v16 = vmul.f32 %v5528_v30, %v2486_v52  ;;  %v2412_v63 = vsub.f32 0.0, %v3041_v54 }
 0x214   : > { %v3267_v3 = vpop.eup %3266  ;;  %3286 = vpow2.f32 %v2436_v0  ;;  %v2421_v51 = vsub.f32 0.0, %v3050_v17  ;;  %v3049_v2 = vclamps-f32 %v5534_v48, 30.0 }
 0x215   : > { %v3269_v9 = vpop.eup %3268  ;;  %v2457_v28 = vadd.f32 1.0, %v3267_v3  ;;  %v2527_v24 = vsel %vm6338_vm1, %v2509_v6, 0.0  ;;  %v2524_v62 = vsel %vm6339_vm11, %v2508_v16, 0.0  ;;  %v2434_v41 = vmul.f32 1.442695, %v2412_v63  ;;  %vm6347_vm1 = vmmov %vm6345_vm0 }
 0x216   : > { %v3271_v55 = vpop.eup %3270  ;;  %v2456_v33 = vadd.f32 1.0, %v3269_v9  ;;  %2528 = vadd.xlane.f32.xlu0 %v2527_v24  ;;  %2525 = vadd.xlane.f32.xlu1 %v2524_v62  ;;  %v2452_v43 = vmul.f32 1.442695, %v2421_v51  ;;  %v2420_v18 = vsub.f32 0.0, %v3049_v2  ;;  %vm6348_vm11 = vmmov %vm6345_vm0 }
 0x217   : > { %v3273_v15 = vpop.eup %3272  ;;  %3288 = vrcp.f32 %v2457_v28  ;;  %v2465_v12 = vadd.f32 1.0, %v3271_v55 }
 0x218   : > { %v3275_v31 = vpop.eup %3274  ;;  %3290 = vrcp.f32 %v2456_v33  ;;  %v2464_v22 = vadd.f32 1.0, %v3273_v15 }
 0x219   : > { %v3277_v34 = vpop.eup %3276  ;;  %3292 = vrcp.f32 %v2465_v12  ;;  %v2459_v20 = vadd.f32 1.0, %v3275_v31 }
 0x21a   : > { %v3279_v46 = vpop.eup %3278  ;;  %v2495_v26 = vmul.f32 %v3277_v34, %v5475_v23  ;;  %3294 = vrcp.f32 %v2464_v22  ;;  %v2450_v23 = vmul.f32 1.442695, %v2420_v18 }
 0x21b   : > { %v3281_v44 = vpop.eup %3280  ;;  %v2494_v52 = vmul.f32 %v3279_v46, %v5478_v57  ;;  %3296 = vrcp.f32 %v2459_v20 }
 0x21c   : > { %v3283_v19 = vpop.eup %3282  ;;  %v2458_v54 = vadd.f32 1.0, %v3281_v44  ;;  %3298 = vpow2.f32 %v2434_v41  ;;  %v2517_v0 = vmul.f32 %v5528_v30, %v2495_v26 }
 0x21d   : > { %v3285_v17 = vpop.eup %3284  ;;  %v2467_v6 = vadd.f32 1.0, %v3283_v19  ;;  %3300 = vpow2.f32 %v2452_v43  ;;  %v2516_v16 = vmul.f32 %v5528_v30, %v2494_v52 }
 0x21e   : > { %v3287_v3 = vpop.eup %3286  ;;  %3302 = vrcp.f32 %v2458_v54  ;;  %v2466_v63 = vadd.f32 1.0, %v3285_v17  ;;  %v2551_v9 = vsel %vm6340_vm14, %v2517_v0, 0.0  ;;  %vm6349_vm14 = vmmov %vm6345_vm0 }
 0x21f   : > { %2552 = vadd.xlane.f32.xlu0 %v2551_v9  ;;  %v2548_v57 = vsel %vm6341_vm15, %v2516_v16, 0.0  ;;  %v2461_v51 = vadd.f32 1.0, %v3287_v3  ;;  %vm6350_vm15 = vmmov %vm6345_vm0 }
 0x220   : > { %3304 = vrcp.f32 %v2466_v63  ;;  %2549 = vadd.xlane.f32.xlu1 %v2548_v57 }
 0x221   : > { %v3289_v28 = vpop.eup %3288  ;;  %3306 = vrcp.f32 %v2467_v6 }
 0x222   : > { %v3291_v24 = vpop.eup %3290  ;;  %v2489_v62 = vmul.f32 %v3289_v28, %v5483_v21  ;;  %3308 = vpow2.f32 %v2450_v23 }
 0x223   : > { %v3293_v55 = vpop.eup %3292  ;;  %v2488_v33 = vmul.f32 %v3291_v24, %v5486_v36  ;;  %3310 = vrcp.f32 %v2461_v51 }
 0x224   : > { %v3295_v2 = vpop.eup %3294  ;;  %v2497_v15 = vmul.f32 %v3293_v55, %v5490_v8  ;;  %v2511_v12 = vmul.f32 %v5528_v30, %v2489_v62 }
 0x225   : > { %v3297_v31 = vpop.eup %3296  ;;  %v2496_v22 = vmul.f32 %v3295_v2, %v5494_v27  ;;  %v2510_v41 = vmul.f32 %v5528_v30, %v2488_v33 }
 0x226   : > { %v3299_v34 = vpop.eup %3298  ;;  %v2491_v20 = vmul.f32 %v3297_v31, %v5498_v58  ;;  %v2533_v21 = vsel %vm6342_vm7, %v2511_v12, 0.0  ;;  %v2519_v43 = vmul.f32 %v5528_v30, %v2497_v15  ;;  %vm6351_vm7 = vmmov %vm6345_vm0 }
 0x227   : > { %v3301_v46 = vpop.eup %3300  ;;  %v2460_v36 = vadd.f32 1.0, %v3299_v34  ;;  %2534 = vadd.xlane.f32.xlu0 %v2533_v21  ;;  %v2530_v8 = vsel %vm6343_vm12, %v2510_v41, 0.0  ;;  %v2518_v26 = vmul.f32 %v5528_v30, %v2496_v22  ;;  %vm6352_vm12 = vmmov %vm6345_vm0  ;;  %v6356_v21 = vld [vmem:[#allocation54_spill] sm:$0xff] }
 0x228   : > { %v3303_v18 = vpop.eup %3302  ;;  %v2469_v44 = vadd.f32 1.0, %v3301_v46  ;;  %2531 = vadd.xlane.f32.xlu1 %v2530_v8  ;;  %v2557_v58 = vsel %vm6344_vm2, %v2519_v43, 0.0  ;;  %v2513_v19 = vmul.f32 %v5528_v30, %v2491_v20  ;;  %vm6353_vm2 = vmmov %vm6345_vm0  ;;  %v6354_v20 = vld [vmem:[#allocation18_spill] sm:$0xff]  ;;  %v6362_v46 = vld [vmem:[#allocation52_spill] sm:$0xff]  ;;  %v1517_v8 = vpop.permute.xlu0 %1516 }
 0x229   : > { %3312 = vrcp.f32 %v2460_v36  ;;  %v2490_v52 = vmul.f32 %v3303_v18, %v5502_v38  ;;  %v2554_v17 = vsel %vm6345_vm0, %v2518_v26, 0.0  ;;  %vm1627_vm0 = vcmp.ne.s32.totalorder %v5390_v60, 0  ;;  %v6364_v36 = vld [vmem:[#allocation27_spill] sm:$0xff]  ;;  %v5603_v26 = vpop.permute.xlu1 %1530 }
 0x22a   : > { %v3305_v27 = vpop.eup %3304  ;;  %3314 = vrcp.f32 %v2469_v44  ;;  %v2539_v38 = vsel %vm6346_vm5, %v2513_v19, 0.0  ;;  %vm6355_vm5 = vnez %v6354_v20  ;;  %vm6365_vm3 = vnez %v6364_v36 }
 0x22b   : > { %v3307_v54 = vpop.eup %3306  ;;  %v2498_v0 = vmul.f32 %v3305_v27, %v5510_v37  ;;  %2558 = vadd.xlane.f32.xlu0 %v2557_v58  ;;  %v2512_v23 = vmul.f32 %v5528_v30, %v2490_v52 }
 0x22c   : > { %v3309_v6 = vpop.eup %3308  ;;  %2555 = vadd.xlane.f32.xlu1 %v2554_v17  ;;  %v2499_v63 = vmul.f32 %v3307_v54, %v5507_v61 }
 0x22d   : > { %v2468_v16 = vadd.f32 1.0, %v3309_v6  ;;  %v2520_v3 = vmul.f32 %v5528_v30, %v2498_v0  ;;  %v3311_v9 = vpop.eup %3310  ;;  %v2536_v28 = vsel %vm6348_vm11, %v2512_v23, 0.0  ;;  %vm6357_vm11 = vcmp.le.f32.partialorder %v6356_v21, 16.0 }
 0x22e   : > { %v2493_v37 = vmul.f32 %v3311_v9, %v5514_v1  ;;  %v2521_v51 = vmul.f32 %v5528_v30, %v2499_v63 }
 0x22f   : > { %3316 = vrcp.f32 %v2468_v16  ;;  %2540 = vadd.xlane.f32.xlu0 %v2539_v38  ;;  %v2560_v57 = vsel %vm6347_vm1, %v2520_v3, 0.0  ;;  %vm1643_vm1 = vmor %vm6355_vm5, %vm1627_vm0  ;;  %v6366_v3 = vld [vmem:[#allocation20_spill] sm:$0xff]  ;;  %v6367_v38 = vld [vmem:[#allocation21_spill] sm:$0xff] }
 0x230   : > { %2561 = vadd.xlane.f32.xlu1 %v2560_v57  ;;  %v2563_v2 = vsel %vm6349_vm14, %v2521_v51, 0.0  ;;  %v2515_v15 = vmul.f32 %v5528_v30, %v2493_v37  ;;  %v2573_v63 = vadd.f32 1e-08, %v6366_v3  ;;  %v2572_v23 = vadd.f32 1e-08, %v6367_v38  ;;  %v6368_v37 = vld [vmem:[#allocation19_spill] sm:$0xff] }
 0x231   : > { %v6371_v51 = vld [vmem:[#allocation28_spill] sm:$0xff] }
 0x232   : > { %v2545_v22 = vsel %vm6351_vm7, %v2515_v15, 0.0  ;;  %vm1626_vm7 = vcmp.ne.s32.totalorder %v5363_v59, 0  ;;  %v5601_v59 = vpop.permute.xlu0 %1520  ;;  %3318 = vrsqrt.f32 %v2573_v63 }
 0x233   : > { %v3313_v24 = vpop.eup %3312  ;;  %2537 = vadd.xlane.f32.xlu0 %v2536_v28  ;;  %3320 = vrsqrt.f32 %v2572_v23  ;;  %v6369_v28 = vld [vmem:[#allocation44_spill] sm:$0xff] }
 0x234   : > { %v3315_v62 = vpop.eup %3314  ;;  %v2492_v61 = vmul.f32 %v3313_v24, %v5519_v49  ;;  %v2581_v24 = vadd.f32 1e-08, %v6371_v51 }
 0x235   : > { %v2501_v55 = vmul.f32 %v3315_v62, %v5522_v39  ;;  %v6373_v62 = vld [vmem:[#allocation24_spill] sm:$0xff] }
 0x236   : > { %v2514_v33 = vmul.f32 %v5528_v30, %v2492_v61  ;;  %v5605_v44 = vpop.permute.xlu0 %1524  ;;  %v2580_v61 = vadd.f32 1e-08, %v6373_v62  ;;  %3322 = vrsqrt.f32 %v2581_v24  ;;  %v6385_v24 = vld [vmem:[#allocation23_spill] sm:$0xff] }
 0x237   : > { %2564 = vadd.xlane.f32.xlu0 %v2563_v2  ;;  %v2523_v41 = vmul.f32 %v5528_v30, %v2501_v55 }
 0x238   : > { %v2542_v1 = vsel %vm6350_vm15, %v2514_v33, 0.0  ;;  %v1677_v18 = vpop.permute.xlu1 %1676  ;;  %3324 = vrsqrt.f32 %v2580_v61  ;;  %v6387_v61 = vld [vmem:[#allocation39_spill] sm:$0xff] }
 0x239   : > { %v3317_v12 = vpop.eup %3316  ;;  %2543 = vadd.xlane.f32.xlu1 %v2542_v1  ;;  %v2569_v34 = vsel %vm6353_vm2, %v2523_v41, 0.0  ;;  %vm6363_vm2 = vcmp.le.f32.partialorder %v6362_v46, 16.0  ;;  %v6381_v46 = vld [vmem:[#allocation35_spill] sm:$0xff] }
 0x23a   : > { %v2500_v31 = vmul.f32 %v3317_v12, %v5534_v48  ;;  %v6358_v48 = vld [vmem:[#allocation45_spill] sm:$0xff]  ;;  %vm1402_vm10 = vmand %vm6365_vm3, %vm6363_vm2  ;;  %v5609_v52 = vpop.permute.xlu0 %1528  ;;  %vm1532_vm3 = vcmp.ne.s32.totalorder %v4945_v29, 0  ;;  %v6375_v12 = vld [vmem:[#allocation38_spill] sm:$0xff]  ;;  %v2583_v36 = vadd.f32 1e-08, %v6381_v46 }
 0x23b   : > { %2546 = vadd.xlane.f32.xlu0 %v2545_v22  ;;  %vm6359_vm14 = vnez %v6358_v48  ;;  %v6378_v48 = vld [vmem:[#allocation25_spill] sm:$0xff] }
 0x23c   : > { %v2522_v49 = vmul.f32 %v5528_v30, %v2500_v31  ;;  %vm1403_vm15 = vmand %vm6359_vm14, %vm6357_vm11  ;;  %v6360_v30 = vld [vmem:[#allocation43_spill] sm:$0xff]  ;;  %vm1533_vm14 = vcmp.ne.s32.totalorder %v4981_v32, 0  ;;  %v6376_v31 = vmov 0.0  }
 0x23d   : > { %vm1659_vm4 = vmor %vm1643_vm1, %vm1403_vm15  ;;  %vm6361_vm13 = vnez %v6360_v30  ;;  %vm6370_vm1 = vnez %v6052_v5  ;;  %vm6372_vm15 = vnez %v6055_v50  ;;  %v3319_v5 = vpop.eup %3318  ;;  %v6374_v50 = vld [vmem:[#allocation31_spill] sm:$0xff] }
 0x23e   : > { %v2566_v39 = vsel %vm6352_vm12, %v2522_v49, 0.0  ;;  %vm1642_vm12 = vmor %vm6361_vm13, %vm1626_vm7  ;;  %v1675_v43 = vsel %vm1659_vm4, 1, %v5975_v47  ;;  %v1679_v58 = vpop.permute.xlu0 %1678  ;;  %vm1453_vm4 = vcmp.ne.s32.totalorder %v6369_v28, 0  ;;  %v3321_v29 = vpop.eup %3320  ;;  %v6377_v49 = vld [vmem:[#allocation29_spill] sm:$0xff] }
 0x23f   : > { %2567 = vadd.xlane.f32.xlu1 %v2566_v39  ;;  %2570 = vadd.xlane.f32.xlu0 %v2569_v34  ;;  %vm1658_vm0 = vmor %vm1642_vm12, %vm1402_vm10  ;;  %vm1452_vm10 = vcmp.ne.s32.totalorder %v6368_v37, 0  ;;  %vm1708_vm12 = vcmp.ne.s32.totalorder %v1677_v18, 0  ;;  %v2575_v39 = vadd.f32 1e-08, %v6377_v49  ;;  %v6384_v28 = vld [vmem:[#allocation33_spill] sm:$0xff] }
 0x240   : > { %v1674_v60 = vsel %vm1658_vm0, 1, %v5975_v47  ;;  %vm1468_vm11 = vmand %vm6370_vm1, %vm1452_vm10  ;;  %vm1709_vm0 = vcmp.ne.s32.totalorder %v1679_v58, 0  ;;  %vm1540_vm1 = vcmp.ne.s32.totalorder %v1517_v8, 0  ;;  %v2576_v51 = vadd.f32 1e-08, %v6384_v28 }
 0x241   : > { %vm1469_vm7 = vmand %vm6372_vm15, %vm1453_vm4  ;;  %vm1460_vm4 = vcmp.ne.s32.totalorder %v6374_v50, 0  ;;  %vm6380_vm15 = vnez %v6075_v45  ;;  %3326 = vrsqrt.f32 %v2575_v39 }
 0x242   : > { %v5607_v27 = vpop.permute.xlu1 %1680  ;;  %vm1548_vm2 = vmand %vm1468_vm11, %vm1532_vm3  ;;  %vm1461_vm3 = vcmp.ne.s32.totalorder %v6375_v12, 0 }
 0x243   : > { %vm1549_vm5 = vmand %vm1469_vm7, %vm1533_vm14  ;;  %vm1541_vm14 = vcmp.ne.s32.totalorder %v5445_v14, 0 }
 0x244   : > { %vm1724_vm13 = vmand %vm1548_vm2, %vm1708_vm12 }
 0x245   : > { %v5613_v54 = vpop.permute.xlu0 %1682  ;;  %vm1725_vm10 = vmand %vm1549_vm5, %vm1709_vm0  ;;  %v2984_v22 = vsel %vm1724_vm13, 1.0, %v6376_v31  ;;  %vm6379_vm5 = vnez %v6072_v35  ;;  %v3323_v35 = vpop.eup %3322 }
 0x246   : > { %v5611_v19 = vpop.permute.xlu1 %1684  ;;  %v2985_v41 = vsel %vm1725_vm10, 1.0, %v6376_v31  ;;  %vm1476_vm11 = vmand %vm6379_vm5, %vm1460_vm4  ;;  %v3325_v14 = vpop.eup %3324  ;;  %vm1462_vm5 = vcmp.ne.s32.totalorder %v6385_v24, 0 }
 0x247   : > { %vm1477_vm7 = vmand %vm6380_vm15, %vm1461_vm3  ;;  %vm1711_vm3 = vcmp.ne.s32.totalorder %v5613_v54, 0 }
 0x248   : > { %vm1556_vm13 = vmand %vm1476_vm11, %vm1540_vm1  ;;  %vm1710_vm1 = vcmp.ne.s32.totalorder %v5607_v27, 0  ;;  %vm1542_vm11 = vcmp.ne.s32.totalorder %v5601_v59, 0 }
 0x249   : > { %v1695_v0 = vpop.permute.xlu0 %1694  ;;  %vm1557_vm0 = vmand %vm1477_vm7, %vm1541_vm14  ;;  %vm6386_vm14 = vnez %v6178_v7  ;;  %vm6388_vm7 = vnez %v6162_v42  ;;  %v6390_v7 = vld [vmem:[#allocation46_spill] sm:$0xff] }
 0x24a   : > { %vm1717_vm12 = vcmp.ne.s32.totalorder %v1695_v0, 0  ;;  %v6383_v0 = vld [vmem:[#allocation36_spill] sm:$0xff]  ;;  %vm1727_vm15 = vmand %vm6386_vm14, %vm1711_vm3 }
 0x24b   : > { %vm1733_vm10 = vmand %vm1557_vm0, %vm1717_vm12  ;;  %v2577_v3 = vadd.f32 1e-08, %v6383_v0  ;;  %v3327_v62 = vpop.eup %3326 }
 0x24c   : > { %v2993_v63 = vsel %vm1733_vm10, 1.0, %v6376_v31  ;;  %vm1726_vm12 = vmand %vm6388_vm7, %vm1710_vm1 }
 0x24d   : > { %v5617_v6 = vpop.permute.xlu0 %1690  ;;  %v2986_v42 = vsel %vm1726_vm12, 1.0, %v6376_v31  ;;  %vm6394_vm12 = vnez %v6092_v53 }
 0x24f   : > { %v5615_v47 = vpop.permute.xlu1 %1686 }
 0x250   : > { %1706 = vrot.lane.b32.xlu1 %v1675_v43, %s3369_s27  ;;  %v2574_v43 = vadd.f32 1e-08, %v6378_v48  ;;  %vm1713_vm1 = vcmp.ne.s32.totalorder %v5615_v47, 0 }
 0x252   : > { %3328 = vrsqrt.f32 %v2574_v43 }
 0x253   : > { %v1693_v17 = vpop.permute.xlu1 %1692  ;;  %3330 = vrsqrt.f32 %v2583_v36 }
 0x254   : > { %vm1716_vm2 = vcmp.ne.s32.totalorder %v1693_v17, 0 }
 0x255   : > { %1704 = vrot.lane.b32.xlu0 %v1674_v60, %s3369_s27  ;;  %v5623_v9 = vpop.permute.xlu0 %1696  ;;  %v6382_v60 = vld [vmem:[#allocation32_spill] sm:$0xff]  ;;  %vm1732_vm4 = vmand %vm1556_vm13, %vm1716_vm2  ;;  %vm6389_vm2 = vnez %v6082_v4 }
 0x256   : > { %v2582_v8 = vadd.f32 1e-08, %v6382_v60  ;;  %v2992_v38 = vsel %vm1732_vm4, 1.0, %v6376_v31  ;;  %vm1478_vm0 = vmand %vm6389_vm2, %vm1462_vm5  ;;  %vm1718_vm10 = vcmp.ne.s32.totalorder %v5623_v9, 0  ;;  %v6391_v4 = vld [vmem:[#allocation40_spill] sm:$0xff]  ;;  %v6393_v60 = vld [vmem:[#allocation55_spill] sm:$0xff] }
 0x257   : > { %vm1558_vm4 = vmand %vm1478_vm0, %vm1542_vm11  ;;  %vm1712_vm11 = vcmp.ne.s32.totalorder %v5611_v19, 0  ;;  %vm1464_vm14 = vcmp.ne.s32.totalorder %v6393_v60, 0  ;;  %v6410_v60 = vld [vmem:[#allocation6_spill] sm:$0xff] }
 0x258   : > { %v5619_v16 = vpop.permute.xlu1 %1688  ;;  %3332 = vrsqrt.f32 %v2582_v8  ;;  %vm1734_vm5 = vmand %vm1558_vm4, %vm1718_vm10  ;;  %vm6398_vm4 = vnez %v6337_v10 }
 0x259   : > { %3334 = vrsqrt.f32 %v2577_v3  ;;  %v2994_v47 = vsel %vm1734_vm5, 1.0, %v6376_v31  ;;  %vm6400_vm5 = vnez %v6333_v25 }
 0x25a   : > { %v5637_v55 = vpop.permute.xlu0 %1700  ;;  %3336 = vrsqrt.f32 %v2576_v51 }
 0x25b   : > { %vm1720_vm7 = vcmp.ne.s32.totalorder %v5637_v55, 0 }
 0x25c   : > { %v5625_v57 = vpop.permute.xlu1 %1698  ;;  %v3329_v54 = vpop.eup %3328 }
 0x25d   : > { %vm1719_vm13 = vcmp.ne.s32.totalorder %v5625_v57, 0 }
 0x25e   : > { %vm1735_vm3 = vmand %vm5451_vm8, %vm1719_vm13 }
 0x25f   : > { %vm1729_vm8 = vmand %vm5425_vm6, %vm1713_vm1  ;;  %vm1714_vm1 = vcmp.ne.s32.totalorder %v5619_v16, 0 }
 0x260   : > { %v5639_v33 = vpop.permute.xlu1 %1702  ;;  %vm1728_vm6 = vmand %vm5412_vm9, %vm1712_vm11  ;;  %vm1715_vm9 = vcmp.ne.s32.totalorder %v5617_v6, 0  ;;  %vm6401_vm11 = vnez %v6330_v11 }
 0x261   : > { %vm1480_vm13 = vmand %vm6394_vm12, %vm1464_vm14  ;;  %vm1721_vm2 = vcmp.ne.s32.totalorder %v5639_v33, 0  ;;  %v2988_v3 = vsel %vm1728_vm6, 1.0, %v6376_v31  ;;  %vm6404_vm12 = vnez %v6360_v30 }
 0x262   : > { %vm1730_vm14 = vmand %vm6401_vm11, %vm1714_vm1  ;;  %vm6412_vm11 = vcmask 23552  }
 0x2a3   : > { %v2529_v32 = vpop.xlane.xlu0 %2528  ;;  %v2526_v2 = vpop.xlane.xlu1 %2525 }
 0x2a4   : > { %v2605_v15 = vmul.f32 %v3319_v5, %v2529_v32  ;;  %v2604_v1 = vmul.f32 %v3321_v29, %v2526_v2  ;;  %v2584_v5 = vadd.f32 1e-08, %v6387_v61  ;;  %v2585_v32 = vadd.f32 1e-08, %v6390_v7  ;;  %v6403_v7 = vld [vmem:[#allocation42_spill] sm:$0xff] }
 0x2a5   : > { %v2987_v2 = vsel %vm1727_vm15, 1.0, %v6376_v31  ;;  %vm1544_vm15 = vcmp.ne.s32.totalorder %v5605_v44, 0  ;;  %vm1467_vm6 = vcmp.ne.s32.totalorder %v6403_v7, 0 }
 0x2a6   : > { %v2621_v34 = vmul.f32 %v2985_v41, %v2605_v15  ;;  %v2620_v21 = vmul.f32 %v2984_v22, %v2604_v1  ;;  %v3331_v15 = vpop.eup %3330  ;;  %3338 = vrsqrt.f32 %v2584_v5  ;;  %v2578_v1 = vadd.f32 1e-08, %v6391_v4  ;;  %vm1560_vm0 = vmand %vm1480_vm13, %vm1544_vm15 }
 0x2a7   : > { %v3333_v41 = vpop.eup %3332  ;;  %3340 = vrsqrt.f32 %v2585_v32  ;;  %vm5697_vm10 = vmand %vm1560_vm0, %vm1720_vm7  ;;  %vm1546_vm7 = vcmp.ne.s32.totalorder %v5609_v52, 0  ;;  %vm6405_vm0 = vnez %v6354_v20  ;;  %v3350_v20 = vld [vmem:[%s3740_s21] sm:$0xff] }
 0x2a8   : > { %2643 = vperm.xlu0 %3184, %v2621_v34   ;;  %2638 = vperm.xlu1 %3185, %v2620_v21   ;;  %v6392_v34 = vld [vmem:[#allocation47_spill] sm:$0xff]  ;;  %v2995_v21 = vsel %vm1735_vm3, 1.0, %v6376_v31  ;;  %v3335_v43 = vpop.eup %3334  ;;  %3342 = vrsqrt.f32 %v2578_v1  ;;  %vm1737_vm3 = vmand %vm6398_vm4, %vm1721_vm2  ;;  %v2996_v10 = vsel %vm5697_vm10, 1.0, %v6376_v31  ;;  %vm1547_vm2 = vcmp.ne.s32.totalorder %v5603_v26, 0 }
 0x2a9   : > { %v2579_v56 = vadd.f32 1e-08, %v6392_v34  ;;  %v2997_v6 = vsel %vm1737_vm3, 1.0, %v6376_v31  ;;  %vm1483_vm10 = vmand %vm6405_vm0, %vm1467_vm6 }
 0x2aa   : > { %vm1563_vm4 = vmand %vm1483_vm10, %vm1547_vm2 }
 0x2ab   : > { %3344 = vrsqrt.f32 %v2579_v56  ;;  %vm6415_vm6 = vmmov %vm6412_vm11 }
 0x2ac   : > { %v2553_v18 = vpop.xlane.xlu0 %2552  ;;  %vm6421_vm2 = vmmov %vm6415_vm6 }
 0x2ad   : > { %v2613_v58 = vmul.f32 %v3323_v35, %v2553_v18  ;;  %v2550_v45 = vpop.xlane.xlu1 %2549  ;;  %v2989_v35 = vsel %vm1729_vm8, 1.0, %v6376_v31  ;;  %v3337_v18 = vpop.eup %3336  ;;  %vm1731_vm8 = vmand %vm6400_vm5, %vm1715_vm9 }
 0x2ae   : > { %v2612_v17 = vmul.f32 %v3325_v14, %v2550_v45  ;;  %v2991_v25 = vsel %vm1731_vm8, 1.0, %v6376_v31  ;;  %vm6424_vm0 = vmmov %vm6421_vm2 }
 0x2af   : > { %v2629_v23 = vmul.f32 %v2993_v63, %v2613_v58  ;;  %v6395_v58 = vld [vmem:[#allocation57_spill] sm:$0xff]  ;;  %vm6425_vm10 = vmmov %vm6424_vm0 }
 0x2b0   : > { %v2628_v37 = vmul.f32 %v2992_v38, %v2612_v17  ;;  %v2587_v44 = vadd.f32 1e-08, %v6395_v58  ;;  %v3339_v0 = vpop.eup %3338  ;;  %v6399_v63 = vld [vmem:[#allocation53_spill] sm:$0xff] }
 0x2b1   : > { %2683 = vperm.xlu0 %3184, %v2629_v23   ;;  %v3341_v33 = vpop.eup %3340  ;;  %v2586_v17 = vadd.f32 1e-08, %v6399_v63 }
 0x2b2   : > { %2678 = vperm.xlu1 %3185, %v2628_v37   ;;  %3346 = vrsqrt.f32 %v2587_v44  ;;  %v3343_v37 = vpop.eup %3342 }
 0x2b3   : > { %3348 = vrsqrt.f32 %v2586_v17 }
 0x2b4   : > { %v2535_v27 = vpop.xlane.xlu0 %2534 }
 0x2b5   : > { %v2607_v29 = vmul.f32 %v3327_v62, %v2535_v27  ;;  %v2532_v59 = vpop.xlane.xlu1 %2531  ;;  %v3345_v62 = vpop.eup %3344  ;;  %v2990_v27 = vsel %vm1730_vm14, 1.0, %v6376_v31  ;;  %vm6413_vm14 = vmmov %vm6412_vm11 }
 0x2b6   : > { %v2606_v50 = vmul.f32 %v3329_v54, %v2532_v59  ;;  %v6402_v54 = vld [vmem:[#allocation22_spill] sm:$0xff] }
 0x2b7   : > { %v2623_v57 = vmul.f32 %v2987_v2, %v2607_v29  ;;  %vm1466_vm15 = vcmp.ne.s32.totalorder %v6402_v54, 0 }
 0x2b8   : > { %v2622_v12 = vmul.f32 %v2986_v42, %v2606_v50  ;;  %v2559_v22 = vpop.xlane.xlu0 %2558  ;;  %vm1482_vm13 = vmand %vm6404_vm12, %vm1466_vm15 }
 0x2b9   : > { %v2615_v49 = vmul.f32 %v3331_v15, %v2559_v22  ;;  %v2556_v39 = vpop.xlane.xlu1 %2555  ;;  %2653 = vperm.xlu1 %3185, %v2623_v57   ;;  %vm1562_vm9 = vmand %vm1482_vm13, %vm1546_vm7 }
 0x2ba   : > { %v2614_v48 = vmul.f32 %v3333_v41, %v2556_v39  ;;  %2648 = vperm.xlu0 %3184, %v2622_v12   ;;  %v3370_v12 = vmov 1   ;;  %vm6414_vm15 = vmmov %vm6412_vm11 }
 0x2bb   : > { %v2631_v9 = vmul.f32 %v2995_v21, %v2615_v49  ;;  %v6406_v21 = vld [vmem:[#allocation5_spill] sm:$0xff]  ;;  %vm6418_vm7 = vmmov %vm6415_vm6 }
 0x2bc   : > { %v2630_v46 = vmul.f32 %v2994_v47, %v2614_v48  ;;  %v2541_v36 = vpop.xlane.xlu0 %2540  ;;  %v3347_v2 = vpop.eup %3346  ;;  %v6407_v47 = vld [vmem:[#allocation7_spill] sm:$0xff]  ;;  %vm6419_vm12 = vmmov %vm6415_vm6 }
 0x2bd   : > { %v2609_v8 = vmul.f32 %v3335_v43, %v2541_v36  ;;  %v2562_v19 = vpop.xlane.xlu1 %2561  ;;  %v3349_v52 = vpop.eup %3348  ;;  %v6408_v43 = vld [vmem:[#allocation2_spill] sm:$0xff]  ;;  %vm6420_vm13 = vmmov %vm6415_vm6 }
 0x2be   : > { %2693 = vperm.xlu0 %3184, %v2631_v9   ;;  %2688 = vperm.xlu1 %3185, %v2630_v46   ;;  %v2616_v53 = vmul.f32 %v3339_v0, %v2562_v19  ;;  %v6409_v46 = vld [vmem:[#allocation3_spill] sm:$0xff]  ;;  %v6416_v0 = vld [vmem:[#allocation10_spill] sm:$0xff] }
 0x2bf   : > { %v2625_v13 = vmul.f32 %v2989_v35, %v2609_v8  ;;  %v6411_v35 = vld [vmem:[#allocation4_spill] sm:$0xff] }
 0x2c0   : > { %v2538_v14 = vpop.xlane.xlu0 %2537  ;;  %v2632_v51 = vmul.f32 %v2996_v10, %v2616_v53 }
 0x2c1   : > { %v2608_v45 = vmul.f32 %v3337_v18, %v2538_v14 }
 0x2c2   : > { %2663 = vperm.xlu0 %3184, %v2625_v13  }
 0x2c3   : > { %v2624_v55 = vmul.f32 %v2988_v3, %v2608_v45 }
 0x2c4   : > { %v2565_v38 = vpop.xlane.xlu0 %2564 }
 0x2c5   : > { %v2617_v23 = vmul.f32 %v3341_v33, %v2565_v38  ;;  %2658 = vperm.xlu1 %3185, %v2624_v55  }
 0x2c6   : > { %v2544_v28 = vpop.xlane.xlu1 %2543 }
 0x2c7   : > { %v2610_v16 = vmul.f32 %v3343_v37, %v2544_v28  ;;  %v2633_v24 = vmul.f32 %v2997_v6, %v2617_v23  ;;  %v6422_v6 = vld [vmem:[#allocation11_spill] sm:$0xff] }
 0x2c8   : > { %v2547_v61 = vpop.xlane.xlu0 %2546 }
 0x2c9   : > { %v2611_v5 = vmul.f32 %v3345_v62, %v2547_v61  ;;  %2703 = vperm.xlu0 %3184, %v2633_v24   ;;  %2698 = vperm.xlu1 %3185, %v2632_v51   ;;  %v2626_v29 = vmul.f32 %v2990_v27, %v2610_v16  ;;  %v6423_v24 = vld [vmem:[#allocation9_spill] sm:$0xff] }
 0x2cb   : > { %v2627_v59 = vmul.f32 %v2991_v25, %v2611_v5 }
 0x2cc   : > { %v2568_v11 = vpop.xlane.xlu1 %2567  ;;  %v2571_v32 = vpop.xlane.xlu0 %2570 }
 0x2cd   : > { %2673 = vperm.xlu0 %3184, %v2627_v59   ;;  %2668 = vperm.xlu1 %3185, %v2626_v29   ;;  %v2619_v42 = vmul.f32 %v3347_v2, %v2571_v32  ;;  %v2618_v15 = vmul.f32 %v3349_v52, %v2568_v11  ;;  %v6426_v32 = vld [vmem:[#allocation14_spill] sm:$0xff] }
 0x2d0   : > { %v1707_v50 = vpop.permute.xlu1 %1706  ;;  %v1705_v57 = vpop.permute.xlu0 %1704 }
 0x2d1   : > { %vm1723_vm3 = vcmp.ne.s32.totalorder %v1707_v50, 0  ;;  %vm1722_vm1 = vcmp.ne.s32.totalorder %v1705_v57, 0  ;;  %v6427_v50 = vld [vmem:[#allocation12_spill] sm:$0xff] }
 0x2d2   : > { %vm1739_vm5 = vmand %vm1563_vm4, %vm1723_vm3 }
 0x2d3   : > { %v2999_v30 = vsel %vm1739_vm5, 1.0, %v6376_v31  ;;  %vm1738_vm8 = vmand %vm1562_vm9, %vm1722_vm1 }
 0x2d4   : > { %v2635_v4 = vmul.f32 %v2999_v30, %v2619_v42  ;;  %v2998_v26 = vsel %vm1738_vm8, 1.0, %v6376_v31  ;;  %vm6428_vm9 = vmmov %vm6424_vm0 }
 0x2d5   : > { %v2634_v1 = vmul.f32 %v2998_v26, %v2618_v15  ;;  %vm6429_vm4 = vmmov %vm6424_vm0 }
 0x2d6   : > { %2713 = vperm.xlu0 %3184, %v2635_v4   ;;  %vm6432_vm3 = vmmov %vm6424_vm0 }
 0x2d7   : > { %2708 = vperm.xlu1 %3185, %v2634_v1   ;;  %vm6433_vm1 = vmmov %vm6424_vm0 }
 0x2d8   : > { %vm6436_vm5 = vmmov %vm6424_vm0 }
 0x2d9   : > { %vm6437_vm8 = vmmov %vm6424_vm0 }
 0x2da   : > { %2878 = vperm.xlu0 %3184, %v3350_v20  }
 0x2db   : > { %3186 = vset.pattern.permute.xlu1 %v3370_v12 }
 0x2dc   : > { %2821 = vperm.xlu1 %3186, %v3350_v20  }
 0x327   : > { %v2639_v22 = vpop.permute.xlu1 %2638  ;;  %v2644_v41 = vpop.permute.xlu0 %2643 }
 0x328   : > { %v2717_v31 = vmul.f32 %v2644_v41, %v6408_v43  ;;  %v2716_v36 = vmul.f32 %v2639_v22, %v6409_v46 }
 0x32a   : > { %v2733_v44 = vsel %vm6414_vm15, %v2717_v31, 0.0  ;;  %v2732_v45 = vsel %vm6415_vm6, %v2716_v36, 0.0  ;;  %vm2861_vm15 = vcmask 1043459   ;;  %vm2864_vm6 = vcmask 1044484  }
 0x32b   : > { %v2734_v38 = vadd.f32 %v2733_v44, %v2732_v45 }
 0x32d   : > { %v2735_v61 = vrot.slane %v2734_v38, 4 }
 0x32f   : > { %v2736_v57 = vadd.f32 %v2735_v61, %v2734_v38 }
 0x330   : > { %v2684_v39 = vpop.permute.xlu0 %2683 }
 0x331   : > { %v2679_v49 = vpop.permute.xlu1 %2678  ;;  %v2725_v8 = vmul.f32 %v2684_v39, %v6410_v60 }
 0x332   : > { %v2724_v13 = vmul.f32 %v2679_v49, %v6411_v35  ;;  %v6430_v49 = vld [vmem:[#allocation15_spill] sm:$0xff] }
 0x333   : > { %v2769_v55 = vsel %vm6418_vm7, %v2725_v8, 0.0  ;;  %vm2867_vm7 = vcmask 1045509  }
 0x334   : > { %v2768_v33 = vsel %vm6419_vm12, %v2724_v13, 0.0  ;;  %vm2870_vm12 = vcmask 1046534  }
 0x335   : > { %v2770_v23 = vadd.f32 %v2769_v55, %v2768_v33  ;;  %v6434_v33 = vld [vmem:[#allocation17_spill] sm:$0xff] }
 0x337   : > { %v2771_v25 = vrot.slane %v2770_v23, 4 }
 0x338   : > { %v2654_v34 = vpop.permute.xlu1 %2653 }
 0x339   : > { %v2649_v56 = vpop.permute.xlu0 %2648  ;;  %v2719_v9 = vmul.f32 %v2654_v34, %v6407_v47  ;;  %v2772_v30 = vadd.f32 %v2771_v25, %v2770_v23  ;;  %v6431_v34 = vld [vmem:[#allocation13_spill] sm:$0xff] }
 0x33a   : > { %v2718_v48 = vmul.f32 %v2649_v56, %v6406_v21  ;;  %v2737_v21 = vrot.slane %v2736_v57, 2 }
 0x33b   : > { %v2742_v58 = vsel %vm6413_vm14, %v2719_v9, 0.0  ;;  %v2773_v43 = vrot.slane %v2772_v30, 2  ;;  %vm2858_vm14 = vcmask 1042434  }
 0x33c   : > { %v2741_v14 = vsel %vm6412_vm11, %v2718_v48, 0.0  ;;  %v2738_v13 = vadd.f32 %v2737_v21, %v2736_v57  ;;  %vm2855_vm11 = vcmask 1041409  }
 0x33d   : > { %v2694_v18 = vpop.permute.xlu0 %2693  ;;  %v2689_v19 = vpop.permute.xlu1 %2688  ;;  %v2743_v63 = vadd.f32 %v2742_v58, %v2741_v14  ;;  %v2774_v14 = vadd.f32 %v2773_v43, %v2772_v30 }
 0x33e   : > { %v2727_v3 = vmul.f32 %v2694_v18, %v6416_v0  ;;  %v2726_v53 = vmul.f32 %v2689_v19, %v6417_v40  ;;  %v2739_v40 = vrot.slane %v2738_v13, 1 }
 0x33f   : > { %v2744_v16 = vrot.slane %v2743_v63, 4  ;;  %v2775_v38 = vrot.slane %v2774_v14, 1 }
 0x340   : > { %v2778_v37 = vsel %vm6420_vm13, %v2727_v3, 0.0  ;;  %v2777_v10 = vsel %vm6421_vm2, %v2726_v53, 0.0  ;;  %vm2873_vm13 = vcmask 1047559   ;;  %vm6438_vm2 = vmmov %vm6424_vm0 }
 0x341   : > { %v2664_v17 = vpop.permute.xlu0 %2663  ;;  %v2779_v5 = vadd.f32 %v2778_v37, %v2777_v10  ;;  %v2745_v11 = vadd.f32 %v2744_v16, %v2743_v63  ;;  %v6435_v37 = vld [vmem:[#allocation16_spill] sm:$0xff] }
 0x342   : > { %v2721_v28 = vmul.f32 %v2664_v17, %v6422_v6 }
 0x343   : > { %v2780_v52 = vrot.slane %v2779_v5, 4  ;;  %v2746_v41 = vrot.slane %v2745_v11, 2 }
 0x344   : > { %v2659_v51 = vpop.permute.xlu1 %2658  ;;  %v2751_v27 = vsel %vm6424_vm0, %v2721_v28, 0.0 }
 0x345   : > { %v2720_v62 = vmul.f32 %v2659_v51, %v6423_v24  ;;  %v2781_v48 = vadd.f32 %v2780_v52, %v2779_v5  ;;  %v2747_v8 = vadd.f32 %v2746_v41, %v2745_v11 }
 0x347   : > { %v2750_v54 = vsel %vm6425_vm10, %v2720_v62, 0.0  ;;  %v2782_v18 = vrot.slane %v2781_v48, 2  ;;  %v2748_v45 = vrot.slane %v2747_v8, 1  ;;  %v2740_v62 = vadd.f32 %v2739_v40, %v2738_v13 }
 0x348   : > { %v2752_v29 = vadd.f32 %v2751_v27, %v2750_v54  ;;  %v2704_v59 = vpop.permute.xlu0 %2703  ;;  %v2699_v7 = vpop.permute.xlu1 %2698  ;;  %v2776_v27 = vadd.f32 %v2775_v38, %v2774_v14 }
 0x349   : > { %v2729_v2 = vmul.f32 %v2704_v59, %v6426_v32  ;;  %v2728_v42 = vmul.f32 %v2699_v7, %v6427_v50  ;;  %v2783_v53 = vadd.f32 %v2782_v18, %v2781_v48  ;;  %v2749_v28 = vadd.f32 %v2748_v45, %v2747_v8 }
 0x34a   : > { %v2753_v15 = vrot.slane %v2752_v29, 4  ;;  %v2812_v52 = vmul.f32 0.01, %v2740_v62 }
 0x34b   : > { %v2787_v4 = vsel %vm6428_vm9, %v2729_v2, 0.0  ;;  %v2786_v26 = vsel %vm6429_vm4, %v2728_v42, 0.0  ;;  %v2784_v61 = vrot.slane %v2783_v53, 1  ;;  %v2813_v2 = vmul.f32 0.01, %v2749_v28 }
 0x34c   : > { %v2754_v1 = vadd.f32 %v2753_v15, %v2752_v29  ;;  %v2788_v20 = vadd.f32 %v2787_v4, %v2786_v26  ;;  %v2674_v12 = vpop.permute.xlu0 %2673  ;;  %v2669_v22 = vpop.permute.xlu1 %2668  ;;  %v2816_v26 = vmul.f32 0.01, %v2776_v27 }
 0x34d   : > { %v2723_v39 = vmul.f32 %v2674_v12, %v6430_v49  ;;  %v2722_v56 = vmul.f32 %v2669_v22, %v6431_v34  ;;  %v2785_v15 = vadd.f32 %v2784_v61, %v2783_v53 }
 0x34e   : > { %v2755_v47 = vrot.slane %v2754_v1, 2  ;;  %v2789_v9 = vrot.slane %v2788_v20, 4 }
 0x34f   : > { %v2760_v31 = vsel %vm6432_vm3, %v2723_v39, 0.0  ;;  %v2759_v46 = vsel %vm6433_vm1, %v2722_v56, 0.0  ;;  %v2817_v48 = vmul.f32 0.01, %v2785_v15 }
 0x350   : > { %v2790_v36 = vadd.f32 %v2789_v9, %v2788_v20  ;;  %v2761_v60 = vadd.f32 %v2760_v31, %v2759_v46  ;;  %v2756_v35 = vadd.f32 %v2755_v47, %v2754_v1 }
 0x352   : > { %v2762_v19 = vrot.slane %v2761_v60, 4  ;;  %v2791_v58 = vrot.slane %v2790_v36, 2  ;;  %v2757_v0 = vrot.slane %v2756_v35, 1 }
 0x354   : > { %v2763_v44 = vadd.f32 %v2762_v19, %v2761_v60  ;;  %v2792_v23 = vadd.f32 %v2791_v58, %v2790_v36  ;;  %v2758_v51 = vadd.f32 %v2757_v0, %v2756_v35 }
 0x355   : > { %v2714_v3 = vpop.permute.xlu0 %2713 }
 0x356   : > { %v2764_v55 = vrot.slane %v2763_v44, 2  ;;  %v2731_v63 = vmul.f32 %v2714_v3, %v6434_v33  ;;  %v2709_v17 = vpop.permute.xlu1 %2708  ;;  %v2793_v54 = vrot.slane %v2792_v23, 1  ;;  %v2814_v50 = vmul.f32 0.01, %v2758_v51 }
 0x357   : > { %v2730_v10 = vmul.f32 %v2709_v17, %v6435_v37 }
 0x358   : > { %v2765_v6 = vadd.f32 %v2764_v55, %v2763_v44  ;;  %v2796_v16 = vsel %vm6436_vm5, %v2731_v63, 0.0  ;;  %v2794_v1 = vadd.f32 %v2793_v54, %v2792_v23  ;;  %v3351_v63 = vld [vmem:[%s3502_s19] sm:$0xff] }
 0x359   : > { %v2795_v24 = vsel %vm6437_vm8, %v2730_v10, 0.0  ;;  %v2879_v38 = vpop.permute.xlu0 %2878 }
 0x35a   : > { %v2766_v5 = vrot.slane %v2765_v6, 1  ;;  %v2797_v25 = vadd.f32 %v2796_v16, %v2795_v24  ;;  %v2818_v43 = vmul.f32 0.01, %v2794_v1 }
 0x35b   : > { %v2822_v29 = vpop.permute.xlu1 %2821 }
 0x35c   : > { %v2767_v59 = vadd.f32 %v2766_v5, %v2765_v6  ;;  %v2798_v7 = vrot.slane %v2797_v25, 4  ;;  %v2823_v11 = vrot.slane %v2822_v29, 1  ;;  %v2824_v32 = vrot.slane %v2822_v29, 2 }
 0x35d   : > { %v2825_v42 = vrot.slane %v2822_v29, 3  ;;  %v2826_v57 = vrot.slane %v2822_v29, 4  ;;  %v2827_v41 = vrot.slane %v2822_v29, 5  ;;  %v2838_v39 = vmul.f32 %v2822_v29, %v2812_v52 }
 0x35e   : > { %v2815_v30 = vmul.f32 0.01, %v2767_v59  ;;  %v2799_v4 = vadd.f32 %v2798_v7, %v2797_v25  ;;  %v2839_v20 = vmul.f32 %v2823_v11, %v2813_v2  ;;  %v2840_v12 = vmul.f32 %v2824_v32, %v2814_v50 }
 0x35f   : > { %v2842_v34 = vmul.f32 %v2826_v57, %v2816_v26  ;;  %v2828_v31 = vrot.slane %v2822_v29, 6  ;;  %v2843_v60 = vmul.f32 %v2827_v41, %v2817_v48  ;;  %v2829_v44 = vrot.slane %v2822_v29, 7 }
 0x360   : > { %v2800_v22 = vrot.slane %v2799_v4, 2  ;;  %v2841_v49 = vmul.f32 %v2825_v42, %v2815_v30  ;;  %v2854_v56 = vrot.slane %v2839_v20, 7  ;;  %v2857_v21 = vrot.slane %v2840_v12, 6 }
 0x361   : > { %v2863_v13 = vrot.slane %v2842_v34, 4  ;;  %v2844_v19 = vmul.f32 %v2828_v31, %v2818_v43  ;;  %v2866_v45 = vrot.slane %v2843_v60, 3 }
 0x362   : > { %v2801_v47 = vadd.f32 %v2800_v22, %v2799_v4  ;;  %v2860_v9 = vrot.slane %v2841_v49, 5  ;;  %v2856_v46 = vsel %vm2855_vm11, %v2854_v56, %v2838_v39 }
 0x363   : > { %v2859_v8 = vsel %vm2858_vm14, %v2857_v21, %v2856_v46  ;;  %v2869_v40 = vrot.slane %v2844_v19, 2 }
 0x364   : > { %v2802_v36 = vrot.slane %v2801_v47, 1  ;;  %v2862_v35 = vsel %vm2861_vm15, %v2860_v9, %v2859_v8 }
 0x365   : > { %v2865_v14 = vsel %vm2864_vm6, %v2863_v13, %v2862_v35 }
 0x366   : > { %v2803_v18 = vadd.f32 %v2802_v36, %v2801_v47  ;;  %v2868_v3 = vsel %vm2867_vm7, %v2866_v45, %v2865_v14 }
 0x367   : > { %v2871_v55 = vsel %vm2870_vm12, %v2869_v40, %v2868_v3 }
 0x368   : > { %v2819_v58 = vmul.f32 0.01, %v2803_v18 }
 0x36a   : > { %v2845_v0 = vmul.f32 %v2829_v44, %v2819_v58 }
 0x36c   : > { %v2872_v53 = vrot.slane %v2845_v0, 1 }
 0x36e   : > { %v2874_v33 = vsel %vm2873_vm13, %v2872_v53, %v2871_v55 }
 0x36f   : > { %v2876_v17 = vadd.f32 %v3351_v63, %v2874_v33 }
 0x371   : > { %v2881_v23 = vmul.f32 %v2879_v38, %v2876_v17 }
 0x373   : > { %2882 = vst.msk [vmem:[%s540_s28] sm:$0xff] %vm6438_vm2, %v2881_v23 }
 0x374 PF: > { %s25_s18 = sadd.s32 1, %s3358_s18  }
 0x375   : > { %p22_p4 = scmp.ge.s32.totalorder %s25_s18, 4  }
 0x377   :  { %24 = sbr.rel (!%p22_p4) target bundleno = 1 (0x1), region = 119 }

// kernel: pre_dynamics_forward.9
= control target key start
LH: loop header
LB: loop body
LE: loop exit
PB: predicated region body
PF: predicated region fallthrough
CT: control target
= control target key end

     0   :  { %s5862_s0 = inlined_call_operand.vmem [shape: f32[16,32], index: 0, kind: input, shape index: {}, may-alias: {0,1}]   ;;  %s5863_s1 = inlined_call_operand.vmem [shape: f32[16,32], index: 1, kind: input, shape index: {}, may-alias: {0,1}]   ;;  %s5864_s2 = inlined_call_operand.vmem [shape: f32[16,3], index: 2, kind: input, shape index: {}, may-alias: {2,3,4,5}]   ;;  %s5865_s3 = inlined_call_operand.vmem [shape: f32[16,3], index: 3, kind: input, shape index: {}, may-alias: {2,3,4,5}]   ;;  %s5866_s4 = inlined_call_operand.vmem [shape: f32[16,3], index: 4, kind: input, shape index: {}, may-alias: {2,3,4,5}]   ;;  %s5867_s5 = inlined_call_operand.vmem [shape: f32[16,3], index: 5, kind: input, shape index: {}, may-alias: {2,3,4,5}]   ;;  %s5868_s6 = inlined_call_operand.vmem [shape: f32[16,6], index: 6, kind: input, shape index: {}, may-alias: {6,7}]   ;;  %s5869_s7 = inlined_call_operand.vmem [shape: f32[16,6], index: 7, kind: input, shape index: {}, may-alias: {6,7}]   ;;  %s5870_s8 = inlined_call_operand.vmem [shape: f32[32,32], index: 8, kind: input, shape index: {}]   ;;  %s5871_s9 = inlined_call_operand.vmem [shape: f32[32,32], index: 9, kind: input, shape index: {}]   ;;  %s5872_s10 = inlined_call_operand.vmem [shape: f32[2,32], index: 10, kind: input, shape index: {}]   ;;  %s5873_s11 = inlined_call_operand.vmem [shape: f32[1,32], index: 11, kind: input, shape index: {}]   ;;  %s5874_s12 = inlined_call_operand.vmem [shape: f32[32,32], index: 12, kind: input, shape index: {}]   ;;  %s5875_s13 = inlined_call_operand.vmem [shape: f32[1,32], index: 13, kind: input, shape index: {}]   ;;  %s5876_s14 = inlined_call_operand.vmem [shape: f32[32,32], index: 14, kind: input, shape index: {}]   ;;  %s5877_s15 = inlined_call_operand.vmem [shape: f32[32,32], index: 15, kind: input, shape index: {}]   ;;  %s5878_s16 = inlined_call_operand.vmem [shape: f32[1,32], index: 16, kind: input, shape index: {}]   ;;  %s5879_s17 = inlined_call_operand.vmem [shape: f32[32,32], index: 17, kind: input, shape index: {}]   ;;  %s5880_s18 = inlined_call_operand.vmem [shape: f32[1,32], index: 18, kind: input, shape index: {}]   ;;  %s5881_s19 = inlined_call_operand.vmem [shape: f32[16,32], index: 19, kind: output, shape index: {}]  }
   0x1   :  { %5984 = sst [smem:[#allocation23_spill]] %s5862_s0  ;;  %s3739_s0 = smov 0  }
   0x2   :  { %5985 = sst [smem:[#allocation24_spill]] %s5863_s1 }
   0x3   :  { %5986 = sst [smem:[#allocation25_spill]] %s5864_s2 }
   0x4   :  { %5987 = sst [smem:[#allocation26_spill]] %s5865_s3 }
   0x5 LB: > { %s3162_s30 = sadd.s32 4294967295, %s3627_s0   ;;  %p3166_p0 = scmp.ge.s32.totalorder %s3627_s0, 1  ;;  %s3627_s0 = sphi %s3739_s0, %s29_s0  }
   0x6   : > { %p563_p1 = scmp.lt.s32.totalorder %s3627_s0, 3 }
   0x8   : > { %p564_p2 = pnand %p3166_p0, %p563_p1 }
   0xa   : > { %567 = sbr.rel (%p564_p2) target bundleno = 1210 (0x4ba), region = 96 }
  0x11   : > { %v663_v0 = vld [vmem:[%s5870_s8] sm:$0xff]  ;;  %v664_v1 = vld [vmem:[%s5870_s8 + $0x8] sm:$0xff]  ;;  %v665_v2 = vld [vmem:[%s5870_s8 + $0x10] sm:$0xff]  ;;  %v761_v3 = vlaneseq  ;;  %v5886_v4 = vmov 0.0|0.0   ;;  %vm5919_vm0 = vmmov 0   ;;  %v5888_v7 = vmov 0.0  }
  0x12   : > { %3382 = vmatprep.subr.bf16.mxu1 %v5886_v4  ;;  %v3383_v5 = vpack.c.bf16 %v664_v1, %v663_v0  ;;  %v666_v6 = vld [vmem:[%s5870_s8 + $0x18] sm:$0xff]  ;;  %3303 = vmatprep.mubr.msk.f32.mxu1 %vm5919_vm0, %v5888_v7  ;;  %p629_p3 = scmp.lt.s32.totalorder %s3162_s30, 1  ;;  %v653_v8 = vld [vmem:[%s5871_s9] sm:$0xff]  ;;  %v654_v9 = vld [vmem:[%s5871_s9 + $0x8] sm:$0xff]  ;;  %v3632_v11 = vmov 1966171168  }
  0x13   : > { %v3386_v10 = vpack.c.bf16 %v666_v6, %v665_v2  ;;  %v759_v12 = vunpack.c.l.s4 %v3632_v11  ;;  %v3768_v13 = vshrl.u32 %v761_v3, 7  ;;  %v3388_v14 = vpack.c.bf16 %v654_v9, %v653_v8  ;;  %v655_v16 = vld [vmem:[%s5871_s9 + $0x10] sm:$0xff]  ;;  %v656_v17 = vld [vmem:[%s5871_s9 + $0x18] sm:$0xff]  ;;  %s5988_s24 = sld [smem:[#allocation23_spill]]  ;;  %s5989_s26 = sld [smem:[#allocation25_spill]]  ;;  %v3830_v33 = vld [vmem:[%s5867_s5 + $0x8] sm:$0xff] }
  0x14   : > { %3384 = vmatpush3.bf16.msra.mxu1 %v3383_v5  ;;  %s6406_s30 = smov (!%p629_p3, %s3162_s30), 1  ;;  %v5890_v15 = vmov 0   ;;  %vm5938_vm1 = vcmask 261120   ;;  %v3392_v22 = vpack.c.bf16 %v656_v17, %v655_v16  ;;  %s5990_s2 = sld [smem:[#allocation24_spill]]  ;;  %v3835_v34 = vld [vmem:[%s5867_s5] sm:$0xff]  ;;  %vm878_vm2 = vcmask 23552  }
  0x15   : > { %3385 = vmatprep.subr.bf16.mxu1 %v5886_v4  ;;  %3440 = vset.pattern.permute.xlu0 %v5890_v15  ;;  %s3772_s29 = sshll.u32 %s6406_s30, 3  ;;  %v760_v18 = vunpack.c.0.s8 %v759_v12  ;;  %v3809_v26 = vsub.s32 0, %v3768_v13  ;;  %s5991_s30 = sld [smem:[#allocation26_spill]] }
  0x16   : > { %3446 = vset.pattern.permute.xlu1 %v5890_v15  ;;  %s640_s21 = scalar_lea.vmem %s5866_s4, %s3772_s29  ;;  %s3940_s3 = scalar_lea.vmem %s5868_s6, %s3772_s29 }
  0x17   : > { %v3795_v21 = vsub.s32 %v760_v18, %v3768_v13  ;;  %v3804_v24 = vld [vmem:[%s640_s21] sm:$0xff]  ;;  %s3634_s21 = smov 1   ;;  %s5884_s1 = smov 127  }
  0x18   : > { %3387 = vmatpush3.bf16.msra.mxu1 %v3386_v10  ;;  %v928_v3 = vcombine.high %v3804_v24, %v3804_v24  ;;  %s3636_s22 = smov 124   ;;  %s3637_s28 = smov 123  }
  0x19   : > { %s3785_s25 = scalar_lea.vmem %s5988_s24, %s3772_s29  ;;  %s636_s27 = scalar_lea.vmem %s5989_s26, %s3772_s29  ;;  %3389 = vmatprep.subr.bf16.mxu1 %v3388_v14  ;;  %v935_v27 = vrot.slane %v3804_v24, %v3795_v21 }
  0x1a   : > { %v649_v19 = vld [vmem:[%s3785_s25] sm:$0xff]  ;;  %v749_v42 = vld [vmem:[%s5990_s2 + $0x8] sm:$0xff]  ;;  %s648_s26 = scalar_lea.vmem %s5881_s19, %s3772_s29 }
  0x1b   : > { %v3792_v20 = vld [vmem:[%s636_s27] sm:$0xff]  ;;  %3304 = vmatmul.mubr.msk.f32.vlgmr.msra.gmra.mrb[0].mxu1 %vm5938_vm1, %v649_v19  ;;  %v3818_v28 = vld [vmem:[%s5991_s30 + $0x8] sm:$0xff]  ;;  %v951_v30 = vrot.slane %v935_v27, %v3795_v21  ;;  %v943_v31 = vcombine.high %v935_v27, %v935_v27  ;;  %s6023_s27 = smov 127  }
  0x1c   : > { %v748_v23 = vld [vmem:[%s5990_s2] sm:$0xff]  ;;  %v764_v25 = vrot.slane %v3792_v20, %v3795_v21  ;;  %3391 = vmatpush3.bf16.msra.mxu1 %v3388_v14  ;;  %v757_v1 = vcombine.high %v3792_v20, %v3792_v20  ;;  %v942_v14 = vrot.slane %v928_v3, %v3795_v21 }
  0x1d   : > { %3314 = vmatprep.mubr.msk.f32.mxu1 %vm5938_vm1, %v748_v23  ;;  %3393 = vmatprep.subr.bf16.mxu1 %v3392_v22  ;;  %v3825_v32 = vld [vmem:[%s5991_s30] sm:$0xff]  ;;  %v980_v37 = vrot.slane %v951_v30, %v3809_v26  ;;  %v965_v38 = vrot.slane %v943_v31, %v3795_v21  ;;  %v973_v47 = vcombine.high %v951_v30, %v951_v30 }
  0x1e   : > { %v780_v29 = vrot.slane %v764_v25, %v3795_v21  ;;  %v772_v35 = vcombine.high %v764_v25, %v764_v25  ;;  %v771_v16 = vrot.slane %v757_v1, %v3795_v21  ;;  %v958_v31 = vrot.slane %v942_v14, %v3795_v21 }
  0x1f   : > { %v1018_v43 = vsub.f32 %v980_v37, %v3830_v33  ;;  %v1017_v44 = vsub.f32 %v980_v37, %v3835_v34  ;;  %v984_v45 = vrot.slane %v965_v38, %v3809_v26  ;;  %v988_v59 = vrot.slane %v973_v47, %v3809_v26 }
  0x20   : > { %v809_v36 = vrot.slane %v780_v29, %v3809_v26  ;;  %v794_v39 = vrot.slane %v772_v35, %v3795_v21  ;;  %3395 = vmatpush3.bf16.msra.mxu1 %v3392_v22  ;;  %v802_v48 = vcombine.high %v780_v29, %v780_v29  ;;  %v975_v11 = vcombine.high %v965_v38, %v965_v38 }
  0x21   : > { %3404 = vmatprep.subr.bf16.mxu1 %v5886_v4  ;;  %v1034_v51 = vmul.f32 %v1018_v43, %v1018_v43  ;;  %v1033_v52 = vmul.f32 %v1017_v44, %v1017_v44  ;;  %v1019_v53 = vsub.f32 %v984_v45, %v3835_v34  ;;  %v1020_v57 = vsub.f32 %v984_v45, %v3830_v33 }
  0x22   : > { %v847_v40 = vsub.f32 %v809_v36, %v3818_v28  ;;  %v846_v41 = vsub.f32 %v809_v36, %v3825_v32  ;;  %v813_v46 = vrot.slane %v794_v39, %v3809_v26  ;;  %v817_v60 = vrot.slane %v802_v48, %v3809_v26 }
  0x23   : > { %3315 = vmatmul.mubr.msk.f32.vlgmr.msra.gmra.mrb[2].mxu1 %vm5938_vm1, %v749_v42  ;;  %v1052_v61 = vsel %vm878_vm2, %v1034_v51, 0.0  ;;  %v1049_v62 = vsel %vm878_vm2, %v1033_v52, 0.0  ;;  %v1035_v63 = vmul.f32 %v1019_v53, %v1019_v53  ;;  %v1036_v2 = vmul.f32 %v1020_v57, %v1020_v57 }
  0x24   : > { %v863_v49 = vmul.f32 %v847_v40, %v847_v40  ;;  %v862_v50 = vmul.f32 %v846_v41, %v846_v41  ;;  %v848_v54 = vsub.f32 %v813_v46, %v3825_v32  ;;  %3357 = vmatprep.mubr.msk.f32.mxu1 %vm5919_vm0, %v5888_v7  ;;  %v849_v58 = vsub.f32 %v813_v46, %v3818_v28 }
  0x25   : > { %v1021_v6 = vsub.f32 %v988_v59, %v3835_v34  ;;  %v850_v8 = vsub.f32 %v817_v60, %v3825_v32  ;;  %v1055_v9 = vsel %vm878_vm2, %v1035_v63, 0.0  ;;  %v804_v12 = vcombine.high %v794_v39, %v794_v39 }
  0x26   : > { %v882_v55 = vsel %vm878_vm2, %v863_v49, 0.0  ;;  %v879_v56 = vsel %vm878_vm2, %v862_v50, 0.0  ;;  %v864_v0 = vmul.f32 %v848_v54, %v848_v54  ;;  %v865_v5 = vmul.f32 %v849_v58, %v849_v58 }
  0x27   : > { %883 = vadd.xlane.f32.xlu1 %v882_v55  ;;  %880 = vadd.xlane.f32.xlu0 %v879_v56  ;;  %v1058_v17 = vsel %vm878_vm2, %v1036_v2, 0.0  ;;  %v1022_v19 = vsub.f32 %v988_v59, %v3830_v33  ;;  %v851_v20 = vsub.f32 %v817_v60, %v3818_v28  ;;  %v1037_v22 = vmul.f32 %v1021_v6, %v1021_v6 }
  0x28   : > { %v885_v10 = vsel %vm878_vm2, %v864_v0, 0.0  ;;  %v888_v18 = vsel %vm878_vm2, %v865_v5, 0.0  ;;  %v866_v23 = vmul.f32 %v850_v8, %v850_v8  ;;  %v992_v24 = vrot.slane %v975_v11, %v3809_v26 }
  0x29   : > { %v821_v25 = vrot.slane %v804_v12, %v3809_v26  ;;  %v787_v27 = vrot.slane %v771_v16, %v3795_v21  ;;  %v1038_v29 = vmul.f32 %v1022_v19, %v1022_v19  ;;  %v867_v30 = vmul.f32 %v851_v20, %v851_v20 }
  0x2a   : > { %v1061_v35 = vsel %vm878_vm2, %v1037_v22, 0.0  ;;  %v891_v36 = vsel %vm878_vm2, %v866_v23, 0.0  ;;  %v1023_v37 = vsub.f32 %v992_v24, %v3835_v34  ;;  %v773_v40 = vcombine.high %v771_v16, %v771_v16 }
  0x2b   : > { %1053 = vadd.xlane.f32.xlu1 %v1052_v61  ;;  %1050 = vadd.xlane.f32.xlu0 %v1049_v62  ;;  %v852_v38 = vsub.f32 %v821_v25, %v3825_v32  ;;  %v825_v39 = vrot.slane %v787_v27, %v3809_v26  ;;  %v1064_v41 = vsel %vm878_vm2, %v1038_v29, 0.0  ;;  %v1024_v42 = vsub.f32 %v992_v24, %v3830_v33 }
  0x2c   : > { %v853_v43 = vsub.f32 %v821_v25, %v3818_v28  ;;  %v996_v44 = vrot.slane %v958_v31, %v3809_v26  ;;  %v894_v45 = vsel %vm878_vm2, %v867_v30, 0.0  ;;  %v1039_v46 = vmul.f32 %v1023_v37, %v1023_v37 }
  0x2d   : > { %v868_v47 = vmul.f32 %v852_v38, %v852_v38  ;;  %v944_v48 = vcombine.high %v942_v14, %v942_v14  ;;  %v854_v49 = vsub.f32 %v825_v39, %v3825_v32  ;;  %v1040_v50 = vmul.f32 %v1024_v42, %v1024_v42 }
  0x2e   : > { %v869_v51 = vmul.f32 %v853_v43, %v853_v43  ;;  %v1025_v52 = vsub.f32 %v996_v44, %v3835_v34  ;;  %v1067_v53 = vsel %vm878_vm2, %v1039_v46, 0.0  ;;  %v801_v56 = vrot.slane %v773_v40, %v3795_v21 }
  0x2f   : > { %1056 = vadd.xlane.f32.xlu1 %v1055_v9  ;;  %886 = vadd.xlane.f32.xlu0 %v885_v10  ;;  %v897_v54 = vsel %vm878_vm2, %v868_v47, 0.0  ;;  %v972_v55 = vrot.slane %v944_v48, %v3795_v21  ;;  %v1026_v57 = vsub.f32 %v996_v44, %v3830_v33  ;;  %v870_v59 = vmul.f32 %v854_v49, %v854_v49 }
  0x30   : > { %v1041_v58 = vmul.f32 %v1025_v52, %v1025_v52  ;;  %v855_v60 = vsub.f32 %v825_v39, %v3818_v28  ;;  %v1070_v61 = vsel %vm878_vm2, %v1040_v50, 0.0  ;;  %v900_v62 = vsel %vm878_vm2, %v869_v51, 0.0 }
  0x31   : > { %v1000_v63 = vrot.slane %v972_v55, %v3809_v26  ;;  %v829_v0 = vrot.slane %v801_v56, %v3809_v26  ;;  %v1042_v1 = vmul.f32 %v1026_v57, %v1026_v57  ;;  %v974_v3 = vcombine.high %v958_v31, %v958_v31 }
  0x32   : > { %v871_v2 = vmul.f32 %v855_v60, %v855_v60  ;;  %v803_v5 = vcombine.high %v787_v27, %v787_v27  ;;  %v1073_v6 = vsel %vm878_vm2, %v1041_v58, 0.0  ;;  %v903_v8 = vsel %vm878_vm2, %v870_v59, 0.0  ;;  %v3950_v60 = vld [vmem:[%s5869_s7 + $0x8] sm:$0xff] }
  0x33   : > { %1059 = vadd.xlane.f32.xlu1 %v1058_v17  ;;  %889 = vadd.xlane.f32.xlu0 %v888_v18  ;;  %v1027_v9 = vsub.f32 %v1000_v63, %v3835_v34  ;;  %v856_v10 = vsub.f32 %v829_v0, %v3825_v32  ;;  %v1076_v11 = vsel %vm878_vm2, %v1042_v1, 0.0  ;;  %v1004_v14 = vrot.slane %v974_v3, %v3809_v26 }
  0x34   : > { %v906_v12 = vsel %vm878_vm2, %v871_v2, 0.0  ;;  %v833_v16 = vrot.slane %v803_v5, %v3809_v26  ;;  %v1028_v19 = vsub.f32 %v1000_v63, %v3830_v33  ;;  %v857_v20 = vsub.f32 %v829_v0, %v3818_v28 }
  0x35   : > { %v1043_v17 = vmul.f32 %v1027_v9, %v1027_v9  ;;  %v872_v18 = vmul.f32 %v856_v10, %v856_v10  ;;  %v976_v22 = vcombine.high %v972_v55, %v972_v55  ;;  %v1029_v23 = vsub.f32 %v1004_v14, %v3835_v34  ;;  %v658_v9 = vld [vmem:[%s5874_s12] sm:$0xff]  ;;  %v659_v10 = vld [vmem:[%s5874_s12 + $0x8] sm:$0xff] }
  0x36   : > { %v858_v24 = vsub.f32 %v833_v16, %v3825_v32  ;;  %v805_v25 = vcombine.high %v801_v56, %v801_v56  ;;  %v1044_v30 = vmul.f32 %v1028_v19, %v1028_v19  ;;  %v873_v31 = vmul.f32 %v857_v20, %v857_v20 }
  0x37   : > { %1062 = vadd.xlane.f32.xlu1 %v1061_v35  ;;  %892 = vadd.xlane.f32.xlu0 %v891_v36  ;;  %v1079_v27 = vsel %vm878_vm2, %v1043_v17, 0.0  ;;  %v909_v29 = vsel %vm878_vm2, %v872_v18, 0.0  ;;  %v1030_v35 = vsub.f32 %v1004_v14, %v3830_v33  ;;  %v1045_v36 = vmul.f32 %v1029_v23, %v1029_v23  ;;  %v661_v14 = vld [vmem:[%s5874_s12 + $0x18] sm:$0xff] }
  0x38   : > { %v874_v37 = vmul.f32 %v858_v24, %v858_v24  ;;  %v859_v38 = vsub.f32 %v833_v16, %v3818_v28  ;;  %v1082_v39 = vsel %vm878_vm2, %v1044_v30, 0.0  ;;  %v912_v40 = vsel %vm878_vm2, %v873_v31, 0.0 }
  0x39   : > { %v837_v42 = vrot.slane %v805_v25, %v3809_v26  ;;  %v1046_v43 = vmul.f32 %v1030_v35, %v1030_v35  ;;  %vm5932_vm3 = vcmp.gt.f32.partialorder %v3950_v60, 0.5 }
  0x3a   : > { %v875_v44 = vmul.f32 %v859_v38, %v859_v38  ;;  %v915_v46 = vsel %vm878_vm2, %v874_v37, 0.0  ;;  %v1370_v0 = vsel %vm5932_vm3, 1, %v5890_v15 }
  0x3b   : > { %1065 = vadd.xlane.f32.xlu1 %v1064_v41  ;;  %895 = vadd.xlane.f32.xlu0 %v894_v45  ;;  %v1008_v41 = vrot.slane %v976_v22, %v3809_v26  ;;  %v1085_v45 = vsel %vm878_vm2, %v1045_v36, 0.0  ;;  %v860_v48 = vsub.f32 %v837_v42, %v3825_v32  ;;  %v1088_v49 = vsel %vm878_vm2, %v1046_v43, 0.0 }
  0x3c   : > { %v918_v50 = vsel %vm878_vm2, %v875_v44, 0.0 }
  0x3d   : > { %v1031_v47 = vsub.f32 %v1008_v41, %v3835_v34  ;;  %v876_v52 = vmul.f32 %v860_v48, %v860_v48 }
  0x3f   : > { %1068 = vadd.xlane.f32.xlu1 %v1067_v53  ;;  %898 = vadd.xlane.f32.xlu0 %v897_v54  ;;  %v1047_v51 = vmul.f32 %v1031_v47, %v1031_v47  ;;  %v1032_v53 = vsub.f32 %v1008_v41, %v3830_v33  ;;  %v861_v54 = vsub.f32 %v837_v42, %v3818_v28  ;;  %v921_v34 = vsel %vm878_vm2, %v876_v52, 0.0  ;;  %v652_v28 = vld [vmem:[%s3940_s3] sm:$0xff] }
  0x40   : > { %v1105_v33 = vrot.slane %v652_v28, %v3795_v21 }
  0x41   : > { %v1091_v55 = vsel %vm878_vm2, %v1047_v51, 0.0  ;;  %v1048_v32 = vmul.f32 %v1032_v53, %v1032_v53  ;;  %v877_v56 = vmul.f32 %v861_v54, %v861_v54 }
  0x42   : > { %v3945_v59 = vrot.slane %v1105_v33, %v3795_v21  ;;  %v1113_v42 = vcombine.high %v1105_v33, %v1105_v33 }
  0x43   : > { %1071 = vadd.xlane.f32.xlu1 %v1070_v61  ;;  %901 = vadd.xlane.f32.xlu0 %v900_v62  ;;  %v1094_v57 = vsel %vm878_vm2, %v1048_v32, 0.0  ;;  %v924_v58 = vsel %vm878_vm2, %v877_v56, 0.0  ;;  %v3958_v62 = vld [vmem:[%s5869_s7] sm:$0xff] }
  0x44   : > { %v1236_v61 = vrot.slane %v3945_v59, %v3809_v26  ;;  %5992 = vst [vmem:[#allocation2_spill] sm:$0xff] %v3958_v62  ;;  %vm5931_vm4 = vcmp.gt.f32.partialorder %v3958_v62, 0.5  ;;  %v1135_v47 = vrot.slane %v1113_v42, %v3795_v21  ;;  %vm1155_vm7 = vcmp.gt.f32.partialorder %v3945_v59, 0.5 }
  0x45   : > { %v1369_v3 = vsel %vm5931_vm4, 1, %v5890_v15  ;;  %v1165_v33 = vsel %vm1155_vm7, 1, %v5890_v15 }
  0x46   : > { %v1273_v63 = vsub.f32 %v1236_v61, %v3958_v62  ;;  %v1274_v1 = vsub.f32 %v1236_v61, %v3950_v60  ;;  %v4041_v51 = vcombine.high %v1135_v47, %v1135_v47  ;;  %v4050_v54 = vrot.slane %v1135_v47, %v3809_v26 }
  0x47   : > { %1074 = vadd.xlane.f32.xlu1 %v1073_v6  ;;  %904 = vadd.xlane.f32.xlu0 %v903_v8  ;;  %vm1156_vm8 = vcmp.gt.f32.partialorder %v1135_v47, 0.5 }
  0x48   : > { %v3966_v2 = vand.u32 2147483647, %v1273_v63  ;;  %v3971_v5 = vand.u32 2147483647, %v1274_v1  ;;  %6003 = vst [vmem:[#allocation13_spill] sm:$0xff] %v4041_v51  ;;  %vm1158_vm10 = vcmp.gt.f32.partialorder %v4041_v51, 0.5 }
  0x49   : > { %v4085_v1 = vsel %vm1158_vm10, 1, %v5890_v15 }
  0x4a   : > { %vm1305_vm5 = vcmp.lt.f32.partialorder %v3966_v2, 0.5  ;;  %vm1306_vm6 = vcmp.lt.f32.partialorder %v3971_v5, 0.5 }
  0x4b   : > { %1077 = vadd.xlane.f32.xlu1 %v1076_v11  ;;  %907 = vadd.xlane.f32.xlu0 %v906_v12  ;;  %v1511_v6 = vsel %vm1305_vm5, 1, %v5890_v15  ;;  %v1512_v8 = vsel %vm1306_vm6, 1, %v5890_v15  ;;  %v3396_v11 = vpack.c.bf16 %v659_v10, %v658_v9  ;;  %v660_v12 = vld [vmem:[%s5874_s12 + $0x10] sm:$0xff] }
  0x4c   : > { %v3400_v16 = vpack.c.bf16 %v661_v14, %v660_v12  ;;  %v1176_v12 = vrot.slane %v1165_v33, %v3809_v26 }
  0x4d   : > { %3397 = vmatprep.subr.bf16.mxu0 %v3396_v11 }
  0x4e   : > { %3399 = vmatpush3.bf16.msra.mxu0 %v3396_v11  ;;  %vm4163_vm2 = vcmp.eq.s32.totalorder %v1176_v12, 1  ;;  %v6164_v12 = vmov 0 }
  0x4f   : > { %1080 = vadd.xlane.f32.xlu1 %v1079_v27  ;;  %910 = vadd.xlane.f32.xlu0 %v909_v29 }
  0x50   : > { %3401 = vmatprep.subr.bf16.mxu0 %v3400_v16 }
  0x52   : > { %3403 = vmatpush3.bf16.msra.mxu0 %v3400_v16 }
  0x53   : > { %1083 = vadd.xlane.f32.xlu1 %v1082_v39  ;;  %913 = vadd.xlane.f32.xlu0 %v912_v40  ;;  %v1098_v39 = vcombine.high %v652_v28, %v652_v28  ;;  %v657_v28 = vld [vmem:[%s5872_s10] sm:$0x3] }
  0x54   : > { %v4101_v10 = vrot.slane %v657_v28, %v3809_v26 }
  0x55   : > { %v1112_v43 = vrot.slane %v1098_v39, %v3795_v21 }
  0x57   : > { %1086 = vadd.xlane.f32.xlu1 %v1085_v45  ;;  %916 = vadd.xlane.f32.xlu0 %v915_v46  ;;  %v1114_v46 = vcombine.high %v1112_v43, %v1112_v43  ;;  %v4044_v52 = vrot.slane %v1112_v43, %v3795_v21 }
  0x59   : > { %6004 = vst [vmem:[#allocation14_spill] sm:$0xff] %v4044_v52  ;;  %v4047_v53 = vrot.slane %v1114_v46, %v3795_v21  ;;  %vm1159_vm11 = vcmp.gt.f32.partialorder %v4044_v52, 0.5 }
  0x5b   : > { %1089 = vadd.xlane.f32.xlu1 %v1088_v49  ;;  %919 = vadd.xlane.f32.xlu0 %v918_v50  ;;  %v1143_v50 = vcombine.high %v3945_v59, %v3945_v59  ;;  %6005 = vst [vmem:[#allocation15_spill] sm:$0xff] %v4047_v53  ;;  %vm1160_vm12 = vcmp.gt.f32.partialorder %v4047_v53, 0.5  ;;  %v4066_v56 = vcombine.high %v4047_v53, %v4047_v53  ;;  %v1166_v59 = vsel %vm1156_vm8, 1, %v5890_v15 }
  0x5c   : > { %v1180_v14 = vrot.slane %v1166_v59, %v3809_v26  ;;  %v6012_v53 = vmov 0 }
  0x5d   : > { %vm1157_vm9 = vcmp.gt.f32.partialorder %v1143_v50, 0.5  ;;  %6008 = vst [vmem:[#allocation18_spill] sm:$0xff] %v4066_v56  ;;  %vm1162_vm14 = vcmp.gt.f32.partialorder %v4066_v56, 0.5  ;;  %v1244_v9 = vrot.slane %v1143_v50, %v3809_v26  ;;  %v6013_v53 = vsel %vm4163_vm2, 4294967295, %v6012_v53 }
  0x5e   : > { %vm4178_vm5 = vcmp.eq.s32.totalorder %v1180_v14, 1 }
  0x5f   : > { %1092 = vadd.xlane.f32.xlu1 %v1091_v55  ;;  %922 = vadd.xlane.f32.xlu0 %v921_v34  ;;  %v4054_v55 = vcombine.high %v4044_v52, %v4044_v52  ;;  %v1277_v33 = vsub.f32 %v1244_v9, %v3958_v62 }
  0x61   : > { %6006 = vst [vmem:[#allocation16_spill] sm:$0xff] %v4054_v55  ;;  %vm1161_vm13 = vcmp.gt.f32.partialorder %v4054_v55, 0.5 }
  0x63   : > { %1095 = vadd.xlane.f32.xlu1 %v1094_v57  ;;  %925 = vadd.xlane.f32.xlu0 %v924_v58  ;;  %v1276_v57 = vsub.f32 %v4050_v54, %v3950_v60  ;;  %v1982_v58 = vsub.s32 1, %v3768_v13  ;;  %v4088_v13 = vsel %vm1159_vm11, 1, %v5890_v15 }
  0x65   : > { %v4103_v11 = vrot.slane %v657_v28, %v1982_v58  ;;  %v1275_v58 = vsub.f32 %v4050_v54, %v3958_v62  ;;  %v1278_v28 = vsub.f32 %v1244_v9, %v3950_v60 }
  0x74   : > { %1395 = vrot.lane.b32.xlu1 %v1370_v0, %s3634_s21 }
  0x78   : > { %1371 = vrot.lane.b32.xlu1 %v1369_v3, %s5884_s1 }
  0x79   : > { %1393 = vrot.lane.b32.xlu0 %v1369_v3, %s3634_s21  ;;  %v4091_v3 = vsel %vm1160_vm12, 1, %v5890_v15 }
  0x7c   : > { %1373 = vrot.lane.b32.xlu1 %v1370_v0, %s5884_s1  ;;  %v4082_v0 = vsel %vm1157_vm9, 1, %v5890_v15 }
  0x7d   : > { %1527 = vrot.lane.b32.xlu0 %v1511_v6, %s3636_s22  ;;  %v4094_v6 = vsel %vm1161_vm13, 1, %v5890_v15  ;;  %v1184_v16 = vrot.slane %v4082_v0, %v3809_v26 }
  0x7f   : > { %vm4211_vm6 = vcmp.eq.s32.totalorder %v1184_v16, 1 }
  0x80   : > { %1529 = vrot.lane.b32.xlu1 %v1512_v8, %s3636_s22  ;;  %v4097_v8 = vand.u32 2147483647, %v1276_v57  ;;  %v4122_v57 = vsel %vm1162_vm14, 1, %v5890_v15 }
  0x82   : > { %vm1308_vm15 = vcmp.lt.f32.partialorder %v4097_v8, 0.5 }
  0xb4   : > { %v3993_v17 = vpop.xlane.xlu1 %883  ;;  %v3995_v18 = vpop.xlane.xlu0 %880 }
  0xb5   : > { %v1965_v59 = vmul.f32 %v4101_v10, %v3993_v17  ;;  %v1964_v0 = vmul.f32 %v4101_v10, %v3995_v18 }
  0xb8   : > { %v3997_v19 = vpop.xlane.xlu1 %1053  ;;  %v3999_v20 = vpop.xlane.xlu0 %1050 }
  0xb9   : > { %5993 = vst [vmem:[#allocation3_spill] sm:$0xff] %v3999_v20  ;;  %v1985_v4 = vmul.f32 %v4103_v11, %v3997_v19  ;;  %v1984_v7 = vmul.f32 %v4103_v11, %v3999_v20 }
  0xbc   : > { %v4001_v22 = vpop.xlane.xlu1 %1056  ;;  %v4003_v23 = vpop.xlane.xlu0 %886 }
  0xbd   : > { %5994 = vst [vmem:[#allocation4_spill] sm:$0xff] %v4001_v22  ;;  %v1986_v50 = vmul.f32 %v4103_v11, %v4001_v22  ;;  %v1966_v54 = vmul.f32 %v4101_v10, %v4003_v23  ;;  %v4199_v22 = vand.u32 2147483647, %v1277_v33 }
  0xc0   : > { %v4005_v24 = vpop.xlane.xlu1 %1059  ;;  %v4007_v25 = vpop.xlane.xlu0 %889 }
  0xc1   : > { %5995 = vst [vmem:[#allocation5_spill] sm:$0xff] %v4005_v24  ;;  %v1987_v9 = vmul.f32 %v4103_v11, %v4005_v24  ;;  %v1967_v17 = vmul.f32 %v4101_v10, %v4007_v25  ;;  %v4201_v24 = vadd.f32 %v1984_v7, %v1964_v0 }
  0xc4   : > { %v4009_v27 = vpop.xlane.xlu1 %1062  ;;  %v4011_v29 = vpop.xlane.xlu0 %892 }
  0xc5   : > { %5996 = vst [vmem:[#allocation6_spill] sm:$0xff] %v4009_v27  ;;  %v1988_v18 = vmul.f32 %v4103_v11, %v4009_v27  ;;  %v1968_v47 = vmul.f32 %v4101_v10, %v4011_v29  ;;  %v4195_v27 = vadd.f32 %v1986_v50, %v1966_v54 }
  0xc7   : > { %v4205_v62 = vadd.f32 %v1988_v18, %v1968_v47 }
  0xc8   : > { %v4013_v30 = vpop.xlane.xlu1 %1065  ;;  %v4015_v31 = vpop.xlane.xlu0 %895 }
  0xc9   : > { %5997 = vst [vmem:[#allocation7_spill] sm:$0xff] %v4013_v30  ;;  %v1989_v46 = vmul.f32 %v4103_v11, %v4013_v30  ;;  %v1969_v39 = vmul.f32 %v4101_v10, %v4015_v31 }
  0xcb   : > { %v4207_v20 = vadd.f32 %v1989_v46, %v1969_v39 }
  0xcc   : > { %v4017_v35 = vpop.xlane.xlu1 %1068  ;;  %v4019_v36 = vpop.xlane.xlu0 %898 }
  0xcd   : > { %5998 = vst [vmem:[#allocation8_spill] sm:$0xff] %v4017_v35  ;;  %v1990_v56 = vmul.f32 %v4103_v11, %v4017_v35  ;;  %v1970_v25 = vmul.f32 %v4101_v10, %v4019_v36  ;;  %v4203_v35 = vadd.f32 %v1987_v9, %v1967_v17 }
  0xd0   : > { %v4021_v37 = vpop.xlane.xlu1 %1071  ;;  %v4023_v38 = vpop.xlane.xlu0 %901 }
  0xd1   : > { %5999 = vst [vmem:[#allocation9_spill] sm:$0xff] %v4021_v37  ;;  %v1991_v55 = vmul.f32 %v4103_v11, %v4021_v37  ;;  %v1971_v29 = vmul.f32 %v4101_v10, %v4023_v38  ;;  %v3172_v38 = vld [vmem:[%s5873_s11] ss:$0 sm:$0xff]  ;;  %v6016_v37 = vmov 0  }
  0xd3   : > { %v4215_v50 = vadd.f32 %v1991_v55, %v1971_v29 }
  0xd4   : > { %v4025_v40 = vpop.xlane.xlu1 %1074  ;;  %v4027_v41 = vpop.xlane.xlu0 %904 }
  0xd5   : > { %6000 = vst [vmem:[#allocation10_spill] sm:$0xff] %v4025_v40  ;;  %v1992_v31 = vmul.f32 %v4103_v11, %v4025_v40  ;;  %v1972_v52 = vmul.f32 %v4101_v10, %v4027_v41  ;;  %v4187_v41 = vsel %vm1308_vm15, 1, %v6016_v37  ;;  %v4189_v40 = vand.u32 2147483647, %v1275_v58 }
  0xd6   : > { %v4209_v58 = vadd.f32 %v1990_v56, %v1970_v25 }
  0xd8   : > { %v4030_v44 = vpop.xlane.xlu1 %1077  ;;  %v4032_v45 = vpop.xlane.xlu0 %907 }
  0xd9   : > { %6001 = vst [vmem:[#allocation11_spill] sm:$0xff] %v4030_v44  ;;  %v1993_v51 = vmul.f32 %v4103_v11, %v4030_v44  ;;  %v1973_v36 = vmul.f32 %v4101_v10, %v4032_v45  ;;  %v4191_v44 = vand.u32 2147483647, %v1278_v28  ;;  %v4193_v45 = vadd.f32 %v1985_v4, %v1965_v59 }
  0xda   : > { %v6018_v4 = vmov 0  ;;  %v4217_v59 = vadd.f32 %v1992_v31, %v1972_v52 }
  0xdb   : > { %v6019_v4 = vsel %vm4211_vm6, 4294967295, %v6018_v4  ;;  %v4219_v33 = vadd.f32 %v1993_v51, %v1973_v36  ;;  %vm1310_vm3 = vcmp.lt.f32.partialorder %v4191_v44, 0.5 }
  0xdc   : > { %v4035_v48 = vpop.xlane.xlu1 %1080  ;;  %v4037_v49 = vpop.xlane.xlu0 %910 }
  0xdd   : > { %6002 = vst [vmem:[#allocation12_spill] sm:$0xff] %v4035_v48  ;;  %v1994_v47 = vmul.f32 %v4103_v11, %v4035_v48  ;;  %v1974_v56 = vmul.f32 %v4101_v10, %v4037_v49 }
  0xe0   : > { %v4056_v34 = vpop.xlane.xlu1 %1083  ;;  %v4058_v32 = vpop.xlane.xlu0 %913 }
  0xe1   : > { %6007 = vst [vmem:[#allocation17_spill] sm:$0xff] %v4056_v34  ;;  %v1995_v16 = vmul.f32 %v4103_v11, %v4056_v34  ;;  %v1975_v39 = vmul.f32 %v4101_v10, %v4058_v32  ;;  %v6020_v32 = vrot.slane %v4085_v1, %v3809_v26 }
  0xe3   : > { %vm4247_vm9 = vcmp.eq.s32.totalorder %v6020_v32, 1  ;;  %v4290_v32 = vadd.f32 %v1995_v16, %v1975_v39  ;;  %v6031_v39 = vrot.slane %v4091_v3, %v3809_v26 }
  0xe4   : > { %v4077_v61 = vpop.xlane.xlu1 %1086  ;;  %v4079_v63 = vpop.xlane.xlu0 %916 }
  0xe5   : > { %6009 = vst [vmem:[#allocation19_spill] sm:$0xff] %v4077_v61  ;;  %v1996_v52 = vmul.f32 %v4103_v11, %v4077_v61  ;;  %v1976_v51 = vmul.f32 %v4101_v10, %v4079_v63  ;;  %v6179_v63 = vmov 0 }
  0xe8   : > { %v4111_v42 = vpop.xlane.xlu1 %1089  ;;  %v4113_v43 = vpop.xlane.xlu0 %919 }
  0xe9   : > { %6010 = vst [vmem:[#allocation20_spill] sm:$0xff] %v4111_v42  ;;  %v1997_v49 = vmul.f32 %v4103_v11, %v4111_v42  ;;  %v1977_v17 = vmul.f32 %v4101_v10, %v4113_v43 }
  0xec   : > { %v4153_v15 = vpop.xlane.xlu1 %1092  ;;  %v923_v23 = vpop.xlane.xlu0 %922 }
  0xed   : > { %6011 = vst [vmem:[#allocation21_spill] sm:$0xff] %v4153_v15  ;;  %v1998_v18 = vmul.f32 %v4103_v11, %v4153_v15  ;;  %v1978_v43 = vmul.f32 %v4101_v10, %v923_v23 }
  0xee   : > { %v744_v28 = vpop.f32.mrb[0].mxu1 }
  0xef   : > { %v745_v7 = vadd.f32 %v3172_v38, %v744_v28  ;;  %v3305_v0 = vpop.f32.mrb[1].mxu1 }
  0xf0   : > { %v4197_v14 = vpop.xlane.xlu1 %1095  ;;  %v926_v30 = vpop.xlane.xlu0 %925 }
  0xf1   : > { %6017 = vst [vmem:[#allocation22_spill] sm:$0xff] %v4197_v14  ;;  %v2017_v55 = vcombine.high %v745_v7, %v745_v7  ;;  %v2024_v46 = vrot.slane %v745_v7, %v3795_v21  ;;  %v1999_v1 = vmul.f32 %v4103_v11, %v4197_v14  ;;  %v1979_v36 = vmul.f32 %v4101_v10, %v926_v30 }
  0xf2   : > { %v6026_v10 = vrot.slane %v4088_v13, %v3809_v26  ;;  %v6041_v14 = vrot.slane %v4122_v57, %v3809_v26  ;;  %v6182_v11 = vmov 0 }
  0xf3   : > { %v2031_v25 = vrot.slane %v2017_v55, %v3795_v21  ;;  %v2032_v29 = vcombine.high %v2024_v46, %v2024_v46  ;;  %v2040_v31 = vrot.slane %v2024_v46, %v3795_v21  ;;  %v4288_v46 = vadd.f32 %v1994_v47, %v1974_v56 }
  0xf4   : > { %v4234_v54 = vpop.permute.xlu1 %1395  ;;  %v4236_v9 = vpop.permute.xlu0 %1393  ;;  %vm4284_vm13 = vcmp.eq.s32.totalorder %v6026_v10, 1  ;;  %v4304_v10 = vadd.f32 %v1996_v52, %v1976_v51  ;;  %v4320_v52 = vadd.f32 %v1997_v49, %v1977_v17 }
  0xf5   : > { %vm1398_vm7 = vcmp.ne.s32.totalorder %v4234_v54, 0  ;;  %vm1397_vm8 = vcmp.ne.s32.totalorder %v4236_v9, 0  ;;  %v2033_v28 = vcombine.high %v2031_v25, %v2031_v25  ;;  %v2047_v7 = vrot.slane %v2031_v25, %v3795_v21 }
  0xf6   : > { %vm1400_vm10 = vmand %vm4163_vm2, %vm1398_vm7  ;;  %v2054_v0 = vrot.slane %v2032_v29, %v3795_v21  ;;  %v2062_v55 = vcombine.high %v2040_v31, %v2040_v31  ;;  %v4271_v23 = vpop.f32.mrb[2].mxu1  ;;  %v2069_v25 = vrot.slane %v2040_v31, %v3809_v26  ;;  %v6032_v31 = vmov 0 }
  0xf7   : > { %v1416_v38 = vsel %vm1400_vm10, 1, %v6016_v37  ;;  %vm1399_vm11 = vmand %vm4163_vm2, %vm1397_vm8  ;;  %v2061_v47 = vrot.slane %v2033_v28, %v3795_v21  ;;  %vm4316_vm10 = vcmp.eq.s32.totalorder %v6031_v39, 1  ;;  %v2063_v21 = vcombine.high %v2047_v7, %v2047_v7 }
  0xf8   : > { %1433 = vrot.lane.b32.xlu1 %v1416_v38, %s6023_s27  ;;  %vm4277_vm12 = vmand %vm4178_vm5, %vm1398_vm7  ;;  %v1415_v29 = vsel %vm1399_vm11, 1, %v6016_v37  ;;  %v4294_v38 = vpop.f32.mrb[3].mxu1  ;;  %v2064_v56 = vcombine.high %v2054_v0, %v2054_v0  ;;  %v2073_v16 = vrot.slane %v2054_v0, %v3809_v26  ;;  %v6033_v31 = vsel %vm4316_vm10, 4294967295, %v6032_v31 }
  0xf9   : > { %vm4300_vm14 = vmand %vm4178_vm5, %vm1397_vm8  ;;  %1431 = vrot.lane.b32.xlu0 %v1415_v29, %s6023_s27  ;;  %v2077_v51 = vrot.slane %v2062_v55, %v3809_v26  ;;  %v1418_v28 = vsel %vm4277_vm12, 1, %v6016_v37  ;;  %v4326_v0 = vadd.f32 %v1998_v18, %v1978_v43  ;;  %v4328_v29 = vadd.f32 %v1999_v1, %v1979_v36 }
  0xfa   : > { %vm1404_vm15 = vmand %vm4211_vm6, %vm1398_vm7  ;;  %v4331_v15 = vrot.slane %v2047_v7, %v3809_v26  ;;  %v1417_v3 = vsel %vm4300_vm14, 1, %v6016_v37  ;;  %v2065_v49 = vcombine.high %v2061_v47, %v2061_v47  ;;  %v2106_v18 = vadd.f32 %v2069_v25, %v4294_v38 }
  0xfb   : > { %v1420_v17 = vsel %vm1404_vm15, 1, %v6016_v37  ;;  %vm1403_vm11 = vmand %vm4211_vm6, %vm1397_vm8  ;;  %v2107_v43 = vadd.f32 %v4271_v23, %v2069_v25  ;;  %v2081_v1 = vrot.slane %v2064_v56, %v3809_v26  ;;  %v4346_v36 = vrot.slane %v2061_v47, %v3809_v26 }
  0xfc   : > { %1437 = vrot.lane.b32.xlu1 %v1418_v28, %s6023_s27  ;;  %vm1406_vm12 = vmand %vm4247_vm9, %vm1398_vm7  ;;  %v2108_v7 = vadd.f32 %v2073_v16, %v4294_v38  ;;  %v2109_v55 = vadd.f32 %v4271_v23, %v2073_v16  ;;  %v4356_v30 = vrot.slane %v2063_v21, %v3809_v26  ;;  %v4359_v25 = vadd.f32 %v2106_v18, %v4201_v24 }
  0xfd   : > { %1435 = vrot.lane.b32.xlu0 %v1417_v3, %s6023_s27  ;;  %v4362_v13 = vadd.f32 %v2107_v43, %v4193_v45  ;;  %v2110_v47 = vadd.f32 %v2077_v51, %v4294_v38  ;;  %v1419_v56 = vsel %vm1403_vm11, 1, %v6016_v37  ;;  %vm4371_vm14 = vmand %vm4247_vm9, %vm1397_vm8  ;;  %v2111_v39 = vadd.f32 %v4271_v23, %v2077_v51 }
  0xfe   : > { %v4376_v24 = vadd.f32 %v2108_v7, %v4195_v27  ;;  %v4379_v45 = vadd.f32 %v2109_v55, %v4203_v35  ;;  %v1422_v21 = vsel %vm1406_vm12, 1, %v6016_v37  ;;  %vm4387_vm15 = vmand %vm4284_vm13, %vm1398_vm7  ;;  %v3192_v3 = vclamps-f32 %v4359_v25, 30.0 }
  0xff   : > { %v3193_v27 = vclamps-f32 %v4362_v13, 30.0  ;;  %v4397_v35 = vrot.slane %v2065_v49, %v3809_v26  ;;  %vm1407_vm11 = vmand %vm4284_vm13, %vm1397_vm8  ;;  %v6038_v51 = vrot.slane %v4094_v6, %v3809_v26  ;;  %v6039_v18 = vmov 0 }
 0x100   : > { %1441 = vrot.lane.b32.xlu1 %v1420_v17, %s6023_s27  ;;  %v4394_v17 = vadd.f32 %v2110_v47, %v4205_v62  ;;  %v3194_v62 = vclamps-f32 %v4376_v24, 30.0  ;;  %v3195_v43 = vclamps-f32 %v4379_v45, 30.0  ;;  %v4414_v49 = vadd.f32 %v2111_v39, %v4207_v20  ;;  %vm1410_vm0 = vmand %vm4316_vm10, %vm1398_vm7 }
 0x101   : > { %1439 = vrot.lane.b32.xlu0 %v1419_v56, %s6023_s27  ;;  %vm4407_vm12 = vcmp.eq.s32.totalorder %v6038_v51, 1  ;;  %v1421_v7 = vsel %vm4371_vm14, 1, %v6016_v37  ;;  %v2170_v6 = vsub.f32 0.0, %v3192_v3  ;;  %v2171_v55 = vsub.f32 0.0, %v3193_v27 }
 0x102   : > { %v6040_v18 = vsel %vm4407_vm12, 4294967295, %v6039_v18  ;;  %v3196_v47 = vclamps-f32 %v4394_v17, 30.0  ;;  %v1424_v20 = vsel %vm4387_vm15, 1, %v6016_v37  ;;  %v2172_v56 = vsub.f32 0.0, %v3194_v62  ;;  %vm4475_vm15 = vmand %vm4407_vm12, %vm1398_vm7 }
 0x103   : > { %v2173_v39 = vsub.f32 0.0, %v3195_v43  ;;  %v3197_v16 = vclamps-f32 %v4414_v49, 30.0  ;;  %v1423_v51 = vsel %vm1407_vm11, 1, %v6016_v37  ;;  %vm4433_vm14 = vcmp.eq.s32.totalorder %v6041_v14, 1  ;;  %vm4498_vm4 = vmand %vm4407_vm12, %vm1397_vm8 }
 0x104   : > { %1445 = vrot.lane.b32.xlu1 %v1422_v21, %s6023_s27  ;;  %v6042_v3 = vmov 0  ;;  %v2186_v27 = vmul.f32 1.442695, %v2170_v6  ;;  %v2188_v61 = vmul.f32 1.442695, %v2171_v55  ;;  %v2174_v21 = vsub.f32 0.0, %v3196_v47 }
 0x105   : > { %v6043_v3 = vsel %vm4433_vm14, 4294967295, %v6042_v3  ;;  %1443 = vrot.lane.b32.xlu0 %v1421_v7, %s6023_s27  ;;  %v1426_v28 = vsel %vm1410_vm0, 1, %v6016_v37  ;;  %v2190_v62 = vmul.f32 1.442695, %v2172_v56  ;;  %v2192_v43 = vmul.f32 1.442695, %v2173_v39  ;;  %vm4459_vm0 = vmand %vm4316_vm10, %vm1397_vm8 }
 0x106   : > { %v2175_v42 = vsub.f32 0.0, %v3197_v16  ;;  %3485 = vpow2.f32 %v2186_v27  ;;  %v2194_v48 = vmul.f32 1.442695, %v2174_v21  ;;  %v2112_v34 = vadd.f32 %v2081_v1, %v4294_v38 }
 0x107   : > { %v2113_v57 = vadd.f32 %v4271_v23, %v2081_v1  ;;  %3487 = vpow2.f32 %v2188_v61  ;;  %v2114_v6 = vadd.f32 %v4331_v15, %v4294_v38  ;;  %v2115_v7 = vadd.f32 %v4271_v23, %v4331_v15 }
 0x108   : > { %1449 = vrot.lane.b32.xlu1 %v1424_v20, %s6023_s27  ;;  %v2196_v14 = vmul.f32 1.442695, %v2175_v42  ;;  %3489 = vpow2.f32 %v2190_v62  ;;  %v4447_v55 = vadd.f32 %v2112_v34, %v4209_v58  ;;  %v2116_v1 = vadd.f32 %v4346_v36, %v4294_v38 }
 0x109   : > { %v4450_v47 = vadd.f32 %v2113_v57, %v4215_v50  ;;  %1447 = vrot.lane.b32.xlu0 %v1423_v51, %s6023_s27  ;;  %3491 = vpow2.f32 %v2192_v43  ;;  %v4464_v15 = vadd.f32 %v2114_v6, %v4217_v59  ;;  %v4467_v34 = vadd.f32 %v2115_v7, %v4219_v33 }
 0x10a   : > { %v2117_v42 = vadd.f32 %v4271_v23, %v4346_v36  ;;  %3493 = vpow2.f32 %v2194_v48  ;;  %v3198_v50 = vclamps-f32 %v4447_v55, 30.0  ;;  %v4482_v20 = vadd.f32 %v2116_v1, %v4288_v46 }
 0x10b   : > { %v3199_v59 = vclamps-f32 %v4450_v47, 30.0  ;;  %vm1307_vm11 = vcmp.lt.f32.partialorder %v4189_v40, 0.5  ;;  %3495 = vpow2.f32 %v2196_v14  ;;  %v3200_v33 = vclamps-f32 %v4464_v15, 30.0 }
 0x10c   : > { %1453 = vrot.lane.b32.xlu1 %v1426_v28, %s6023_s27  ;;  %v3201_v36 = vclamps-f32 %v4467_v34, 30.0  ;;  %v4489_v56 = vadd.f32 %v2117_v42, %v4290_v32  ;;  %v1425_v48 = vsel %vm4459_vm0, 1, %v6016_v37  ;;  %v2176_v39 = vsub.f32 0.0, %v3198_v50  ;;  %vm4512_vm0 = vmand %vm4433_vm14, %vm1398_vm7 }
 0x10d   : > { %v2177_v16 = vsub.f32 0.0, %v3199_v59  ;;  %v2118_v51 = vadd.f32 %v4356_v30, %v4294_v38  ;;  %1451 = vrot.lane.b32.xlu0 %v1425_v48, %s6023_s27  ;;  %v1428_v32 = vsel %vm4475_vm15, 1, %v6016_v37  ;;  %v2178_v21 = vsub.f32 0.0, %v3200_v33  ;;  %vm4524_vm15 = vmand %vm4433_vm14, %vm1397_vm8 }
 0x10e   : > { %v3202_v28 = vclamps-f32 %v4482_v20, 30.0  ;;  %v2119_v62 = vadd.f32 %v4271_v23, %v4356_v30  ;;  %v2198_v43 = vmul.f32 1.442695, %v2176_v39  ;;  %v2179_v14 = vsub.f32 0.0, %v3201_v36 }
 0x10f   : > { %v2200_v57 = vmul.f32 1.442695, %v2177_v16  ;;  %v4529_v6 = vadd.f32 %v2118_v51, %v4304_v10  ;;  %v1427_v30 = vsel %vm4498_vm4, 1, %v6016_v37  ;;  %v2202_v7 = vmul.f32 1.442695, %v2178_v21 }
 0x110   : > { %1457 = vrot.lane.b32.xlu1 %v1428_v32, %s6023_s27  ;;  %v3203_v9 = vclamps-f32 %v4489_v56, 30.0  ;;  %v4537_v1 = vadd.f32 %v2119_v62, %v4320_v52  ;;  %v3486_v61 = vpop.eup %3485  ;;  %v1430_v42 = vsel %vm4512_vm0, 1, %v6016_v37  ;;  %3497 = vpow2.f32 %v2198_v43 }
 0x111   : > { %v3204_v10 = vclamps-f32 %v4529_v6, 30.0  ;;  %v2120_v58 = vadd.f32 %v4397_v35, %v4294_v38  ;;  %v3488_v50 = vpop.eup %3487  ;;  %1455 = vrot.lane.b32.xlu0 %v1427_v30, %s6023_s27  ;;  %v1429_v59 = vsel %vm4524_vm15, 1, %v6016_v37  ;;  %v2218_v52 = vadd.f32 1.0, %v3486_v61 }
 0x112   : > { %3499 = vpow2.f32 %v2200_v57  ;;  %v2180_v33 = vsub.f32 0.0, %v3202_v28  ;;  %v3490_v36 = vpop.eup %3489  ;;  %v2219_v48 = vadd.f32 1.0, %v3488_v50  ;;  %v2204_v46 = vmul.f32 1.442695, %v2179_v14 }
 0x113   : > { %3501 = vpow2.f32 %v2202_v7  ;;  %v4550_v39 = vadd.f32 %v2120_v58, %v4326_v0  ;;  %v3492_v16 = vpop.eup %3491  ;;  %v2220_v38 = vadd.f32 1.0, %v3490_v36  ;;  %v2181_v51 = vsub.f32 0.0, %v3203_v9 }
 0x114   : > { %1461 = vrot.lane.b32.xlu1 %v1430_v42, %s6023_s27  ;;  %3503 = vrcp.f32 %v2218_v52  ;;  %v2121_v32 = vadd.f32 %v4271_v23, %v4397_v35  ;;  %v3494_v27 = vpop.eup %3493  ;;  %v2221_v21 = vadd.f32 1.0, %v3492_v16  ;;  %v2182_v28 = vsub.f32 0.0, %v3204_v10 }
 0x115   : > { %3505 = vrcp.f32 %v2219_v48  ;;  %v3205_v62 = vclamps-f32 %v4537_v1, 30.0  ;;  %v3496_v54 = vpop.eup %3495  ;;  %1459 = vrot.lane.b32.xlu0 %v1429_v59, %s6023_s27  ;;  %v2222_v0 = vadd.f32 1.0, %v3494_v27  ;;  %v3206_v43 = vclamps-f32 %v4550_v39, 30.0 }
 0x116   : > { %3507 = vrcp.f32 %v2220_v38  ;;  %v4559_v57 = vadd.f32 %v2121_v32, %v4328_v29  ;;  %v1513_v23 = vsel %vm1307_vm11, 1, %v6016_v37  ;;  %v2223_v35 = vadd.f32 1.0, %v3496_v54 }
 0x117   : > { %3509 = vrcp.f32 %v2221_v21  ;;  %v2206_v14 = vmul.f32 1.442695, %v2180_v33  ;;  %vm1309_vm4 = vcmp.lt.f32.partialorder %v4199_v22, 0.5  ;;  %v2208_v30 = vmul.f32 1.442695, %v2181_v51 }
 0x118   : > { %1533 = vrot.lane.b32.xlu1 %v4187_v41, %s3636_s22  ;;  %3511 = vrcp.f32 %v2222_v0  ;;  %v3207_v7 = vclamps-f32 %v4559_v57, 30.0  ;;  %v1516_v29 = vsel %vm1310_vm3, 1, %v6016_v37  ;;  %v2210_v9 = vmul.f32 1.442695, %v2182_v28  ;;  %v6057_v0 = vld [vmem:[#allocation3_spill] sm:$0xff] }
 0x119   : > { %3513 = vrcp.f32 %v2223_v35  ;;  %v2183_v61 = vsub.f32 0.0, %v3205_v62  ;;  %1531 = vrot.lane.b32.xlu0 %v1513_v23, %s3636_s22  ;;  %vm1322_vm7 = vcmp.gt.f32.partialorder %v3971_v5, 0.5  ;;  %v2184_v42 = vsub.f32 0.0, %v3206_v43  ;;  %v6058_v43 = vld [vmem:[#allocation2_spill] sm:$0xff] }
 0x11a   : > { %3515 = vpow2.f32 %v2204_v46  ;;  %v3498_v41 = vpop.eup %3497  ;;  %v1515_v10 = vsel %vm1309_vm4, 1, %v6016_v37  ;;  %v2185_v58 = vsub.f32 0.0, %v3207_v7  ;;  %vm1321_vm8 = vcmp.gt.f32.partialorder %v3966_v2, 0.5 }
 0x11b   : > { %3517 = vpow2.f32 %v2206_v14  ;;  %v2224_v59 = vadd.f32 1.0, %v3498_v41  ;;  %v1592_v33 = vsel %vm1322_vm7, 1, %v6016_v37  ;;  %v2212_v5 = vmul.f32 1.442695, %v2183_v61  ;;  %v6069_v41 = vld [vmem:[#allocation4_spill] sm:$0xff] }
 0x11c   : > { %v3500_v50 = vpop.eup %3499  ;;  %1537 = vrot.lane.b32.xlu1 %v1516_v29, %s3636_s22  ;;  %3519 = vpow2.f32 %v2208_v30  ;;  %vm1324_vm3 = vcmp.gt.f32.partialorder %v4097_v8, 0.5  ;;  %v2214_v16 = vmul.f32 1.442695, %v2184_v42  ;;  %v1591_v51 = vsel %vm1321_vm8, 1, %v6016_v37  ;;  %v6062_v30 = vld [vmem:[#allocation5_spill] sm:$0xff] }
 0x11d   : > { %v3502_v52 = vpop.eup %3501  ;;  %v2225_v36 = vadd.f32 1.0, %v3500_v50  ;;  %3521 = vpow2.f32 %v2210_v9  ;;  %1535 = vrot.lane.b32.xlu0 %v1515_v10, %s3636_s22  ;;  %v2216_v32 = vmul.f32 1.442695, %v2185_v58  ;;  %vm1323_vm11 = vcmp.gt.f32.partialorder %v4189_v40, 0.5 }
 0x11e   : > { %v3504_v48 = vpop.eup %3503  ;;  %3523 = vrcp.f32 %v2224_v59  ;;  %v2226_v46 = vadd.f32 1.0, %v3502_v52  ;;  %vm5933_vm0 = vcmp.le.f32.partialorder %v3997_v19, 16.0  ;;  %vm6054_vm15 = vcmp.gt.f32.partialorder %v3950_v60, 0.5 }
 0x11f   : > { %v3506_v38 = vpop.eup %3505  ;;  %v2250_v2 = vmul.f32 %v3504_v48, %v4359_v25  ;;  %3525 = vrcp.f32 %v2225_v36  ;;  %v1594_v25 = vsel %vm1324_vm3, 1, %v6016_v37  ;;  %vm4594_vm4 = vmand %vm4163_vm2, %vm6054_vm15  ;;  %v1593_v8 = vsel %vm1323_vm11, 1, %v6016_v37  ;;  %v6076_v48 = vld [vmem:[#allocation7_spill] sm:$0xff] }
 0x120   : > { %v3508_v27 = vpop.eup %3507  ;;  %1609 = vrot.lane.b32.xlu1 %v1592_v33, %s3637_s28  ;;  %v2251_v21 = vmul.f32 %v3506_v38, %v4362_v13  ;;  %3527 = vrcp.f32 %v2226_v46  ;;  %v6055_v13 = vmov 0  ;;  %vm6059_vm8 = vcmp.gt.f32.partialorder %v6058_v43, 0.5  ;;  %vm1354_vm15 = vmand %vm4594_vm4, %vm5933_vm0 }
 0x121   : > { %v3510_v28 = vpop.eup %3509  ;;  %3325 = vmatprep.mubr.msk.f32.mxu0 %vm5938_vm1, %v2250_v2  ;;  %v2252_v62 = vmul.f32 %v3508_v27, %v4376_v24  ;;  %v6056_v13 = vsel %vm4594_vm4, 4294967295, %v6055_v13  ;;  %3529 = vpow2.f32 %v2212_v5  ;;  %1607 = vrot.lane.b32.xlu0 %v1591_v51, %s3637_s28  ;;  %vm4609_vm3 = vmand %vm4163_vm2, %vm6059_vm8  ;;  %v6060_v23 = vmov 0  ;;  %v6081_v51 = vld [vmem:[#allocation6_spill] sm:$0xff] }
 0x122   : > { %v3512_v54 = vpop.eup %3511  ;;  %3326 = vmatmul.mubr.msk.f32.vlgmr.msra.gmra.mrb[0].mxu0 %vm5938_vm1, %v2251_v21  ;;  %3531 = vpow2.f32 %v2214_v16  ;;  %v6061_v23 = vsel %vm4609_vm3, 4294967295, %v6060_v23  ;;  %v2253_v14 = vmul.f32 %v3510_v28, %v4379_v45  ;;  %vm6063_vm8 = vcmp.gt.f32.partialorder %v3950_v60, 0.5 }
 0x123   : > { %v3514_v24 = vpop.eup %3513  ;;  %3328 = vmatprep.mubr.msk.f32.mxu0 %vm5938_vm1, %v2252_v62  ;;  %3533 = vpow2.f32 %v2216_v32  ;;  %v2254_v7 = vmul.f32 %v3512_v54, %v4394_v17  ;;  %vm4625_vm7 = vmand %vm4178_vm5, %vm6063_vm8  ;;  %v6064_v29 = vmov 0  ;;  %vm6066_vm0 = vcmp.le.f32.partialorder %v6057_v0, 16.0 }
 0x124   : > { %v3516_v35 = vpop.eup %3515  ;;  %1613 = vrot.lane.b32.xlu1 %v1594_v25, %s3637_s28  ;;  %v6065_v29 = vsel %vm4625_vm7, 4294967295, %v6064_v29  ;;  %vm4635_vm11 = vmand %vm4609_vm3, %vm6066_vm0  ;;  %v1672_v10 = vsel %vm1354_vm15, 1, %v6016_v37  ;;  %vm6070_vm4 = vcmp.gt.f32.partialorder %v6058_v43, 0.5  ;;  %v6071_v58 = vmov 0  ;;  %v6087_v25 = vld [vmem:[#allocation11_spill] sm:$0xff] }
 0x125   : > { %v3518_v40 = vpop.eup %3517  ;;  %v2227_v9 = vadd.f32 1.0, %v3516_v35  ;;  %1611 = vrot.lane.b32.xlu0 %v1593_v8, %s3637_s28  ;;  %vm4646_vm2 = vmand %vm4178_vm5, %vm6070_vm4  ;;  %v2255_v52 = vmul.f32 %v3514_v24, %v4414_v49  ;;  %vm6073_vm0 = vcmp.le.f32.partialorder %v6062_v30, 16.0  ;;  %v1671_v46 = vsel %vm4635_vm11, 1, %v6016_v37  ;;  %v6093_v35 = vld [vmem:[#allocation10_spill] sm:$0xff] }
 0x126   : > { %v3520_v45 = vpop.eup %3519  ;;  %3329 = vmatmul.mubr.msk.f32.gmra.mrb[2].mxu0 %vm5938_vm1, %v2253_v14  ;;  %v2228_v61 = vadd.f32 1.0, %v3518_v40  ;;  %v6072_v58 = vsel %vm4646_vm2, 4294967295, %v6071_v58  ;;  %vm4656_vm15 = vmand %vm4625_vm7, %vm6073_vm0  ;;  %v6077_v49 = vmov 0  ;;  %vm6079_vm0 = vcmask 261120  }
 0x127   : > { %v3522_v42 = vpop.eup %3521  ;;  %3331 = vmatprep.mubr.msk.f32.mxu0 %vm5938_vm1, %v2254_v7  ;;  %3535 = vrcp.f32 %v2227_v9  ;;  %v2229_v50 = vadd.f32 1.0, %v3520_v45  ;;  %vm4669_vm1 = vmand %vm4211_vm6, %vm6063_vm8  ;;  %vm6080_vm4 = vcmp.le.f32.partialorder %v6069_v41, 16.0  ;;  %v1674_v2 = vsel %vm4656_vm15, 1, %v6016_v37  ;;  %v6099_v9 = vld [vmem:[#allocation9_spill] sm:$0xff] }
 0x128   : > { %v3524_v59 = vpop.eup %3523  ;;  %1689 = vrot.lane.b32.xlu1 %v1672_v10, %s6023_s27  ;;  %3537 = vrcp.f32 %v2228_v61  ;;  %v2230_v36 = vadd.f32 1.0, %v3522_v42  ;;  %v6078_v49 = vsel %vm4669_vm1, 4294967295, %v6077_v49  ;;  %vm1355_vm11 = vmand %vm4646_vm2, %vm6080_vm4  ;;  %vm6083_vm8 = vcmp.gt.f32.partialorder %v6058_v43, 0.5 }
 0x129   : > { %v3526_v5 = vpop.eup %3525  ;;  %v2256_v16 = vmul.f32 %v3524_v59, %v4447_v55  ;;  %3539 = vrcp.f32 %v2229_v50  ;;  %1687 = vrot.lane.b32.xlu0 %v1671_v46, %s6023_s27  ;;  %vm6082_vm7 = vmmov %vm6079_vm0  ;;  %v6084_v32 = vmov 0  ;;  %vm6086_vm4 = vcmp.le.f32.partialorder %v6076_v48, 16.0  ;;  %v6103_v50 = vld [vmem:[#allocation8_spill] sm:$0xff] }
 0x12a   : > { %v3528_v38 = vpop.eup %3527  ;;  %3332 = vmatmul.mubr.msk.f32.gmra.mrb[4].mxu0 %vm6079_vm0, %v2255_v52  ;;  %3541 = vrcp.f32 %v2230_v36  ;;  %vm4688_vm0 = vmand %vm4211_vm6, %vm6083_vm8  ;;  %v2257_v21 = vmul.f32 %v3526_v5, %v4450_v47  ;;  %v1673_v54 = vsel %vm1355_vm11, 1, %v6016_v37  ;;  %vm6088_vm8 = vcmp.gt.f32.partialorder %v3950_v60, 0.5 }
 0x12b   : > { %v3530_v55 = vpop.eup %3529  ;;  %3334 = vmatprep.mubr.msk.f32.mxu0 %vm6082_vm7, %v2256_v16  ;;  %v6085_v32 = vsel %vm4688_vm0, 4294967295, %v6084_v32  ;;  %vm1358_vm7 = vmand %vm4669_vm1, %vm6086_vm4  ;;  %v2258_v24 = vmul.f32 %v3528_v38, %v4464_v15  ;;  %v6089_v8 = vmov 0  ;;  %vm6091_vm4 = vcmask 261120   ;;  %v6115_v16 = vld [vmem:[#allocation13_spill] sm:$0xff] }
 0x12c   : > { %v3532_v27 = vpop.eup %3531  ;;  %1693 = vrot.lane.b32.xlu1 %v1674_v2, %s6023_s27  ;;  %v2231_v28 = vadd.f32 1.0, %v3530_v55  ;;  %vm4705_vm3 = vmand %vm4284_vm13, %vm6088_vm8  ;;  %vm6092_vm1 = vcmp.le.f32.partialorder %v6081_v51, 16.0  ;;  %vm5951_vm15 = vcmp.le.f32.partialorder %v6093_v35, 16.0  ;;  %v1676_v14 = vsel %vm1358_vm7, 1, %v6016_v37  ;;  %v6116_v55 = vld [vmem:[#allocation12_spill] sm:$0xff] }
 0x12d   : > { %v3534_v62 = vpop.eup %3533  ;;  %v6090_v8 = vsel %vm4705_vm3, 4294967295, %v6089_v8  ;;  %v2232_v47 = vadd.f32 1.0, %v3532_v27  ;;  %1691 = vrot.lane.b32.xlu0 %v1673_v54, %s6023_s27  ;;  %vm1357_vm11 = vmand %vm4688_vm0, %vm6092_vm1  ;;  %vm6095_vm8 = vcmp.gt.f32.partialorder %v6058_v43, 0.5  ;;  %v6096_v40 = vmov 0 }
 0x12e   : > { %3335 = vmatmul.mubr.msk.f32.gmra.mrb[6].mxu0 %vm6091_vm4, %v2257_v21  ;;  %3543 = vrcp.f32 %v2231_v28  ;;  %v2233_v15 = vadd.f32 1.0, %v3534_v62  ;;  %vm6094_vm2 = vmmov %vm6091_vm4  ;;  %vm6098_vm1 = vcmp.le.f32.partialorder %v6087_v25, 16.0  ;;  %v1675_v45 = vsel %vm1357_vm11, 1, %v6016_v37  ;;  %v6122_v28 = vld [vmem:[#allocation20_spill] sm:$0xff] }
 0x12f   : > { %3337 = vmatprep.mubr.msk.f32.mxu0 %vm6094_vm2, %v2258_v24  ;;  %vm4722_vm6 = vmand %vm4284_vm13, %vm6095_vm8  ;;  %3545 = vrcp.f32 %v2232_v47  ;;  %vm6100_vm7 = vcmp.gt.f32.partialorder %v3950_v60, 0.5  ;;  %v6101_v17 = vmov 0  ;;  %v6105_v33 = vmov 0  ;;  %v4820_v47 = vld [vmem:[%s5869_s7 + $0x8] sm:$0xff] }
 0x130   : > { %v6097_v40 = vsel %vm4722_vm6, 4294967295, %v6096_v40  ;;  %1697 = vrot.lane.b32.xlu1 %v1676_v14, %s6023_s27  ;;  %vm1362_vm4 = vmand %vm4705_vm3, %vm6098_vm1  ;;  %3547 = vrcp.f32 %v2233_v15  ;;  %vm6107_vm3 = vcmask 261120   ;;  %v6112_v5 = vmov 0 }
 0x131   : > { %v3536_v7 = vpop.eup %3535  ;;  %vm4737_vm8 = vmand %vm4247_vm9, %vm6100_vm7  ;;  %1695 = vrot.lane.b32.xlu0 %v1675_v45, %s6023_s27  ;;  %v1680_v52 = vsel %vm1362_vm4, 1, %v6016_v37  ;;  %vm6104_vm7 = vcmp.gt.f32.partialorder %v6058_v43, 0.5  ;;  %v1248_v38 = vrot.slane %v6115_v16, %v3809_v26  ;;  %v6125_v54 = vmov 0 }
 0x132   : > { %v6102_v17 = vsel %vm4737_vm8, 4294967295, %v6101_v17  ;;  %v3538_v61 = vpop.eup %3537  ;;  %v2259_v42 = vmul.f32 %v3536_v7, %v4467_v34  ;;  %vm1361_vm1 = vmand %vm4722_vm6, %vm5951_vm15  ;;  %vm6108_vm15 = vcmp.le.f32.partialorder %v6099_v9, 16.0  ;;  %v6128_v7 = vld [vmem:[#allocation19_spill] sm:$0xff] }
 0x133   : > { %v3540_v10 = vpop.eup %3539  ;;  %v2260_v59 = vmul.f32 %v3538_v61, %v4482_v20  ;;  %vm4754_vm2 = vmand %vm4247_vm9, %vm6104_vm7  ;;  %v6109_v20 = vld [vmem:[#allocation17_spill] sm:$0xff]  ;;  %v1679_v36 = vsel %vm1361_vm1, 1, %v6016_v37  ;;  %vm6111_vm7 = vcmp.gt.f32.partialorder %v3950_v60, 0.5  ;;  %vm6117_vm1 = vcmp.gt.f32.partialorder %v6058_v43, 0.5 }
 0x134   : > { %v6106_v33 = vsel %vm4754_vm2, 4294967295, %v6105_v33  ;;  %v3542_v34 = vpop.eup %3541  ;;  %3338 = vmatmul.mubr.msk.f32.gmra.mrb[8].mxu0 %vm6107_vm3, %v2259_v42  ;;  %1705 = vrot.lane.b32.xlu1 %v1680_v52, %s6023_s27  ;;  %vm1360_vm11 = vmand %vm4737_vm8, %vm6108_vm15  ;;  %v2261_v46 = vmul.f32 %v3540_v10, %v4489_v56  ;;  %v6118_v56 = vmov 0  ;;  %v1280_v15 = vsub.f32 %v1248_v38, %v4820_v47  ;;  %v6133_v10 = vld [vmem:[#allocation22_spill] sm:$0xff] }
 0x135   : > { %vm6110_vm6 = vmmov %vm6107_vm3  ;;  %1703 = vrot.lane.b32.xlu0 %v1679_v36, %s6023_s27  ;;  %vm6114_vm3 = vcmp.le.f32.partialorder %v6103_v50, 16.0  ;;  %v2262_v2 = vmul.f32 %v3542_v34, %v4529_v6  ;;  %v1678_v27 = vsel %vm1360_vm11, 1, %v6016_v37  ;;  %vm5962_vm11 = vcmp.le.f32.partialorder %v6122_v28, 16.0 }
 0x136   : > { %3340 = vmatprep.mubr.msk.f32.mxu0 %vm6110_vm6, %v2260_v59  ;;  %vm4771_vm0 = vmand %vm4316_vm10, %vm6111_vm7  ;;  %v6136_v52 = vmov 0  ;;  %v1296_v36 = vand.u32 2147483647, %v1280_v15 }
 0x137   : > { %v6113_v5 = vsel %vm4771_vm0, 4294967295, %v6112_v5  ;;  %vm1359_vm15 = vmand %vm4754_vm2, %vm6114_vm3  ;;  %vm6121_vm3 = vcmp.le.f32.partialorder %v6109_v20, 16.0 }
 0x138   : > { %vm4790_vm7 = vmand %vm4316_vm10, %vm6117_vm1  ;;  %v3544_v21 = vpop.eup %3543  ;;  %1701 = vrot.lane.b32.xlu1 %v1678_v27, %s6023_s27  ;;  %v1677_v62 = vsel %vm1359_vm15, 1, %v6016_v37  ;;  %vm6124_vm1 = vcmp.gt.f32.partialorder %v3950_v60, 0.5  ;;  %vm6129_vm15 = vcmp.gt.f32.partialorder %v6058_v43, 0.5 }
 0x139   : > { %v6119_v56 = vsel %vm4790_vm7, 4294967295, %v6118_v56  ;;  %vm6120_vm4 = vmmov %vm6110_vm6  ;;  %v3546_v6 = vpop.eup %3545  ;;  %1699 = vrot.lane.b32.xlu0 %v1677_v62, %s6023_s27  ;;  %v2263_v24 = vmul.f32 %v3544_v21, %v4537_v1  ;;  %v6130_v1 = vmov 0 }
 0x13a   : > { %3341 = vmatmul.mubr.msk.f32.gmra.mrb[10].mxu0 %vm6120_vm4, %v2261_v46  ;;  %vm1364_vm6 = vmand %vm4771_vm0, %vm6121_vm3  ;;  %v3548_v14 = vpop.eup %3547  ;;  %v2264_v45 = vmul.f32 %v3546_v6, %v4550_v39  ;;  %v4843_v39 = vld [vmem:[%s5869_s7] sm:$0xff] }
 0x13b   : > { %vm6123_vm2 = vmmov %vm6120_vm4  ;;  %vm6127_vm4 = vcmp.le.f32.partialorder %v6116_v55, 16.0  ;;  %v1682_v61 = vsel %vm1364_vm6, 1, %v6016_v37  ;;  %v1279_v42 = vsub.f32 %v1248_v38, %v4843_v39  ;;  %v2265_v34 = vmul.f32 %v3548_v14, %v4559_v57  ;;  %v6139_v46 = vld [vmem:[#allocation14_spill] sm:$0xff]  ;;  %v6147_v14 = vld [vmem:[#allocation15_spill] sm:$0xff] }
 0x13c   : > { %3343 = vmatprep.mubr.msk.f32.mxu0 %vm6123_vm2, %v2262_v2  ;;  %vm4807_vm8 = vmand %vm4407_vm12, %vm6124_vm1  ;;  %1709 = vrot.lane.b32.xlu1 %v1682_v61, %s6023_s27  ;;  %v1252_v16 = vrot.slane %v6139_v46, %v3809_v26  ;;  %v6142_v2 = vmov 0 }
 0x13d   : > { %v6126_v54 = vsel %vm4807_vm8, 4294967295, %v6125_v54  ;;  %vm1363_vm3 = vmand %vm4790_vm7, %vm6127_vm4  ;;  %v1295_v57 = vand.u32 2147483647, %v1279_v42 }
 0x13e   : > { %vm4830_vm1 = vmand %vm4407_vm12, %vm6129_vm15  ;;  %v1681_v59 = vsel %vm1363_vm3, 1, %v6016_v37  ;;  %v1281_v6 = vsub.f32 %v1252_v16, %v4843_v39 }
 0x13f   : > { %v6131_v1 = vsel %vm4830_vm1, 4294967295, %v6130_v1  ;;  %vm6132_vm4 = vmmov %vm6123_vm2  ;;  %1707 = vrot.lane.b32.xlu0 %v1681_v59, %s6023_s27 }
 0x140   : > { %3344 = vmatmul.mubr.msk.f32.gmra.mrb[12].mxu0 %vm6132_vm4, %v2263_v24  ;;  %vm1366_vm2 = vmand %vm4807_vm8, %vm5962_vm11  ;;  %vm6138_vm11 = vcmp.le.f32.partialorder %v6128_v7, 16.0  ;;  %vm6145_vm8 = vcmask 261120   ;;  %v1297_v42 = vand.u32 2147483647, %v1281_v6 }
 0x141   : > { %vm6134_vm15 = vmmov %vm6132_vm4  ;;  %vm6135_vm4 = vcmp.gt.f32.partialorder %v3950_v60, 0.5  ;;  %v6140_v60 = vld [vmem:[#allocation21_spill] sm:$0xff]  ;;  %v1684_v38 = vsel %vm1366_vm2, 1, %v6016_v37 }
 0x142   : > { %3346 = vmatprep.mubr.msk.f32.mxu0 %vm6134_vm15, %v2264_v45  ;;  %vm4853_vm7 = vmand %vm4433_vm14, %vm6135_vm4  ;;  %vm5967_vm3 = vcmp.le.f32.partialorder %v6140_v60, 16.0  ;;  %vm6141_vm15 = vcmp.gt.f32.partialorder %v6058_v43, 0.5  ;;  %1713 = vrot.lane.b32.xlu1 %v1684_v38, %s6023_s27  ;;  %v1282_v43 = vsub.f32 %v1252_v16, %v4820_v47  ;;  %v1256_v45 = vrot.slane %v6147_v14, %v3809_v26  ;;  %v6148_v38 = vld [vmem:[#allocation16_spill] sm:$0xff] }
 0x143   : > { %v6137_v52 = vsel %vm4853_vm7, 4294967295, %v6136_v52  ;;  %vm1365_vm6 = vmand %vm4830_vm1, %vm6138_vm11  ;;  %vm6146_vm11 = vcmp.le.f32.partialorder %v6133_v10, 16.0 }
 0x144   : > { %vm4871_vm4 = vmand %vm4433_vm14, %vm6141_vm15  ;;  %3347 = vmatmul.mubr.msk.f32.gmra.mrb[14].mxu0 %vm6145_vm8, %v2265_v34  ;;  %v1683_v27 = vsel %vm1365_vm6, 1, %v6016_v37  ;;  %vm1312_vm15 = vcmp.lt.f32.partialorder %v1296_v36, 0.5  ;;  %vm1311_vm8 = vcmp.lt.f32.partialorder %v1295_v57, 0.5  ;;  %vm1326_vm6 = vcmp.gt.f32.partialorder %v4191_v44, 0.5 }
 0x145   : > { %v6143_v2 = vsel %vm4871_vm4, 4294967295, %v6142_v2  ;;  %vm1368_vm1 = vmand %vm4853_vm7, %vm6146_vm11  ;;  %1711 = vrot.lane.b32.xlu0 %v1683_v27, %s6023_s27  ;;  %v1518_v24 = vsel %vm1312_vm15, 1, %v6016_v37  ;;  %v1298_v15 = vand.u32 2147483647, %v1282_v43  ;;  %v1517_v61 = vsel %vm1311_vm8, 1, %v6016_v37 }
 0x146   : > { %6144 = vst [vmem:[#allocation3_spill] sm:$0xff] %v6143_v2  ;;  %vm1367_vm2 = vmand %vm4871_vm4, %vm5967_vm3  ;;  %v1686_v21 = vsel %vm1368_vm1, 1, %v6016_v37  ;;  %vm1325_vm1 = vcmp.gt.f32.partialorder %v4199_v22, 0.5  ;;  %v1596_v59 = vsel %vm1326_vm6, 1, %v6016_v37  ;;  %v1284_v34 = vsub.f32 %v1256_v45, %v4820_v47 }
 0x147   : > { %1717 = vrot.lane.b32.xlu1 %v1686_v21, %s6023_s27  ;;  %v1685_v62 = vsel %vm1367_vm2, 1, %v6016_v37  ;;  %vm1314_vm11 = vcmp.lt.f32.partialorder %v1298_v15, 0.5  ;;  %v1595_v44 = vsel %vm1325_vm1, 1, %v6016_v37  ;;  %vm1313_vm2 = vcmp.lt.f32.partialorder %v1297_v42, 0.5 }
 0x148   : > { %v1283_v46 = vsub.f32 %v1256_v45, %v4843_v39  ;;  %v1520_v16 = vsel %vm1314_vm11, 1, %v6016_v37  ;;  %vm1328_vm15 = vcmp.gt.f32.partialorder %v1296_v36, 0.5  ;;  %v1300_v22 = vand.u32 2147483647, %v1284_v34  ;;  %v6149_v45 = vld [vmem:[#allocation18_spill] sm:$0xff]  ;;  %v4923_v34 = vpop.permute.xlu1 %1371 }
 0x149   : > { %1715 = vrot.lane.b32.xlu0 %v1685_v62, %s6023_s27  ;;  %v1260_v27 = vrot.slane %v6148_v38, %v3809_v26  ;;  %v1519_v43 = vsel %vm1313_vm2, 1, %v6016_v37  ;;  %vm1327_vm8 = vcmp.gt.f32.partialorder %v1295_v57, 0.5  ;;  %v1598_v6 = vsel %vm1328_vm15, 1, %v6016_v37 }
 0x14a   : > { %v1299_v21 = vand.u32 2147483647, %v1283_v46  ;;  %vm1316_vm6 = vcmp.lt.f32.partialorder %v1300_v22, 0.5  ;;  %vm1330_vm11 = vcmp.gt.f32.partialorder %v1298_v15, 0.5  ;;  %vm1329_vm2 = vcmp.gt.f32.partialorder %v1297_v42, 0.5 }
 0x14b   : > { %1541 = vrot.lane.b32.xlu1 %v1518_v24, %s3636_s22  ;;  %v1286_v62 = vsub.f32 %v1260_v27, %v4820_v47  ;;  %v1597_v24 = vsel %vm1327_vm8, 1, %v6016_v37  ;;  %v1285_v36 = vsub.f32 %v1260_v27, %v4843_v39  ;;  %v1522_v14 = vsel %vm1316_vm6, 1, %v6016_v37 }
 0x14c   : > { %vm1315_vm1 = vcmp.lt.f32.partialorder %v1299_v21, 0.5  ;;  %v1600_v46 = vsel %vm1330_vm11, 1, %v6016_v37  ;;  %v1599_v15 = vsel %vm1329_vm2, 1, %v6016_v37  ;;  %v4933_v27 = vpop.permute.xlu1 %1373  ;;  %vm1332_vm6 = vcmp.gt.f32.partialorder %v1300_v22, 0.5 }
 0x14d   : > { %1539 = vrot.lane.b32.xlu0 %v1517_v61, %s3636_s22  ;;  %v1302_v57 = vand.u32 2147483647, %v1286_v62  ;;  %v1264_v61 = vrot.slane %v6149_v45, %v3809_v26  ;;  %vm6157_vm3 = vnez %v6019_v4 }
 0x14f   : > { %1617 = vrot.lane.b32.xlu1 %v1596_v59, %s3637_s28  ;;  %v1521_v59 = vsel %vm1315_vm1, 1, %v6016_v37  ;;  %vm1318_vm15 = vcmp.lt.f32.partialorder %v1302_v57, 0.5  ;;  %v1287_v26 = vsub.f32 %v1264_v61, %v4843_v39  ;;  %vm1331_vm1 = vcmp.gt.f32.partialorder %v1299_v21, 0.5 }
 0x150   : > { %v1524_v38 = vsel %vm1318_vm15, 1, %v6016_v37  ;;  %v1601_v39 = vsel %vm1331_vm1, 1, %v6016_v37  ;;  %v4941_v62 = vpop.permute.xlu1 %1529  ;;  %vm1334_vm15 = vcmp.gt.f32.partialorder %v1302_v57, 0.5 }
 0x151   : > { %1615 = vrot.lane.b32.xlu0 %v1595_v44, %s3637_s28  ;;  %v1301_v44 = vand.u32 2147483647, %v1285_v36  ;;  %6150 = vst [vmem:[#allocation2_spill] sm:$0xff] %v4941_v62  ;;  %v1604_v36 = vsel %vm1334_vm15, 1, %v6016_v37  ;;  %vm6152_vm15 = vnez %v6013_v53  ;;  %v6160_v53 = vmov 0 }
 0x153   : > { %1545 = vrot.lane.b32.xlu1 %v1520_v16, %s3636_s22  ;;  %v1288_v16 = vsub.f32 %v1264_v61, %v4820_v47  ;;  %vm1317_vm8 = vcmp.lt.f32.partialorder %v1301_v44, 0.5  ;;  %v1303_v47 = vand.u32 2147483647, %v1287_v26 }
 0x155   : > { %1543 = vrot.lane.b32.xlu0 %v1519_v43, %s3636_s22  ;;  %v1304_v42 = vand.u32 2147483647, %v1288_v16  ;;  %v1523_v43 = vsel %vm1317_vm8, 1, %v6016_v37  ;;  %vm1319_vm2 = vcmp.lt.f32.partialorder %v1303_v47, 0.5  ;;  %vm1333_vm8 = vcmp.gt.f32.partialorder %v1301_v44, 0.5 }
 0x156   : > { %v1525_v21 = vsel %vm1319_vm2, 1, %v6016_v37  ;;  %v1603_v45 = vsel %vm1333_vm8, 1, %v6016_v37  ;;  %vm1335_vm1 = vcmp.gt.f32.partialorder %v1303_v47, 0.5  ;;  %vm5983_vm2 = vcmp.ne.s32.totalorder %v4933_v27, 0 }
 0x157   : > { %1621 = vrot.lane.b32.xlu1 %v1598_v6, %s3637_s28  ;;  %v1602_v6 = vsel %vm1332_vm6, 1, %v6016_v37  ;;  %vm1320_vm11 = vcmp.lt.f32.partialorder %v1304_v42, 0.5  ;;  %vm1336_vm6 = vcmp.gt.f32.partialorder %v1304_v42, 0.5  ;;  %vm1380_vm0 = vmand %vm4178_vm5, %vm5983_vm2 }
 0x158   : > { %v1526_v22 = vsel %vm1320_vm11, 1, %v6016_v37  ;;  %vm5978_vm11 = vcmp.ne.s32.totalorder %v4923_v34, 0  ;;  %vm5023_vm12 = vmand %vm4284_vm13, %vm5983_vm2 }
 0x159   : > { %1619 = vrot.lane.b32.xlu0 %v1597_v24, %s3637_s28  ;;  %v4945_v24 = vpop.permute.xlu0 %1527  ;;  %vm4981_vm8 = vmand %vm6152_vm15, %vm5978_vm11 }
 0x15a   : > { %6151 = vst [vmem:[#allocation5_spill] sm:$0xff] %v4945_v24  ;;  %vm5001_vm4 = vmand %vm6157_vm3, %vm5978_vm11  ;;  %v6158_v24 = vmov 0 }
 0x15b   : > { %1549 = vrot.lane.b32.xlu1 %v1522_v14, %s3636_s22  ;;  %v6159_v24 = vsel %vm5001_vm4, 4294967295, %v6158_v24 }
 0x15d   : > { %1547 = vrot.lane.b32.xlu0 %v1521_v59, %s3636_s22  ;;  %v1606_v59 = vsel %vm1336_vm6, 1, %v6016_v37  ;;  %vm4989_vm6 = vmand %vm4178_vm5, %vm5978_vm11 }
 0x15f   : > { %1625 = vrot.lane.b32.xlu1 %v1600_v46, %s3637_s28  ;;  %v1605_v46 = vsel %vm1335_vm1, 1, %v6016_v37  ;;  %vm1378_vm1 = vmand %vm6152_vm15, %vm5983_vm2 }
 0x160   : > { %vm5013_vm15 = vmand %vm6157_vm3, %vm5983_vm2 }
 0x161   : > { %1623 = vrot.lane.b32.xlu0 %v1599_v15, %s3637_s28  ;;  %v6161_v53 = vsel %vm5013_vm15, 4294967295, %v6160_v53  ;;  %vm5031_vm3 = vmand %vm4247_vm9, %vm5983_vm2 }
 0x162   : > { %v6165_v12 = vsel %vm5031_vm3, 4294967295, %v6164_v12 }
 0x163   : > { %1553 = vrot.lane.b32.xlu1 %v1524_v38, %s3636_s22 }
 0x165   : > { %1551 = vrot.lane.b32.xlu0 %v1523_v43, %s3636_s22 }
 0x167   : > { %1629 = vrot.lane.b32.xlu1 %v1602_v6, %s3637_s28 }
 0x169   : > { %1627 = vrot.lane.b32.xlu0 %v1601_v39, %s3637_s28 }
 0x16a   : > { %v1434_v14 = vpop.permute.xlu1 %1433 }
 0x16b   : > { %1557 = vrot.lane.b32.xlu1 %v1526_v22, %s3636_s22  ;;  %v1432_v61 = vpop.permute.xlu0 %1431  ;;  %vm1464_vm7 = vcmp.ne.s32.totalorder %v1434_v14, 0  ;;  %v6162_v14 = vmov 0 }
 0x16c   : > { %vm1463_vm14 = vcmp.ne.s32.totalorder %v1432_v61, 0  ;;  %v6163_v14 = vsel %vm5023_vm12, 4294967295, %v6162_v14  ;;  %vm1480_vm5 = vmor %vm1378_vm1, %vm1464_vm7  ;;  %vm6170_vm1 = vcmp.ne.s32.totalorder %v4923_v34, 0  ;;  %v6223_v61 = vmov 0 }
 0x16d   : > { %1555 = vrot.lane.b32.xlu0 %v1525_v21, %s3636_s22  ;;  %vm5039_vm10 = vmor %vm4981_vm8, %vm1463_vm14  ;;  %s3638_s22 = smov 126  }
 0x16e   : > { %v1438_v57 = vpop.permute.xlu1 %1437  ;;  %vm5051_vm2 = vmand %vm4247_vm9, %vm6170_vm1 }
 0x16f   : > { %1633 = vrot.lane.b32.xlu1 %v1604_v36, %s3637_s28  ;;  %v1436_v44 = vpop.permute.xlu0 %1435  ;;  %vm1466_vm11 = vcmp.ne.s32.totalorder %v1438_v57, 0  ;;  %vm6173_vm3 = vmmov %vm6170_vm1  ;;  %vm6184_vm1 = vcmp.ne.s32.totalorder %v4933_v27, 0 }
 0x170   : > { %vm1465_vm4 = vcmp.ne.s32.totalorder %v1436_v44, 0  ;;  %vm5043_vm12 = vmor %vm1380_vm0, %vm1466_vm11  ;;  %v6171_v44 = vmov 0  ;;  %vm6178_vm11 = vcmp.le.f32.partialorder %v3997_v19, 16.0 }
 0x171   : > { %1631 = vrot.lane.b32.xlu0 %v1603_v45, %s3637_s28  ;;  %v6172_v44 = vsel %vm5051_vm2, 4294967295, %v6171_v44  ;;  %vm5059_vm14 = vmand %vm4284_vm13, %vm6173_vm3  ;;  %v6174_v45 = vmov 0  ;;  %vm6181_vm13 = vnez %v6161_v53  ;;  %v6192_v53 = vmov 0 }
 0x172   : > { %v1442_v16 = vpop.permute.xlu1 %1441  ;;  %v6175_v45 = vsel %vm5059_vm14, 4294967295, %v6174_v45  ;;  %vm5067_vm0 = vmor %vm4989_vm6, %vm1465_vm4  ;;  %vm6185_vm4 = vnez %v6033_v31  ;;  %v6206_v31 = vmov 0 }
 0x173   : > { %1637 = vrot.lane.b32.xlu1 %v1606_v59, %s3637_s28  ;;  %v1440_v15 = vpop.permute.xlu0 %1439  ;;  %vm1468_vm15 = vcmp.ne.s32.totalorder %v1442_v16, 0  ;;  %vm5073_vm8 = vmand %vm1480_vm5, %vm6178_vm11  ;;  %vm6188_vm5 = vnez %v6159_v24  ;;  %v6198_v24 = vmov 0 }
 0x174   : > { %vm1467_vm7 = vcmp.ne.s32.totalorder %v1440_v15, 0  ;;  %v6180_v63 = vsel %vm5073_vm8, 4294967295, %v6179_v63  ;;  %vm5079_vm3 = vmor %vm6181_vm13, %vm1468_vm15  ;;  %vm6191_vm15 = vcmp.le.f32.partialorder %v6057_v0, 16.0  ;;  %vm6194_vm8 = vnez %v6163_v14 }
 0x175   : > { %1635 = vrot.lane.b32.xlu0 %v1605_v46, %s3637_s28  ;;  %v6183_v11 = vsel %vm5079_vm3, 4294967295, %v6182_v11  ;;  %vm5087_vm6 = vmand %vm6185_vm4, %vm6184_vm1  ;;  %v6186_v46 = vmov 0  ;;  %vm6201_vm3 = vcmp.le.f32.partialorder %v6062_v30, 16.0  ;;  %v6208_v30 = vmov 0 }
 0x176   : > { %v1446_v26 = vpop.permute.xlu1 %1445  ;;  %v6187_v46 = vsel %vm5087_vm6, 4294967295, %v6186_v46  ;;  %vm5095_vm11 = vmor %vm6188_vm5, %vm1467_vm7  ;;  %vm6197_vm7 = vcmp.ne.s32.totalorder %v4923_v34, 0  ;;  %v6211_v14 = vmov 0  ;;  %v6250_v15 = vmov 0 }
 0x177   : > { %v4959_v38 = vpop.permute.xlu0 %1443  ;;  %vm5103_vm13 = vmand %vm5039_vm10, %vm6191_vm15  ;;  %vm1470_vm1 = vcmp.ne.s32.totalorder %v1446_v26, 0  ;;  %vm6200_vm10 = vnez %v6065_v29  ;;  %v6202_v26 = vmov 0 }
 0x178   : > { %v6193_v53 = vsel %vm5103_vm13, 4294967295, %v6192_v53  ;;  %vm5117_vm5 = vmand %vm6185_vm4, %vm6197_vm7  ;;  %vm6204_vm7 = vcmp.ne.s32.totalorder %v4933_v27, 0 }
 0x179   : > { %v6199_v24 = vsel %vm5117_vm5, 4294967295, %v6198_v24 }
 0x17a   : > { %v1450_v42 = vpop.permute.xlu1 %1449 }
 0x17b   : > { %v4961_v43 = vpop.permute.xlu0 %1447  ;;  %vm1472_vm9 = vcmp.ne.s32.totalorder %v1450_v42, 0  ;;  %v6189_v42 = vmov 0 }
 0x17c   : > { %v6190_v42 = vsel %vm5095_vm11, 4294967295, %v6189_v42  ;;  %vm5109_vm6 = vmor %vm6194_vm8, %vm1472_vm9  ;;  %vm1469_vm8 = vcmp.ne.s32.totalorder %v4959_v38, 0  ;;  %vm1471_vm4 = vcmp.ne.s32.totalorder %v4961_v43, 0  ;;  %v6215_v38 = vmov 0 }
 0x17d   : > { %vm5127_vm9 = vmand %vm5043_vm12, %vm6201_vm3  ;;  %vm6210_vm12 = vnez %v6165_v12  ;;  %v6218_v43 = vmov 0  ;;  %v6220_v12 = vmov 0 }
 0x17e   : > { %v4963_v47 = vpop.permute.xlu1 %1453  ;;  %v6203_v26 = vsel %vm5127_vm9, 4294967295, %v6202_v26  ;;  %vm5147_vm3 = vmor %vm6210_vm12, %vm1470_vm1  ;;  %vm6213_vm9 = vnez %v6072_v58 }
 0x17f   : > { %v4965_v6 = vpop.permute.xlu0 %1451  ;;  %v6212_v14 = vsel %vm5147_vm3, 4294967295, %v6211_v14  ;;  %vm6237_vm3 = vnez %v6187_v46 }
 0x182   : > { %v4967_v39 = vpop.permute.xlu1 %1457 }
 0x183   : > { %v4969_v22 = vpop.permute.xlu0 %1455 }
 0x186   : > { %v4971_v21 = vpop.permute.xlu1 %1461 }
 0x187   : > { %v4974_v36 = vpop.permute.xlu0 %1459 }
 0x18a   : > { %v1534_v59 = vpop.permute.xlu1 %1533 }
 0x18b   : > { %v1532_v62 = vpop.permute.xlu0 %1531  ;;  %vm1562_vm14 = vcmp.ne.s32.totalorder %v1534_v59, 0  ;;  %v6195_v59 = vmov 0 }
 0x18c   : > { %v6196_v59 = vsel %vm5109_vm6, 4294967295, %v6195_v59  ;;  %vm1561_vm11 = vcmp.ne.s32.totalorder %v1532_v62, 0  ;;  %vm1578_vm15 = vmand %vm6200_vm10, %vm1562_vm14  ;;  %vm6205_vm6 = vnez %v6040_v18  ;;  %v6230_v18 = vmov 0 }
 0x18d   : > { %vm5137_vm5 = vmand %vm6205_vm6, %vm6204_vm7  ;;  %vm6214_vm7 = vcmp.le.f32.partialorder %v6069_v41, 16.0 }
 0x18e   : > { %v5017_v2 = vpop.permute.xlu1 %1537  ;;  %v6207_v31 = vsel %vm5137_vm5, 4294967295, %v6206_v31  ;;  %vm1577_vm10 = vmand %vm6213_vm9, %vm1561_vm11 }
 0x18f   : > { %v5035_v4 = vpop.permute.xlu0 %1535  ;;  %vm5157_vm5 = vmand %vm5067_vm0, %vm6214_vm7  ;;  %vm6222_vm0 = vnez %v6172_v44  ;;  %vm6225_vm7 = vnez %v6175_v45  ;;  %v6238_v44 = vmov 0 }
 0x190   : > { %v6216_v38 = vsel %vm5157_vm5, 4294967295, %v6215_v38  ;;  %vm5176_vm12 = vmor %vm6222_vm0, %vm1469_vm8  ;;  %vm1473_vm8 = vcmp.ne.s32.totalorder %v4965_v6, 0  ;;  %vm6232_vm0 = vcmp.ne.s32.totalorder %v4933_v27, 0  ;;  %v6320_v6 = vld [vmem:[#allocation3_spill] sm:$0xff] }
 0x191   : > { %v6224_v61 = vsel %vm5176_vm12, 4294967295, %v6223_v61 }
 0x192   : > { %v5063_v16 = vpop.permute.xlu1 %1609 }
 0x193   : > { %v5091_v19 = vpop.permute.xlu0 %1607 }
 0x196   : > { %v1614_v0 = vpop.permute.xlu1 %1613 }
 0x197   : > { %vm1642_vm13 = vcmp.ne.s32.totalorder %v1614_v0, 0  ;;  %v1612_v62 = vpop.permute.xlu0 %1611 }
 0x198   : > { %vm5141_vm14 = vmand %vm1578_vm15, %vm1642_vm13  ;;  %vm1641_vm2 = vcmp.ne.s32.totalorder %v1612_v62, 0  ;;  %vm1474_vm13 = vcmp.ne.s32.totalorder %v4963_v47, 0  ;;  %vm6217_vm15 = vcmp.ne.s32.totalorder %v4923_v34, 0 }
 0x199   : > { %v6209_v30 = vsel %vm5141_vm14, 4294967295, %v6208_v30  ;;  %vm5166_vm1 = vmand %vm6205_vm6, %vm6217_vm15  ;;  %vm6228_vm15 = vcmp.le.f32.partialorder %v6076_v48, 16.0 }
 0x19a   : > { %v6219_v43 = vsel %vm5166_vm1, 4294967295, %v6218_v43  ;;  %vm5170_vm11 = vmand %vm1577_vm10, %vm1641_vm2  ;;  %v1690_v41 = vpop.permute.xlu1 %1689  ;;  %vm6229_vm2 = vnez %v6183_v11  ;;  %vm6241_vm1 = vcmp.le.f32.partialorder %v6081_v51, 16.0  ;;  %v6268_v11 = vmov 0 }
 0x19b   : > { %v6221_v12 = vsel %vm5170_vm11, 4294967295, %v6220_v12  ;;  %vm5182_vm14 = vmor %vm6225_vm7, %vm1471_vm4  ;;  %vm1720_vm6 = vcmp.ne.s32.totalorder %v1690_v41, 0  ;;  %vm6233_vm11 = vnez %v6043_v3  ;;  %vm6236_vm4 = vnez %v6056_v13  ;;  %v1688_v48 = vpop.permute.xlu0 %1687 }
 0x19c   : > { %vm5190_vm10 = vmand %vm6229_vm2, %vm6228_vm15  ;;  %vm6240_vm2 = vnez %v6180_v63  ;;  %vm1719_vm5 = vcmp.ne.s32.totalorder %v1688_v48, 0  ;;  %v6255_v3 = vmov 0 }
 0x19d   : > { %v6231_v18 = vsel %vm5190_vm10, 4294967295, %v6230_v18  ;;  %vm5199_vm12 = vmand %vm6233_vm11, %vm6232_vm0  ;;  %vm6242_vm0 = vnez %v6190_v42 }
 0x19e   : > { %vm1736_vm7 = vmor %vm6236_vm4, %vm1720_vm6  ;;  %vm6245_vm4 = vcmp.ne.s32.totalorder %v4923_v34, 0  ;;  %v1694_v51 = vpop.permute.xlu1 %1693 }
 0x19f   : > { %vm5207_vm15 = vmor %vm6237_vm3, %vm1474_vm13  ;;  %vm6248_vm13 = vnez %v6061_v23  ;;  %v1692_v34 = vpop.permute.xlu0 %1691 }
 0x1a0   : > { %v6239_v44 = vsel %vm5207_vm15, 4294967295, %v6238_v44  ;;  %vm1752_vm10 = vmor %vm1736_vm7, %vm6240_vm2  ;;  %vm1722_vm15 = vcmp.ne.s32.totalorder %v1694_v51, 0 }
 0x1a1   : > { %vm5217_vm9 = vmand %vm6242_vm0, %vm6241_vm1  ;;  %v1768_v45 = vsel %vm1752_vm10, 1, %v6016_v37  ;;  %vm6249_vm1 = vnez %v6199_v24  ;;  %vm6252_vm0 = vnez %v6193_v53  ;;  %vm1475_vm10 = vcmp.ne.s32.totalorder %v4969_v22, 0 }
 0x1a2   : > { %vm5226_vm3 = vmand %vm6233_vm11, %vm6245_vm4  ;;  %1785 = vrot.lane.b32.xlu1 %v1768_v45, %s3638_s22  ;;  %vm6253_vm11 = vcmp.le.f32.partialorder %v6087_v25, 16.0  ;;  %v6260_v25 = vmov 0  ;;  %v6284_v53 = vmov 0 }
 0x1a3   : > { %vm1735_vm7 = vmor %vm6248_vm13, %vm1719_vm5  ;;  %vm6254_vm5 = vnez %v6196_v59 }
 0x1a4   : > { %vm5235_vm2 = vmor %vm6249_vm1, %vm1473_vm8  ;;  %vm6257_vm8 = vnez %v6065_v29  ;;  %v6264_v29 = vmov 0 }
 0x1a5   : > { %v6251_v15 = vsel %vm5235_vm2, 4294967295, %v6250_v15  ;;  %vm1751_vm6 = vmor %vm1735_vm7, %vm6252_vm0  ;;  %vm6258_vm7 = vcmp.ne.s32.totalorder %v4967_v39, 0  ;;  %vm6259_vm0 = vnez %v6207_v31  ;;  %vm1721_vm2 = vcmp.ne.s32.totalorder %v1692_v34, 0  ;;  %v1698_v39 = vpop.permute.xlu1 %1697 }
 0x1a6   : > { %vm5246_vm4 = vmand %vm6254_vm5, %vm6253_vm11  ;;  %v1767_v63 = vsel %vm1751_vm6, 1, %v6016_v37  ;;  %vm6262_vm11 = vnez %v6203_v26  ;;  %vm1478_vm6 = vcmp.ne.s32.totalorder %v4971_v21, 0 }
 0x1a7   : > { %v6256_v3 = vsel %vm5246_vm4, 4294967295, %v6255_v3  ;;  %vm1738_vm1 = vmor %vm6257_vm8, %vm1722_vm15  ;;  %1783 = vrot.lane.b32.xlu0 %v1767_v63, %s3638_s22  ;;  %vm6263_vm4 = vcmp.le.f32.partialorder %v6093_v35, 16.0  ;;  %vm6266_vm8 = vnez %v6072_v58  ;;  %v1696_v35 = vpop.permute.xlu0 %1695 }
 0x1a8   : > { %vm5258_vm13 = vmor %vm6259_vm0, %vm6258_vm7 }
 0x1a9   : > { %v6261_v25 = vsel %vm5258_vm13, 4294967295, %v6260_v25  ;;  %vm1754_vm5 = vmor %vm1738_vm1, %vm6262_vm11  ;;  %vm6267_vm1 = vnez %v6219_v43  ;;  %vm6270_vm11 = vnez %v6216_v38  ;;  %vm6271_vm13 = vcmp.le.f32.partialorder %v6099_v9, 16.0 }
 0x1aa   : > { %vm5269_vm15 = vmand %vm5182_vm14, %vm6263_vm4  ;;  %v1770_v22 = vsel %vm1754_vm5, 1, %v6016_v37  ;;  %vm1724_vm4 = vcmp.ne.s32.totalorder %v1698_v39, 0  ;;  %vm1477_vm5 = vcmp.ne.s32.totalorder %v4974_v36, 0  ;;  %v1706_v36 = vpop.permute.xlu1 %1705 }
 0x1ab   : > { %v6265_v29 = vsel %vm5269_vm15, 4294967295, %v6264_v29  ;;  %vm1737_vm7 = vmor %vm6266_vm8, %vm1721_vm2  ;;  %1789 = vrot.lane.b32.xlu1 %v1770_v22, %s3638_s22  ;;  %vm6272_vm15 = vnez %v6212_v14  ;;  %v1704_v59 = vpop.permute.xlu0 %1703 }
 0x1ac   : > { %vm5279_vm0 = vmor %vm6267_vm1, %vm1475_vm10  ;;  %vm6275_vm10 = vnez %v6078_v49  ;;  %vm6278_vm1 = vnez %v6231_v18 }
 0x1ad   : > { %v6269_v11 = vsel %vm5279_vm0, 4294967295, %v6268_v11  ;;  %vm1753_vm14 = vmor %vm1737_vm7, %vm6270_vm11  ;;  %vm6279_vm11 = vcmp.le.f32.partialorder %v6103_v50, 16.0  ;;  %vm6280_vm0 = vnez %v6224_v61 }
 0x1ae   : > { %vm5290_vm2 = vmand %vm6272_vm15, %vm6271_vm13  ;;  %v1769_v21 = vsel %vm1753_vm14, 1, %v6016_v37  ;;  %vm1723_vm15 = vcmp.ne.s32.totalorder %v1696_v35, 0  ;;  %vm6283_vm14 = vnez %v6085_v32  ;;  %v1702_v0 = vpop.permute.xlu1 %1701 }
 0x1af   : > { %vm1740_vm8 = vmor %vm6275_vm10, %vm1724_vm4  ;;  %1787 = vrot.lane.b32.xlu0 %v1769_v21, %s3638_s22  ;;  %vm6293_vm10 = vnez %v6251_v15  ;;  %v1700_v31 = vpop.permute.xlu0 %1699 }
 0x1b0   : > { %vm5300_vm7 = vmor %vm5199_vm12, %vm1478_vm6 }
 0x1b1   : > { %vm1756_vm13 = vmor %vm1740_vm8, %vm6278_vm1  ;;  %vm1728_vm1 = vcmp.ne.s32.totalorder %v1706_v36, 0 }
 0x1b2   : > { %vm5311_vm4 = vmand %vm6280_vm0, %vm6279_vm11  ;;  %v1772_v42 = vsel %vm1756_vm13, 1, %v6016_v37  ;;  %vm6286_vm0 = vcmp.le.f32.partialorder %v6109_v20, 16.0  ;;  %vm6287_vm11 = vnez %v6239_v44  ;;  %vm6290_vm13 = vnez %v6090_v8  ;;  %v1710_v14 = vpop.permute.xlu1 %1709 }
 0x1b3   : > { %vm1739_vm12 = vmor %vm6283_vm14, %vm1723_vm15  ;;  %1793 = vrot.lane.b32.xlu1 %v1772_v42, %s3638_s22  ;;  %vm6292_vm14 = vcmp.le.f32.partialorder %v6116_v55, 16.0  ;;  %v1708_v43 = vpop.permute.xlu0 %1707 }
 0x1b4   : > { %vm5320_vm6 = vmor %vm5226_vm3, %vm1477_vm5  ;;  %vm6291_vm5 = vnez %v6256_v3 }
 0x1b5   : > { %v6285_v53 = vsel %vm5320_vm6, 4294967295, %v6284_v53  ;;  %vm1755_vm8 = vmor %vm1739_vm12, %vm5217_vm9  ;;  %vm1727_vm12 = vcmp.ne.s32.totalorder %v1704_v59, 0  ;;  %vm6299_vm6 = vnez %v6261_v25 }
 0x1b6   : > { %vm5331_vm15 = vmand %vm6287_vm11, %vm6286_vm0  ;;  %v1771_v24 = vsel %vm1755_vm8, 1, %v6016_v37  ;;  %vm6296_vm11 = vnez %v6097_v40  ;;  %vm6297_vm8 = vnez %v6265_v29  ;;  %v1714_v61 = vpop.permute.xlu1 %1713 }
 0x1b7   : > { %vm1744_vm3 = vmor %vm6290_vm13, %vm1728_vm1  ;;  %1791 = vrot.lane.b32.xlu0 %v1771_v24, %s3638_s22  ;;  %vm6298_vm13 = vcmp.le.f32.partialorder %v6122_v28, 16.0  ;;  %v6322_v28 = vld [vmem:[#allocation2_spill] sm:$0xff] }
 0x1b8   : > { %vm1760_vm9 = vmor %vm1744_vm3, %vm6291_vm5  ;;  %vm1726_vm5 = vcmp.ne.s32.totalorder %v1702_v0, 0 }
 0x1b9   : > { %vm5345_vm0 = vmand %vm6293_vm10, %vm6292_vm14  ;;  %v1776_v26 = vsel %vm1760_vm9, 1, %v6016_v37  ;;  %vm6302_vm14 = vnez %v6102_v17 }
 0x1ba   : > { %vm1743_vm1 = vmor %vm6296_vm11, %vm1727_vm12  ;;  %1801 = vrot.lane.b32.xlu1 %v1776_v26, %s3638_s22  ;;  %vm6304_vm11 = vnez %v6269_v11  ;;  %v1718_v57 = vpop.permute.xlu1 %1717 }
 0x1bb   : > { %vm1759_vm3 = vmor %vm1743_vm1, %vm6297_vm8  ;;  %vm1725_vm1 = vcmp.ne.s32.totalorder %v1700_v31, 0  ;;  %vm6303_vm8 = vcmp.le.f32.partialorder %v6128_v7, 16.0 }
 0x1bc   : > { %vm5359_vm10 = vmand %vm6299_vm6, %vm6298_vm13  ;;  %v1775_v62 = vsel %vm1759_vm3, 1, %v6016_v37  ;;  %vm6307_vm13 = vnez %v6106_v33  ;;  %vm1730_vm3 = vcmp.ne.s32.totalorder %v1710_v14, 0 }
 0x1bd   : > { %vm1742_vm12 = vmor %vm6302_vm14, %vm1726_vm5  ;;  %1799 = vrot.lane.b32.xlu0 %v1775_v62, %s3638_s22 }
 0x1be   : > { %vm1758_vm9 = vmor %vm1742_vm12, %vm5290_vm2  ;;  %vm6308_vm12 = vcmp.le.f32.partialorder %v6133_v10, 16.0  ;;  %v1542_v15 = vpop.permute.xlu1 %1541 }
 0x1bf   : > { %vm5373_vm6 = vmand %vm6304_vm11, %vm6303_vm8  ;;  %v1774_v38 = vsel %vm1758_vm9, 1, %v6016_v37  ;;  %vm6311_vm8 = vnez %v6113_v5  ;;  %vm1729_vm9 = vcmp.ne.s32.totalorder %v1708_v43, 0 }
 0x1c0   : > { %vm1741_vm5 = vmor %vm6307_vm13, %vm1725_vm1  ;;  %1797 = vrot.lane.b32.xlu1 %v1774_v38, %s3638_s22  ;;  %vm6313_vm13 = vnez %v6285_v53  ;;  %v6323_v38 = vld [vmem:[#allocation5_spill] sm:$0xff] }
 0x1c1   : > { %vm1757_vm2 = vmor %vm1741_vm5, %vm5311_vm4  ;;  %vm6312_vm5 = vcmp.le.f32.partialorder %v6140_v60, 16.0  ;;  %v1712_v60 = vpop.permute.xlu0 %1711 }
 0x1c2   : > { %vm5387_vm11 = vmand %vm5300_vm7, %vm6308_vm12  ;;  %v1773_v41 = vsel %vm1757_vm2, 1, %v6016_v37  ;;  %vm6316_vm12 = vnez %v6119_v56  ;;  %vm1732_vm2 = vcmp.ne.s32.totalorder %v1714_v61, 0  ;;  %v1618_v34 = vpop.permute.xlu1 %1617 }
 0x1c3   : > { %vm1746_vm1 = vmor %vm6311_vm8, %vm1730_vm3  ;;  %1795 = vrot.lane.b32.xlu0 %v1773_v41, %s3638_s22 }
 0x1c4   : > { %vm1762_vm4 = vmor %vm1746_vm1, %vm5331_vm15  ;;  %vm6317_vm1 = vnez %v6126_v54 }
 0x1c5   : > { %vm5401_vm7 = vmand %vm6313_vm13, %vm6312_vm5  ;;  %v1778_v47 = vsel %vm1762_vm4, 1, %v6016_v37  ;;  %vm1731_vm5 = vcmp.ne.s32.totalorder %v1712_v60, 0  ;;  %vm6318_vm4 = vnez %v6131_v1  ;;  %v1716_v44 = vpop.permute.xlu0 %1715  ;;  %v6339_v60 = vmov 0 }
 0x1c6   : > { %vm1745_vm3 = vmor %vm6316_vm12, %vm1729_vm9  ;;  %1805 = vrot.lane.b32.xlu1 %v1778_v47, %s3638_s22  ;;  %v5437_v25 = vpop.permute.xlu1 %1545 }
 0x1c7   : > { %vm1761_vm15 = vmor %vm1745_vm3, %vm5345_vm0  ;;  %vm1734_vm3 = vcmp.ne.s32.totalorder %v1718_v57, 0 }
 0x1c8   : > { %vm1748_vm8 = vmor %vm6317_vm1, %vm1732_vm2  ;;  %v1777_v18 = vsel %vm1761_vm15, 1, %v6016_v37  ;;  %vm6319_vm15 = vnez %v6137_v52 }
 0x1c9   : > { %vm1764_vm13 = vmor %vm1748_vm8, %vm5359_vm10  ;;  %1803 = vrot.lane.b32.xlu0 %v1777_v18, %s3638_s22  ;;  %vm1733_vm8 = vcmp.ne.s32.totalorder %v1716_v44, 0  ;;  %v1540_v3 = vpop.permute.xlu0 %1539  ;;  %v6341_v18 = vmov 0  ;;  %v6345_v44 = vmov 0.0  }
 0x1ca   : > { %vm1747_vm9 = vmor %vm6318_vm4, %vm1731_vm5  ;;  %v1780_v48 = vsel %vm1764_vm13, 1, %v6016_v37  ;;  %vm6321_vm13 = vnez %v6320_v6  ;;  %v5441_v39 = vpop.permute.xlu1 %1621  ;;  %vm1565_vm4 = vcmp.ne.s32.totalorder %v1540_v3, 0 }
 0x1cb   : > { %vm1763_vm0 = vmor %vm1747_vm9, %vm5373_vm6  ;;  %1809 = vrot.lane.b32.xlu1 %v1780_v48, %s3638_s22  ;;  %vm1564_vm9 = vcmp.ne.s32.totalorder %v5017_v2, 0 }
 0x1cc   : > { %vm1750_vm2 = vmor %vm6319_vm15, %vm1734_vm3  ;;  %v1779_v27 = vsel %vm1763_vm0, 1, %v6016_v37  ;;  %vm6324_vm0 = vnez %v6056_v13 }
 0x1cd   : > { %vm1766_vm10 = vmor %vm1750_vm2, %vm5387_vm11  ;;  %1807 = vrot.lane.b32.xlu0 %v1779_v27, %s3638_s22  ;;  %v1616_v63 = vpop.permute.xlu0 %1615  ;;  %vm1560_vm11 = vcmp.ne.s32.totalorder %v6322_v28, 0  ;;  %vm1563_vm2 = vcmp.ne.s32.totalorder %v5035_v4, 0 }
 0x1ce   : > { %vm1749_vm5 = vmor %vm6321_vm13, %vm1733_vm8  ;;  %v1782_v51 = vsel %vm1766_vm10, 1, %v6016_v37  ;;  %v5445_v11 = vpop.permute.xlu1 %1549  ;;  %vm6325_vm10 = vnez %v6061_v23 }
 0x1cf   : > { %vm1765_vm6 = vmor %vm1749_vm5, %vm5401_vm7  ;;  %1813 = vrot.lane.b32.xlu1 %v1782_v51, %s3638_s22  ;;  %vm1559_vm7 = vcmp.ne.s32.totalorder %v6323_v38, 0  ;;  %vm1640_vm5 = vcmp.ne.s32.totalorder %v5063_v16, 0 }
 0x1d0   : > { %v1781_v45 = vsel %vm1765_vm6, 1, %v6016_v37  ;;  %vm1576_vm3 = vmand %vm6324_vm0, %vm1560_vm11  ;;  %vm6326_vm6 = vnez %v6078_v49  ;;  %vm1639_vm11 = vcmp.ne.s32.totalorder %v5091_v19, 0  ;;  %vm6329_vm0 = vnez %v6085_v32 }
 0x1d1   : > { %1811 = vrot.lane.b32.xlu0 %v1781_v45, %s3638_s22  ;;  %v5439_v29 = vpop.permute.xlu0 %1543  ;;  %vm1575_vm8 = vmand %vm6325_vm10, %vm1559_vm7  ;;  %vm1566_vm7 = vcmp.ne.s32.totalorder %v1542_v15, 0 }
 0x1d2   : > { %v5449_v35 = vpop.permute.xlu1 %1625  ;;  %vm5504_vm13 = vmand %vm6326_vm6, %vm1564_vm9  ;;  %vm1644_vm6 = vcmp.ne.s32.totalorder %v1618_v34, 0 }
 0x1d3   : > { %vm5513_vm15 = vmand %vm6329_vm0, %vm1563_vm2 }
 0x1d4   : > { %vm5517_vm10 = vmand %vm1576_vm3, %vm1640_vm5  ;;  %vm1643_vm3 = vcmp.ne.s32.totalorder %v1616_v63, 0  ;;  %vm6338_vm5 = vnez %v6106_v33  ;;  %v6343_v33 = vmov 0  ;;  %v2800_v63 = vld [vmem:[%s5877_s15 + $0x18] sm:$0xff] }
 0x1d5   : > { %v5443_v22 = vpop.permute.xlu0 %1619  ;;  %vm5525_vm9 = vmand %vm1575_vm8, %vm1639_vm11  ;;  %vm1568_vm11 = vcmp.ne.s32.totalorder %v5437_v25, 0  ;;  %v6384_v25 = vmov 0.0|0.0  }
 0x1d6   : > { %v5457_v9 = vpop.permute.xlu1 %1553  ;;  %vm5533_vm2 = vmand %vm6302_vm14, %vm1566_vm7 }
 0x1d7   : > { %vm5539_vm0 = vmand %vm6338_vm5, %vm1565_vm4  ;;  %vm1567_vm4 = vcmp.ne.s32.totalorder %v5439_v29, 0  ;;  %vm1570_vm5 = vcmp.ne.s32.totalorder %v5445_v11, 0 }
 0x1d8   : > { %v6340_v60 = vsel %vm5539_vm0, 4294967295, %v6339_v60  ;;  %vm5545_vm8 = vmand %vm5504_vm13, %vm1644_vm6  ;;  %vm1646_vm0 = vcmp.ne.s32.totalorder %v5441_v39, 0 }
 0x1d9   : > { %v5447_v58 = vpop.permute.xlu0 %1547  ;;  %v6342_v18 = vsel %vm5545_vm8, 4294967295, %v6341_v18  ;;  %vm5554_vm7 = vmand %vm5513_vm15, %vm1643_vm3  ;;  %vm6346_vm15 = vnez %v6090_v8  ;;  %vm1648_vm8 = vcmp.ne.s32.totalorder %v5449_v35, 0  ;;  %v6351_v8 = vmov 0 }
 0x1da   : > { %v5465_v50 = vpop.permute.xlu1 %1629  ;;  %v6344_v33 = vsel %vm5554_vm7, 4294967295, %v6343_v33  ;;  %vm1584_vm3 = vmand %vm6346_vm15, %vm1568_vm11  ;;  %vm1569_vm7 = vcmp.ne.s32.totalorder %v5447_v58, 0  ;;  %vm1645_vm11 = vcmp.ne.s32.totalorder %v5443_v22, 0 }
 0x1dd   : > { %v5451_v37 = vpop.permute.xlu0 %1623 }
 0x1de   : > { %v5477_v55 = vpop.permute.xlu1 %1557 }
 0x1e1   : > { %v5459_v36 = vpop.permute.xlu0 %1551 }
 0x1e2   : > { %v5487_v7 = vpop.permute.xlu1 %1633 }
 0x1e5   : > { %v5471_v20 = vpop.permute.xlu0 %1627 }
 0x1e6   : > { %v5509_v13 = vpop.permute.xlu1 %1637 }
 0x1e9   : > { %v5479_v31 = vpop.permute.xlu0 %1555 }
 0x1ed   : > { %v5493_v43 = vpop.permute.xlu0 %1631 }
 0x1f1   : > { %v5521_v49 = vpop.permute.xlu0 %1635 }
 0x1f5   : > { %v5453_v21 = vpop.f32.mrb[0].mxu0 }
 0x1f6   : > { %v5455_v46 = vpop.f32.mrb[1].mxu0 }
 0x1f9   : > { %v5461_v42 = vpop.f32.mrb[2].mxu0 }
 0x1fa   : > { %v5463_v53 = vpop.f32.mrb[3].mxu0 }
 0x1fd   : > { %v5467_v59 = vpop.f32.mrb[4].mxu0 }
 0x1fe   : > { %v5469_v24 = vpop.f32.mrb[5].mxu0 }
 0x201   : > { %v5473_v0 = vpop.f32.mrb[6].mxu0 }
 0x202   : > { %v5475_v26 = vpop.f32.mrb[7].mxu0 }
 0x207   : > { %v5481_v62 = vpop.f32.mrb[8].mxu0 }
 0x208   : > { %v5484_v14 = vpop.f32.mrb[9].mxu0 }
 0x20d   : > { %v5495_v41 = vpop.f32.mrb[10].mxu0 }
 0x20e   : > { %v5500_v10 = vpop.f32.mrb[11].mxu0 }
 0x213   : > { %v5523_v16 = vpop.f32.mrb[12].mxu0 }
 0x214   : > { %v5529_v32 = vpop.f32.mrb[13].mxu0  ;;  %v1786_v47 = vpop.permute.xlu1 %1785 }
 0x215   : > { %vm1816_vm14 = vcmp.ne.s32.totalorder %v1786_v47, 0 }
 0x216   : > { %vm1832_vm13 = vmand %vm5517_vm10, %vm1816_vm14  ;;  %vm6347_vm10 = vnez %v6097_v40  ;;  %v6353_v40 = vmov 0 }
 0x217   : > { %v5550_v17 = vpop.f32.mrb[14].mxu0  ;;  %v3175_v27 = vsel %vm1832_vm13, 1.0, %v6345_v44  ;;  %vm5573_vm14 = vmand %vm6347_vm10, %vm1567_vm4  ;;  %vm6359_vm10 = vnez %v6209_v30 }
 0x218   : > { %v5561_v48 = vpop.f32.mrb[15].mxu0  ;;  %vm5588_vm4 = vmand %vm6316_vm12, %vm1569_vm7  ;;  %vm1647_vm7 = vcmp.ne.s32.totalorder %v5451_v37, 0 }
 0x219   : > { %v1784_v57 = vpop.permute.xlu0 %1783  ;;  %v6354_v40 = vsel %vm5588_vm4, 4294967295, %v6353_v40  ;;  %vm6361_vm4 = vnez %v6340_v60 }
 0x21a   : > { %vm1815_vm6 = vcmp.ne.s32.totalorder %v1784_v57, 0 }
 0x21b   : > { %vm1831_vm1 = vmand %vm5525_vm9, %vm1815_vm6  ;;  %vm6350_vm9 = vnez %v6113_v5 }
 0x21c   : > { %v3174_v15 = vsel %vm1831_vm1, 1.0, %v6345_v44  ;;  %vm5581_vm13 = vmand %vm6350_vm9, %vm1570_vm5 }
 0x21d   : > { %v1790_v51 = vpop.permute.xlu1 %1789  ;;  %v6352_v8 = vsel %vm5581_vm13, 4294967295, %v6351_v8  ;;  %v3441_v34 = vpack.i.bf16 %v3175_v27, %v3174_v15  ;;  %vm5592_vm6 = vmand %vm1584_vm3, %vm1648_vm8  ;;  %vm6360_vm8 = vnez %v6221_v12  ;;  %v3619_v15 = vld [vmem:[%s3940_s3] sm:$0xff] }
 0x21e   : > { %vm1818_vm1 = vcmp.ne.s32.totalorder %v1790_v51, 0  ;;  %vm5598_vm5 = vmand %vm5533_vm2, %vm1646_vm0  ;;  %vm6364_vm2 = vnez %v6342_v18 }
 0x21f   : > { %vm1834_vm9 = vmand %vm6359_vm10, %vm1818_vm1  ;;  %3442 = vperm.xlu0 %3440, %v3441_v34   ;;  %vm1572_vm10 = vcmp.ne.s32.totalorder %v5457_v9, 0  ;;  %v2799_v34 = vld [vmem:[%s5877_s15 + $0x10] sm:$0xff] }
 0x220   : > { %v3177_v56 = vsel %vm1834_vm9, 1.0, %v6345_v44  ;;  %vm5610_vm13 = vmand %vm6361_vm4, %vm1645_vm11  ;;  %vm1571_vm4 = vcmp.ne.s32.totalorder %v5459_v36, 0 }
 0x221   : > { %v1788_v3 = vpop.permute.xlu0 %1787  ;;  %vm1663_vm11 = vmand %vm5573_vm14, %vm1647_vm7  ;;  %vm6369_vm7 = vnez %v6131_v1 }
 0x222   : > { %vm1817_vm15 = vcmp.ne.s32.totalorder %v1788_v3, 0  ;;  %v2797_v3 = vld [vmem:[%s5877_s15] sm:$0xff] }
 0x223   : > { %vm1833_vm3 = vmand %vm6360_vm8, %vm1817_vm15  ;;  %vm6365_vm15 = vnez %v6344_v33 }
 0x224   : > { %v3176_v22 = vsel %vm1833_vm3, 1.0, %v6345_v44 }
 0x225   : > { %v1794_v5 = vpop.permute.xlu1 %1793  ;;  %v3447_v30 = vpack.i.bf16 %v3177_v56, %v3176_v22  ;;  %v3224_v56 = vld [vmem:[%s5875_s13] ss:$0 sm:$0xff] }
 0x226   : > { %vm1820_vm12 = vcmp.ne.s32.totalorder %v1794_v5, 0  ;;  %v3408_v5 = vpack.c.bf16 %v2800_v63, %v2799_v34  ;;  %v5719_v39 = vadd.f32 %v3224_v56, %v5455_v46  ;;  %v5737_v9 = vadd.f32 %v5473_v0, %v3224_v56 }
 0x227   : > { %vm1836_vm0 = vmand %vm6364_vm2, %vm1820_vm12  ;;  %vm1650_vm12 = vcmp.ne.s32.totalorder %v5465_v50, 0  ;;  %3448 = vperm.xlu1 %3446, %v3447_v30   ;;  %vm6366_vm2 = vnez %v6126_v54  ;;  %v5723_v30 = vadd.f32 %v5461_v42, %v3224_v56 }
 0x228   : > { %v3179_v11 = vsel %vm1836_vm0, 1.0, %v6345_v44  ;;  %vm5630_vm0 = vmand %vm6366_vm2, %vm1572_vm10  ;;  %v3232_v0 = vclamps-f32 %v5737_v9, 30.0 }
 0x229   : > { %v1792_v29 = vpop.permute.xlu0 %1791 }
 0x22a   : > { %vm1819_vm1 = vcmp.ne.s32.totalorder %v1792_v29, 0  ;;  %v5716_v29 = vadd.f32 %v5453_v21, %v3224_v56  ;;  %v3228_v21 = vclamps-f32 %v5723_v30, 30.0 }
 0x22b   : > { %vm1835_vm9 = vmand %vm6365_vm15, %vm1819_vm1  ;;  %vm1649_vm15 = vcmp.ne.s32.totalorder %v5471_v20, 0  ;;  %v5757_v20 = vadd.f32 %v3224_v56, %v5500_v10 }
 0x22c   : > { %v1802_v12 = vpop.permute.xlu1 %1801  ;;  %v3178_v58 = vsel %vm1835_vm9, 1.0, %v6345_v44  ;;  %vm5637_vm1 = vmand %vm6369_vm7, %vm1571_vm4  ;;  %v3226_v22 = vclamps-f32 %v5716_v29, 30.0 }
 0x22d   : > { %vm1824_vm8 = vcmp.ne.s32.totalorder %v1802_v12, 0  ;;  %v3452_v35 = vpack.i.bf16 %v3179_v11, %v3178_v58  ;;  %v3225_v11 = vclamps-f32 %v5719_v39, 30.0  ;;  %v5727_v12 = vadd.f32 %v3224_v56, %v5463_v53 }
 0x22e   : > { %vm1840_vm3 = vmand %vm5592_vm6, %vm1824_vm8  ;;  %vm6372_vm6 = vnez %v6352_v8  ;;  %v2798_v8 = vld [vmem:[%s5877_s15 + $0x8] sm:$0xff]  ;;  %v2514_v58 = vsub.f32 0.0, %v3226_v22 }
 0x22f   : > { %v1800_v37 = vpop.permute.xlu0 %1799  ;;  %v3183_v28 = vsel %vm1840_vm3, 1.0, %v6345_v44  ;;  %vm5644_vm8 = vmand %vm6372_vm6, %vm1650_vm12  ;;  %vm1574_vm3 = vcmp.ne.s32.totalorder %v5477_v55, 0  ;;  %3453 = vperm.xlu1 %3446, %v3452_v35   ;;  %v5730_v35 = vadd.f32 %v5467_v59, %v3224_v56  ;;  %v2513_v46 = vsub.f32 0.0, %v3225_v11 }
 0x230   : > { %vm1823_vm14 = vcmp.ne.s32.totalorder %v1800_v37, 0  ;;  %v5734_v37 = vadd.f32 %v3224_v56, %v5469_v24  ;;  %v3227_v42 = vclamps-f32 %v5727_v12, 30.0  ;;  %v2531_v53 = vmul.f32 1.442695, %v2514_v58 }
 0x231   : > { %vm1839_vm9 = vmand %vm1663_vm11, %vm1823_vm14  ;;  %vm6375_vm11 = vnez %v6354_v40  ;;  %vm1573_vm14 = vcmp.ne.s32.totalorder %v5479_v31, 0  ;;  %v3405_v40 = vpack.c.bf16 %v2798_v8, %v2797_v3  ;;  %v3230_v36 = vclamps-f32 %v5730_v35, 30.0 }
 0x232   : > { %v1798_v50 = vpop.permute.xlu1 %1797  ;;  %v3182_v38 = vsel %vm1839_vm9, 1.0, %v6345_v44  ;;  %vm5654_vm2 = vmand %vm6375_vm11, %vm1649_vm15  ;;  %vm6378_vm9 = vnez %v6137_v52  ;;  %vm1652_vm15 = vcmp.ne.s32.totalorder %v5487_v7, 0  ;;  %vm1651_vm11 = vcmp.ne.s32.totalorder %v5493_v43, 0 }
 0x233   : > { %vm1822_vm10 = vcmp.ne.s32.totalorder %v1798_v50, 0  ;;  %v3457_v1 = vpack.i.bf16 %v3183_v28, %v3182_v38  ;;  %vm5664_vm6 = vmand %vm6378_vm9, %vm1574_vm3  ;;  %3406 = vmatpush3.bf16.msra.mxu1 %v3405_v40  ;;  %v5741_v28 = vadd.f32 %v3224_v56, %v5475_v26  ;;  %v5745_v59 = vadd.f32 %v5481_v62, %v3224_v56 }
 0x234   : > { %vm1838_vm4 = vmand %vm5598_vm5, %vm1822_vm10  ;;  %3407 = vmatprep.subr.bf16.mxu1 %v6384_v25  ;;  %v2516_v50 = vsub.f32 0.0, %v3228_v21  ;;  %v3229_v54 = vclamps-f32 %v5734_v37, 30.0  ;;  %v5749_v24 = vadd.f32 %v3224_v56, %v5484_v14  ;;  %v2529_v38 = vmul.f32 1.442695, %v2513_v46 }
 0x235   : > { %v1796_v2 = vpop.permute.xlu0 %1795  ;;  %v3181_v4 = vsel %vm1838_vm4, 1.0, %v6345_v44  ;;  %3458 = vperm.xlu1 %3446, %v3457_v1   ;;  %v5753_v1 = vadd.f32 %v5495_v41, %v3224_v56  ;;  %v2515_v26 = vsub.f32 0.0, %v3227_v42  ;;  %3549 = vpow2.f32 %v2531_v53 }
 0x236   : > { %vm1821_vm12 = vcmp.ne.s32.totalorder %v1796_v2, 0  ;;  %v3231_v2 = vclamps-f32 %v5741_v28, 30.0  ;;  %v2518_v62 = vsub.f32 0.0, %v3230_v36  ;;  %v2535_v14 = vmul.f32 1.442695, %v2516_v50 }
 0x237   : > { %vm1837_vm7 = vmand %vm5610_vm13, %vm1821_vm12  ;;  %vm6381_vm13 = vnez %v6320_v6  ;;  %3409 = vmatpush3.bf16.msra.mxu1 %v3408_v5  ;;  %v2517_v23 = vsub.f32 0.0, %v3229_v54  ;;  %3551 = vpow2.f32 %v2529_v38  ;;  %v2520_v41 = vsub.f32 0.0, %v3232_v0 }
 0x238   : > { %v1806_v55 = vpop.permute.xlu1 %1805  ;;  %v3180_v19 = vsel %vm1837_vm7, 1.0, %v6345_v44  ;;  %vm5674_vm4 = vmand %vm6381_vm13, %vm1573_vm14  ;;  %vm1654_vm14 = vcmp.ne.s32.totalorder %v5509_v13, 0  ;;  %3410 = vmatprep.subr.bf16.mxu1 %v6384_v25  ;;  %v2533_v10 = vmul.f32 1.442695, %v2515_v26  ;;  %v2519_v47 = vsub.f32 0.0, %v3231_v2 }
 0x239   : > { %vm1826_vm5 = vcmp.ne.s32.totalorder %v1806_v55, 0  ;;  %v3462_v61 = vpack.i.bf16 %v3181_v4, %v3180_v19  ;;  %v3234_v4 = vclamps-f32 %v5745_v59, 30.0  ;;  %v5761_v55 = vadd.f32 %v5523_v16, %v3224_v56 }
 0x23a   : > { %vm1842_vm10 = vmand %vm5644_vm8, %vm1826_vm5  ;;  %v3233_v19 = vclamps-f32 %v5749_v24, 30.0  ;;  %3553 = vpow2.f32 %v2535_v14 }
 0x23b   : > { %v1804_v31 = vpop.permute.xlu0 %1803  ;;  %v3185_v52 = vsel %vm1842_vm10, 1.0, %v6345_v44  ;;  %3463 = vperm.xlu0 %3440, %v3462_v61   ;;  %vm1668_vm8 = vmand %vm5630_vm0, %vm1652_vm15  ;;  %v3236_v61 = vclamps-f32 %v5753_v1, 30.0  ;;  %v3238_v16 = vclamps-f32 %v5761_v55, 30.0  ;;  %3555 = vpow2.f32 %v2533_v10 }
 0x23c   : > { %vm1825_vm3 = vcmp.ne.s32.totalorder %v1804_v31, 0  ;;  %vm1667_vm5 = vmand %vm5637_vm1, %vm1651_vm11  ;;  %v5766_v31 = vadd.f32 %v3224_v56, %v5529_v32  ;;  %v2541_v32 = vmul.f32 1.442695, %v2519_v47 }
 0x23d   : > { %vm1841_vm12 = vmand %vm5654_vm2, %vm1825_vm3  ;;  %v1810_v7 = vpop.permute.xlu1 %1809  ;;  %vm1653_vm2 = vcmp.ne.s32.totalorder %v5521_v49, 0 }
 0x23e   : > { %v3184_v60 = vsel %vm1841_vm12, 1.0, %v6345_v44  ;;  %vm1828_vm7 = vcmp.ne.s32.totalorder %v1810_v7, 0  ;;  %vm1670_vm0 = vmand %vm5664_vm6, %vm1654_vm14  ;;  %v2539_v7 = vmul.f32 1.442695, %v2518_v62  ;;  %vm6385_vm6 = vcmask 261120  }
 0x23f   : > { %v3467_v6 = vpack.i.bf16 %v3185_v52, %v3184_v60  ;;  %vm1844_vm9 = vmand %vm1668_vm8, %vm1828_vm7  ;;  %v1808_v18 = vpop.permute.xlu0 %1807  ;;  %v3235_v52 = vclamps-f32 %v5757_v20, 30.0  ;;  %v2522_v60 = vsub.f32 0.0, %v3234_v4  ;;  %v3550_v8 = vpop.eup %3549 }
 0x240   : > { %v3187_v43 = vsel %vm1844_vm9, 1.0, %v6345_v44  ;;  %vm1827_vm10 = vcmp.ne.s32.totalorder %v1808_v18, 0  ;;  %vm1669_vm1 = vmand %vm5674_vm4, %vm1653_vm2  ;;  %v2521_v18 = vsub.f32 0.0, %v3233_v19  ;;  %3557 = vpow2.f32 %v2539_v7 }
 0x241   : > { %vm1843_vm13 = vmand %vm1667_vm5, %vm1827_vm10  ;;  %3468 = vperm.xlu0 %3440, %v3467_v6   ;;  %v1814_v57 = vpop.permute.xlu1 %1813  ;;  %v2537_v6 = vmul.f32 1.442695, %v2517_v23  ;;  %v3552_v5 = vpop.eup %3551  ;;  %vm2809_vm5 = vcmask 1041409  }
 0x242   : > { %v3186_v13 = vsel %vm1843_vm13, 1.0, %v6345_v44  ;;  %vm1830_vm15 = vcmp.ne.s32.totalorder %v1814_v57, 0  ;;  %v2543_v57 = vmul.f32 1.442695, %v2520_v41  ;;  %v2561_v21 = vadd.f32 1.0, %v3552_v5  ;;  %vm6386_vm4 = vmmov %vm6385_vm6 }
 0x243   : > { %v3472_v33 = vpack.i.bf16 %v3187_v43, %v3186_v13  ;;  %vm1846_vm3 = vmand %vm1670_vm0, %vm1830_vm15  ;;  %v1812_v27 = vpop.permute.xlu0 %1811  ;;  %v5771_v43 = vadd.f32 %v5550_v17, %v3224_v56  ;;  %v2524_v13 = vsub.f32 0.0, %v3236_v61  ;;  %3559 = vpow2.f32 %v2537_v6 }
 0x244   : > { %v3189_v51 = vsel %vm1846_vm3, 1.0, %v6345_v44  ;;  %vm1829_vm11 = vcmp.ne.s32.totalorder %v1812_v27, 0  ;;  %v2523_v27 = vsub.f32 0.0, %v3235_v52  ;;  %3561 = vpow2.f32 %v2543_v57  ;;  %v3554_v58 = vpop.eup %3553  ;;  %vm6387_vm8 = vmmov %vm6386_vm4 }
 0x245   : > { %vm1845_vm12 = vmand %vm1669_vm1, %vm1829_vm11  ;;  %3473 = vperm.xlu1 %3446, %v3472_v33   ;;  %v3237_v33 = vclamps-f32 %v5766_v31, 30.0  ;;  %v3240_v3 = vclamps-f32 %v5771_v43, 30.0  ;;  %v2551_v17 = vmul.f32 1.442695, %v2524_v13  ;;  %3563 = vpow2.f32 %v2541_v32  ;;  %v3556_v42 = vpop.eup %3555 }
 0x246   : > { %v3188_v49 = vsel %vm1845_vm12, 1.0, %v6345_v44  ;;  %v2549_v40 = vmul.f32 1.442695, %v2523_v27  ;;  %v2564_v50 = vadd.f32 1.0, %v3554_v58  ;;  %v2563_v26 = vadd.f32 1.0, %v3556_v42  ;;  %vm6388_vm7 = vmmov %vm6386_vm4 }
 0x247   : > { %v3477_v45 = vpack.i.bf16 %v3189_v51, %v3188_v49  ;;  %v5775_v51 = vadd.f32 %v3224_v56, %v5561_v48  ;;  %v2547_v49 = vmul.f32 1.442695, %v2522_v60  ;;  %v2525_v34 = vsub.f32 0.0, %v3237_v33  ;;  %vm6389_vm14 = vmmov %vm6386_vm4 }
 0x248   : > { %v2562_v48 = vadd.f32 1.0, %v3550_v8  ;;  %v2528_v56 = vsub.f32 0.0, %v3240_v3  ;;  %vm6390_vm9 = vmmov %vm6386_vm4  ;;  %vm2811_vm1 = vcmask 1042434  }
 0x249   : > { %3068 = vperm.xlu1 %3446, %v3619_v15   ;;  %3478 = vperm.xlu0 %3440, %v3477_v45   ;;  %v2526_v45 = vsub.f32 0.0, %v3238_v16  ;;  %v2545_v15 = vmul.f32 1.442695, %v2521_v18  ;;  %v3239_v63 = vclamps-f32 %v5775_v51, 30.0  ;;  %3565 = vpow2.f32 %v2547_v49  ;;  %vm6391_vm10 = vmmov %vm6386_vm4 }
 0x24a   : > { %v2553_v11 = vmul.f32 1.442695, %v2525_v34  ;;  %v2559_v53 = vmul.f32 1.442695, %v2528_v56  ;;  %v3558_v36 = vpop.eup %3557  ;;  %vm6392_vm2 = vmmov %vm6386_vm4 }
 0x24b   : > { %v2555_v22 = vmul.f32 1.442695, %v2526_v45  ;;  %3567 = vpow2.f32 %v2545_v15  ;;  %v2527_v46 = vsub.f32 0.0, %v3239_v63  ;;  %v2566_v62 = vadd.f32 1.0, %v3558_v36  ;;  %vm6393_vm13 = vmmov %vm6392_vm2 }
 0x24c   : > { %3569 = vpow2.f32 %v2551_v17  ;;  %vm6394_vm0 = vmmov %vm6392_vm2 }
 0x24d   : > { %3571 = vpow2.f32 %v2549_v40  ;;  %v3560_v54 = vpop.eup %3559  ;;  %v2557_v38 = vmul.f32 1.442695, %v2527_v46  ;;  %vm6395_vm15 = vmmov %vm6394_vm0 }
 0x24e   : > { %3573 = vpow2.f32 %v2555_v22  ;;  %v3562_v0 = vpop.eup %3561  ;;  %v2565_v14 = vadd.f32 1.0, %v3560_v54  ;;  %vm6396_vm3 = vmmov %vm6394_vm0 }
 0x24f   : > { %3575 = vrcp.f32 %v2562_v48  ;;  %v3564_v2 = vpop.eup %3563  ;;  %v2568_v19 = vadd.f32 1.0, %v3562_v0  ;;  %vm6397_vm11 = vmmov %vm6394_vm0 }
 0x250   : > { %3577 = vpow2.f32 %v2553_v11  ;;  %v2567_v61 = vadd.f32 1.0, %v3564_v2  ;;  %vm6398_vm12 = vmmov %vm6394_vm0 }
 0x251   : > { %3579 = vrcp.f32 %v2561_v21 }
 0x252   : > { %3581 = vpow2.f32 %v2559_v53 }
 0x253   : > { %v3566_v4 = vpop.eup %3565  ;;  %3583 = vrcp.f32 %v2564_v50 }
 0x254   : > { %3585 = vpow2.f32 %v2557_v38  ;;  %v2570_v47 = vadd.f32 1.0, %v3566_v4 }
 0x255   : > { %v3568_v23 = vpop.eup %3567  ;;  %3587 = vrcp.f32 %v2563_v26 }
 0x256   : > { %v3570_v41 = vpop.eup %3569  ;;  %3589 = vrcp.f32 %v2566_v62  ;;  %v2569_v7 = vadd.f32 1.0, %v3568_v23 }
 0x257   : > { %v3572_v10 = vpop.eup %3571  ;;  %3591 = vrcp.f32 %v2565_v14  ;;  %v2572_v16 = vadd.f32 1.0, %v3570_v41 }
 0x258   : > { %v3574_v52 = vpop.eup %3573  ;;  %3593 = vrcp.f32 %v2568_v19  ;;  %v2571_v18 = vadd.f32 1.0, %v3572_v10 }
 0x259   : > { %v3576_v60 = vpop.eup %3575  ;;  %3595 = vrcp.f32 %v2567_v61  ;;  %v2574_v13 = vadd.f32 1.0, %v3574_v52 }
 0x25a   : > { %v3578_v6 = vpop.eup %3577  ;;  %3597 = vrcp.f32 %v2570_v47  ;;  %v2594_v32 = vmul.f32 %v3576_v60, %v5716_v29 }
 0x25b   : > { %v3580_v57 = vpop.eup %3579  ;;  %3599 = vrcp.f32 %v2569_v7  ;;  %v2573_v27 = vadd.f32 1.0, %v3578_v6 }
 0x25c   : > { %v3582_v33 = vpop.eup %3581  ;;  %3601 = vrcp.f32 %v2572_v16  ;;  %v2593_v15 = vmul.f32 %v3580_v57, %v5719_v39 }
 0x25d   : > { %v3584_v45 = vpop.eup %3583  ;;  %3603 = vrcp.f32 %v2571_v18  ;;  %v2576_v40 = vadd.f32 1.0, %v3582_v33 }
 0x25e   : > { %v3586_v17 = vpop.eup %3585  ;;  %3605 = vrcp.f32 %v2574_v13  ;;  %v2596_v29 = vmul.f32 %v3584_v45, %v5723_v30 }
 0x25f   : > { %v3588_v34 = vpop.eup %3587  ;;  %3607 = vrcp.f32 %v2573_v27  ;;  %v2575_v56 = vadd.f32 1.0, %v3586_v17 }
 0x260   : > { %v3590_v22 = vpop.eup %3589  ;;  %v2595_v46 = vmul.f32 %v3588_v34, %v5727_v12  ;;  %3609 = vrcp.f32 %v2576_v40 }
 0x261   : > { %v3592_v48 = vpop.eup %3591  ;;  %v2598_v30 = vmul.f32 %v3590_v22, %v5730_v35  ;;  %3611 = vrcp.f32 %v2575_v56 }
 0x262   : > { %v3594_v21 = vpop.eup %3593  ;;  %v2597_v61 = vmul.f32 %v3592_v48, %v5734_v37 }
 0x263   : > { %v3596_v50 = vpop.eup %3595  ;;  %v2600_v10 = vmul.f32 %v3594_v21, %v5737_v9 }
 0x264   : > { %v3598_v54 = vpop.eup %3597  ;;  %v2599_v60 = vmul.f32 %v3596_v50, %v5741_v28 }
 0x265   : > { %v3600_v2 = vpop.eup %3599  ;;  %v2602_v35 = vmul.f32 %v3598_v54, %v5745_v59 }
 0x266   : > { %v3602_v4 = vpop.eup %3601  ;;  %v2601_v18 = vmul.f32 %v3600_v2, %v5749_v24 }
 0x267   : > { %v3604_v41 = vpop.eup %3603  ;;  %v2604_v57 = vmul.f32 %v3602_v4, %v5753_v1 }
 0x268   : > { %v3606_v7 = vpop.eup %3605 }
 0x269   : > { %v3608_v27 = vpop.eup %3607  ;;  %v2606_v28 = vmul.f32 %v3606_v7, %v5761_v55 }
 0x26a   : > { %v3610_v40 = vpop.eup %3609 }
 0x29e   : > { %v3443_v49 = vpop.permute.xlu0 %3442 }
 0x29f   : > { %v3445_v3 = vunpack.i.h.bf16 %v3443_v49  ;;  %v3444_v8 = vunpack.i.l.bf16 %v3443_v49 }
 0x2a1   : > { %v2689_v63 = vmul.f32 %v3444_v8, %v2593_v15  ;;  %v2690_v5 = vmul.f32 %v3445_v3, %v2594_v32  ;;  %v2603_v15 = vmul.f32 %v3604_v41, %v5757_v20 }
 0x2a3   : > { %v2705_v11 = vsel %vm6385_vm6, %v2689_v63, 0.0  ;;  %v2706_v58 = vsel %vm6386_vm4, %v2690_v5, 0.0  ;;  %v2605_v63 = vmul.f32 %v3608_v27, %v5766_v31  ;;  %vm6399_vm6 = vmmov %vm6394_vm0 }
 0x2a4   : > { %v2707_v42 = vadd.f32 %v2706_v58, %v2705_v11  ;;  %v3612_v11 = vpop.eup %3611  ;;  %vm6400_vm4 = vmmov %vm6394_vm0 }
 0x2a6   : > { %v3449_v39 = vpop.permute.xlu1 %3448  ;;  %v2708_v38 = vrot.slane %v2707_v42, 4 }
 0x2a7   : > { %v3451_v53 = vunpack.i.h.bf16 %v3449_v39  ;;  %v3450_v36 = vunpack.i.l.bf16 %v3449_v39 }
 0x2a8   : > { %v2709_v14 = vadd.f32 %v2708_v38, %v2707_v42 }
 0x2a9   : > { %v2691_v0 = vmul.f32 %v3450_v36, %v2595_v46  ;;  %v2692_v26 = vmul.f32 %v3451_v53, %v2596_v29  ;;  %v2608_v53 = vmul.f32 %v3610_v40, %v5771_v43 }
 0x2aa   : > { %v2710_v16 = vrot.slane %v2709_v14, 2 }
 0x2ab   : > { %v2714_v23 = vsel %vm6387_vm8, %v2691_v0, 0.0  ;;  %v2715_v12 = vsel %vm6388_vm7, %v2692_v26, 0.0  ;;  %vm2813_vm8 = vcmask 1043459   ;;  %vm2815_vm7 = vcmask 1044484  }
 0x2ac   : > { %v2716_v47 = vadd.f32 %v2715_v12, %v2714_v23  ;;  %v2711_v37 = vadd.f32 %v2710_v16, %v2709_v14  ;;  %v2607_v14 = vmul.f32 %v3612_v11, %v5775_v51 }
 0x2ae   : > { %v3454_v62 = vpop.permute.xlu1 %3453  ;;  %v2717_v13 = vrot.slane %v2716_v47, 4  ;;  %v2712_v24 = vrot.slane %v2711_v37, 1 }
 0x2af   : > { %v3456_v19 = vunpack.i.h.bf16 %v3454_v62  ;;  %v3455_v52 = vunpack.i.l.bf16 %v3454_v62 }
 0x2b0   : > { %v2718_v59 = vadd.f32 %v2717_v13, %v2716_v47  ;;  %v2713_v29 = vadd.f32 %v2712_v24, %v2711_v37 }
 0x2b1   : > { %v2694_v6 = vmul.f32 %v3456_v19, %v2598_v30  ;;  %v2693_v33 = vmul.f32 %v3455_v52, %v2597_v61 }
 0x2b2   : > { %v2719_v5 = vrot.slane %v2718_v59, 2  ;;  %v2785_v23 = vmul.f32 0.01, %v2713_v29 }
 0x2b3   : > { %v2724_v9 = vsel %vm6389_vm14, %v2694_v6, 0.0  ;;  %v2723_v3 = vsel %vm6390_vm9, %v2693_v33, 0.0  ;;  %vm2817_vm14 = vcmask 1045509   ;;  %vm2819_vm9 = vcmask 1046534  }
 0x2b4   : > { %v3459_v32 = vpop.permute.xlu1 %3458  ;;  %v2725_v1 = vadd.f32 %v2724_v9, %v2723_v3  ;;  %v2720_v58 = vadd.f32 %v2719_v5, %v2718_v59 }
 0x2b5   : > { %v3461_v49 = vunpack.i.h.bf16 %v3459_v32  ;;  %v3460_v45 = vunpack.i.l.bf16 %v3459_v32 }
 0x2b6   : > { %v2726_v56 = vrot.slane %v2725_v1, 4  ;;  %v2721_v54 = vrot.slane %v2720_v58, 1 }
 0x2b7   : > { %v2697_v17 = vmul.f32 %v3460_v45, %v2601_v18  ;;  %v2698_v34 = vmul.f32 %v3461_v49, %v2602_v35 }
 0x2b8   : > { %v2727_v36 = vadd.f32 %v2726_v56, %v2725_v1  ;;  %v2722_v12 = vadd.f32 %v2721_v54, %v2720_v58 }
 0x2b9   : > { %v2741_v20 = vsel %vm6391_vm10, %v2697_v17, 0.0  ;;  %v2742_v55 = vsel %vm6392_vm2, %v2698_v34, 0.0  ;;  %vm6401_vm10 = vmmov %vm6394_vm0  ;;  %vm6402_vm2 = vmmov 0  }
 0x2ba   : > { %v3464_v8 = vpop.permute.xlu0 %3463  ;;  %v2743_v39 = vadd.f32 %v2742_v55, %v2741_v20  ;;  %v2728_v2 = vrot.slane %v2727_v36, 2  ;;  %v2786_v52 = vmul.f32 0.01, %v2722_v12  ;;  %v2793_v12 = vld [vmem:[%s5876_s14] sm:$0xff] }
 0x2bb   : > { %v3466_v22 = vunpack.i.h.bf16 %v3464_v8  ;;  %v3465_v48 = vunpack.i.l.bf16 %v3464_v8 }
 0x2bc   : > { %v2744_v38 = vrot.slane %v2743_v39, 4  ;;  %v2729_v43 = vadd.f32 %v2728_v2, %v2727_v36  ;;  %v2810_v51 = vsel %vm2809_vm5, %v2786_v52, %v2785_v23  ;;  %vm2821_vm5 = vcmask 1047559   ;;  %v2796_v52 = vld [vmem:[%s5876_s14 + $0x18] sm:$0xff] }
 0x2bd   : > { %v2695_v21 = vmul.f32 %v3465_v48, %v2599_v60  ;;  %v2696_v46 = vmul.f32 %v3466_v22, %v2600_v10 }
 0x2be   : > { %v2745_v19 = vadd.f32 %v2744_v38, %v2743_v39  ;;  %v2730_v16 = vrot.slane %v2729_v43, 1 }
 0x2bf   : > { %v2732_v0 = vsel %vm6393_vm13, %v2695_v21, 0.0  ;;  %v2733_v26 = vsel %vm6394_vm0, %v2696_v46, 0.0  ;;  %vm6403_vm13 = vmmov %vm6394_vm0 }
 0x2c0   : > { %v3469_v42 = vpop.permute.xlu0 %3468  ;;  %v2734_v30 = vadd.f32 %v2733_v26, %v2732_v0  ;;  %v2746_v7 = vrot.slane %v2745_v19, 2  ;;  %v2731_v27 = vadd.f32 %v2730_v16, %v2729_v43  ;;  %v2981_v16 = vld [vmem:[%s5879_s17] sm:$0xff] }
 0x2c1   : > { %v3471_v50 = vunpack.i.h.bf16 %v3469_v42  ;;  %v3470_v31 = vunpack.i.l.bf16 %v3469_v42 }
 0x2c2   : > { %v2735_v61 = vrot.slane %v2734_v30, 4  ;;  %v2787_v8 = vmul.f32 0.01, %v2731_v27  ;;  %v3243_v27 = vld [vmem:[%s5878_s16] ss:$0 sm:$0xff] }
 0x2c3   : > { %v2699_v62 = vmul.f32 %v3470_v31, %v2603_v15  ;;  %v2700_v4 = vmul.f32 %v3471_v50, %v2604_v57  ;;  %v2747_v57 = vadd.f32 %v2746_v7, %v2745_v19  ;;  %v2794_v19 = vld [vmem:[%s5876_s14 + $0x8] sm:$0xff] }
 0x2c4   : > { %v3474_v41 = vpop.permute.xlu1 %3473  ;;  %v2736_v6 = vadd.f32 %v2735_v61, %v2734_v30  ;;  %v2812_v48 = vsel %vm2811_vm1, %v2787_v8, %v2810_v51 }
 0x2c5   : > { %v2750_v10 = vsel %vm6395_vm15, %v2699_v62, 0.0  ;;  %v2751_v47 = vsel %vm6396_vm3, %v2700_v4, 0.0  ;;  %v3476_v35 = vunpack.i.h.bf16 %v3474_v41  ;;  %v3475_v18 = vunpack.i.l.bf16 %v3474_v41  ;;  %vm6404_vm15 = vmmov %vm6394_vm0 }
 0x2c6   : > { %v2752_v60 = vadd.f32 %v2751_v47, %v2750_v10  ;;  %v2737_v37 = vrot.slane %v2736_v6, 2  ;;  %v2748_v45 = vrot.slane %v2747_v57, 1  ;;  %v3411_v10 = vpack.c.bf16 %v2794_v19, %v2793_v12  ;;  %v2795_v47 = vld [vmem:[%s5876_s14 + $0x10] sm:$0xff] }
 0x2c7   : > { %v2702_v33 = vmul.f32 %v3476_v35, %v2606_v28  ;;  %v2701_v9 = vmul.f32 %v3475_v18, %v2605_v63  ;;  %v3620_v35 = vld [vmem:[%s3785_s25] sm:$0xff]  ;;  %v2983_v18 = vld [vmem:[%s5879_s17 + $0x10] sm:$0xff] }
 0x2c8   : > { %v2753_v13 = vrot.slane %v2752_v60, 4  ;;  %v3479_v32 = vpop.permute.xlu0 %3478  ;;  %v2738_v24 = vadd.f32 %v2737_v37, %v2736_v6  ;;  %v2749_v63 = vadd.f32 %v2748_v45, %v2747_v57  ;;  %v2982_v6 = vld [vmem:[%s5879_s17 + $0x8] sm:$0xff]  ;;  %v2984_v57 = vld [vmem:[%s5879_s17 + $0x18] sm:$0xff] }
 0x2c9   : > { %v3481_v49 = vunpack.i.h.bf16 %v3479_v32  ;;  %v2760_v59 = vsel %vm6397_vm11, %v2702_v33, 0.0  ;;  %v3480_v3 = vunpack.i.l.bf16 %v3479_v32  ;;  %v2759_v1 = vsel %vm6398_vm12, %v2701_v9, 0.0 }
 0x2ca   : > { %v2754_v15 = vadd.f32 %v2753_v13, %v2752_v60  ;;  %v2761_v40 = vadd.f32 %v2760_v59, %v2759_v1  ;;  %v2739_v22 = vrot.slane %v2738_v24, 1  ;;  %v2789_v42 = vmul.f32 0.01, %v2749_v63 }
 0x2cb   : > { %v2704_v17 = vmul.f32 %v3481_v49, %v2608_v53  ;;  %v2703_v5 = vmul.f32 %v3480_v3, %v2607_v14  ;;  %v3414_v60 = vpack.c.bf16 %v2796_v52, %v2795_v47  ;;  %v3417_v51 = vpack.c.bf16 %v2982_v6, %v2981_v16 }
 0x2cc   : > { %v2755_v34 = vrot.slane %v2754_v15, 2  ;;  %v2762_v56 = vrot.slane %v2761_v40, 4  ;;  %v2740_v55 = vadd.f32 %v2739_v22, %v2738_v24  ;;  %v3420_v13 = vpack.c.bf16 %v2984_v57, %v2983_v18  ;;  %v3069_v22 = vpop.permute.xlu1 %3068 }
 0x2cd   : > { %v2769_v28 = vsel %vm6399_vm6, %v2704_v17, 0.0  ;;  %v2768_v20 = vsel %vm6400_vm4, %v2703_v5, 0.0  ;;  %v3246_v17 = vld [vmem:[%s5880_s18] ss:$0 sm:$0xff] }
 0x2ce   : > { %v2756_v29 = vadd.f32 %v2755_v34, %v2754_v15  ;;  %v2770_v11 = vadd.f32 %v2769_v28, %v2768_v20  ;;  %v2763_v39 = vadd.f32 %v2762_v56, %v2761_v40  ;;  %v2788_v21 = vmul.f32 0.01, %v2740_v55 }
 0x2d0   : > { %v2757_v58 = vrot.slane %v2756_v29, 1  ;;  %v2771_v46 = vrot.slane %v2770_v11, 4  ;;  %v2764_v36 = vrot.slane %v2763_v39, 2  ;;  %v2814_v31 = vsel %vm2813_vm8, %v2788_v21, %v2812_v48 }
 0x2d1   : > { %v2816_v0 = vsel %vm2815_vm7, %v2789_v42, %v2814_v31 }
 0x2d2   : > { %v2758_v53 = vadd.f32 %v2757_v58, %v2756_v29  ;;  %v2772_v50 = vadd.f32 %v2771_v46, %v2770_v11  ;;  %v2765_v38 = vadd.f32 %v2764_v36, %v2763_v39 }
 0x2d4   : > { %v2790_v54 = vmul.f32 0.01, %v2758_v53  ;;  %v2773_v26 = vrot.slane %v2772_v50, 2  ;;  %v2766_v2 = vrot.slane %v2765_v38, 1 }
 0x2d6   : > { %v2818_v30 = vsel %vm2817_vm14, %v2790_v54, %v2816_v0  ;;  %v2774_v62 = vadd.f32 %v2773_v26, %v2772_v50  ;;  %v2767_v4 = vadd.f32 %v2766_v2, %v2765_v38 }
 0x2d8   : > { %v2775_v14 = vrot.slane %v2774_v62, 1  ;;  %v2791_v23 = vmul.f32 0.01, %v2767_v4 }
 0x2da   : > { %v2776_v41 = vadd.f32 %v2775_v14, %v2774_v62  ;;  %v2820_v43 = vsel %vm2819_vm9, %v2791_v23, %v2818_v30 }
 0x2dc   : > { %v2792_v61 = vmul.f32 0.01, %v2776_v41 }
 0x2de   : > { %v2822_v7 = vsel %vm2821_vm5, %v2792_v61, %v2820_v43 }
 0x2df   : > { %3358 = vmatmul.mubr.msk.f32.vlgmr.msra.gmra.mrb[4].mxu1 %vm6401_vm10, %v2822_v7 }
 0x2e0   : > { %3412 = vmatpush3.bf16.msra.mxu1 %v3411_v10  ;;  %3368 = vmatprep.mubr.msk.f32.mxu1 %vm6402_vm2, %v6345_v44 }
 0x2e1   : > { %3413 = vmatprep.subr.bf16.mxu1 %v6384_v25 }
 0x2e4   : > { %3415 = vmatpush3.bf16.msra.mxu1 %v3414_v60 }
 0x2e5   : > { %3416 = vmatprep.subr.bf16.mxu1 %v6384_v25 }
 0x2e7   : > { %3369 = vmatmul.mubr.msk.f32.vlgmr.msra.gmra.mrb[6].mxu1 %vm6403_vm13, %v3620_v35 }
 0x2e8   : > { %3379 = vmatprep.mubr.msk.f32.mxu1 %vm6402_vm2, %v6345_v44  ;;  %3418 = vmatpush3.bf16.msra.mxu1 %v3417_v51 }
 0x2e9   : > { %3419 = vmatprep.subr.bf16.mxu1 %v6384_v25 }
 0x2ec   : > { %3421 = vmatpush3.bf16.msra.mxu1 %v3420_v13 }
 0x3b2   : > { %v2891_v44 = vpop.f32.mrb[4].mxu1 }
 0x3b3   : > { %v3359_v33 = vpop.f32.mrb[5].mxu1 }
 0x3ba   : > { %v2961_v32 = vpop.f32.mrb[6].mxu1 }
 0x3bb   : > { %v2962_v37 = vadd.f32 %v2961_v32, %v2891_v44  ;;  %v3370_v9 = vpop.f32.mrb[7].mxu1 }
 0x3bd   : > { %v2972_v49 = vadd.f32 %v3243_v27, %v2962_v37 }
 0x3bf   : > { %v3244_v45 = vclamps-f32 %v2972_v49, 30.0 }
 0x3c1   : > { %v2975_v15 = vsub.f32 0.0, %v3244_v45 }
 0x3c3   : > { %v2976_v59 = vmul.f32 1.442695, %v2975_v15 }
 0x3c5   : > { %3613 = vpow2.f32 %v2976_v59 }
 0x3cf   : > { %v3614_v3 = vpop.eup %3613 }
 0x3d0   : > { %v2978_v8 = vadd.f32 1.0, %v3614_v3 }
 0x3d2   : > { %3615 = vrcp.f32 %v2978_v8 }
 0x3dc   : > { %v3616_v25 = vpop.eup %3615 }
 0x3dd   : > { %v2980_v24 = vmul.f32 %v3616_v25, %v2972_v49 }
 0x3df   : > { %3380 = vmatmul.mubr.msk.f32.vlgmr.msra.gmra.mrb[8].mxu1 %vm6394_vm0, %v2980_v24 }
 0x4b2   : > { %v3054_v1 = vpop.f32.mrb[8].mxu1 }
 0x4b3   : > { %v3058_v34 = vadd.f32 %v3620_v35, %v3054_v1  ;;  %v3381_v40 = vpop.f32.mrb[9].mxu1 }
 0x4b5   : > { %v3066_v5 = vadd.f32 %v3246_v17, %v3058_v34 }
 0x4b7   : > { %v3071_v28 = vmul.f32 %v3069_v22, %v3066_v5 }
 0x4b9   : > { %3072 = vst.msk [vmem:[%s648_s26] sm:$0xff] %vm6404_vm15, %v3071_v28 }
 0x4ba PF: > { %s29_s0 = sadd.s32 1, %s3627_s0  }
 0x4bb   : > { %p26_p4 = scmp.ge.s32.totalorder %s29_s0, 4  }
 0x4bd   :  { %28 = sbr.rel (!%p26_p4) target bundleno = 5 (0x5), region = 135 }

</bundles_post_ra>
